<compile_context>
chip_gen: v5e
topology: v5e:2x2
jax: 0.10.0
libtpu: 0.0.40
codegen_flags: <defaults>
</compile_context>

<pallas_src>
import functools

import jax
import jax.numpy as jnp
from jax.experimental import pallas as pl
from jax.experimental.pallas import tpu as pltpu


def _round_up(x, m):
    return ((x + m - 1) // m) * m


def _cdiv(a, b):
    return -(-a // b)


def _num_tensorcores():
    """TensorCores addressed by one pallas_call ('parallel' megacore split).
    v5e/v6e: 1.  Megacore-style devices (v4/v5p/v7x): 2.  Defensive probing with
    a safe fallback of 1 (the split then just becomes a short outer loop)."""
    try:
        dev = jax.devices()[0]
        for attr in ("num_cores", "core_count", "num_tensorcores"):
            v = getattr(dev, attr, None)
            if isinstance(v, int) and 1 <= v <= 8:
                return min(v, 2)
        kind = str(getattr(dev, "device_kind", "")).lower()
        if any(t in kind for t in ("v4", "v5p", "v7")):
            return 2
    except Exception:
        pass
    return 1


def _vq_kernel(z_ref, wd_ref, we_ref, wwh_ref, zq_ref, idx_ref, counts_ref, sq_ref,
               counts_acc, sq_acc, *, n_valid, tiles_per_core, mask_rows):
    """One grid step: a (TM, e_dim) tile of flattened z against the full resident
    (n_e, e_dim) codebook -- bf16 distance matmul, argmin, one-hot re-embed, plus
    running per-core accumulators (counts / sum((zq-z)^2)) via small MXU matvecs."""
    c = pl.program_id(0)          # megacore split ("parallel")
    i = pl.program_id(1)          # row tile within this core ("arbitrary")

    @pl.when(i == 0)
    def _():
        counts_acc[...] = jnp.zeros_like(counts_acc)
        sq_acc[...] = jnp.zeros_like(sq_acc)

    z = z_ref[...]                                   # (TM, D), caller dtype
    w_e = we_ref[...]                                # (K, D),  caller dtype (re-embed)
    wwh = wwh_ref[...]                               # (1, K),  f32 = 0.5*||w||^2
    tm, _ = z.shape
    k = w_e.shape[0]

    # argmin_k ||z - w_k||^2 == argmin_k (0.5*||w_k||^2 - z.w_k): the row-constant
    # ||z||^2 is dropped and the factor 2 is folded into the hoisted norms.
    # Distance matmul in bf16 (f32 accumulation) -- argmin only, so precision is
    # decided below on the single f32 tensor `d`.
    zw = jnp.dot(z.astype(jnp.bfloat16), wd_ref[...].T,
                 preferred_element_type=jnp.float32)              # (TM, K) MXU
    d = wwh - zw                                                  # (TM, K) f32

    # first-occurrence argmin along the codebook axis (dmin and the equality use
    # the SAME f32 tensor d, so exactly one column matches per row).
    col = jax.lax.broadcasted_iota(jnp.int32, (tm, k), 1)
    dmin = jnp.min(d, axis=1, keepdims=True)
    idx = jnp.min(jnp.where(d == dmin, col, k), axis=1)           # (TM,)
    idx_ref[...] = idx.reshape(1, 1, tm).astype(jnp.int32)        # lane-dense store

    # one-hot re-embedding: z_q = onehot @ W  (caller dtype -> exact code rows)
    onehot = (col == idx[:, None]).astype(w_e.dtype)              # (TM, K)
    zq = jnp.dot(onehot, w_e, preferred_element_type=jnp.float32) # (TM, D)
    zq_ref[...] = zq.astype(zq_ref.dtype)

    # running per-core stats; padded rows of the last tile masked out.  The row
    # masking and the sublane reductions are fused into two small MXU matvecs
    # (the VPU/XLU slots are the binding units here, the MXU has slack).
    if mask_rows:
        row0 = (c * tiles_per_core + i) * tm
        rows = row0 + jax.lax.broadcasted_iota(jnp.int32, (1, tm), 1)
        valid = (rows < n_valid).astype(jnp.float32)              # (1, TM)
    else:
        valid = jnp.ones((1, tm), jnp.float32)
    counts_acc[...] += jnp.dot(valid.astype(onehot.dtype), onehot,
                               preferred_element_type=jnp.float32)      # (1, K)
    diff2 = (zq - z.astype(jnp.float32)) ** 2                           # (TM, D)
    sq_acc[...] += jnp.dot(valid, diff2, preferred_element_type=jnp.float32)  # (1, D)

    # write the per-core accumulators once, on this core's last row tile
    @pl.when(i == pl.num_programs(1) - 1)
    def _():
        counts_ref[...] = counts_acc[...].reshape(counts_ref.shape)
        sq_ref[...] = sq_acc[...].reshape(sq_ref.shape)


def vector_quantizer_forward(z, embedding_weight, beta, *, max_tile_rows=256):
    """Pallas implementation of VectorQuantizer.forward.

    Returns (loss, z_q, perplexity, min_encoding_indices) with the same
    forward-pass *values* as the PyTorch module (detach / straight-through only
    affects gradients).
    """
    n_e, e_dim = embedding_weight.shape
    orig_shape = z.shape
    z_flat = z.reshape(-1, e_dim)
    n = z_flat.shape[0]
    compute_dtype = z_flat.dtype
    itemsize = jnp.dtype(compute_dtype).itemsize

    # ---- grid / tile sizing -------------------------------------------------
    cores = _num_tensorcores()
    core_splits = cores if (cores > 1 and n >= 128) else 1
    per_core_rows = _round_up(_cdiv(n, core_splits), 8)

    def _working_set(tm_):
        # double-buffered z/zq tiles plus the (tm, n_e) f32 planes the compiler
        # materializes for d / iota / onehot (deliberately generous).
        return 4 * tm_ * e_dim * max(itemsize, 4) + 4 * tm_ * n_e * 4

    SINGLE_TILE_BUDGET = 8 * 1024 * 1024
    if _working_set(per_core_rows) <= SINGLE_TILE_BUDGET:
        tm = per_core_rows            # one tile per core: no pipeline priming,
        tiles_per_core = 1            # no manufactured padding tiles
    else:
        cap = max(8, min(_round_up(max_tile_rows, 8), per_core_rows))
        tiles_per_core = _cdiv(per_core_rows, cap)
        tm = _round_up(_cdiv(per_core_rows, tiles_per_core), 8)   # minimal padding

    # prefer a lane-aligned tile (unmasked lane-dense idx stores) when the extra
    # padded rows are cheap (<= ~25% of the tile)
    if tm >= 128 and _round_up(tm, 128) <= tm + tm // 4:
        tm = _round_up(tm, 128)

    tiles_total = core_splits * tiles_per_core
    n_pad = tiles_total * tm
    if n_pad != n:
        z_flat = jnp.pad(z_flat, ((0, n_pad - n), (0, 0)))
    mask_rows = (n_pad != n)

    # ---- codebook-only precompute (independent of z) ------------------------
    w_embed = embedding_weight.astype(compute_dtype)       # re-embed: exact codes
    w_dist = embedding_weight.astype(jnp.bfloat16)         # distance matmul
    w_f32 = embedding_weight.astype(jnp.float32)

    ww = jnp.sum(w_f32 * w_f32, axis=1)[None, :]                        # (1, K)
    ww_half = (0.5 * ww).astype(jnp.float32)
    gram = jnp.dot(w_f32, w_f32.T, precision=jax.lax.Precision.HIGHEST)
    e_d = jnp.sqrt(jnp.maximum(ww + ww.T - 2.0 * gram, 0.0))            # (K, K)
    e_loss = jnp.exp(-jnp.mean(jnp.tril(e_d)) / 0.1)

    # ---- VMEM budget from actual buffer sizes (not a flat 48 MiB) -----------
    dbl = 2  # pipeline double-buffering
    bytes_in = dbl * (tm * e_dim * itemsize                 # z tile
                      + n_e * e_dim * (2 + itemsize)        # bf16 + embed codebooks
                      + 8 * n_e * 4)                        # 0.5*||w||^2 (padded)
    bytes_out = dbl * (tm * e_dim * itemsize                # z_q tile
                       + 8 * tm * 4                         # idx block (padded)
                       + 8 * (n_e + e_dim) * 4)             # counts / sq blocks
    bytes_scr = 8 * (n_e + e_dim) * 4
    bytes_tmp = 6 * tm * n_e * 4 + 4 * tm * e_dim * 4       # in-kernel f32 planes
    vmem_limit = int(min(max(bytes_in + bytes_out + bytes_scr + bytes_tmp
                             + (4 << 20), 16 << 20), 64 << 20))

    kernel = functools.partial(
        _vq_kernel, n_valid=n, tiles_per_core=tiles_per_core, mask_rows=mask_rows)

    out_shapes = (
        jax.ShapeDtypeStruct((n_pad, e_dim), compute_dtype),        # z_q (flattened)
        jax.ShapeDtypeStruct((tiles_total, 1, tm), jnp.int32),      # indices (lane-dense)
        jax.ShapeDtypeStruct((core_splits, 1, n_e), jnp.float32),   # per-core counts
        jax.ShapeDtypeStruct((core_splits, 1, e_dim), jnp.float32), # per-core sum (zq-z)^2
    )

    zq_flat, idx_tiles, counts, sq_part = pl.pallas_call(
        kernel,
        out_shape=out_shapes,
        grid_spec=pltpu.PrefetchScalarGridSpec(
            num_scalar_prefetch=0,
            grid=(core_splits, tiles_per_core),
            in_specs=[
                pl.BlockSpec((tm, e_dim), lambda c, i: (c * tiles_per_core + i, 0)),
                pl.BlockSpec((n_e, e_dim), lambda c, i: (0, 0)),    # resident bf16 codebook
                pl.BlockSpec((n_e, e_dim), lambda c, i: (0, 0)),    # resident codebook
                pl.BlockSpec((1, n_e), lambda c, i: (0, 0)),        # resident 0.5*||w||^2
            ],
            out_specs=[
                pl.BlockSpec((tm, e_dim), lambda c, i: (c * tiles_per_core + i, 0)),
                pl.BlockSpec((1, 1, tm), lambda c, i: (c * tiles_per_core + i, 0, 0)),
                pl.BlockSpec((1, 1, n_e), lambda c, i: (c, 0, 0)),
                pl.BlockSpec((1, 1, e_dim), lambda c, i: (c, 0, 0)),
            ],
            scratch_shapes=[
                pltpu.VMEM((1, n_e), jnp.float32),    # per-core one-hot counts
                pltpu.VMEM((1, e_dim), jnp.float32),  # per-core sum((zq-z)^2), per lane
            ],
        ),
        compiler_params=pltpu.CompilerParams(
            dimension_semantics=("parallel", "arbitrary"),
            vmem_limit_bytes=vmem_limit,
        ),
    )(z_flat, w_dist, w_embed, ww_half)

    mse = jnp.sum(sq_part) / jnp.float32(n * e_dim)
    # mean((zq.detach()-z)^2) + beta*mean((zq-z.detach())^2) == (1+beta)*mse in value
    loss = (1.0 + beta) * mse + e_loss

    e_mean = jnp.sum(counts, axis=(0, 1)) / jnp.float32(n)
    perplexity = jnp.exp(-jnp.sum(e_mean * jnp.log(e_mean + 1e-10)))

    z_q = zq_flat[:n].astype(z.dtype).reshape(orig_shape)   # z + (z_q-z).detach() == z_q
    min_encoding_indices = idx_tiles.reshape(-1)[:n].reshape(orig_shape[:-1])
    return loss, z_q, perplexity, min_encoding_indices


def _reference_forward(z, w, beta):
    """Pure-JAX reference mirroring the PyTorch forward.  Also returns the
    per-row gap between best and 2nd-best distance, used to excuse float
    near-ties when comparing argmin indices."""
    hp = jax.lax.Precision.HIGHEST
    zf = z.reshape(-1, w.shape[1]).astype(jnp.float32)
    wf = w.astype(jnp.float32)
    d = (jnp.sum(zf ** 2, axis=1, keepdims=True) + jnp.sum(wf ** 2, axis=1)
         - 2.0 * jnp.matmul(zf, wf.T, precision=hp))
    e_d = jnp.linalg.norm(wf[:, None] - wf[None, :], axis=2)
    e_loss = jnp.exp(-jnp.mean(jnp.tril(e_d)) / 0.1)
    idx = jnp.argmin(d, axis=1)
    onehot = jax.nn.one_hot(idx, wf.shape[0], dtype=jnp.float32)
    zq = (onehot @ wf).reshape(z.shape)
    loss = (1.0 + beta) * jnp.mean((zq - z) ** 2) + e_loss
    e_mean = jnp.mean(onehot, axis=0)
    perp = jnp.exp(-jnp.sum(e_mean * jnp.log(e_mean + 1e-10)))
    top2 = jax.lax.top_k(-d, 2)[0]
    gap = top2[:, 0] - top2[:, 1]            # d_2nd_min - d_min >= 0
    return loss, zq, perp, idx, e_loss, gap


if __name__ == "__main__":
    n_e, e_dim, beta = 64, 32, 0.25
    batch, channels, num_subseq = 2, 4, 72     # N = 576 flattened rows

    key = jax.random.PRNGKey(0)
    k_emb, k_z = jax.random.split(key)
    # nn.Embedding(n_e, e_dim).weight.data.uniform_(-1/n_e, 1/n_e)
    embedding_weight = jax.random.uniform(
        k_emb, (n_e, e_dim), dtype=jnp.float32,
        minval=-1.0 / n_e, maxval=1.0 / n_e)
    z = jax.random.normal(
        k_z, (batch, channels, num_subseq, e_dim), dtype=jnp.float32)

    fwd = jax.jit(functools.partial(vector_quantizer_forward, beta=beta))
    loss, z_q, perplexity, indices = fwd(z, embedding_weight)
    jax.block_until_ready((loss, z_q, perplexity, indices))

    # ---- correctness checks against a pure-JAX reference -------------------
    r_loss, r_zq, r_perp, r_idx, r_eloss, gap = _reference_forward(
        z, embedding_weight, beta)

    idx_flat = indices.reshape(-1)
    # Excuse argmin flips only for genuinely near-tied rows.  1e-2 (in the
    # reference-distance scale) safely covers the bf16 distance-matmul rounding
    # while remaining far below the typical best-vs-2nd-best gap (~4e-2).
    near_tie = gap < 1e-2
    assert bool(jnp.all((idx_flat == r_idx) | near_tie)), "argmin indices mismatch"

    # quantized rows must be (numerically) the selected codebook entries
    zq_rows = z_q.reshape(-1, e_dim)
    assert bool(jnp.allclose(zq_rows, embedding_weight[idx_flat],
                             rtol=1e-5, atol=1e-6)), "z_q rows != selected codes"

    # tight check of the in-kernel accumulators (recomputed from kernel indices)
    zf = z.reshape(-1, e_dim)
    mse_k = jnp.mean((embedding_weight[idx_flat] - zf) ** 2)
    loss_k = (1.0 + beta) * mse_k + r_eloss
    cnt = jnp.zeros((n_e,), jnp.float32).at[idx_flat].add(1.0) / idx_flat.shape[0]
    perp_k = jnp.exp(-jnp.sum(cnt * jnp.log(cnt + 1e-10)))
    assert bool(jnp.allclose(loss, loss_k, rtol=5e-4, atol=5e-4)), "loss mismatch"
    assert bool(jnp.allclose(perplexity, perp_k, rtol=1e-4, atol=1e-4)), "perplexity mismatch"

    # looser sanity check against the fully faithful reference values
    assert bool(jnp.allclose(loss, r_loss, rtol=5e-3, atol=5e-3))
    assert bool(jnp.allclose(perplexity, r_perp, rtol=5e-2))

    print("KERNEL_OK")
</pallas_src>

<mosaic_0001>
module attributes {stable_mosaic.version = 11 : i64} {
  func.func @_vq_kernel(%arg0: i32, %arg1: i32, %arg2: memref<640x32xf32, #tpu.memory_space<vmem>>, %arg3: memref<64x32xbf16, #tpu.memory_space<vmem>>, %arg4: memref<64x32xf32, #tpu.memory_space<vmem>>, %arg5: memref<1x64xf32, #tpu.memory_space<vmem>>, %arg6: memref<640x32xf32, #tpu.memory_space<vmem>>, %arg7: memref<1x1x640xi32, #tpu.memory_space<vmem>>, %arg8: memref<1x1x64xf32, #tpu.memory_space<vmem>>, %arg9: memref<1x1x32xf32, #tpu.memory_space<vmem>>, %arg10: memref<1x64xf32, #tpu.memory_space<vmem>>, %arg11: memref<1x32xf32, #tpu.memory_space<vmem>>) attributes {dimension_semantics = [#tpu.dimension_semantics<parallel>, #tpu.dimension_semantics<arbitrary>], iteration_bounds = array<i64: 1, 1>, scalar_prefetch = 0 : i64, scratch_operands = 2 : i64, tpu.core_type = #tpu.core_type<tc>, window_params = [{transform_indices = @transform_0, window_bounds = array<i64: 640, 32>}, {pipeline_mode = #tpu.pipeline_mode<synchronous>, transform_indices = @transform_1, window_bounds = array<i64: 64, 32>}, {pipeline_mode = #tpu.pipeline_mode<synchronous>, transform_indices = @transform_2, window_bounds = array<i64: 64, 32>}, {pipeline_mode = #tpu.pipeline_mode<synchronous>, transform_indices = @transform_3, window_bounds = array<i64: 1, 64>}, {transform_indices = @transform_4, window_bounds = array<i64: 640, 32>}, {transform_indices = @transform_5, window_bounds = array<i64: 1, 1, 640>}, {transform_indices = @transform_6, window_bounds = array<i64: 1, 1, 64>}, {transform_indices = @transform_7, window_bounds = array<i64: 1, 1, 32>}]} {
    %c0_i32 = arith.constant 0 : i32
    %0 = arith.cmpi eq, %arg1, %c0_i32 : i32
    %1 = arith.extui %0 : i1 to i32
    %c0_i32_0 = arith.constant 0 : i32
    %2 = arith.cmpi ne, %1, %c0_i32_0 : i32
    scf.if %2 {
      %cst_28 = arith.constant 0.000000e+00 : f32
      %52 = vector.broadcast %cst_28 : f32 to vector<1x64xf32>
      %c0_29 = arith.constant 0 : index
      %c0_30 = arith.constant 0 : index
      %53 = vector.load %arg10[%c0_29, %c0_30] : memref<1x64xf32, #tpu.memory_space<vmem>>, vector<1x64xf32>
      tpu.vector_store %arg10[%c0_29, %c0_30], %52 {strides = array<i32>} : memref<1x64xf32, #tpu.memory_space<vmem>>, vector<1x64xf32>,
      %cst_31 = arith.constant 0.000000e+00 : f32
      %54 = vector.broadcast %cst_31 : f32 to vector<1x32xf32>
      %c0_32 = arith.constant 0 : index
      %c0_33 = arith.constant 0 : index
      %55 = vector.load %arg11[%c0_32, %c0_33] : memref<1x32xf32, #tpu.memory_space<vmem>>, vector<1x32xf32>
      tpu.vector_store %arg11[%c0_32, %c0_33], %54 {strides = array<i32>} : memref<1x32xf32, #tpu.memory_space<vmem>>, vector<1x32xf32>,
    } else {
    }
    %c0 = arith.constant 0 : index
    %c0_1 = arith.constant 0 : index
    %3 = vector.load %arg2[%c0, %c0_1] : memref<640x32xf32, #tpu.memory_space<vmem>>, vector<640x32xf32>
    %c0_2 = arith.constant 0 : index
    %c0_3 = arith.constant 0 : index
    %4 = vector.load %arg4[%c0_2, %c0_3] : memref<64x32xf32, #tpu.memory_space<vmem>>, vector<64x32xf32>
    %c0_4 = arith.constant 0 : index
    %c0_5 = arith.constant 0 : index
    %5 = vector.load %arg5[%c0_4, %c0_5] : memref<1x64xf32, #tpu.memory_space<vmem>>, vector<1x64xf32>
    %6 = arith.truncf %3 : vector<640x32xf32> to vector<640x32xbf16>
    %c0_6 = arith.constant 0 : index
    %c0_7 = arith.constant 0 : index
    %7 = vector.load %arg3[%c0_6, %c0_7] : memref<64x32xbf16, #tpu.memory_space<vmem>>, vector<64x32xbf16>
    %8 = tpu.transpose %7, [1, 0] : vector<64x32xbf16> -> vector<32x64xbf16>
    %cst = arith.constant dense<0.000000e+00> : vector<640x64xf32>
    %9 = tpu.matmul %6, %8, %cst {dimension_numbers = #tpu.dot_dimension_numbers<[1], [0], [0], [1], [0, 0, 1, 1], [], []>} : vector<640x32xbf16>, vector<32x64xbf16>, vector<640x64xf32> -> vector<640x64xf32>
    %10 = vector.broadcast %5 : vector<1x64xf32> to vector<640x64xf32>
    %11 = arith.subf %10, %9 : vector<640x64xf32>
    %12 = tpu.iota {dimensions = array<i32: 1>} : vector<640x64xi32>
    %cst_8 = arith.constant dense<0x7F800000> : vector<640xf32>
    %13 = vector.multi_reduction <minimumf>, %11, %cst_8 [1] : vector<640x64xf32> to vector<640xf32>
    %14 = vector.shape_cast %13 : vector<640xf32> to vector<640x1xf32>
    %15 = vector.broadcast %14 : vector<640x1xf32> to vector<640x64xf32>
    %16 = arith.cmpf oeq, %11, %15 : vector<640x64xf32>
    %c64_i32 = arith.constant 64 : i32
    %17 = vector.broadcast %c64_i32 : i32 to vector<640x64xi32>
    %18 = arith.select %16, %12, %17 : vector<640x64xi1>, vector<640x64xi32>
    %cst_9 = arith.constant dense<2147483647> : vector<640xi32>
    %19 = vector.multi_reduction <minsi>, %18, %cst_9 [1] : vector<640x64xi32> to vector<640xi32>
    %20 = vector.shape_cast %19 : vector<640xi32> to vector<1x1x640xi32>
    %c0_10 = arith.constant 0 : index
    %c0_11 = arith.constant 0 : index
    %c0_12 = arith.constant 0 : index
    %21 = vector.load %arg7[%c0_10, %c0_11, %c0_12] : memref<1x1x640xi32, #tpu.memory_space<vmem>>, vector<1x1x640xi32>
    tpu.vector_store %arg7[%c0_10, %c0_11, %c0_12], %20 {strides = array<i32>} : memref<1x1x640xi32, #tpu.memory_space<vmem>>, vector<1x1x640xi32>,
    %22 = vector.shape_cast %19 : vector<640xi32> to vector<640x1xi32>
    %23 = vector.broadcast %22 : vector<640x1xi32> to vector<640x64xi32>
    %24 = arith.cmpi eq, %12, %23 : vector<640x64xi32>
    %25 = arith.extui %24 : vector<640x64xi1> to vector<640x64xi32>
    %26 = arith.sitofp %25 : vector<640x64xi32> to vector<640x64xf32>
    %cst_13 = arith.constant dense<0.000000e+00> : vector<640x32xf32>
    %27 = tpu.matmul %26, %4, %cst_13 {dimension_numbers = #tpu.dot_dimension_numbers<[1], [0], [0], [1], [0, 0, 1, 1], [], []>} : vector<640x64xf32>, vector<64x32xf32>, vector<640x32xf32> -> vector<640x32xf32>
    %c0_14 = arith.constant 0 : index
    %c0_15 = arith.constant 0 : index
    %28 = vector.load %arg6[%c0_14, %c0_15] : memref<640x32xf32, #tpu.memory_space<vmem>>, vector<640x32xf32>
    tpu.vector_store %arg6[%c0_14, %c0_15], %27 {strides = array<i32>} : memref<640x32xf32, #tpu.memory_space<vmem>>, vector<640x32xf32>,
    %c1_i32 = arith.constant 1 : i32
    %29 = arith.muli %arg0, %c1_i32 : i32
    %30 = arith.addi %29, %arg1 : i32
    %c640_i32 = arith.constant 640 : i32
    %31 = arith.muli %30, %c640_i32 : i32
    %32 = tpu.iota {dimensions = array<i32: 1>} : vector<1x640xi32>
    %33 = vector.broadcast %31 : i32 to vector<1x640xi32>
    %34 = arith.addi %33, %32 : vector<1x640xi32>
    %c576_i32 = arith.constant 576 : i32
    %35 = vector.broadcast %c576_i32 : i32 to vector<1x640xi32>
    %36 = arith.cmpi slt, %34, %35 : vector<1x640xi32>
    %37 = arith.extui %36 : vector<1x640xi1> to vector<1x640xi32>
    %38 = arith.sitofp %37 : vector<1x640xi32> to vector<1x640xf32>
    %c0_16 = arith.constant 0 : index
    %c0_17 = arith.constant 0 : index
    %39 = vector.load %arg10[%c0_16, %c0_17] : memref<1x64xf32, #tpu.memory_space<vmem>>, vector<1x64xf32>
    %cst_18 = arith.constant dense<0.000000e+00> : vector<1x64xf32>
    %40 = tpu.matmul %38, %26, %cst_18 {dimension_numbers = #tpu.dot_dimension_numbers<[1], [0], [0], [1], [0, 0, 1, 1], [], []>} : vector<1x640xf32>, vector<640x64xf32>, vector<1x64xf32> -> vector<1x64xf32>
    %41 = arith.addf %39, %40 : vector<1x64xf32>
    %c0_19 = arith.constant 0 : index
    %c0_20 = arith.constant 0 : index
    %42 = vector.load %arg10[%c0_19, %c0_20] : memref<1x64xf32, #tpu.memory_space<vmem>>, vector<1x64xf32>
    tpu.vector_store %arg10[%c0_19, %c0_20], %41 {strides = array<i32>} : memref<1x64xf32, #tpu.memory_space<vmem>>, vector<1x64xf32>,
    %43 = arith.subf %27, %3 : vector<640x32xf32>
    %44 = arith.mulf %43, %43 : vector<640x32xf32>
    %c0_21 = arith.constant 0 : index
    %c0_22 = arith.constant 0 : index
    %45 = vector.load %arg11[%c0_21, %c0_22] : memref<1x32xf32, #tpu.memory_space<vmem>>, vector<1x32xf32>
    %cst_23 = arith.constant dense<0.000000e+00> : vector<1x32xf32>
    %46 = tpu.matmul %38, %44, %cst_23 {dimension_numbers = #tpu.dot_dimension_numbers<[1], [0], [0], [1], [0, 0, 1, 1], [], []>} : vector<1x640xf32>, vector<640x32xf32>, vector<1x32xf32> -> vector<1x32xf32>
    %47 = arith.addf %45, %46 : vector<1x32xf32>
    %c0_24 = arith.constant 0 : index
    %c0_25 = arith.constant 0 : index
    %48 = vector.load %arg11[%c0_24, %c0_25] : memref<1x32xf32, #tpu.memory_space<vmem>>, vector<1x32xf32>
    tpu.vector_store %arg11[%c0_24, %c0_25], %47 {strides = array<i32>} : memref<1x32xf32, #tpu.memory_space<vmem>>, vector<1x32xf32>,
    %c0_i32_26 = arith.constant 0 : i32
    %49 = arith.cmpi eq, %arg1, %c0_i32_26 : i32
    %50 = arith.extui %49 : i1 to i32
    %c0_i32_27 = arith.constant 0 : i32
    %51 = arith.cmpi ne, %50, %c0_i32_27 : i32
    scf.if %51 {
      %c0_28 = arith.constant 0 : index
      %c0_29 = arith.constant 0 : index
      %52 = vector.load %arg10[%c0_28, %c0_29] : memref<1x64xf32, #tpu.memory_space<vmem>>, vector<1x64xf32>
      %53 = vector.shape_cast %52 : vector<1x64xf32> to vector<1x1x64xf32>
      %c0_30 = arith.constant 0 : index
      %c0_31 = arith.constant 0 : index
      %c0_32 = arith.constant 0 : index
      %54 = vector.load %arg8[%c0_30, %c0_31, %c0_32] : memref<1x1x64xf32, #tpu.memory_space<vmem>>, vector<1x1x64xf32>
      tpu.vector_store %arg8[%c0_30, %c0_31, %c0_32], %53 {strides = array<i32>} : memref<1x1x64xf32, #tpu.memory_space<vmem>>, vector<1x1x64xf32>,
      %c0_33 = arith.constant 0 : index
      %c0_34 = arith.constant 0 : index
      %55 = vector.load %arg11[%c0_33, %c0_34] : memref<1x32xf32, #tpu.memory_space<vmem>>, vector<1x32xf32>
      %56 = vector.shape_cast %55 : vector<1x32xf32> to vector<1x1x32xf32>
      %c0_35 = arith.constant 0 : index
      %c0_36 = arith.constant 0 : index
      %c0_37 = arith.constant 0 : index
      %57 = vector.load %arg9[%c0_35, %c0_36, %c0_37] : memref<1x1x32xf32, #tpu.memory_space<vmem>>, vector<1x1x32xf32>
      tpu.vector_store %arg9[%c0_35, %c0_36, %c0_37], %56 {strides = array<i32>} : memref<1x1x32xf32, #tpu.memory_space<vmem>>, vector<1x1x32xf32>,
    } else {
    }
    return
  }
  func.func @transform_0(%arg0: i32, %arg1: i32) -> (i32, i32) {
    %c1_i32 = arith.constant 1 : i32
    %0 = arith.muli %arg0, %c1_i32 : i32
    %1 = arith.addi %0, %arg1 : i32
    %c0_i32 = arith.constant 0 : i32
    %c0_i32_0 = arith.constant 0 : i32
    return %1, %c0_i32 : i32, i32
  }
  func.func @transform_1(%arg0: i32, %arg1: i32) -> (i32, i32) {
    %c0_i32 = arith.constant 0 : i32
    %c0_i32_0 = arith.constant 0 : i32
    %c0_i32_1 = arith.constant 0 : i32
    return %c0_i32, %c0_i32_0 : i32, i32
  }
  func.func @transform_2(%arg0: i32, %arg1: i32) -> (i32, i32) {
    %c0_i32 = arith.constant 0 : i32
    %c0_i32_0 = arith.constant 0 : i32
    %c0_i32_1 = arith.constant 0 : i32
    return %c0_i32, %c0_i32_0 : i32, i32
  }
  func.func @transform_3(%arg0: i32, %arg1: i32) -> (i32, i32) {
    %c0_i32 = arith.constant 0 : i32
    %c0_i32_0 = arith.constant 0 : i32
    %c0_i32_1 = arith.constant 0 : i32
    return %c0_i32, %c0_i32_0 : i32, i32
  }
  func.func @transform_4(%arg0: i32, %arg1: i32) -> (i32, i32) {
    %c1_i32 = arith.constant 1 : i32
    %0 = arith.muli %arg0, %c1_i32 : i32
    %1 = arith.addi %0, %arg1 : i32
    %c0_i32 = arith.constant 0 : i32
    %c0_i32_0 = arith.constant 0 : i32
    return %1, %c0_i32 : i32, i32
  }
  func.func @transform_5(%arg0: i32, %arg1: i32) -> (i32, i32, i32) {
    %c1_i32 = arith.constant 1 : i32
    %0 = arith.muli %arg0, %c1_i32 : i32
    %1 = arith.addi %0, %arg1 : i32
    %c0_i32 = arith.constant 0 : i32
    %c0_i32_0 = arith.constant 0 : i32
    %c0_i32_1 = arith.constant 0 : i32
    return %1, %c0_i32, %c0_i32_0 : i32, i32, i32
  }
  func.func @transform_6(%arg0: i32, %arg1: i32) -> (i32, i32, i32) {
    %c0_i32 = arith.constant 0 : i32
    %c0_i32_0 = arith.constant 0 : i32
    %c0_i32_1 = arith.constant 0 : i32
    return %arg0, %c0_i32, %c0_i32_0 : i32, i32, i32
  }
  func.func @transform_7(%arg0: i32, %arg1: i32) -> (i32, i32, i32) {
    %c0_i32 = arith.constant 0 : i32
    %c0_i32_0 = arith.constant 0 : i32
    %c0_i32_1 = arith.constant 0 : i32
    return %arg0, %c0_i32, %c0_i32_0 : i32, i32, i32
  }
}

</mosaic_0001>

<bundles_post_ra>
// kernel: vector_quantizer_forward.1
= control target key start
LH: loop header
LB: loop body
LE: loop exit
PB: predicated region body
PF: predicated region fallthrough
CT: control target
= control target key end

     0   :  { %vm11215_vm0 = vcmask 261120   ;;  %vm661_vm1 = vcmask 523264   ;;  %s10935_s1 = inlined_call_operand.vmem [shape: bf16[64,32], index: 1, kind: input, shape index: {}]   ;;  %s10936_s3 = inlined_call_operand.vmem [shape: f32[1,64], index: 3, kind: input, shape index: {}]   ;;  %s10937_s0 = inlined_call_operand.vmem [shape: f32[640,32], index: 0, kind: input, shape index: {}]   ;;  %s10938_s2 = inlined_call_operand.vmem [shape: f32[64,32], index: 2, kind: input, shape index: {}]   ;;  %s10939_s4 = inlined_call_operand.vmem [shape: f32[640,32], index: 4, kind: output, shape index: {0}]   ;;  %s10940_s6 = inlined_call_operand.vmem [shape: f32[1,1,64], index: 6, kind: output, shape index: {2}]   ;;  %s10941_s7 = inlined_call_operand.vmem [shape: f32[1,1,32], index: 7, kind: output, shape index: {3}]   ;;  %s10942_s5 = inlined_call_operand.vmem [shape: s32[1,1,640], index: 5, kind: output, shape index: {1}]  }
   0x1   :  { %v5655_v0 = vld [vmem:[%s10935_s1 + $0x18] sm:$0xff]  ;;  %v5654_v2 = vld [vmem:[%s10935_s1 + $0x10] sm:$0xff]  ;;  %v5653_v4 = vld [vmem:[%s10935_s1 + $0x8] sm:$0xff] }
   0x2   :  { %v365_v1 = vsel %vm11215_vm0, %v5655_v0, 0  ;;  %v362_v3 = vsel %vm11215_vm0, %v5654_v2, 0  ;;  %v359_v5 = vsel %vm11215_vm0, %v5653_v4, 0  ;;  %v5652_v6 = vld [vmem:[%s10935_s1] sm:$0xff]  ;;  %v78_v9 = vld [vmem:[%s10937_s0 + $0x8] sm:$0xff]  ;;  %v79_v14 = vld [vmem:[%s10937_s0 + $0x10] sm:$0xff] }
   0x3   :  { %371 = vmatpush.bf16.xpose.msra.mxu0 %v365_v1  ;;  %5656 = vmatpush.bf16.xpose.msra.mxu2 %v365_v1  ;;  %v356_v7 = vsel %vm11215_vm0, %v5652_v6, 0  ;;  %v77_v8 = vld [vmem:[%s10937_s0] sm:$0xff]  ;;  %v126_v11 = vld [vmem:[%s10937_s0 + $0x188] sm:$0xff]  ;;  %v80_v15 = vld [vmem:[%s10937_s0 + $0x18] sm:$0xff] }
   0x4   :  { %v125_v10 = vld [vmem:[%s10937_s0 + $0x180] sm:$0xff]  ;;  %v166_v12 = vpack.c.bf16 %v78_v9, %v77_v8  ;;  %v127_v16 = vld [vmem:[%s10937_s0 + $0x190] sm:$0xff]  ;;  %v128_v17 = vld [vmem:[%s10937_s0 + $0x198] sm:$0xff]  ;;  %v167_v18 = vpack.c.bf16 %v80_v15, %v79_v14 }
   0x5   :  { %v190_v13 = vpack.c.bf16 %v126_v11, %v125_v10  ;;  %v191_v19 = vpack.c.bf16 %v128_v17, %v127_v16  ;;  %v81_v20 = vld [vmem:[%s10937_s0 + $0x20] sm:$0xff]  ;;  %v82_v21 = vld [vmem:[%s10937_s0 + $0x28] sm:$0xff]  ;;  %v83_v26 = vld [vmem:[%s10937_s0 + $0x30] sm:$0xff] }
   0x6   :  { %v129_v22 = vld [vmem:[%s10937_s0 + $0x1a0] sm:$0xff]  ;;  %v130_v23 = vld [vmem:[%s10937_s0 + $0x1a8] sm:$0xff]  ;;  %v168_v24 = vpack.c.bf16 %v82_v21, %v81_v20  ;;  %v84_v27 = vld [vmem:[%s10937_s0 + $0x38] sm:$0xff] }
   0x7   :  { %v192_v25 = vpack.c.bf16 %v130_v23, %v129_v22  ;;  %v131_v28 = vld [vmem:[%s10937_s0 + $0x1b0] sm:$0xff]  ;;  %v132_v29 = vld [vmem:[%s10937_s0 + $0x1b8] sm:$0xff]  ;;  %v169_v30 = vpack.c.bf16 %v84_v27, %v83_v26  ;;  %v85_v32 = vld [vmem:[%s10937_s0 + $0x40] sm:$0xff] }
   0x8   :  { %v193_v31 = vpack.c.bf16 %v132_v29, %v131_v28  ;;  %v86_v33 = vld [vmem:[%s10937_s0 + $0x48] sm:$0xff]  ;;  %v133_v34 = vld [vmem:[%s10937_s0 + $0x1c0] sm:$0xff]  ;;  %v87_v38 = vld [vmem:[%s10937_s0 + $0x50] sm:$0xff] }
   0x9   :  { %v134_v35 = vld [vmem:[%s10937_s0 + $0x1c8] sm:$0xff]  ;;  %v170_v36 = vpack.c.bf16 %v86_v33, %v85_v32  ;;  %v88_v39 = vld [vmem:[%s10937_s0 + $0x58] sm:$0xff]  ;;  %v135_v40 = vld [vmem:[%s10937_s0 + $0x1d0] sm:$0xff] }
   0xa   :  { %v194_v37 = vpack.c.bf16 %v134_v35, %v133_v34  ;;  %v136_v41 = vld [vmem:[%s10937_s0 + $0x1d8] sm:$0xff]  ;;  %v171_v42 = vpack.c.bf16 %v88_v39, %v87_v38  ;;  %v89_v44 = vld [vmem:[%s10937_s0 + $0x60] sm:$0xff]  ;;  %v90_v45 = vld [vmem:[%s10937_s0 + $0x68] sm:$0xff] }
   0xb   :  { %372 = vmatpush.bf16.xpose.msra.mxu0 %v362_v3  ;;  %5657 = vmatpush.bf16.xpose.msra.mxu2 %v362_v3  ;;  %v195_v43 = vpack.c.bf16 %v136_v41, %v135_v40  ;;  %v137_v46 = vld [vmem:[%s10937_s0 + $0x1e0] sm:$0xff]  ;;  %v138_v47 = vld [vmem:[%s10937_s0 + $0x1e8] sm:$0xff]  ;;  %v172_v48 = vpack.c.bf16 %v90_v45, %v89_v44  ;;  %v91_v50 = vld [vmem:[%s10937_s0 + $0x70] sm:$0xff] }
   0xc   :  { %v196_v49 = vpack.c.bf16 %v138_v47, %v137_v46  ;;  %v92_v51 = vld [vmem:[%s10937_s0 + $0x78] sm:$0xff]  ;;  %v139_v52 = vld [vmem:[%s10937_s0 + $0x1f0] sm:$0xff]  ;;  %v93_v56 = vld [vmem:[%s10937_s0 + $0x80] sm:$0xff] }
   0xd   :  { %v140_v53 = vld [vmem:[%s10937_s0 + $0x1f8] sm:$0xff]  ;;  %v173_v54 = vpack.c.bf16 %v92_v51, %v91_v50  ;;  %v94_v57 = vld [vmem:[%s10937_s0 + $0x88] sm:$0xff]  ;;  %v141_v58 = vld [vmem:[%s10937_s0 + $0x200] sm:$0xff] }
   0xe   :  { %v197_v55 = vpack.c.bf16 %v140_v53, %v139_v52  ;;  %v142_v59 = vld [vmem:[%s10937_s0 + $0x208] sm:$0xff]  ;;  %v5943_v60 = vld [vmem:[%s10936_s3] ss:$0 sm:$0xff]  ;;  %v174_v61 = vpack.c.bf16 %v94_v57, %v93_v56  ;;  %v95_v6 = vld [vmem:[%s10937_s0 + $0x90] sm:$0xff] }
   0xf   :  { %v198_v62 = vpack.c.bf16 %v142_v59, %v141_v58  ;;  %v143_v8 = vld [vmem:[%s10937_s0 + $0x210] sm:$0xff]  ;;  %v144_v9 = vld [vmem:[%s10937_s0 + $0x218] sm:$0xff]  ;;  %v145_v26 = vld [vmem:[%s10937_s0 + $0x220] sm:$0xff] }
  0x10   :  { %v199_v14 = vpack.c.bf16 %v144_v9, %v143_v8  ;;  %v146_v27 = vld [vmem:[%s10937_s0 + $0x228] sm:$0xff]  ;;  %v99_v44 = vld [vmem:[%s10937_s0 + $0xb0] sm:$0xff]  ;;  %v100_v45 = vld [vmem:[%s10937_s0 + $0xb8] sm:$0xff] }
  0x11   :  { %v200_v32 = vpack.c.bf16 %v146_v27, %v145_v26  ;;  %v147_v46 = vld [vmem:[%s10937_s0 + $0x230] sm:$0xff]  ;;  %v148_v47 = vld [vmem:[%s10937_s0 + $0x238] sm:$0xff]  ;;  %v177_v50 = vpack.c.bf16 %v100_v45, %v99_v44 }
  0x12   :  { %v201_v51 = vpack.c.bf16 %v148_v47, %v147_v46  ;;  %v152_v26 = vld [vmem:[%s10937_s0 + $0x258] sm:$0xff] }
  0x13   :  { %373 = vmatpush.bf16.xpose.msra.mxu0 %v359_v5  ;;  %5658 = vmatpush.bf16.xpose.msra.mxu2 %v359_v5 }
  0x1b   :  { %374 = vmatpush.bf16.xpose.msra.mxu0 %v356_v7  ;;  %5659 = vmatpush.bf16.xpose.msra.mxu2 %v356_v7  ;;  %v96_v7 = vld [vmem:[%s10937_s0 + $0x98] sm:$0xff] }
  0x22   :  { %5369 = vmatmul.msk.bf16.vlgmr.msra.gmra.mxu0 %vm11215_vm0, %v166_v12  ;;  %5393 = vmatmul.msk.bf16.vlgmr.msra.gmra.mxu2 %vm11215_vm0, %v190_v13  ;;  %v175_v13 = vpack.c.bf16 %v96_v7, %v95_v6 }
  0x32   :  { %5370 = vmatmul.msk.bf16.gmra.mxu0 %vm11215_vm0, %v167_v18  ;;  %5394 = vmatmul.msk.bf16.gmra.mxu2 %vm11215_vm0, %v191_v19 }
  0x42   :  { %5371 = vmatmul.msk.bf16.gmra.mxu0 %vm11215_vm0, %v168_v24  ;;  %5395 = vmatmul.msk.bf16.gmra.mxu2 %vm11215_vm0, %v192_v25  ;;  %v97_v24 = vld [vmem:[%s10937_s0 + $0xa0] sm:$0xff]  ;;  %v98_v25 = vld [vmem:[%s10937_s0 + $0xa8] sm:$0xff] }
  0x52   :  { %5372 = vmatmul.msk.bf16.gmra.mxu0 %vm11215_vm0, %v169_v30  ;;  %5396 = vmatmul.msk.bf16.gmra.mxu2 %vm11215_vm0, %v193_v31  ;;  %v176_v31 = vpack.c.bf16 %v98_v25, %v97_v24  ;;  %v104_v24 = vld [vmem:[%s10937_s0 + $0xd8] sm:$0xff]  ;;  %v151_v25 = vld [vmem:[%s10937_s0 + $0x250] sm:$0xff] }
  0x62   :  { %5373 = vmatmul.msk.bf16.gmra.mxu0 %vm11215_vm0, %v170_v36  ;;  %5397 = vmatmul.msk.bf16.gmra.mxu2 %vm11215_vm0, %v194_v37 }
  0x72   :  { %5374 = vmatmul.msk.bf16.gmra.mxu0 %vm11215_vm0, %v171_v42  ;;  %5398 = vmatmul.msk.bf16.gmra.mxu2 %vm11215_vm0, %v195_v43 }
  0x82   :  { %5375 = vmatmul.msk.bf16.gmra.mxu0 %vm11215_vm0, %v172_v48  ;;  %5399 = vmatmul.msk.bf16.gmra.mxu2 %vm11215_vm0, %v196_v49 }
  0x92   :  { %5376 = vmatmul.msk.bf16.gmra.mxu0 %vm11215_vm0, %v173_v54  ;;  %5400 = vmatmul.msk.bf16.gmra.mxu2 %vm11215_vm0, %v197_v55 }
  0x9f   :  { %v376_v63 = vpop.f32.mrf.mxu0 }
  0xa0   :  { %v5946_v0 = vsub.f32 %v5943_v60, %v376_v63  ;;  %v101_v63 = vld [vmem:[%s10937_s0 + $0xc0] sm:$0xff] }
  0xa2   :  { %5377 = vmatmul.msk.bf16.gmra.mxu0 %vm11215_vm0, %v174_v61  ;;  %v662_v1 = vsel %vm661_vm1, %v5946_v0, inf  ;;  %5401 = vmatmul.msk.bf16.gmra.mxu2 %vm11215_vm0, %v198_v62 }
  0xa3   :  { %663 = vmin.xlane.f32.xlu0 %v662_v1  ;;  %v102_v1 = vld [vmem:[%s10937_s0 + $0xc8] sm:$0xff] }
  0xa4   :  { %v178_v7 = vpack.c.bf16 %v102_v1, %v101_v63 }
  0xa5   :  { %v496_v2 = vpop.f32.mrf.mxu2 }
  0xa6   :  { %v5953_v3 = vsub.f32 %v5943_v60, %v496_v2  ;;  %v149_v2 = vld [vmem:[%s10937_s0 + $0x240] sm:$0xff] }
  0xa7   :  { %v378_v4 = vpop.f32.mrf.mxu0 }
  0xa8   :  { %v806_v5 = vsel %vm661_vm1, %v5953_v3, inf  ;;  %v5970_v11 = vsub.f32 %v5943_v60, %v378_v4  ;;  %v150_v4 = vld [vmem:[%s10937_s0 + $0x248] sm:$0xff] }
  0xa9   :  { %v202_v8 = vpack.c.bf16 %v150_v4, %v149_v2 }
  0xaa   :  { %v665_v17 = vsel %vm661_vm1, %v5970_v11, inf }
  0xab   :  { %807 = vmin.xlane.f32.xlu0 %v806_v5 }
  0xad   :  { %v498_v10 = vpop.f32.mrf.mxu2 }
  0xae   :  { %v5973_v12 = vsub.f32 %v5943_v60, %v498_v10 }
  0xaf   :  { %v381_v15 = vpop.f32.mrf.mxu0 }
  0xb0   :  { %v809_v16 = vsel %vm661_vm1, %v5973_v12, inf  ;;  %v5982_v18 = vsub.f32 %v5943_v60, %v381_v15 }
  0xb1   :  { %810 = vmin.xlane.f32.xlu1 %v809_v16 }
  0xb2   :  { %5378 = vmatmul.msk.bf16.gmra.mxu0 %vm11215_vm0, %v175_v13  ;;  %5402 = vmatmul.msk.bf16.gmra.mxu2 %vm11215_vm0, %v199_v14  ;;  %v668_v23 = vsel %vm661_vm1, %v5982_v18, inf }
  0xb3   :  { %666 = vmin.xlane.f32.xlu0 %v665_v17 }
  0xb5   :  { %v501_v19 = vpop.f32.mrf.mxu2 }
  0xb6   :  { %v5985_v20 = vsub.f32 %v5943_v60, %v501_v19 }
  0xb7   :  { %v383_v21 = vpop.f32.mrf.mxu0 }
  0xb8   :  { %v812_v22 = vsel %vm661_vm1, %v5985_v20, inf  ;;  %v6004_v28 = vsub.f32 %v5943_v60, %v383_v21 }
  0xb9   :  { %813 = vmin.xlane.f32.xlu2 %v812_v22  ;;  %669 = vmin.xlane.f32.xlu1 %v668_v23  ;;  %v103_v23 = vld [vmem:[%s10937_s0 + $0xd0] sm:$0xff] }
  0xba   :  { %v671_v36 = vsel %vm661_vm1, %v6004_v28, inf }
  0xbd   :  { %v503_v29 = vpop.f32.mrf.mxu2 }
  0xbe   :  { %v6007_v30 = vsub.f32 %v5943_v60, %v503_v29 }
  0xbf   :  { %v386_v33 = vpop.f32.mrf.mxu0 }
  0xc0   :  { %v6010_v34 = vsub.f32 %v5943_v60, %v386_v33  ;;  %v815_v35 = vsel %vm661_vm1, %v6007_v30, inf }
  0xc1   :  { %816 = vmin.xlane.f32.xlu0 %v815_v35  ;;  %672 = vmin.xlane.f32.xlu1 %v671_v36 }
  0xc2   :  { %v674_v37 = vsel %vm661_vm1, %v6010_v34, inf  ;;  %5379 = vmatmul.msk.bf16.gmra.mxu0 %vm11215_vm0, %v176_v31  ;;  %5403 = vmatmul.msk.bf16.gmra.mxu2 %vm11215_vm0, %v200_v32  ;;  %v179_v31 = vpack.c.bf16 %v104_v24, %v103_v23  ;;  %v203_v32 = vpack.c.bf16 %v152_v26, %v151_v25 }
  0xc3   :  { %675 = vmin.xlane.f32.xlu2 %v674_v37 }
  0xc5   :  { %v506_v38 = vpop.f32.mrf.mxu2 }
  0xc6   :  { %v6021_v39 = vsub.f32 %v5943_v60, %v506_v38 }
  0xc7   :  { %v388_v40 = vpop.f32.mrf.mxu0 }
  0xc8   :  { %v6024_v41 = vsub.f32 %v5943_v60, %v388_v40  ;;  %v818_v42 = vsel %vm661_vm1, %v6021_v39, inf }
  0xc9   :  { %819 = vmin.xlane.f32.xlu1 %v818_v42 }
  0xca   :  { %v677_v43 = vsel %vm661_vm1, %v6024_v41, inf }
  0xcb   :  { %678 = vmin.xlane.f32.xlu2 %v677_v43 }
  0xcd   :  { %v508_v48 = vpop.f32.mrf.mxu2 }
  0xce   :  { %v6043_v49 = vsub.f32 %v5943_v60, %v508_v48 }
  0xcf   :  { %v391_v52 = vpop.f32.mrf.mxu0 }
  0xd0   :  { %v6046_v53 = vsub.f32 %v5943_v60, %v391_v52  ;;  %v821_v54 = vsel %vm661_vm1, %v6043_v49, inf }
  0xd2   :  { %v680_v55 = vsel %vm661_vm1, %v6046_v53, inf  ;;  %5380 = vmatmul.msk.bf16.gmra.mxu0 %vm11215_vm0, %v177_v50  ;;  %5404 = vmatmul.msk.bf16.gmra.mxu2 %vm11215_vm0, %v201_v51  ;;  %v105_v50 = vld [vmem:[%s10937_s0 + $0xe0] sm:$0xff]  ;;  %v106_v51 = vld [vmem:[%s10937_s0 + $0xe8] sm:$0xff] }
  0xd3   :  { %822 = vmin.xlane.f32.xlu2 %v821_v54  ;;  %681 = vmin.xlane.f32.xlu0 %v680_v55  ;;  %v180_v54 = vpack.c.bf16 %v106_v51, %v105_v50 }
  0xd5   :  { %v511_v56 = vpop.f32.mrf.mxu2 }
  0xd6   :  { %v6055_v57 = vsub.f32 %v5943_v60, %v511_v56 }
  0xd7   :  { %v393_v58 = vpop.f32.mrf.mxu0 }
  0xd8   :  { %v6058_v59 = vsub.f32 %v5943_v60, %v393_v58  ;;  %v824_v61 = vsel %vm661_vm1, %v6055_v57, inf  ;;  %v153_v58 = vld [vmem:[%s10937_s0 + $0x260] sm:$0xff] }
  0xda   :  { %v683_v62 = vsel %vm661_vm1, %v6058_v59, inf }
  0xdb   :  { %825 = vmin.xlane.f32.xlu0 %v824_v61  ;;  %684 = vmin.xlane.f32.xlu1 %v683_v62  ;;  %v154_v61 = vld [vmem:[%s10937_s0 + $0x268] sm:$0xff] }
  0xdc   :  { %v204_v62 = vpack.c.bf16 %v154_v61, %v153_v58  ;;  %v156_v61 = vld [vmem:[%s10937_s0 + $0x278] sm:$0xff] }
  0xdd   :  { %v513_v5 = vpop.f32.mrf.mxu2 }
  0xde   :  { %v6077_v6 = vsub.f32 %v5943_v60, %v513_v5 }
  0xdf   :  { %v396_v9 = vpop.f32.mrf.mxu0 }
  0xe0   :  { %v6080_v10 = vsub.f32 %v5943_v60, %v396_v9  ;;  %v827_v13 = vsel %vm661_vm1, %v6077_v6, inf }
  0xe2   :  { %v686_v14 = vsel %vm661_vm1, %v6080_v10, inf  ;;  %5381 = vmatmul.msk.bf16.gmra.mxu0 %vm11215_vm0, %v178_v7  ;;  %5405 = vmatmul.msk.bf16.gmra.mxu2 %vm11215_vm0, %v202_v8 }
  0xe3   :  { %828 = vmin.xlane.f32.xlu1 %v827_v13  ;;  %687 = vmin.xlane.f32.xlu2 %v686_v14 }
  0xe5   :  { %v516_v15 = vpop.f32.mrf.mxu2 }
  0xe6   :  { %v6089_v16 = vsub.f32 %v5943_v60, %v516_v15  ;;  %v10943_v15 = vlaneseq }
  0xe7   :  { %v398_v17 = vpop.f32.mrf.mxu0 }
  0xe8   :  { %v6092_v19 = vsub.f32 %v5943_v60, %v398_v17  ;;  %v830_v21 = vsel %vm661_vm1, %v6089_v16, inf }
  0xea   :  { %v689_v22 = vsel %vm661_vm1, %v6092_v19, inf }
  0xeb   :  { %831 = vmin.xlane.f32.xlu2 %v830_v21  ;;  %690 = vmin.xlane.f32.xlu0 %v689_v22  ;;  %v6177_v22 = vand.u32 127, %v10943_v15 }
  0xed   :  { %v518_v27 = vpop.f32.mrf.mxu2 }
  0xee   :  { %v6111_v29 = vsub.f32 %v5943_v60, %v518_v27 }
  0xef   :  { %v401_v33 = vpop.f32.mrf.mxu0 }
  0xf0   :  { %v6114_v35 = vsub.f32 %v5943_v60, %v401_v33  ;;  %v833_v36 = vsel %vm661_vm1, %v6111_v29, inf  ;;  %v107_v33 = vld [vmem:[%s10937_s0 + $0xf0] sm:$0xff] }
  0xf2   :  { %v692_v37 = vsel %vm661_vm1, %v6114_v35, inf  ;;  %5382 = vmatmul.msk.bf16.gmra.mxu0 %vm11215_vm0, %v179_v31  ;;  %5406 = vmatmul.msk.bf16.gmra.mxu2 %vm11215_vm0, %v203_v32 }
  0xf3   :  { %834 = vmin.xlane.f32.xlu0 %v833_v36  ;;  %693 = vmin.xlane.f32.xlu1 %v692_v37  ;;  %v108_v36 = vld [vmem:[%s10937_s0 + $0xf8] sm:$0xff] }
  0xf4   :  { %v181_v37 = vpack.c.bf16 %v108_v36, %v107_v33 }
  0xf5   :  { %v521_v38 = vpop.f32.mrf.mxu2 }
  0xf6   :  { %v6123_v40 = vsub.f32 %v5943_v60, %v521_v38 }
  0xf7   :  { %v403_v42 = vpop.f32.mrf.mxu0 }
  0xf8   :  { %v6126_v43 = vsub.f32 %v5943_v60, %v403_v42  ;;  %v836_v44 = vsel %vm661_vm1, %v6123_v40, inf }
  0xfa   :  { %v695_v45 = vsel %vm661_vm1, %v6126_v43, inf }
  0xfb   :  { %837 = vmin.xlane.f32.xlu1 %v836_v44  ;;  %696 = vmin.xlane.f32.xlu2 %v695_v45 }
  0xfd   :  { %v523_v46 = vpop.f32.mrf.mxu2 }
  0xfe   :  { %v6133_v47 = vsub.f32 %v5943_v60, %v523_v46 }
  0xff   :  { %v406_v48 = vpop.f32.mrf.mxu0 }
 0x100   :  { %v6142_v52 = vsub.f32 %v5943_v60, %v406_v48  ;;  %v839_v55 = vsel %vm661_vm1, %v6133_v47, inf }
 0x102   :  { %v698_v56 = vsel %vm661_vm1, %v6142_v52, inf  ;;  %5383 = vmatmul.msk.bf16.gmra.mxu0 %vm11215_vm0, %v180_v54  ;;  %5407 = vmatmul.msk.bf16.gmra.mxu2 %vm11215_vm0, %v204_v62 }
 0x103   :  { %840 = vmin.xlane.f32.xlu2 %v839_v55  ;;  %699 = vmin.xlane.f32.xlu0 %v698_v56 }
 0x105   :  { %v526_v63 = vpop.f32.mrf.mxu2 }
 0x106   :  { %v6157_v1 = vsub.f32 %v5943_v60, %v526_v63 }
 0x107   :  { %v408_v2 = vpop.f32.mrf.mxu0 }
 0x108   :  { %v6160_v4 = vsub.f32 %v5943_v60, %v408_v2  ;;  %v842_v5 = vsel %vm661_vm1, %v6157_v1, inf }
 0x10a   :  { %v701_v7 = vsel %vm661_vm1, %v6160_v4, inf }
 0x10b   :  { %843 = vmin.xlane.f32.xlu0 %v842_v5  ;;  %702 = vmin.xlane.f32.xlu1 %v701_v7 }
 0x10d   :  { %v528_v8 = vpop.f32.mrf.mxu2 }
 0x10e   :  { %v6167_v9 = vsub.f32 %v5943_v60, %v528_v8 }
 0x10f   :  { %v411_v13 = vpop.f32.mrf.mxu0 }
 0x110   :  { %v6170_v14 = vsub.f32 %v5943_v60, %v411_v13  ;;  %v845_v17 = vsel %vm661_vm1, %v6167_v9, inf }
 0x112   :  { %v704_v21 = vsel %vm661_vm1, %v6170_v14, inf  ;;  %5384 = vmatmul.msk.bf16.gmra.mxu0 %vm11215_vm0, %v181_v37 }
 0x113   :  { %846 = vmin.xlane.f32.xlu1 %v845_v17  ;;  %705 = vmin.xlane.f32.xlu2 %v704_v21 }
 0x115   :  { %v531_v23 = vpop.f32.mrf.mxu2 }
 0x116   :  { %v6180_v24 = vsub.f32 %v5943_v60, %v531_v23  ;;  %v664_v25 = vpop.xlane.xlu0 %663 }
 0x117   :  { %vm902_vm2 = vcmp.eq.f32.partialorder %v5946_v0, %v664_v25  ;;  %v413_v26 = vpop.f32.mrf.mxu0 }
 0x118   :  { %v982_v27 = vsel %vm902_vm2, %v6177_v22, 64  ;;  %v6185_v31 = vsub.f32 %v5943_v60, %v413_v26  ;;  %v848_v32 = vsel %vm661_vm1, %v6180_v24, inf }
 0x119   :  { %v6198_v38 = vsel %vm661_vm1, %v982_v27, 2147483647 }
 0x11a   :  { %v707_v0 = vsel %vm661_vm1, %v6185_v31, inf  ;;  %v1064_v44 = vshra.s32 %v6198_v38, 16 }
 0x11b   :  { %849 = vmin.xlane.f32.xlu2 %v848_v32  ;;  %708 = vmin.xlane.f32.xlu0 %v707_v0 }
 0x11c   :  { %v6210_v54 = vcvt.s32.f32 %v1064_v44 }
 0x11d   :  { %v533_v42 = vpop.f32.mrf.mxu2 }
 0x11e   :  { %v6203_v45 = vsub.f32 %v5943_v60, %v533_v42  ;;  %v808_v46 = vpop.xlane.xlu0 %807 }
 0x11f   :  { %vm950_vm3 = vcmp.eq.f32.partialorder %v5953_v3, %v808_v46  ;;  %v416_v48 = vpop.f32.mrf.mxu0  ;;  %v155_v3 = vld [vmem:[%s10937_s0 + $0x270] sm:$0xff] }
 0x120   :  { %v1030_v50 = vsel %vm950_vm3, %v6177_v22, 64  ;;  %v6208_v51 = vsub.f32 %v5943_v60, %v416_v48  ;;  %v851_v55 = vsel %vm661_vm1, %v6203_v45, inf  ;;  %v205_v62 = vpack.c.bf16 %v156_v61, %v155_v3 }
 0x121   :  { %v6217_v58 = vsel %vm661_vm1, %v1030_v50, 2147483647 }
 0x122   :  { %v710_v56 = vsel %vm661_vm1, %v6208_v51, inf  ;;  %v1784_v2 = vshra.s32 %v6217_v58, 16  ;;  %5408 = vmatmul.msk.bf16.gmra.mxu2 %vm11215_vm0, %v205_v62 }
 0x123   :  { %1067 = vmin.xlane.f32.xlu2 %v6210_v54  ;;  %852 = vmin.xlane.f32.xlu0 %v851_v55 }
 0x124   :  { %711 = vmin.xlane.f32.xlu1 %v710_v56  ;;  %v811_v63 = vpop.xlane.xlu1 %810  ;;  %v6230_v13 = vcvt.s32.f32 %v1784_v2 }
 0x125   :  { %v536_v8 = vpop.f32.mrf.mxu2  ;;  %vm951_vm6 = vcmp.eq.f32.partialorder %v5973_v12, %v811_v63 }
 0x126   :  { %v667_v5 = vpop.xlane.xlu0 %666  ;;  %v1031_v37 = vsel %vm951_vm6, %v6177_v22, 64  ;;  %v6252_v0 = vsub.f32 %v5943_v60, %v536_v8 }
 0x127   :  { %vm903_vm4 = vcmp.eq.f32.partialorder %v5970_v11, %v667_v5  ;;  %v418_v21 = vpop.f32.mrf.mxu0  ;;  %v6260_v48 = vsel %vm661_vm1, %v1031_v37, 2147483647 }
 0x128   :  { %v983_v7 = vsel %vm903_vm4, %v6177_v22, 64  ;;  %v6242_v11 = vsub.f32 %v5943_v60, %v418_v21  ;;  %v854_v50 = vsel %vm661_vm1, %v6252_v0, inf  ;;  %v1799_v63 = vshra.s32 %v6260_v48, 16 }
 0x129   :  { %v6233_v17 = vsel %vm661_vm1, %v983_v7, 2147483647 }
 0x12a   :  { %v1079_v23 = vshra.s32 %v6233_v17, 16  ;;  %v713_v12 = vsel %vm661_vm1, %v6242_v11, inf }
 0x12b   :  { %1787 = vmin.xlane.f32.xlu2 %v6230_v13 }
 0x12c   :  { %v670_v25 = vpop.xlane.xlu1 %669  ;;  %v6237_v26 = vcvt.s32.f32 %v1079_v23  ;;  %v814_v33 = vpop.xlane.xlu2 %813 }
 0x12d   :  { %vm904_vm5 = vcmp.eq.f32.partialorder %v5982_v18, %v670_v25  ;;  %v538_v44 = vpop.f32.mrf.mxu2  ;;  %vm952_vm7 = vcmp.eq.f32.partialorder %v5985_v20, %v814_v33  ;;  %v109_v20 = vld [vmem:[%s10937_s0 + $0x100] sm:$0xff]  ;;  %v6293_v25 = vcvt.s32.f32 %v1799_v63 }
 0x12e   :  { %v984_v27 = vsel %vm904_vm5, %v6177_v22, 64  ;;  %1082 = vmin.xlane.f32.xlu1 %v6237_v26  ;;  %v6270_v56 = vsub.f32 %v5943_v60, %v538_v44  ;;  %v1032_v61 = vsel %vm952_vm7, %v6177_v22, 64 }
 0x12f   :  { %v6247_v32 = vsel %vm661_vm1, %v984_v27, 2147483647  ;;  %v421_v42 = vpop.f32.mrf.mxu0  ;;  %v6289_v23 = vsel %vm661_vm1, %v1032_v61, 2147483647 }
 0x130   :  { %v1094_v36 = vshra.s32 %v6247_v32, 16  ;;  %v6267_v55 = vsub.f32 %v5943_v60, %v421_v42  ;;  %v857_v8 = vsel %vm661_vm1, %v6270_v56, inf }
 0x132   :  { %v6256_v18 = vcvt.s32.f32 %v1094_v36  ;;  %v716_v5 = vsel %vm661_vm1, %v6267_v55, inf  ;;  %v1814_v36 = vshra.s32 %v6289_v23, 16 }
 0x133   :  { %714 = vmin.xlane.f32.xlu2 %v713_v12 }
 0x134   :  { %v673_v46 = vpop.xlane.xlu1 %672  ;;  %1097 = vmin.xlane.f32.xlu0 %v6256_v18  ;;  %v817_v2 = vpop.xlane.xlu0 %816 }
 0x135   :  { %vm905_vm8 = vcmp.eq.f32.partialorder %v6004_v28, %v673_v46  ;;  %v110_v28 = vld [vmem:[%s10937_s0 + $0x108] sm:$0xff]  ;;  %vm953_vm9 = vcmp.eq.f32.partialorder %v6007_v30, %v817_v2  ;;  %v541_v12 = vpop.f32.mrf.mxu2 }
 0x136   :  { %855 = vmin.xlane.f32.xlu1 %v854_v50  ;;  %v985_v3 = vsel %vm905_vm8, %v6177_v22, 64  ;;  %v676_v62 = vpop.xlane.xlu2 %675  ;;  %v182_v7 = vpack.c.bf16 %v110_v28, %v109_v20  ;;  %v1033_v37 = vsel %vm953_vm9, %v6177_v22, 64  ;;  %v6306_v50 = vcvt.s32.f32 %v1814_v36 }
 0x137   :  { %v6286_v21 = vsel %vm661_vm1, %v985_v3, 2147483647  ;;  %v423_v33 = vpop.f32.mrf.mxu0  ;;  %vm906_vm10 = vcmp.eq.f32.partialorder %v6010_v34, %v676_v62  ;;  %v6309_v3 = vsel %vm661_vm1, %v1033_v37, 2147483647  ;;  %v6313_v61 = vsub.f32 %v5943_v60, %v541_v12 }
 0x138   :  { %5385 = vmatmul.msk.bf16.gmra.mxu0 %vm11215_vm0, %v182_v7  ;;  %v1109_v27 = vshra.s32 %v6286_v21, 16  ;;  %v6301_v42 = vsub.f32 %v5943_v60, %v423_v33  ;;  %v986_v30 = vsel %vm906_vm10, %v6177_v22, 64  ;;  %v1829_v62 = vshra.s32 %v6309_v3, 16 }
 0x139   :  { %11239 = vst [vmem:[#allocation4_spill] sm:$0xff] %v6313_v61  ;;  %v6321_v63 = vsel %vm661_vm1, %v986_v30, 2147483647  ;;  %v860_v7 = vsel %vm661_vm1, %v6313_v61, inf }
 0x13a   :  { %v6303_v44 = vcvt.s32.f32 %v1109_v27  ;;  %v719_v34 = vsel %vm661_vm1, %v6301_v42, inf  ;;  %v1124_v28 = vshra.s32 %v6321_v63, 16 }
 0x13b   :  { %858 = vmin.xlane.f32.xlu2 %v857_v8 }
 0x13c   :  { %717 = vmin.xlane.f32.xlu0 %v716_v5  ;;  %v6325_v5 = vcvt.s32.f32 %v1829_v62  ;;  %v820_v27 = vpop.xlane.xlu1 %819  ;;  %v6336_v36 = vcvt.s32.f32 %v1124_v28 }
 0x13d   :  { %v543_v2 = vpop.f32.mrf.mxu2  ;;  %vm954_vm12 = vcmp.eq.f32.partialorder %v6021_v39, %v820_v27 }
 0x13e   :  { %1802 = vmin.xlane.f32.xlu1 %v6293_v25  ;;  %v679_v46 = vpop.xlane.xlu2 %678  ;;  %v6350_v62 = vsub.f32 %v5943_v60, %v543_v2  ;;  %v1034_v28 = vsel %vm954_vm12, %v6177_v22, 64 }
 0x13f   :  { %vm907_vm11 = vcmp.eq.f32.partialorder %v6024_v41, %v679_v46  ;;  %v426_v41 = vpop.f32.mrf.mxu0  ;;  %v111_v46 = vld [vmem:[%s10937_s0 + $0x110] sm:$0xff] }
 0x140   :  { %v987_v20 = vsel %vm907_vm11, %v6177_v22, 64  ;;  %v6334_v33 = vsub.f32 %v5943_v60, %v426_v41  ;;  %11240 = vst [vmem:[#allocation5_spill] sm:$0xff] %v6350_v62  ;;  %v863_v2 = vsel %vm661_vm1, %v6350_v62, inf }
 0x141   :  { %v6331_v8 = vsel %vm661_vm1, %v987_v20, 2147483647 }
 0x142   :  { %v1139_v37 = vshra.s32 %v6331_v8, 16  ;;  %v722_v30 = vsel %vm661_vm1, %v6334_v33, inf }
 0x143   :  { %1112 = vmin.xlane.f32.xlu2 %v6303_v44 }
 0x144   :  { %1817 = vmin.xlane.f32.xlu0 %v6306_v50  ;;  %v6353_v39 = vcvt.s32.f32 %v1139_v37  ;;  %v6365_v37 = vsel %vm661_vm1, %v1034_v28, 2147483647 }
 0x145   :  { %v546_v41 = vpop.f32.mrf.mxu2 }
 0x146   :  { %720 = vmin.xlane.f32.xlu1 %v719_v34  ;;  %v682_v12 = vpop.xlane.xlu0 %681  ;;  %v112_v34 = vld [vmem:[%s10937_s0 + $0x118] sm:$0xff]  ;;  %v6358_v15 = vsub.f32 %v5943_v60, %v546_v41 }
 0x147   :  { %v183_v20 = vpack.c.bf16 %v112_v34, %v111_v46  ;;  %vm908_vm13 = vcmp.eq.f32.partialorder %v6046_v53, %v682_v12  ;;  %v428_v27 = vpop.f32.mrf.mxu0  ;;  %v1844_v34 = vshra.s32 %v6365_v37, 16 }
 0x148   :  { %11241 = vst [vmem:[#allocation6_spill] sm:$0xff] %v6358_v15  ;;  %v6369_v46 = vsub.f32 %v5943_v60, %v428_v27  ;;  %v866_v12 = vsel %vm661_vm1, %v6358_v15, inf }
 0x149   :  { %5386 = vmatmul.msk.bf16.gmra.mxu0 %vm11215_vm0, %v183_v20  ;;  %v6384_v27 = vcvt.s32.f32 %v1844_v34 }
 0x14a   :  { %v725_v28 = vsel %vm661_vm1, %v6369_v46, inf }
 0x14b   :  { %1832 = vmin.xlane.f32.xlu2 %v6325_v5 }
 0x14c   :  { %861 = vmin.xlane.f32.xlu0 %v860_v7  ;;  %v823_v7 = vpop.xlane.xlu2 %822 }
 0x14d   :  { %vm955_vm14 = vcmp.eq.f32.partialorder %v6043_v49, %v823_v7  ;;  %v548_v62 = vpop.f32.mrf.mxu2 }
 0x14e   :  { %1127 = vmin.xlane.f32.xlu1 %v6336_v36  ;;  %v1035_v53 = vsel %vm955_vm14, %v6177_v22, 64  ;;  %v826_v49 = vpop.xlane.xlu0 %825  ;;  %v685_v41 = vpop.xlane.xlu1 %684 }
 0x14f   :  { %v6381_v7 = vsel %vm661_vm1, %v1035_v53, 2147483647  ;;  %vm956_vm15 = vcmp.eq.f32.partialorder %v6055_v57, %v826_v49  ;;  %v431_v15 = vpop.f32.mrf.mxu0  ;;  %vm909_vm2 = vcmp.eq.f32.partialorder %v6058_v59, %v685_v41  ;;  %v6412_v41 = vsub.f32 %v5943_v60, %v548_v62 }
 0x150   :  { %v6392_v53 = vsub.f32 %v5943_v60, %v431_v15  ;;  %v989_v34 = vsel %vm909_vm2, %v6177_v22, 64 }
 0x151   :  { %v6409_v15 = vsel %vm661_vm1, %v989_v34, 2147483647  ;;  %11248 = vst [vmem:[#allocation13_spill] sm:$0xff] %v6412_v41  ;;  %v869_v62 = vsel %vm661_vm1, %v6412_v41, inf }
 0x152   :  { %11243 = vst [vmem:[#allocation8_spill] sm:$0xff] %v6392_v53 }
 0x153   :  { %723 = vmin.xlane.f32.xlu2 %v722_v30  ;;  %v988_v30 = vsel %vm908_vm13, %v6177_v22, 64  ;;  %11247 = vst [vmem:[#allocation12_spill] sm:$0xff] %v6409_v15 }
 0x154   :  { %1142 = vmin.xlane.f32.xlu0 %v6353_v39  ;;  %v6376_v20 = vsel %vm661_vm1, %v988_v30, 2147483647  ;;  %v1859_v30 = vshra.s32 %v6381_v7, 16 }
 0x155   :  { %11242 = vst [vmem:[#allocation7_spill] sm:$0xff] %v6376_v20 }
 0x156   :  { %864 = vmin.xlane.f32.xlu1 %v863_v2  ;;  %v1154_v2 = vshra.s32 %v6376_v20, 16  ;;  %v688_v49 = vpop.xlane.xlu2 %687  ;;  %v728_v20 = vsel %vm661_vm1, %v6392_v53, inf  ;;  %v829_v53 = vpop.xlane.xlu1 %828 }
 0x157   :  { %vm910_vm3 = vcmp.eq.f32.partialorder %v6080_v10, %v688_v49  ;;  %v114_v10 = vld [vmem:[%s10937_s0 + $0x128] sm:$0xff]  ;;  %v551_v49 = vpop.f32.mrf.mxu2  ;;  %vm957_vm4 = vcmp.eq.f32.partialorder %v6077_v6, %v829_v53 }
 0x158   :  { %v6394_v57 = vcvt.s32.f32 %v1154_v2  ;;  %v990_v2 = vsel %vm910_vm3, %v6177_v22, 64 }
 0x15a   :  { %11244 = vst [vmem:[#allocation9_spill] sm:$0xff] %v6394_v57 }
 0x15b   :  { %867 = vmin.xlane.f32.xlu2 %v866_v12  ;;  %v1036_v12 = vsel %vm956_vm15, %v6177_v22, 64 }
 0x15c   :  { %726 = vmin.xlane.f32.xlu0 %v725_v28  ;;  %v6397_v28 = vcvt.s32.f32 %v1859_v30  ;;  %v6400_v61 = vsel %vm661_vm1, %v1036_v12, 2147483647  ;;  %v1169_v30 = vshra.s32 %v6409_v15, 16  ;;  %v113_v12 = vld [vmem:[%s10937_s0 + $0x120] sm:$0xff] }
 0x15d   :  { %11246 = vst [vmem:[#allocation11_spill] sm:$0xff] %v6400_v61  ;;  %v1874_v59 = vshra.s32 %v6400_v61, 16  ;;  %v184_v34 = vpack.c.bf16 %v114_v10, %v113_v12 }
 0x15e   :  { %1847 = vmin.xlane.f32.xlu1 %v6384_v27  ;;  %11245 = vst [vmem:[#allocation10_spill] sm:$0xff] %v6397_v28  ;;  %v832_v15 = vpop.xlane.xlu2 %831  ;;  %v691_v10 = vpop.xlane.xlu0 %690 }
 0x15f   :  { %v6422_v61 = vcvt.s32.f32 %v1874_v59  ;;  %5387 = vmatmul.msk.bf16.gmra.mxu0 %vm11215_vm0, %v184_v34  ;;  %v1037_v34 = vsel %vm957_vm4, %v6177_v22, 64  ;;  %vm911_vm5 = vcmp.eq.f32.partialorder %v6092_v19, %v691_v10  ;;  %vm958_vm6 = vcmp.eq.f32.partialorder %v6089_v16, %v832_v15  ;;  %v115_v15 = vld [vmem:[%s10937_s0 + $0x130] sm:$0xff] }
 0x160   :  { %v991_v19 = vsel %vm911_vm5, %v6177_v22, 64  ;;  %v1038_v10 = vsel %vm958_vm6, %v6177_v22, 64 }
 0x161   :  { %11249 = vst [vmem:[#allocation14_spill] sm:$0xff] %v6422_v61 }
 0x163   :  { %1157 = vmin.xlane.f32.xlu2 %v6394_v57  ;;  %v6428_v57 = vsel %vm661_vm1, %v990_v2, 2147483647  ;;  %v6440_v2 = vsub.f32 %v5943_v60, %v551_v49 }
 0x164   :  { %1862 = vmin.xlane.f32.xlu0 %v6397_v28  ;;  %11250 = vst [vmem:[#allocation15_spill] sm:$0xff] %v6428_v57  ;;  %v6431_v28 = vcvt.s32.f32 %v1169_v30  ;;  %v1184_v12 = vshra.s32 %v6428_v57, 16 }
 0x165   :  { %11252 = vst [vmem:[#allocation17_spill] sm:$0xff] %v6440_v2  ;;  %v872_v53 = vsel %vm661_vm1, %v6440_v2, inf  ;;  %v6475_v2 = vsel %vm661_vm1, %v991_v19, 2147483647 }
 0x166   :  { %729 = vmin.xlane.f32.xlu1 %v728_v20  ;;  %v433_v20 = vpop.f32.mrf.mxu0  ;;  %v6445_v30 = vcvt.s32.f32 %v1184_v12  ;;  %v694_v6 = vpop.xlane.xlu1 %693  ;;  %v6456_v12 = vsel %vm661_vm1, %v1037_v34, 2147483647  ;;  %11256 = vst [vmem:[#allocation21_spill] sm:$0xff] %v6475_v2 }
 0x167   :  { %v6434_v59 = vsub.f32 %v5943_v60, %v433_v20  ;;  %v553_v20 = vpop.f32.mrf.mxu2  ;;  %v1889_v16 = vshra.s32 %v6456_v12, 16  ;;  %v835_v34 = vpop.xlane.xlu0 %834  ;;  %vm912_vm8 = vcmp.eq.f32.partialorder %v6114_v35, %v694_v6 }
 0x168   :  { %11253 = vst [vmem:[#allocation18_spill] sm:$0xff] %v6445_v30  ;;  %v6459_v57 = vsub.f32 %v5943_v60, %v553_v20  ;;  %vm959_vm7 = vcmp.eq.f32.partialorder %v6111_v29, %v835_v34  ;;  %v992_v34 = vsel %vm912_vm8, %v6177_v22, 64 }
 0x169   :  { %11251 = vst [vmem:[#allocation16_spill] sm:$0xff] %v6434_v59 }
 0x16a   :  { %11255 = vst [vmem:[#allocation20_spill] sm:$0xff] %v6459_v57 }
 0x16b   :  { %1877 = vmin.xlane.f32.xlu2 %v6422_v61 }
 0x16c   :  { %870 = vmin.xlane.f32.xlu0 %v869_v62  ;;  %v731_v62 = vsel %vm661_vm1, %v6434_v59, inf  ;;  %v6482_v59 = vcvt.s32.f32 %v1889_v16 }
 0x16e   :  { %1172 = vmin.xlane.f32.xlu1 %v6431_v28  ;;  %v436_v41 = vpop.f32.mrf.mxu0  ;;  %v697_v61 = vpop.xlane.xlu2 %696  ;;  %11258 = vst [vmem:[#allocation23_spill] sm:$0xff] %v6482_v59 }
 0x16f   :  { %v6453_v49 = vsub.f32 %v5943_v60, %v436_v41  ;;  %v116_v41 = vld [vmem:[%s10937_s0 + $0x138] sm:$0xff]  ;;  %vm913_vm9 = vcmp.eq.f32.partialorder %v6126_v43, %v697_v61 }
 0x170   :  { %v185_v20 = vpack.c.bf16 %v116_v41, %v115_v15 }
 0x171   :  { %11254 = vst [vmem:[#allocation19_spill] sm:$0xff] %v6453_v49 }
 0x172   :  { %5388 = vmatmul.msk.bf16.gmra.mxu0 %vm11215_vm0, %v185_v20  ;;  %v556_v20 = vpop.f32.mrf.mxu2 }
 0x173   :  { %732 = vmin.xlane.f32.xlu2 %v731_v62  ;;  %v734_v62 = vsel %vm661_vm1, %v6453_v49, inf  ;;  %v1199_v49 = vshra.s32 %v6475_v2, 16 }
 0x174   :  { %1187 = vmin.xlane.f32.xlu0 %v6445_v30  ;;  %v6478_v30 = vsel %vm661_vm1, %v1038_v10, 2147483647  ;;  %v838_v10 = vpop.xlane.xlu1 %837 }
 0x175   :  { %11257 = vst [vmem:[#allocation22_spill] sm:$0xff] %v6478_v30  ;;  %v1904_v19 = vshra.s32 %v6478_v30, 16  ;;  %v6494_v16 = vcvt.s32.f32 %v1199_v49  ;;  %v6504_v30 = vsub.f32 %v5943_v60, %v556_v20  ;;  %v6512_v49 = vsel %vm661_vm1, %v992_v34, 2147483647 }
 0x176   :  { %873 = vmin.xlane.f32.xlu1 %v872_v53  ;;  %v875_v53 = vsel %vm661_vm1, %v6459_v57, inf  ;;  %v6485_v15 = vpop.xlane.xlu2 %840  ;;  %v438_v41 = vpop.f32.mrf.mxu0  ;;  %11264 = vst [vmem:[#allocation29_spill] sm:$0xff] %v6512_v49  ;;  %v1214_v20 = vshra.s32 %v6512_v49, 16  ;;  %vm960_vm10 = vcmp.eq.f32.partialorder %v6123_v40, %v838_v10 }
 0x177   :  { %v6492_v29 = vsub.f32 %v5943_v60, %v438_v41  ;;  %11260 = vst [vmem:[#allocation25_spill] sm:$0xff] %v6494_v16  ;;  %v700_v2 = vpop.xlane.xlu0 %699  ;;  %v878_v43 = vsel %vm661_vm1, %v6504_v30, inf  ;;  %vm961_vm12 = vcmp.eq.f32.partialorder %v6133_v47, %v6485_v15 }
 0x178   :  { %11263 = vst [vmem:[#allocation28_spill] sm:$0xff] %v6504_v30  ;;  %vm914_vm11 = vcmp.eq.f32.partialorder %v6142_v52, %v700_v2 }
 0x179   :  { %11259 = vst [vmem:[#allocation24_spill] sm:$0xff] %v6492_v29  ;;  %v737_v35 = vsel %vm661_vm1, %v6492_v29, inf  ;;  %v994_v52 = vsel %vm914_vm11, %v6177_v22, 64 }
 0x17b   :  { %876 = vmin.xlane.f32.xlu2 %v875_v53  ;;  %v1039_v53 = vsel %vm959_vm7, %v6177_v22, 64 }
 0x17c   :  { %735 = vmin.xlane.f32.xlu0 %v734_v62  ;;  %v6497_v62 = vcvt.s32.f32 %v1904_v19  ;;  %v6500_v57 = vsel %vm661_vm1, %v1039_v53, 2147483647  ;;  %v993_v53 = vsel %vm913_vm9, %v6177_v22, 64 }
 0x17d   :  { %11262 = vst [vmem:[#allocation27_spill] sm:$0xff] %v6500_v57  ;;  %v1919_v6 = vshra.s32 %v6500_v57, 16  ;;  %v6526_v34 = vsel %vm661_vm1, %v993_v53, 2147483647  ;;  %v6531_v57 = vcvt.s32.f32 %v1214_v20  ;;  %v117_v53 = vld [vmem:[%s10937_s0 + $0x140] sm:$0xff]  ;;  %v118_v20 = vld [vmem:[%s10937_s0 + $0x148] sm:$0xff] }
 0x17e   :  { %1892 = vmin.xlane.f32.xlu1 %v6482_v59  ;;  %11261 = vst [vmem:[#allocation26_spill] sm:$0xff] %v6497_v62  ;;  %v6516_v19 = vpop.xlane.xlu1 %702  ;;  %v441_v61 = vpop.f32.mrf.mxu0 }
 0x17f   :  { %11266 = vst [vmem:[#allocation31_spill] sm:$0xff] %v6526_v34  ;;  %v844_v29 = vpop.xlane.xlu0 %843  ;;  %vm915_vm14 = vcmp.eq.f32.partialorder %v6160_v4, %v6516_v19 }
 0x180   :  { %11268 = vst [vmem:[#allocation33_spill] sm:$0xff] %v6531_v57  ;;  %vm962_vm13 = vcmp.eq.f32.partialorder %v6157_v1, %v844_v29 }
 0x183   :  { %1202 = vmin.xlane.f32.xlu2 %v6494_v16  ;;  %v558_v16 = vpop.f32.mrf.mxu2 }
 0x184   :  { %1907 = vmin.xlane.f32.xlu0 %v6497_v62  ;;  %v6520_v62 = vcvt.s32.f32 %v1919_v6  ;;  %v1229_v6 = vshra.s32 %v6526_v34, 16  ;;  %v1040_v34 = vsel %vm960_vm10, %v6177_v22, 64 }
 0x186   :  { %v6514_v41 = vpop.xlane.xlu2 %705  ;;  %738 = vmin.xlane.f32.xlu1 %v737_v35  ;;  %11265 = vst [vmem:[#allocation30_spill] sm:$0xff] %v6520_v62  ;;  %v6529_v35 = vsub.f32 %v5943_v60, %v441_v61  ;;  %v6549_v61 = vsub.f32 %v5943_v60, %v558_v16  ;;  %v6552_v40 = vcvt.s32.f32 %v1229_v6 }
 0x187   :  { %vm916_vm15 = vcmp.eq.f32.partialorder %v6170_v14, %v6514_v41  ;;  %v119_v14 = vld [vmem:[%s10937_s0 + $0x150] sm:$0xff]  ;;  %v120_v41 = vld [vmem:[%s10937_s0 + $0x158] sm:$0xff] }
 0x188   :  { %11267 = vst [vmem:[#allocation32_spill] sm:$0xff] %v6529_v35  ;;  %v740_v30 = vsel %vm661_vm1, %v6529_v35, inf  ;;  %v443_v35 = vpop.f32.mrf.mxu0  ;;  %v881_v6 = vsel %vm661_vm1, %v6549_v61, inf }
 0x189   :  { %11269 = vst [vmem:[#allocation34_spill] sm:$0xff] %v6549_v61  ;;  %v6573_v2 = vsub.f32 %v5943_v60, %v443_v35 }
 0x18a   :  { %11270 = vst [vmem:[#allocation35_spill] sm:$0xff] %v6552_v40 }
 0x18b   :  { %1922 = vmin.xlane.f32.xlu2 %v6520_v62  ;;  %v186_v62 = vpack.c.bf16 %v118_v20, %v117_v53  ;;  %v561_v10 = vpop.f32.mrf.mxu2  ;;  %11273 = vst [vmem:[#allocation38_spill] sm:$0xff] %v6573_v2  ;;  %v1041_v53 = vsel %vm961_vm12, %v6177_v22, 64 }
 0x18c   :  { %879 = vmin.xlane.f32.xlu0 %v878_v43  ;;  %v6546_v43 = vpop.xlane.xlu1 %846 }
 0x18d   :  { %5389 = vmatmul.msk.bf16.gmra.mxu0 %vm11215_vm0, %v186_v62  ;;  %vm963_vm2 = vcmp.eq.f32.partialorder %v6167_v9, %v6546_v43 }
 0x18e   :  { %v6533_v49 = vpop.xlane.xlu2 %849  ;;  %1217 = vmin.xlane.f32.xlu1 %v6531_v57  ;;  %v6557_v57 = vsub.f32 %v5943_v60, %v561_v10  ;;  %v6562_v16 = vpop.xlane.xlu0 %708  ;;  %v743_v10 = vsel %vm661_vm1, %v6573_v2, inf }
 0x18f   :  { %vm917_vm3 = vcmp.eq.f32.partialorder %v6185_v31, %v6562_v16  ;;  %vm964_vm4 = vcmp.eq.f32.partialorder %v6180_v24, %v6533_v49 }
 0x190   :  { %11271 = vst [vmem:[#allocation36_spill] sm:$0xff] %v6557_v57  ;;  %v884_v47 = vsel %vm661_vm1, %v6557_v57, inf }
 0x193   :  { %741 = vmin.xlane.f32.xlu2 %v740_v30  ;;  %v6567_v30 = vsel %vm661_vm1, %v1040_v34, 2147483647  ;;  %v6582_v34 = vsel %vm661_vm1, %v994_v52, 2147483647  ;;  %v446_v52 = vpop.f32.mrf.mxu0  ;;  %v563_v29 = vpop.f32.mrf.mxu2 }
 0x194   :  { %1232 = vmin.xlane.f32.xlu0 %v6552_v40  ;;  %11272 = vst [vmem:[#allocation37_spill] sm:$0xff] %v6567_v30  ;;  %v1934_v15 = vshra.s32 %v6567_v30, 16  ;;  %v1244_v57 = vshra.s32 %v6582_v34, 16  ;;  %v1042_v40 = vsel %vm962_vm13, %v6177_v22, 64  ;;  %v6603_v1 = vsub.f32 %v5943_v60, %v446_v52 }
 0x195   :  { %11274 = vst [vmem:[#allocation39_spill] sm:$0xff] %v6582_v34  ;;  %v995_v34 = vsel %vm915_vm14, %v6177_v22, 64 }
 0x196   :  { %v6569_v62 = vpop.xlane.xlu2 %1067  ;;  %882 = vmin.xlane.f32.xlu1 %v881_v6  ;;  %v6587_v6 = vsel %vm661_vm1, %v1041_v53, 2147483647  ;;  %v6590_v35 = vcvt.s32.f32 %v1934_v15  ;;  %v6600_v53 = vpop.xlane.xlu0 %852  ;;  %11278 = vst [vmem:[#allocation43_spill] sm:$0xff] %v6603_v1  ;;  %v746_v4 = vsel %vm661_vm1, %v6603_v1, inf  ;;  %v6623_v19 = vsel %vm661_vm1, %v995_v34, 2147483647 }
 0x197   :  { %v6579_v20 = vpop.xlane.xlu1 %711  ;;  %11275 = vst [vmem:[#allocation40_spill] sm:$0xff] %v6587_v6  ;;  %v1259_v1 = vshra.s32 %v6623_v19, 16  ;;  %vm1069_vm6 = vcmp.eq.f32.partialorder %v6210_v54, %v6569_v62  ;;  %vm965_vm7 = vcmp.eq.f32.partialorder %v6203_v45, %v6600_v53 }
 0x198   :  { %11276 = vst [vmem:[#allocation41_spill] sm:$0xff] %v6590_v35  ;;  %vm918_vm5 = vcmp.eq.f32.partialorder %v6208_v51, %v6579_v20 }
 0x199   :  { %11282 = vst [vmem:[#allocation47_spill] sm:$0xff] %v6623_v19 }
 0x19b   :  { %885 = vmin.xlane.f32.xlu2 %v884_v47  ;;  %v1949_v47 = vshra.s32 %v6587_v6, 16  ;;  %v6613_v6 = vsel %vm661_vm1, %v1042_v40, 2147483647  ;;  %v6628_v40 = vsub.f32 %v5943_v60, %v563_v29  ;;  %v566_v34 = vpop.f32.mrf.mxu2  ;;  %v187_v60 = vpack.c.bf16 %v120_v41, %v119_v14  ;;  %v448_v29 = vpop.f32.mrf.mxu0 }
 0x19c   :  { %744 = vmin.xlane.f32.xlu0 %v743_v10  ;;  %v6607_v10 = vcvt.s32.f32 %v1244_v57  ;;  %11281 = vst [vmem:[#allocation46_spill] sm:$0xff] %v6613_v6  ;;  %v1964_v57 = vshra.s32 %v6613_v6, 16 }
 0x19d   :  { %v6610_v2 = vcvt.s32.f32 %v1949_v47  ;;  %11283 = vst [vmem:[#allocation48_spill] sm:$0xff] %v6628_v40  ;;  %v887_v19 = vsel %vm661_vm1, %v6628_v40, inf  ;;  %5390 = vmatmul.msk.bf16.gmra.mxu0 %vm11215_vm0, %v187_v60  ;;  %v1043_v40 = vsel %vm963_vm2, %v6177_v22, 64 }
 0x19e   :  { %v6593_v61 = vpop.xlane.xlu2 %1787  ;;  %1937 = vmin.xlane.f32.xlu1 %v6590_v35  ;;  %11279 = vst [vmem:[#allocation44_spill] sm:$0xff] %v6607_v10  ;;  %v6651_v35 = vcvt.s32.f32 %v1259_v1 }
 0x19f   :  { %11277 = vst [vmem:[#allocation42_spill] sm:$0xff] %v6593_v61  ;;  %vm1789_vm12 = vcmp.eq.f32.partialorder %v6230_v13, %v6593_v61  ;;  %v1108_v61 = vand.u32 65535, %v6286_v21 }
 0x1a0   :  { %11280 = vst [vmem:[#allocation45_spill] sm:$0xff] %v6610_v2 }
 0x1a1   :  { %v6605_v15 = vpop.xlane.xlu1 %1082  ;;  %11286 = vst [vmem:[#allocation51_spill] sm:$0xff] %v6651_v35 }
 0x1a2   :  { %vm1084_vm8 = vcmp.eq.f32.partialorder %v6237_v26, %v6605_v15 }
 0x1a3   :  { %1247 = vmin.xlane.f32.xlu2 %v6607_v10  ;;  %v996_v10 = vsel %vm916_vm15, %v6177_v22, 64  ;;  %v568_v30 = vpop.f32.mrf.mxu2 }
 0x1a4   :  { %1952 = vmin.xlane.f32.xlu0 %v6610_v2  ;;  %v6648_v2 = vsel %vm661_vm1, %v996_v10, 2147483647 }
 0x1a5   :  { %11285 = vst [vmem:[#allocation50_spill] sm:$0xff] %v6648_v2  ;;  %v1274_v10 = vshra.s32 %v6648_v2, 16 }
 0x1a6   :  { %v6625_v52 = vpop.xlane.xlu2 %714  ;;  %747 = vmin.xlane.f32.xlu1 %v746_v4  ;;  %v6642_v4 = vcvt.s32.f32 %v1964_v57  ;;  %v6656_v57 = vld [vmem:[%s10936_s3] ss:$0 sm:$0xff] }
 0x1a7   :  { %v6630_v47 = vpop.xlane.xlu0 %1097  ;;  %v6659_v14 = vsub.f32 %v6656_v57, %v448_v29  ;;  %v6670_v1 = vsub.f32 %v6656_v57, %v566_v34  ;;  %v6688_v34 = vsel %vm661_vm1, %v1043_v40, 2147483647  ;;  %v122_v40 = vld [vmem:[%s10937_s0 + $0x168] sm:$0xff]  ;;  %vm919_vm9 = vcmp.eq.f32.partialorder %v6242_v11, %v6625_v52 }
 0x1a8   :  { %11284 = vst [vmem:[#allocation49_spill] sm:$0xff] %v6642_v4  ;;  %v1979_v16 = vshra.s32 %v6688_v34, 16  ;;  %v999_v11 = vsel %vm919_vm9, %v6177_v22, 64  ;;  %vm1099_vm13 = vcmp.eq.f32.partialorder %v6256_v18, %v6630_v47 }
 0x1a9   :  { %v6640_v6 = vpop.xlane.xlu1 %855  ;;  %11287 = vst [vmem:[#allocation52_spill] sm:$0xff] %v6659_v14  ;;  %v749_v29 = vsel %vm661_vm1, %v6659_v14, inf  ;;  %v890_v9 = vsel %vm661_vm1, %v6670_v1, inf }
 0x1aa   :  { %11288 = vst [vmem:[#allocation53_spill] sm:$0xff] %v6670_v1  ;;  %vm966_vm10 = vcmp.eq.f32.partialorder %v6252_v0, %v6640_v6 }
 0x1ab   :  { %1967 = vmin.xlane.f32.xlu2 %v6642_v4  ;;  %v6677_v4 = vcvt.s32.f32 %v1274_v10  ;;  %11292 = vst [vmem:[#allocation57_spill] sm:$0xff] %v6688_v34  ;;  %v6691_v10 = vsub.f32 %v6656_v57, %v568_v30  ;;  %v6715_v34 = vcvt.s32.f32 %v1979_v16  ;;  %v571_v54 = vpop.f32.mrf.mxu2 }
 0x1ac   :  { %888 = vmin.xlane.f32.xlu0 %v887_v19 }
 0x1ad   :  { %11290 = vst [vmem:[#allocation55_spill] sm:$0xff] %v6677_v4 }
 0x1ae   :  { %v6661_v41 = vpop.xlane.xlu2 %858  ;;  %1262 = vmin.xlane.f32.xlu1 %v6651_v35  ;;  %v451_v35 = vpop.f32.mrf.mxu0  ;;  %11293 = vst [vmem:[#allocation58_spill] sm:$0xff] %v6691_v10 }
 0x1af   :  { %v6667_v19 = vpop.xlane.xlu0 %717  ;;  %v6685_v43 = vsub.f32 %v6656_v57, %v451_v35  ;;  %v121_v35 = vld [vmem:[%s10937_s0 + $0x160] sm:$0xff]  ;;  %vm967_vm2 = vcmp.eq.f32.partialorder %v6270_v56, %v6661_v41  ;;  %v1110_v41 = vcvt.s32.f32 %v1108_v61 }
 0x1b0   :  { %vm920_vm14 = vcmp.eq.f32.partialorder %v6267_v55, %v6667_v19  ;;  %v1047_v56 = vsel %vm967_vm2, %v6177_v22, 64 }
 0x1b1   :  { %v6672_v60 = vpop.xlane.xlu1 %1802  ;;  %11291 = vst [vmem:[#allocation56_spill] sm:$0xff] %v6685_v43  ;;  %v752_v30 = vsel %vm661_vm1, %v6685_v43, inf  ;;  %v1063_v43 = vand.u32 65535, %v6198_v38 }
 0x1b2   :  { %11289 = vst [vmem:[#allocation54_spill] sm:$0xff] %v6672_v60  ;;  %vm1804_vm11 = vcmp.eq.f32.partialorder %v6293_v25, %v6672_v60 }
 0x1b3   :  { %750 = vmin.xlane.f32.xlu2 %v749_v29  ;;  %v997_v29 = vsel %vm917_vm3, %v6177_v22, 64  ;;  %v1065_v16 = vcvt.s32.f32 %v1063_v43 }
 0x1b4   :  { %1277 = vmin.xlane.f32.xlu0 %v6677_v4  ;;  %v893_v4 = vsel %vm661_vm1, %v6691_v10, inf  ;;  %v6712_v14 = vsel %vm661_vm1, %v997_v29, 2147483647  ;;  %v1044_v29 = vsel %vm964_vm4, %v6177_v22, 64 }
 0x1b5   :  { %11294 = vst [vmem:[#allocation59_spill] sm:$0xff] %v6712_v14  ;;  %v1289_v59 = vshra.s32 %v6712_v14, 16  ;;  %v1070_v51 = vsel %vm1069_vm6, %v1065_v16, inf  ;;  %v6741_v20 = vsel %vm661_vm1, %v1044_v29, 2147483647  ;;  %v1045_v29 = vsel %vm965_vm7, %v6177_v22, 64 }
 0x1b6   :  { %v6693_v2 = vpop.xlane.xlu2 %1112  ;;  %891 = vmin.xlane.f32.xlu1 %v890_v9  ;;  %v188_v9 = vpack.c.bf16 %v122_v40, %v121_v35  ;;  %v453_v40 = vpop.f32.mrf.mxu0  ;;  %v1994_v16 = vshra.s32 %v6741_v20, 16  ;;  %v1798_v14 = vand.u32 65535, %v6260_v48  ;;  %v1093_v48 = vand.u32 65535, %v6247_v32 }
 0x1b7   :  { %v6696_v31 = vpop.xlane.xlu0 %1817  ;;  %v6732_v24 = vsub.f32 %v6656_v57, %v453_v40  ;;  %v6736_v38 = vcvt.s32.f32 %v1289_v59  ;;  %v6820_v32 = vsel %vm661_vm1, %v999_v11, 2147483647 }
 0x1b8   :  { %5391 = vmatmul.msk.bf16.gmra.mxu0 %vm11215_vm0, %v188_v9  ;;  %v1078_v9 = vand.u32 65535, %v6233_v17  ;;  %v1800_v52 = vcvt.s32.f32 %v1798_v14  ;;  %v1095_v6 = vcvt.s32.f32 %v1093_v48  ;;  %v1319_v18 = vshra.s32 %v6820_v32, 16 }
 0x1b9   :  { %v6705_v1 = vpop.xlane.xlu1 %720  ;;  %11296 = vst [vmem:[#allocation61_spill] sm:$0xff] %v6736_v38  ;;  %v755_v59 = vsel %vm661_vm1, %v6732_v24, inf  ;;  %v1000_v48 = vsel %vm920_vm14, %v6177_v22, 64  ;;  %vm1819_vm15 = vcmp.eq.f32.partialorder %v6306_v50, %v6696_v31 }
 0x1ba   :  { %v1080_v45 = vcvt.s32.f32 %v1078_v9  ;;  %v1805_v0 = vsel %vm1804_vm11, %v1800_v52, inf  ;;  %v1100_v14 = vsel %vm1099_vm13, %v1095_v6, inf  ;;  %vm921_vm3 = vcmp.eq.f32.partialorder %v6301_v42, %v6705_v1 }
 0x1bb   :  { %894 = vmin.xlane.f32.xlu2 %v893_v4 }
 0x1bc   :  { %753 = vmin.xlane.f32.xlu0 %v752_v30  ;;  %v998_v30 = vsel %vm918_vm5, %v6177_v22, 64  ;;  %vm1114_vm5 = vcmp.eq.f32.partialorder %v6303_v44, %v6693_v2 }
 0x1bd   :  { %v6749_v43 = vsel %vm661_vm1, %v998_v30, 2147483647  ;;  %v6762_v30 = vcvt.s32.f32 %v1994_v16  ;;  %v1115_v1 = vsel %vm1114_vm5, %v1110_v41, inf }
 0x1be   :  { %v6721_v35 = vpop.xlane.xlu2 %1832  ;;  %1982 = vmin.xlane.f32.xlu1 %v6715_v34  ;;  %v1304_v17 = vshra.s32 %v6749_v43, 16 }
 0x1bf   :  { %v6726_v4 = vpop.xlane.xlu0 %861  ;;  %vm1834_vm9 = vcmp.eq.f32.partialorder %v6325_v5, %v6721_v35 }
 0x1c0   :  { %11295 = vst [vmem:[#allocation60_spill] sm:$0xff] %v6726_v4  ;;  %v6765_v4 = vsel %vm661_vm1, %v1045_v29, 2147483647  ;;  %v123_v29 = vld [vmem:[%s10937_s0 + $0x170] sm:$0xff] }
 0x1c1   :  { %v6734_v49 = vpop.xlane.xlu1 %1127  ;;  %11298 = vst [vmem:[#allocation63_spill] sm:$0xff] %v6765_v4  ;;  %v2009_v26 = vshra.s32 %v6765_v4, 16 }
 0x1c2   :  { %vm1129_vm4 = vcmp.eq.f32.partialorder %v6336_v36, %v6734_v49  ;;  %v1843_v36 = vand.u32 65535, %v6365_v37 }
 0x1c3   :  { %1292 = vmin.xlane.f32.xlu2 %v6736_v38  ;;  %v6771_v38 = vsub.f32 %v6656_v57, %v571_v54 }
 0x1c4   :  { %1071 = vmin.xlane.f32.xlu0 %v1070_v51  ;;  %v1085_v51 = vsel %vm1084_vm8, %v1080_v45, inf  ;;  %v573_v45 = vpop.f32.mrf.mxu2 }
 0x1c5   :  { %11300 = vst [vmem:[#allocation65_spill] sm:$0xff] %v6771_v38  ;;  %v6786_v54 = vsub.f32 %v6656_v57, %v573_v45 }
 0x1c6   :  { %v6751_v40 = vpop.xlane.xlu2 %723  ;;  %756 = vmin.xlane.f32.xlu1 %v755_v59  ;;  %v6768_v59 = vcvt.s32.f32 %v1304_v17  ;;  %v124_v17 = vld [vmem:[%s10937_s0 + $0x178] sm:$0xff] }
 0x1c7   :  { %v6755_v10 = vpop.xlane.xlu0 %1142  ;;  %11302 = vst [vmem:[#allocation67_spill] sm:$0xff] %v6786_v54  ;;  %v189_v4 = vpack.c.bf16 %v124_v17, %v123_v29  ;;  %v899_v45 = vsel %vm661_vm1, %v6786_v54, inf  ;;  %v456_v17 = vpop.f32.mrf.mxu0  ;;  %vm922_vm8 = vcmp.eq.f32.partialorder %v6334_v33, %v6751_v40 }
 0x1c8   :  { %11299 = vst [vmem:[#allocation64_spill] sm:$0xff] %v6768_v59  ;;  %v6825_v13 = vsub.f32 %v6656_v57, %v456_v17 }
 0x1c9   :  { %v6760_v53 = vpop.xlane.xlu1 %864  ;;  %5392 = vmatmul.msk.bf16.gmra.mxu0 %vm11215_vm0, %v189_v4 }
 0x1ca   :  { %11297 = vst [vmem:[#allocation62_spill] sm:$0xff] %v6760_v53  ;;  %v6790_v53 = vcvt.s32.f32 %v2009_v26  ;;  %v1783_v26 = vand.u32 65535, %v6217_v58  ;;  %v758_v55 = vsel %vm661_vm1, %v6825_v13, inf }
 0x1cb   :  { %1086 = vmin.xlane.f32.xlu2 %v1085_v51 }
 0x1cc   :  { %1997 = vmin.xlane.f32.xlu0 %v6762_v30  ;;  %v1785_v4 = vcvt.s32.f32 %v1783_v26 }
 0x1ce   :  { %v6774_v9 = vpop.xlane.xlu2 %867  ;;  %1307 = vmin.xlane.f32.xlu1 %v6768_v59  ;;  %v1790_v25 = vsel %vm1789_vm12, %v1785_v4, inf  ;;  %v6841_v4 = vcvt.s32.f32 %v1319_v18 }
 0x1cf   :  { %11301 = vst [vmem:[#allocation66_spill] sm:$0xff] %v6774_v9  ;;  %v6777_v16 = vpop.xlane.xlu0 %726  ;;  %v896_v9 = vsel %vm661_vm1, %v6771_v38, inf  ;;  %v458_v17 = vpop.f32.mrf.mxu0 }
 0x1d0   :  { %vm923_vm7 = vcmp.eq.f32.partialorder %v6369_v46, %v6777_v16  ;;  %v1138_v46 = vand.u32 65535, %v6331_v8  ;;  %v1002_v16 = vsel %vm922_vm8, %v6177_v22, 64 }
 0x1d1   :  { %v6788_v51 = vpop.xlane.xlu1 %1847 }
 0x1d2   :  { %vm1849_vm6 = vcmp.eq.f32.partialorder %v6384_v27, %v6788_v51  ;;  %v1828_v27 = vand.u32 65535, %v6309_v3  ;;  %v1140_v8 = vcvt.s32.f32 %v1138_v46 }
 0x1d3   :  { %2012 = vmin.xlane.f32.xlu2 %v6790_v53 }
 0x1d4   :  { %897 = vmin.xlane.f32.xlu0 %v896_v9  ;;  %v1046_v9 = vsel %vm966_vm10, %v6177_v22, 64  ;;  %v1830_v3 = vcvt.s32.f32 %v1828_v27  ;;  %vm1144_vm10 = vcmp.eq.f32.partialorder %v6353_v39, %v6755_v10 }
 0x1d6   :  { %v6802_v59 = vpop.xlane.xlu2 %1157  ;;  %900 = vmin.xlane.f32.xlu1 %v899_v45  ;;  %v6828_v45 = vsel %vm661_vm1, %v1046_v9, 2147483647  ;;  %v6844_v9 = vsel %vm661_vm1, %v1000_v48, 2147483647  ;;  %v1813_v48 = vand.u32 65535, %v6289_v23 }
 0x1d7   :  { %v6806_v29 = vpop.xlane.xlu0 %1862  ;;  %v2024_v19 = vshra.s32 %v6828_v45, 16  ;;  %v461_v60 = vpop.f32.mrf.mxu0 }
 0x1d8   :  { %v1815_v38 = vcvt.s32.f32 %v1813_v48  ;;  %v6879_v48 = vsub.f32 %v6656_v57, %v461_v60 }
 0x1d9   :  { %v6814_v58 = vpop.xlane.xlu1 %729 }
 0x1da   :  { %v1820_v23 = vsel %vm1819_vm15, %v1815_v38, inf  ;;  %v1001_v38 = vsel %vm921_vm3, %v6177_v22, 64  ;;  %v764_v60 = vsel %vm661_vm1, %v6879_v48, inf }
 0x1db   :  { %1806 = vmin.xlane.f32.xlu2 %v1805_v0  ;;  %v6847_v0 = vcvt.s32.f32 %v2024_v19 }
 0x1dc   :  { %1791 = vmin.xlane.f32.xlu0 %v1790_v25  ;;  %v1334_v25 = vshra.s32 %v6844_v9, 16 }
 0x1de   :  { %v6830_v26 = vpop.xlane.xlu2 %1877  ;;  %1101 = vmin.xlane.f32.xlu1 %v1100_v14  ;;  %v6854_v14 = vsub.f32 %v6656_v57, %v458_v17  ;;  %v1123_v17 = vand.u32 65535, %v6321_v63 }
 0x1df   :  { %11303 = vst [vmem:[#allocation68_spill] sm:$0xff] %v6830_v26  ;;  %v6834_v11 = vpop.xlane.xlu0 %870 }
 0x1e0   :  { %11304 = vst [vmem:[#allocation69_spill] sm:$0xff] %v6834_v11  ;;  %v761_v19 = vsel %vm661_vm1, %v6854_v14, inf  ;;  %v1125_v63 = vcvt.s32.f32 %v1123_v17  ;;  %v6896_v17 = vsel %vm661_vm1, %v1001_v38, 2147483647  ;;  %v463_v38 = vpop.f32.mrf.mxu0 }
 0x1e1   :  { %v6839_v52 = vpop.xlane.xlu1 %1172 }
 0x1e2   :  { %11305 = vst [vmem:[#allocation70_spill] sm:$0xff] %v6839_v52  ;;  %v1130_v42 = vsel %vm1129_vm4, %v1125_v63, inf  ;;  %v1845_v63 = vcvt.s32.f32 %v1843_v36  ;;  %vm1174_vm13 = vcmp.eq.f32.partialorder %v6431_v28, %v6839_v52  ;;  %v163_v28 = vld [vmem:[%s10938_s2 + $0x30] sm:$0xff]  ;;  %v11360_v52 = vld [vmem:[#allocation38_spill] sm:$0xff] }
 0x1e3   :  { %759 = vmin.xlane.f32.xlu2 %v758_v55  ;;  %v6861_v55 = vcvt.s32.f32 %v1334_v25 }
 0x1e4   :  { %1322 = vmin.xlane.f32.xlu0 %v6841_v4 }
 0x1e5   :  { %11308 = vst [vmem:[#allocation73_spill] sm:$0xff] %v6861_v55 }
 0x1e6   :  { %v6850_v6 = vpop.xlane.xlu2 %732  ;;  %2027 = vmin.xlane.f32.xlu1 %v6847_v0 }
 0x1e7   :  { %v6856_v18 = vpop.xlane.xlu0 %1187 }
 0x1e8   :  { %11306 = vst [vmem:[#allocation71_spill] sm:$0xff] %v6856_v18  ;;  %v466_v5 = vpop.f32.mrf.mxu0 }
 0x1e9   :  { %v6859_v54 = vpop.xlane.xlu1 %873  ;;  %v6962_v11 = vsub.f32 %v6656_v57, %v466_v5 }
 0x1ea   :  { %11307 = vst [vmem:[#allocation72_spill] sm:$0xff] %v6859_v54 }
 0x1eb   :  { %1337 = vmin.xlane.f32.xlu2 %v6861_v55  ;;  %v770_v5 = vsel %vm661_vm1, %v6962_v11, inf }
 0x1ec   :  { %762 = vmin.xlane.f32.xlu0 %v761_v19  ;;  %v6892_v19 = vsel %vm661_vm1, %v1047_v56, 2147483647  ;;  %v1349_v56 = vshra.s32 %v6896_v17, 16 }
 0x1ed   :  { %v2039_v61 = vshra.s32 %v6892_v19, 16 }
 0x1ee   :  { %v6872_v25 = vpop.xlane.xlu2 %876  ;;  %1821 = vmin.xlane.f32.xlu1 %v1820_v23 }
 0x1ef   :  { %11309 = vst [vmem:[#allocation74_spill] sm:$0xff] %v6872_v25  ;;  %v6876_v50 = vpop.xlane.xlu0 %735  ;;  %v6908_v37 = vcvt.s32.f32 %v2039_v61  ;;  %v1003_v61 = vsel %vm923_vm7, %v6177_v22, 64 }
 0x1f1   :  { %v6886_v21 = vpop.xlane.xlu1 %1892 }
 0x1f2   :  { %11310 = vst [vmem:[#allocation75_spill] sm:$0xff] %v6886_v21 }
 0x1f3   :  { %1131 = vmin.xlane.f32.xlu2 %v1130_v42  ;;  %v1850_v42 = vsel %vm1849_vm6, %v1845_v63, inf }
 0x1f4   :  { %1116 = vmin.xlane.f32.xlu0 %v1115_v1  ;;  %v6913_v1 = vcvt.s32.f32 %v1349_v56  ;;  %v6938_v56 = vsel %vm661_vm1, %v1003_v61, 2147483647  ;;  %v1858_v61 = vand.u32 65535, %v6381_v7 }
 0x1f5   :  { %11316 = vst [vmem:[#allocation81_spill] sm:$0xff] %v6938_v56  ;;  %v1379_v27 = vshra.s32 %v6938_v56, 16 }
 0x1f6   :  { %v6898_v44 = vpop.xlane.xlu2 %1202  ;;  %765 = vmin.xlane.f32.xlu1 %v764_v60  ;;  %v6919_v60 = vsub.f32 %v6656_v57, %v463_v38  ;;  %v6941_v38 = vsel %vm661_vm1, %v1002_v16, 2147483647 }
 0x1f7   :  { %11311 = vst [vmem:[#allocation76_spill] sm:$0xff] %v6898_v44  ;;  %v6901_v23 = vpop.xlane.xlu0 %1907  ;;  %v1364_v54 = vshra.s32 %v6941_v38, 16  ;;  %v6952_v46 = vcvt.s32.f32 %v1379_v27  ;;  %v468_v27 = vpop.f32.mrf.mxu0 }
 0x1f8   :  { %11312 = vst [vmem:[#allocation77_spill] sm:$0xff] %v6901_v23  ;;  %v767_v40 = vsel %vm661_vm1, %v6919_v60, inf }
 0x1f9   :  { %v6906_v41 = vpop.xlane.xlu1 %738  ;;  %11313 = vst [vmem:[#allocation78_spill] sm:$0xff] %v6919_v60  ;;  %v6954_v16 = vcvt.s32.f32 %v1364_v54  ;;  %v11325_v54 = vld [vmem:[#allocation8_spill] sm:$0xff] }
 0x1fa   :  { %11317 = vst [vmem:[#allocation82_spill] sm:$0xff] %v6941_v38  ;;  %vm924_vm12 = vcmp.eq.f32.partialorder %v11325_v54, %v6814_v58 }
 0x1fb   :  { %1851 = vmin.xlane.f32.xlu2 %v1850_v42  ;;  %v1835_v42 = vsel %vm1834_vm9, %v1830_v3, inf  ;;  %11319 = vst [vmem:[#allocation84_spill] sm:$0xff] %v6952_v46  ;;  %v11321_v3 = vld [vmem:[#allocation10_spill] sm:$0xff]  ;;  %v1004_v58 = vsel %vm924_vm12, %v6177_v22, 64 }
 0x1fc   :  { %2042 = vmin.xlane.f32.xlu0 %v6908_v37  ;;  %11320 = vst [vmem:[#allocation85_spill] sm:$0xff] %v6954_v16  ;;  %vm1864_vm11 = vcmp.eq.f32.partialorder %v11321_v3, %v6806_v29  ;;  %v6973_v3 = vsub.f32 %v6656_v57, %v468_v27  ;;  %v162_v27 = vld [vmem:[%s10938_s2 + $0x28] sm:$0xff] }
 0x1fd   :  { %11323 = vst [vmem:[#allocation10_spill] sm:$0xff] %v6962_v11  ;;  %v11349_v11 = vld [vmem:[#allocation24_spill] sm:$0xff] }
 0x1fe   :  { %v6921_v36 = vpop.xlane.xlu2 %1922  ;;  %1352 = vmin.xlane.f32.xlu1 %v6913_v1  ;;  %11326 = vst [vmem:[#allocation8_spill] sm:$0xff] %v6973_v3  ;;  %v773_v54 = vsel %vm661_vm1, %v6973_v3, inf  ;;  %vm927_vm7 = vcmp.eq.f32.partialorder %v11349_v11, %v6906_v41 }
 0x1ff   :  { %v6925_v63 = vpop.xlane.xlu0 %879  ;;  %v471_v38 = vpop.f32.mrf.mxu0 }
 0x200   :  { %11314 = vst [vmem:[#allocation79_spill] sm:$0xff] %v6925_v63  ;;  %v1145_v63 = vsel %vm1144_vm10, %v1140_v8, inf }
 0x201   :  { %v6931_v33 = vpop.xlane.xlu1 %1217 }
 0x202   :  { %11315 = vst [vmem:[#allocation80_spill] sm:$0xff] %v6931_v33 }
 0x203   :  { %768 = vmin.xlane.f32.xlu2 %v767_v40 }
 0x204   :  { %1836 = vmin.xlane.f32.xlu0 %v1835_v42  ;;  %v1860_v42 = vcvt.s32.f32 %v1858_v61 }
 0x206   :  { %v6944_v25 = vpop.xlane.xlu2 %741  ;;  %1146 = vmin.xlane.f32.xlu1 %v1145_v63  ;;  %v11322_v63 = vld [vmem:[#allocation12_spill] sm:$0xff]  ;;  %v1865_v7 = vsel %vm1864_vm11, %v1860_v42, inf  ;;  %v164_v42 = vld [vmem:[%s10938_s2 + $0x38] sm:$0xff] }
 0x207   :  { %v6947_v39 = vpop.xlane.xlu0 %1232  ;;  %v1168_v8 = vand.u32 65535, %v11322_v63  ;;  %4559 = vmatpush.msra.mxu1 %v164_v42  ;;  %5660 = vmatpush.msra.mxu3 %v164_v42  ;;  %v161_v42 = vld [vmem:[%s10938_s2 + $0x20] sm:$0xff] }
 0x209   :  { %v6950_v40 = vpop.xlane.xlu1 %882  ;;  %v1170_v61 = vcvt.s32.f32 %v1168_v8  ;;  %v1888_v8 = vand.u32 65535, %v6456_v12  ;;  %4560 = vmatpush.msra.mxu1 %v163_v28  ;;  %5661 = vmatpush.msra.mxu3 %v163_v28 }
 0x20a   :  { %11318 = vst [vmem:[#allocation83_spill] sm:$0xff] %v6950_v40 }
 0x20b   :  { %1382 = vmin.xlane.f32.xlu2 %v6952_v46  ;;  %v6994_v46 = vsel %vm661_vm1, %v1004_v58, 2147483647  ;;  %4561 = vmatpush.msra.mxu1 %v162_v27  ;;  %v1890_v60 = vcvt.s32.f32 %v1888_v8  ;;  %v11332_v8 = vld [vmem:[#allocation19_spill] sm:$0xff] }
 0x20c   :  { %1367 = vmin.xlane.f32.xlu0 %v6954_v16  ;;  %5662 = vmatpush.msra.mxu3 %v162_v27  ;;  %v1394_v58 = vshra.s32 %v6994_v46, 16  ;;  %vm926_vm2 = vcmp.eq.f32.partialorder %v11332_v8, %v6876_v50  ;;  %v11338_v50 = vld [vmem:[#allocation15_spill] sm:$0xff] }
 0x20d   :  { %4562 = vmatpush.msra.mxu1 %v161_v42 }
 0x20e   :  { %v6964_v56 = vpop.xlane.xlu2 %885  ;;  %1866 = vmin.xlane.f32.xlu1 %v1865_v7  ;;  %v1175_v7 = vsel %vm1174_vm13, %v1170_v61, inf  ;;  %5663 = vmatpush.msra.mxu3 %v161_v42 }
 0x20f   :  { %11324 = vst [vmem:[#allocation12_spill] sm:$0xff] %v6964_v56  ;;  %v6968_v40 = vpop.xlane.xlu0 %744  ;;  %v11328_v56 = vld [vmem:[#allocation7_spill] sm:$0xff] }
 0x210   :  { %v1153_v61 = vand.u32 65535, %v11328_v56  ;;  %11329 = vst [vmem:[#allocation7_spill] sm:$0xff] %v6994_v46  ;;  %v11331_v56 = vld [vmem:[#allocation9_spill] sm:$0xff]  ;;  %v11336_v46 = vld [vmem:[#allocation11_spill] sm:$0xff]  ;;  %vm929_vm11 = vcmp.eq.f32.partialorder %v11360_v52, %v6968_v40 }
 0x211   :  { %v6975_v63 = vpop.xlane.xlu1 %1937  ;;  %vm1159_vm15 = vcmp.eq.f32.partialorder %v11331_v56, %v6802_v59  ;;  %v7018_v56 = vcvt.s32.f32 %v1394_v58  ;;  %v1873_v42 = vand.u32 65535, %v11336_v46  ;;  %v11339_v46 = vld [vmem:[#allocation14_spill] sm:$0xff] }
 0x212   :  { %11327 = vst [vmem:[#allocation86_spill] sm:$0xff] %v6975_v63  ;;  %v1155_v28 = vcvt.s32.f32 %v1153_v61  ;;  %v11335_v61 = vld [vmem:[#allocation16_spill] sm:$0xff]  ;;  %vm1879_vm4 = vcmp.eq.f32.partialorder %v11339_v46, %v6830_v26 }
 0x213   :  { %1176 = vmin.xlane.f32.xlu2 %v1175_v7  ;;  %v11330_v7 = vld [vmem:[#allocation23_spill] sm:$0xff]  ;;  %11334 = vst [vmem:[#allocation9_spill] sm:$0xff] %v7018_v56  ;;  %vm925_vm3 = vcmp.eq.f32.partialorder %v11335_v61, %v6850_v6  ;;  %v1875_v8 = vcvt.s32.f32 %v1873_v42 }
 0x214   :  { %771 = vmin.xlane.f32.xlu0 %v770_v5  ;;  %vm1894_vm14 = vcmp.eq.f32.partialorder %v11330_v7, %v6886_v21  ;;  %v1160_v27 = vsel %vm1159_vm15, %v1155_v28, inf  ;;  %v7016_v7 = vsub.f32 %v6656_v57, %v471_v38  ;;  %v159_v38 = vld [vmem:[%s10938_s2 + $0x10] sm:$0xff]  ;;  %v1005_v58 = vsel %vm925_vm3, %v6177_v22, 64  ;;  %v158_v61 = vld [vmem:[%s10938_s2 + $0x8] sm:$0xff]  ;;  %v157_v42 = vld [vmem:[%s10938_s2] sm:$0xff] }
 0x215   :  { %v1895_v16 = vsel %vm1894_vm14, %v1890_v60, inf }
 0x216   :  { %v6999_v5 = vpop.xlane.xlu2 %1247  ;;  %774 = vmin.xlane.f32.xlu1 %v773_v54  ;;  %v160_v54 = vld [vmem:[%s10938_s2 + $0x18] sm:$0xff]  ;;  %11333 = vst [vmem:[#allocation23_spill] sm:$0xff] %v7016_v7  ;;  %v776_v6 = vsel %vm661_vm1, %v7016_v7, inf  ;;  %v1880_v7 = vsel %vm1879_vm4, %v1875_v8, inf }
 0x217   :  { %v7001_v12 = vpop.xlane.xlu0 %1952  ;;  %4563 = vmatpush.msra.mxu1 %v160_v54  ;;  %5664 = vmatpush.msra.mxu3 %v160_v54  ;;  %v1183_v54 = vand.u32 65535, %v11338_v50  ;;  %v11340_v50 = vld [vmem:[#allocation18_spill] sm:$0xff] }
 0x218   :  { %vm1189_vm5 = vcmp.eq.f32.partialorder %v11340_v50, %v6856_v18 }
 0x219   :  { %v7008_v3 = vpop.xlane.xlu1 %747  ;;  %4564 = vmatpush.msra.mxu1 %v159_v38  ;;  %5665 = vmatpush.msra.mxu3 %v159_v38  ;;  %v1185_v46 = vcvt.s32.f32 %v1183_v54  ;;  %v7049_v38 = vsel %vm661_vm1, %v1005_v58, 2147483647  ;;  %v11343_v58 = vld [vmem:[#allocation22_spill] sm:$0xff] }
 0x21a   :  { %11342 = vst [vmem:[#allocation11_spill] sm:$0xff] %v7049_v38  ;;  %v1903_v8 = vand.u32 65535, %v11343_v58 }
 0x21b   :  { %1896 = vmin.xlane.f32.xlu2 %v1895_v16  ;;  %v1006_v16 = vsel %vm926_vm2, %v6177_v22, 64  ;;  %4565 = vmatpush.msra.mxu1 %v158_v61 }
 0x21c   :  { %1161 = vmin.xlane.f32.xlu0 %v1160_v27  ;;  %5666 = vmatpush.msra.mxu3 %v158_v61 }
 0x21d   :  { %4566 = vmatpush.msra.mxu1 %v157_v42 }
 0x21e   :  { %v7023_v60 = vpop.xlane.xlu2 %1967  ;;  %1397 = vmin.xlane.f32.xlu1 %v7018_v56  ;;  %v1190_v56 = vsel %vm1189_vm5, %v1185_v46, inf  ;;  %5667 = vmatpush.msra.mxu3 %v157_v42  ;;  %v11347_v46 = vld [vmem:[#allocation26_spill] sm:$0xff]  ;;  %v1905_v42 = vcvt.s32.f32 %v1903_v8  ;;  %v11353_v8 = vld [vmem:[#allocation33_spill] sm:$0xff] }
 0x21f   :  { %v7027_v28 = vpop.xlane.xlu0 %888  ;;  %vm1909_vm6 = vcmp.eq.f32.partialorder %v11347_v46, %v6901_v23  ;;  %vm1219_vm8 = vcmp.eq.f32.partialorder %v11353_v8, %v6931_v33 }
 0x220   :  { %11337 = vst [vmem:[#allocation19_spill] sm:$0xff] %v7027_v28  ;;  %v7046_v28 = vsel %vm661_vm1, %v1006_v16, 2147483647  ;;  %v473_v16 = vpop.f32.mrf.mxu0 }
 0x221   :  { %v7038_v27 = vpop.xlane.xlu1 %1262  ;;  %11341 = vst [vmem:[#allocation16_spill] sm:$0xff] %v7046_v28  ;;  %v1424_v50 = vshra.s32 %v7046_v28, 16 }
 0x223   :  { %777 = vmin.xlane.f32.xlu2 %v776_v6  ;;  %v1409_v6 = vshra.s32 %v7049_v38, 16  ;;  %v7063_v21 = vcvt.s32.f32 %v1424_v50  ;;  %v1910_v38 = vsel %vm1909_vm6, %v1905_v42, inf  ;;  %v1007_v42 = vsel %vm927_vm7, %v6177_v22, 64 }
 0x224   :  { %1881 = vmin.xlane.f32.xlu0 %v1880_v7  ;;  %v7096_v8 = vsel %vm661_vm1, %v1007_v42, 2147483647 }
 0x225   :  { %11345 = vst [vmem:[#allocation14_spill] sm:$0xff] %v7063_v21  ;;  %v7065_v7 = vcvt.s32.f32 %v1409_v6  ;;  %v7077_v6 = vsub.f32 %v6656_v57, %v473_v16  ;;  %v1074_v16 = vcvt.f32.s32 %v6569_v62 }
 0x226   :  { %v7055_v18 = vpop.xlane.xlu2 %750  ;;  %1191 = vmin.xlane.f32.xlu1 %v1190_v56  ;;  %v11348_v56 = vld [vmem:[#allocation29_spill] sm:$0xff]  ;;  %11355 = vst [vmem:[#allocation24_spill] sm:$0xff] %v7096_v8 }
 0x227   :  { %v7058_v54 = vpop.xlane.xlu0 %1277  ;;  %11346 = vst [vmem:[#allocation18_spill] sm:$0xff] %v7065_v7  ;;  %v1213_v28 = vand.u32 65535, %v11348_v56  ;;  %v779_v41 = vsel %vm661_vm1, %v7077_v6, inf }
 0x228   :  { %v476_v50 = vpop.f32.mrf.mxu0  ;;  %11351 = vst [vmem:[#allocation26_spill] sm:$0xff] %v7077_v6  ;;  %v1439_v6 = vshra.s32 %v7096_v8, 16 }
 0x229   :  { %v7061_v61 = vpop.xlane.xlu1 %891  ;;  %v7082_v46 = vsub.f32 %v6656_v57, %v476_v50  ;;  %v1215_v56 = vcvt.s32.f32 %v1213_v28  ;;  %v11354_v50 = vld [vmem:[#allocation37_spill] sm:$0xff] }
 0x22a   :  { %11344 = vst [vmem:[#allocation15_spill] sm:$0xff] %v7061_v61  ;;  %v11356_v28 = vld [vmem:[#allocation21_spill] sm:$0xff] }
 0x22b   :  { %1427 = vmin.xlane.f32.xlu2 %v7063_v21  ;;  %11352 = vst [vmem:[#allocation29_spill] sm:$0xff] %v7082_v46  ;;  %v1220_v11 = vsel %vm1219_vm8, %v1215_v56, inf  ;;  %v1198_v33 = vand.u32 65535, %v11356_v28  ;;  %v1089_v28 = vcvt.f32.s32 %v6605_v15  ;;  %v11362_v15 = vld [vmem:[#allocation32_spill] sm:$0xff] }
 0x22c   :  { %1412 = vmin.xlane.f32.xlu0 %v7065_v7  ;;  %vm928_vm12 = vcmp.eq.f32.partialorder %v11362_v15, %v6944_v25  ;;  %v11368_v15 = vld [vmem:[#allocation35_spill] sm:$0xff] }
 0x22d   :  { %v1200_v42 = vcvt.s32.f32 %v1198_v33  ;;  %v11363_v33 = vld [vmem:[#allocation27_spill] sm:$0xff]  ;;  %vm1234_vm15 = vcmp.eq.f32.partialorder %v11368_v15, %v6947_v39 }
 0x22e   :  { %v7074_v58 = vpop.xlane.xlu2 %894  ;;  %1911 = vmin.xlane.f32.xlu1 %v1910_v38  ;;  %v782_v38 = vsel %vm661_vm1, %v7082_v46, inf  ;;  %v1075_v46 = vshll.u32 %v1074_v16, 16  ;;  %v7113_v16 = vcvt.s32.f32 %v1439_v6 }
 0x22f   :  { %11350 = vst [vmem:[#allocation22_spill] sm:$0xff] %v7074_v58  ;;  %v7079_v61 = vpop.xlane.xlu0 %753  ;;  %v1933_v58 = vand.u32 65535, %v11354_v50 }
 0x230   :  { %11361 = vst [vmem:[#allocation37_spill] sm:$0xff] %v7113_v16 }
 0x231   :  { %v7087_v21 = vpop.xlane.xlu1 %1982  ;;  %v1935_v62 = vcvt.s32.f32 %v1933_v58 }
 0x232   :  { %vm1984_vm6 = vcmp.eq.f32.partialorder %v6715_v34, %v7087_v21 }
 0x233   :  { %1221 = vmin.xlane.f32.xlu2 %v1220_v11  ;;  %v11357_v11 = vld [vmem:[#allocation41_spill] sm:$0xff] }
 0x234   :  { %780 = vmin.xlane.f32.xlu0 %v779_v41  ;;  %vm1939_vm9 = vcmp.eq.f32.partialorder %v11357_v11, %v6975_v63  ;;  %v11358_v41 = vld [vmem:[#allocation25_spill] sm:$0xff]  ;;  %v478_v11 = vpop.f32.mrf.mxu0 }
 0x235   :  { %vm1204_vm10 = vcmp.eq.f32.partialorder %v11358_v41, %v6898_v44 }
 0x236   :  { %v7099_v7 = vpop.xlane.xlu2 %1292  ;;  %783 = vmin.xlane.f32.xlu1 %v782_v38  ;;  %v1940_v38 = vsel %vm1939_vm9, %v1935_v62, inf  ;;  %v1205_v8 = vsel %vm1204_vm10, %v1200_v42, inf  ;;  %v11364_v62 = vld [vmem:[#allocation31_spill] sm:$0xff]  ;;  %v7125_v42 = vsub.f32 %v6656_v57, %v478_v11 }
 0x237   :  { %v1072_v56 = vpop.xlane.xlu0 %1071  ;;  %v1228_v63 = vand.u32 65535, %v11364_v62  ;;  %v11040_v62 = vmov 0.0  }
 0x238   :  { %v1073_v23 = vcvt.f32.s32 %v1072_v56  ;;  %11365 = vst [vmem:[#allocation21_spill] sm:$0xff] %v7125_v42  ;;  %v785_v25 = vsel %vm661_vm1, %v7125_v42, inf  ;;  %v11381_v42 = vld [vmem:[#allocation43_spill] sm:$0xff] }
 0x239   :  { %v7106_v50 = vpop.xlane.xlu1 %756  ;;  %vm930_vm4 = vcmp.eq.f32.partialorder %v11381_v42, %v7008_v3  ;;  %v1104_v3 = vcvt.f32.s32 %v6630_v47  ;;  %v11388_v47 = vld [vmem:[#allocation39_spill] sm:$0xff] }
 0x23a   :  { %v7109_v26 = vadd.s32 %v1075_v46, %v1073_v23  ;;  %v1918_v46 = vand.u32 65535, %v11363_v33  ;;  %v1010_v42 = vsel %vm930_vm4, %v6177_v22, 64 }
 0x23b   :  { %1941 = vmin.xlane.f32.xlu2 %v1940_v38  ;;  %v1090_v38 = vshll.u32 %v1089_v28, 16 }
 0x23c   :  { %11359 = vst [vmem:[#allocation33_spill] sm:$0xff] %v7109_v26  ;;  %v2262_v58 = vperm.slane %v7109_v26, 0  ;;  %v2263_v56 = vperm.slane %v7109_v26, 1  ;;  %v2264_v41 = vperm.slane %v7109_v26, 2  ;;  %1206 = vmin.xlane.f32.xlu0 %v1205_v8  ;;  %v2265_v23 = vperm.slane %v7109_v26, 3 }
 0x23d   :  { %v2266_v6 = vperm.slane %v7109_v26, 4  ;;  %vm11102_vm13 = vcmp.eq.s32.totalorder %v6177_v22, %v7109_v26  ;;  %v1009_v8 = vsel %vm929_vm11, %v6177_v22, 64  ;;  %v2267_v33 = vperm.slane %v7109_v26, 5 }
 0x23e   :  { %2902 = vst [vmem:[#allocation1] ss:$9 sm:$0xff] %v2262_v58  ;;  %v1087_v44 = vpop.xlane.xlu2 %1086  ;;  %1442 = vmin.xlane.f32.xlu1 %v7113_v16  ;;  %v5409_v11 = vsel %vm11102_vm13, 1.0, %v11040_v62  ;;  %v1008_v16 = vsel %vm928_vm12, %v6177_v22, 64  ;;  %v2268_v52 = vperm.slane %v7109_v26, 6  ;;  %v2269_v40 = vperm.slane %v7109_v26, 7 }
 0x23f   :  { %2904 = vst [vmem:[#allocation1 + $0x1] ss:$9 sm:$0xff] %v2263_v56  ;;  %v1088_v28 = vcvt.f32.s32 %v1087_v44  ;;  %v7139_v58 = vpop.xlane.xlu0 %1997  ;;  %5489 = vmatmul.msk.f32.vlgmr.msra.gmra.mxu1 %vm661_vm1, %v5409_v11  ;;  %v11366_v44 = vld [vmem:[#allocation30_spill] sm:$0xff]  ;;  %v1920_v55 = vcvt.s32.f32 %v1918_v46  ;;  %v481_v46 = vpop.f32.mrf.mxu0 }
 0x240   :  { %2906 = vst [vmem:[#allocation1 + $0x2] ss:$9 sm:$0xff] %v2264_v41  ;;  %vm1924_vm14 = vcmp.eq.f32.partialorder %v11366_v44, %v6921_v36  ;;  %v7159_v41 = vsel %vm661_vm1, %v1009_v8, 2147483647  ;;  %v1230_v44 = vcvt.s32.f32 %v1228_v63  ;;  %v11371_v8 = vmov 0.0  }
 0x241   :  { %2908 = vst [vmem:[#allocation1 + $0x3] ss:$9 sm:$0xff] %v2265_v23  ;;  %v7150_v56 = vadd.s32 %v1090_v38, %v1088_v28  ;;  %v7152_v62 = vpop.xlane.xlu1 %1307  ;;  %v1925_v11 = vsel %vm1924_vm14, %v1920_v55, inf  ;;  %v7162_v23 = vsel %vm661_vm1, %v1008_v16, 2147483647 }
 0x242   :  { %2910 = vst [vmem:[#allocation1 + $0x4] ss:$9 sm:$0xff] %v2266_v6  ;;  %v1235_v38 = vsel %vm1234_vm15, %v1230_v44, inf  ;;  %v1469_v6 = vshra.s32 %v7159_v41, 16  ;;  %v1454_v63 = vshra.s32 %v7162_v23, 16  ;;  %vm1999_vm15 = vcmp.eq.f32.partialorder %v6762_v30, %v7139_v58 }
 0x243   :  { %11367 = vst [vmem:[#allocation41_spill] sm:$0xff] %v7150_v56  ;;  %786 = vmin.xlane.f32.xlu2 %v785_v25  ;;  %vm11104_vm2 = vcmp.eq.s32.totalorder %v6177_v22, %v7150_v56 }
 0x244   :  { %11369 = vst [vmem:[#allocation25_spill] sm:$0xff] %v7159_v41  ;;  %1926 = vmin.xlane.f32.xlu0 %v1925_v11  ;;  %v5410_v55 = vsel %vm11104_vm2, 1.0, %v11371_v8  ;;  %v7181_v15 = vcvt.s32.f32 %v1469_v6  ;;  %v2271_v11 = vperm.slane %v7150_v56, 1  ;;  %v7184_v44 = vcvt.s32.f32 %v1454_v63  ;;  %v11379_v6 = vld [vmem:[#allocation47_spill] sm:$0xff] }
 0x245   :  { %2912 = vst [vmem:[#allocation1 + $0x5] ss:$9 sm:$0xff] %v2267_v33  ;;  %v11373_v33 = vld [vmem:[#allocation40_spill] sm:$0xff]  ;;  %v2272_v41 = vperm.slane %v7150_v56, 2  ;;  %v7197_v63 = vsub.f32 %v6656_v57, %v481_v46  ;;  %v2277_v46 = vperm.slane %v7150_v56, 7 }
 0x246   :  { %11370 = vst [vmem:[#allocation38_spill] sm:$0xff] %v7162_v23  ;;  %v7167_v28 = vpop.xlane.xlu2 %2012  ;;  %1236 = vmin.xlane.f32.xlu1 %v1235_v38  ;;  %v11377_v38 = vld [vmem:[#allocation45_spill] sm:$0xff]  ;;  %v2274_v23 = vperm.slane %v7150_v56, 4 }
 0x247   :  { %2914 = vst [vmem:[#allocation1 + $0x6] ss:$9 sm:$0xff] %v2268_v52  ;;  %v7174_v16 = vpop.xlane.xlu0 %897  ;;  %v1948_v52 = vand.u32 65535, %v11373_v33  ;;  %5490 = vmatmul.msk.f32.gmra.mxu1 %vm661_vm1, %v5410_v55  ;;  %vm1954_vm3 = vcmp.eq.f32.partialorder %v11377_v38, %v7001_v12  ;;  %v2273_v55 = vperm.slane %v7150_v56, 3 }
 0x248   :  { %2916 = vst [vmem:[#allocation1 + $0x7] ss:$9 sm:$0xff] %v2269_v40  ;;  %v2270_v40 = vperm.slane %v7150_v56, 0 }
 0x249   :  { %11372 = vst [vmem:[#allocation32_spill] sm:$0xff] %v7174_v16  ;;  %v7179_v25 = vpop.xlane.xlu1 %900  ;;  %v1950_v33 = vcvt.s32.f32 %v1948_v52  ;;  %v2275_v52 = vperm.slane %v7150_v56, 5 }
 0x24a   :  { %11374 = vst [vmem:[#allocation27_spill] sm:$0xff] %v7179_v25  ;;  %v1258_v25 = vand.u32 65535, %v11379_v6 }
 0x24b   :  { %11375 = vst [vmem:[#allocation31_spill] sm:$0xff] %v7181_v15  ;;  %1472 = vmin.xlane.f32.xlu2 %v7181_v15  ;;  %v1955_v38 = vsel %vm1954_vm3, %v1950_v33, inf  ;;  %v483_v15 = vpop.f32.mrf.mxu0  ;;  %vm933_vm3 = vcmp.eq.f32.partialorder %v6732_v24, %v7106_v50 }
 0x24c   :  { %11376 = vst [vmem:[#allocation30_spill] sm:$0xff] %v7184_v44  ;;  %1457 = vmin.xlane.f32.xlu0 %v7184_v44  ;;  %v2276_v44 = vperm.slane %v7150_v56, 6  ;;  %v1260_v33 = vcvt.s32.f32 %v1258_v25  ;;  %v7219_v25 = vsel %vm661_vm1, %v1010_v42, 2147483647 }
 0x24d   :  { %11380 = vst [vmem:[#allocation40_spill] sm:$0xff] %v7197_v63 }
 0x24e   :  { %1956 = vmin.xlane.f32.xlu1 %v1955_v38 }
 0x24f   :  { %v7190_v16 = vld [vmem:[#allocation1] sm:$0xff]  ;;  %v7205_v6 = vpop.xlane.xlu0 %1791 }
 0x250   :  { %11378 = vst [vmem:[#allocation35_spill] sm:$0xff] %v7190_v16  ;;  %v7202_v16 = vpop.xlane.xlu2 %1806 }
 0x251   :  { %2918 = vst [vmem:[#allocation1] ss:$9 sm:$0xff] %v2270_v40  ;;  %v11384_v40 = vld [vmem:[#allocation51_spill] sm:$0xff]  ;;  %v1102_v38 = vpop.xlane.xlu1 %1101 }
 0x252   :  { %2919 = vst [vmem:[#allocation1 + $0x1] ss:$9 sm:$0xff] %v2271_v11  ;;  %vm1264_vm5 = vcmp.eq.f32.partialorder %v11384_v40, %v7038_v27  ;;  %v7213_v11 = vsub.f32 %v6656_v57, %v483_v15  ;;  %v1103_v40 = vcvt.f32.s32 %v1102_v38  ;;  %v1105_v15 = vshll.u32 %v1104_v3, 16 }
 0x253   :  { %11382 = vst [vmem:[#allocation45_spill] sm:$0xff] %v7202_v16  ;;  %v11386_v16 = vld [vmem:[#allocation57_spill] sm:$0xff] }
 0x254   :  { %2920 = vst [vmem:[#allocation1 + $0x2] ss:$9 sm:$0xff] %v2272_v41  ;;  %v788_v41 = vsel %vm661_vm1, %v7197_v63, inf  ;;  %v791_v26 = vsel %vm661_vm1, %v7213_v11, inf }
 0x255   :  { %11383 = vst [vmem:[#allocation47_spill] sm:$0xff] %v7205_v6  ;;  %v1265_v6 = vsel %vm1264_vm5, %v1260_v33, inf  ;;  %789 = vmin.xlane.f32.xlu0 %v788_v41 }
 0x256   :  { %2921 = vst [vmem:[#allocation1 + $0x3] ss:$9 sm:$0xff] %v2273_v55  ;;  %1266 = vmin.xlane.f32.xlu2 %v1265_v6  ;;  %v1978_v55 = vand.u32 65535, %v11386_v16  ;;  %792 = vmin.xlane.f32.xlu1 %v791_v26  ;;  %v1484_v16 = vshra.s32 %v7219_v25, 16 }
 0x257   :  { %2922 = vst [vmem:[#allocation1 + $0x4] ss:$9 sm:$0xff] %v2274_v23  ;;  %v1243_v23 = vand.u32 65535, %v11388_v47  ;;  %v486_v47 = vpop.f32.mrf.mxu0 }
 0x258   :  { %11385 = vst [vmem:[#allocation43_spill] sm:$0xff] %v7213_v11  ;;  %v7224_v56 = vpop.xlane.xlu2 %759  ;;  %v1980_v6 = vcvt.s32.f32 %v1978_v55  ;;  %v11394_v11 = vld [vmem:[#allocation46_spill] sm:$0xff] }
 0x259   :  { %2923 = vst [vmem:[#allocation1 + $0x5] ss:$9 sm:$0xff] %v2275_v52  ;;  %v7226_v52 = vadd.s32 %v1105_v15, %v1103_v40  ;;  %v7237_v42 = vpop.xlane.xlu1 %2027  ;;  %v1245_v26 = vcvt.s32.f32 %v1243_v23  ;;  %v7245_v15 = vcvt.s32.f32 %v1484_v16  ;;  %v11395_v16 = vld [vmem:[#allocation52_spill] sm:$0xff] }
 0x25a   :  { %2924 = vst [vmem:[#allocation1 + $0x6] ss:$9 sm:$0xff] %v2276_v44  ;;  %v7228_v44 = vpop.xlane.xlu0 %1322  ;;  %v1985_v41 = vsel %vm1984_vm6, %v1980_v6, inf  ;;  %v7251_v6 = vsub.f32 %v6656_v57, %v486_v47  ;;  %vm931_vm10 = vcmp.eq.f32.partialorder %v11395_v16, %v7055_v18 }
 0x25b   :  { %11387 = vst [vmem:[#allocation51_spill] sm:$0xff] %v7219_v25  ;;  %v2278_v33 = vperm.slane %v7226_v52, 0  ;;  %v2279_v3 = vperm.slane %v7226_v52, 1  ;;  %v2280_v38 = vperm.slane %v7226_v52, 2  ;;  %v2281_v34 = vperm.slane %v7226_v52, 3 }
 0x25c   :  { %2925 = vst [vmem:[#allocation1 + $0x7] ss:$9 sm:$0xff] %v2277_v46  ;;  %v11389_v46 = vld [vmem:[#allocation44_spill] sm:$0xff]  ;;  %vm11106_vm8 = vcmp.eq.s32.totalorder %v6177_v22, %v7226_v52  ;;  %v2282_v23 = vperm.slane %v7226_v52, 4  ;;  %v2284_v57 = vperm.slane %v7226_v52, 6 }
 0x25d   :  { %vm1249_vm7 = vcmp.eq.f32.partialorder %v11389_v46, %v6999_v5  ;;  %11391 = vst [vmem:[#allocation39_spill] sm:$0xff] %v7245_v15  ;;  %v11392_v46 = vld [vmem:[#allocation56_spill] sm:$0xff] }
 0x25e   :  { %1986 = vmin.xlane.f32.xlu2 %v1985_v41  ;;  %v1250_v55 = vsel %vm1249_vm7, %v1245_v26, inf  ;;  %vm932_vm9 = vcmp.eq.f32.partialorder %v11392_v46, %v7079_v61  ;;  %11393 = vst [vmem:[#allocation44_spill] sm:$0xff] %v7251_v6  ;;  %v1963_v41 = vand.u32 65535, %v11394_v11  ;;  %v2283_v26 = vperm.slane %v7226_v52, 5  ;;  %1487 = vmin.xlane.f32.xlu1 %v7245_v15  ;;  %v11399_v46 = vld [vmem:[#allocation55_spill] sm:$0xff] }
 0x25f   :  { %1251 = vmin.xlane.f32.xlu0 %v1250_v55  ;;  %v11396_v55 = vld [vmem:[#allocation50_spill] sm:$0xff]  ;;  %v1012_v18 = vsel %vm932_vm9, %v6177_v22, 64  ;;  %v2285_v11 = vperm.slane %v7226_v52, 7  ;;  %vm1279_vm12 = vcmp.eq.f32.partialorder %v11399_v46, %v7058_v54  ;;  %vm2029_vm7 = vcmp.eq.f32.partialorder %v6847_v0, %v7237_v42 }
 0x260   :  { %v7264_v47 = vpop.xlane.xlu2 %1337  ;;  %v1273_v25 = vand.u32 65535, %v11396_v55  ;;  %v1965_v55 = vcvt.s32.f32 %v1963_v41  ;;  %v7281_v61 = vsel %vm661_vm1, %v1012_v18, 2147483647 }
 0x261   :  { %v1822_v16 = vpop.xlane.xlu1 %1821  ;;  %11398 = vst [vmem:[#allocation56_spill] sm:$0xff] %v7281_v61 }
 0x262   :  { %v1275_v63 = vcvt.s32.f32 %v1273_v25 }
 0x263   :  { %v7240_v40 = vld [vmem:[#allocation1] sm:$0xff] }
 0x264   :  { %11390 = vst [vmem:[#allocation57_spill] sm:$0xff] %v7240_v40  ;;  %v5411_v40 = vsel %vm11106_vm8, 1.0, %v11371_v8  ;;  %v1280_v41 = vsel %vm1279_vm12, %v1275_v63, inf  ;;  %vm2014_vm12 = vcmp.eq.f32.partialorder %v6790_v53, %v7167_v28 }
 0x265   :  { %2927 = vst [vmem:[#allocation1] ss:$9 sm:$0xff] %v2278_v33  ;;  %5491 = vmatmul.msk.f32.gmra.mxu1 %vm661_vm1, %v5411_v40  ;;  %v1824_v33 = vcvt.f32.s32 %v6696_v31  ;;  %v1011_v31 = vsel %vm931_vm10, %v6177_v22, 64  ;;  %v11397_v40 = vld [vmem:[#allocation49_spill] sm:$0xff] }
 0x266   :  { %2928 = vst [vmem:[#allocation1 + $0x1] ss:$9 sm:$0xff] %v2279_v3  ;;  %v7273_v3 = vpop.xlane.xlu0 %762  ;;  %vm1969_vm11 = vcmp.eq.f32.partialorder %v11397_v40, %v7023_v60  ;;  %1281 = vmin.xlane.f32.xlu1 %v1280_v41 }
 0x267   :  { %2929 = vst [vmem:[#allocation1 + $0x2] ss:$9 sm:$0xff] %v2280_v38  ;;  %v794_v38 = vsel %vm661_vm1, %v7251_v6, inf  ;;  %v1825_v15 = vshll.u32 %v1824_v33, 16  ;;  %v1970_v6 = vsel %vm1969_vm11, %v1965_v55, inf  ;;  %v1514_v33 = vshra.s32 %v7281_v61, 16 }
 0x268   :  { %2930 = vst [vmem:[#allocation1 + $0x3] ss:$9 sm:$0xff] %v2281_v34  ;;  %v1823_v34 = vcvt.f32.s32 %v1822_v16  ;;  %795 = vmin.xlane.f32.xlu2 %v794_v38  ;;  %1971 = vmin.xlane.f32.xlu0 %v1970_v6  ;;  %v1132_v18 = vpop.xlane.xlu2 %1131  ;;  %v1134_v55 = vcvt.f32.s32 %v6734_v49  ;;  %vm935_vm10 = vcmp.eq.f32.partialorder %v6854_v14, %v7273_v3  ;;  %vm934_vm11 = vcmp.eq.f32.partialorder %v6825_v13, %v7224_v56 }
 0x269   :  { %2931 = vst [vmem:[#allocation1 + $0x4] ss:$9 sm:$0xff] %v2282_v23  ;;  %v7286_v23 = vsel %vm661_vm1, %v1011_v31, 2147483647  ;;  %v1993_v31 = vand.u32 65535, %v6741_v20  ;;  %v7300_v63 = vpop.xlane.xlu1 %765  ;;  %v7302_v25 = vcvt.s32.f32 %v1514_v33  ;;  %v1133_v41 = vcvt.f32.s32 %v1132_v18 }
 0x26a   :  { %2932 = vst [vmem:[#allocation1 + $0x5] ss:$9 sm:$0xff] %v2283_v26  ;;  %v1119_v26 = vcvt.f32.s32 %v6693_v2  ;;  %v7289_v40 = vadd.s32 %v1825_v15, %v1823_v34  ;;  %v1499_v16 = vshra.s32 %v7286_v23, 16  ;;  %v1303_v34 = vand.u32 65535, %v6749_v43  ;;  %v7327_v43 = vld [vmem:[%s10936_s3] ss:$0 sm:$0xff] }
 0x26b   :  { %2933 = vst [vmem:[#allocation1 + $0x6] ss:$9 sm:$0xff] %v2284_v57  ;;  %v488_v57 = vpop.f32.mrf.mxu0  ;;  %v1995_v6 = vcvt.s32.f32 %v1993_v31  ;;  %v1318_v13 = vand.u32 65535, %v6820_v32  ;;  %v1015_v56 = vsel %vm935_vm10, %v6177_v22, 64 }
 0x26c   :  { %11400 = vst [vmem:[#allocation46_spill] sm:$0xff] %v7286_v23  ;;  %vm11070_vm14 = vcmp.eq.s32.totalorder %v6177_v22, %v7289_v40  ;;  %v7307_v20 = vcvt.s32.f32 %v1499_v16 }
 0x26d   :  { %2934 = vst [vmem:[#allocation1 + $0x7] ss:$9 sm:$0xff] %v2285_v11  ;;  %v1120_v11 = vshll.u32 %v1119_v26, 16  ;;  %v5459_v2 = vsel %vm11070_vm14, 1.0, %v11371_v8  ;;  %v2000_v26 = vsel %vm1999_vm15, %v1995_v6, inf  ;;  %v11407_v6 = vld [vmem:[#allocation64_spill] sm:$0xff] }
 0x26e   :  { %11401 = vst [vmem:[#allocation52_spill] sm:$0xff] %v7289_v40  ;;  %v1117_v46 = vpop.xlane.xlu0 %1116  ;;  %5539 = vmatmul.msk.f32.vlgmr.msra.gmra.mxu3 %vm661_vm1, %v5459_v2  ;;  %2001 = vmin.xlane.f32.xlu1 %v2000_v26  ;;  %vm1309_vm4 = vcmp.eq.f32.partialorder %v11407_v6, %v7152_v62  ;;  %v1135_v26 = vshll.u32 %v1134_v55, 16  ;;  %v1305_v40 = vcvt.s32.f32 %v1303_v34  ;;  %v1013_v55 = vsel %vm933_vm3, %v6177_v22, 64 }
 0x26f   :  { %v1118_v38 = vcvt.f32.s32 %v1117_v46  ;;  %11402 = vst [vmem:[#allocation50_spill] sm:$0xff] %v7302_v25  ;;  %vm1324_vm3 = vcmp.eq.f32.partialorder %v6841_v4, %v7228_v44 }
 0x270   :  { %11403 = vst [vmem:[#allocation49_spill] sm:$0xff] %v7307_v20  ;;  %1517 = vmin.xlane.f32.xlu2 %v7302_v25  ;;  %1502 = vmin.xlane.f32.xlu0 %v7307_v20  ;;  %v7320_v46 = vpop.xlane.xlu2 %1851 }
 0x271   :  { %v7304_v15 = vadd.s32 %v1120_v11, %v1118_v38  ;;  %v7330_v11 = vsub.f32 %v7327_v43, %v488_v57  ;;  %v2023_v57 = vand.u32 65535, %v6828_v45  ;;  %v7349_v61 = vpop.xlane.xlu1 %1352  ;;  %v1310_v45 = vsel %vm1309_vm4, %v1305_v40, inf }
 0x273   :  { %v2286_v33 = vperm.slane %v7304_v15, 0  ;;  %v2287_v16 = vperm.slane %v7304_v15, 1  ;;  %v2288_v30 = vperm.slane %v7304_v15, 2  ;;  %v491_v31 = vpop.f32.mrf.mxu0  ;;  %11405 = vst [vmem:[#allocation87_spill] sm:$0xff] %v7330_v11  ;;  %v2289_v18 = vperm.slane %v7304_v15, 3 }
 0x274   :  { %v7322_v49 = vld [vmem:[#allocation1] sm:$0xff]  ;;  %v7336_v2 = vsub.f32 %v7327_v43, %v491_v31  ;;  %vm4074_vm5 = vcmp.eq.s32.totalorder %v6177_v22, %v7304_v15  ;;  %v2291_v25 = vperm.slane %v7304_v15, 5  ;;  %v2292_v34 = vperm.slane %v7304_v15, 6 }
 0x275   :  { %11404 = vst [vmem:[#allocation55_spill] sm:$0xff] %v7322_v49  ;;  %v2290_v49 = vperm.slane %v7304_v15, 4  ;;  %v5412_v31 = vsel %vm4074_vm5, 1.0, %v11371_v8  ;;  %v2293_v20 = vperm.slane %v7304_v15, 7  ;;  %v797_v24 = vsel %vm661_vm1, %v7330_v11, inf  ;;  %v11477_v15 = vld [vmem:[#allocation41_spill] sm:$0xff] }
 0x276   :  { %v7333_v38 = vpop.xlane.xlu0 %2042  ;;  %11406 = vst [vmem:[#allocation88_spill] sm:$0xff] %v7336_v2  ;;  %5492 = vmatmul.msk.f32.gmra.mxu1 %vm661_vm1, %v5412_v31  ;;  %v800_v50 = vsel %vm661_vm1, %v7336_v2, inf }
 0x277   :  { %2936 = vst [vmem:[#allocation1] ss:$9 sm:$0xff] %v2286_v33  ;;  %v7355_v33 = vadd.s32 %v1135_v26, %v1133_v41  ;;  %v11408_v41 = vld [vmem:[#allocation59_spill] sm:$0xff]  ;;  %v7370_v26 = vsel %vm661_vm1, %v1013_v55, 2147483647  ;;  %801 = vmin.xlane.f32.xlu1 %v800_v50  ;;  %v1149_v55 = vcvt.f32.s32 %v6755_v10 }
 0x278   :  { %2937 = vst [vmem:[#allocation1 + $0x1] ss:$9 sm:$0xff] %v2287_v16  ;;  %v1839_v16 = vcvt.f32.s32 %v6721_v35  ;;  %1311 = vmin.xlane.f32.xlu2 %v1310_v45  ;;  %798 = vmin.xlane.f32.xlu0 %v797_v24  ;;  %v7374_v35 = vpop.xlane.xlu2 %768  ;;  %v1854_v24 = vcvt.f32.s32 %v6788_v51  ;;  %v1853_v51 = vcvt.f32.s32 %v7320_v46 }
 0x279   :  { %2938 = vst [vmem:[#allocation1 + $0x2] ss:$9 sm:$0xff] %v2288_v30  ;;  %v1288_v30 = vand.u32 65535, %v11408_v41  ;;  %vm4075_vm6 = vcmp.eq.s32.totalorder %v6177_v22, %v7355_v33  ;;  %v2296_v46 = vperm.slane %v7355_v33, 2  ;;  %v2300_v53 = vperm.slane %v7355_v33, 6 }
 0x27a   :  { %2939 = vst [vmem:[#allocation1 + $0x3] ss:$9 sm:$0xff] %v2289_v18  ;;  %v1840_v40 = vshll.u32 %v1839_v16, 16  ;;  %v11410_v18 = vld [vmem:[#allocation63_spill] sm:$0xff]  ;;  %v1147_v16 = vpop.xlane.xlu1 %1146 }
 0x27b   :  { %2940 = vst [vmem:[#allocation1 + $0x4] ss:$9 sm:$0xff] %v2290_v49  ;;  %v2008_v6 = vand.u32 65535, %v11410_v18  ;;  %v2025_v49 = vcvt.s32.f32 %v2023_v57  ;;  %v1290_v57 = vcvt.s32.f32 %v1288_v30  ;;  %v1148_v10 = vcvt.f32.s32 %v1147_v16  ;;  %v493_v41 = vpop.f32.mrf.mxu0 }
 0x27c   :  { %11409 = vst [vmem:[#allocation64_spill] sm:$0xff] %v7370_v26  ;;  %v1855_v30 = vshll.u32 %v1854_v24, 16  ;;  %v7405_v14 = vsub.f32 %v7327_v43, %v493_v41  ;;  %v2298_v16 = vperm.slane %v7355_v33, 4  ;;  %v2299_v41 = vperm.slane %v7355_v33, 5 }
 0x27d   :  { %2941 = vst [vmem:[#allocation1 + $0x5] ss:$9 sm:$0xff] %v2291_v25  ;;  %v11411_v25 = vld [vmem:[#allocation61_spill] sm:$0xff]  ;;  %v2030_v50 = vsel %vm2029_vm7, %v2025_v49, inf }
 0x27e   :  { %2942 = vst [vmem:[#allocation1 + $0x6] ss:$9 sm:$0xff] %v2292_v34  ;;  %v1837_v31 = vpop.xlane.xlu0 %1836  ;;  %vm1294_vm9 = vcmp.eq.f32.partialorder %v11411_v25, %v7099_v7  ;;  %v1529_v34 = vshra.s32 %v7370_v26, 16  ;;  %v1150_v25 = vshll.u32 %v1149_v55, 16  ;;  %v7423_v24 = vadd.s32 %v1855_v30, %v1853_v51 }
 0x27f   :  { %2943 = vst [vmem:[#allocation1 + $0x7] ss:$9 sm:$0xff] %v2293_v20  ;;  %v1838_v45 = vcvt.f32.s32 %v1837_v31  ;;  %v5413_v20 = vsel %vm4075_vm6, 1.0, %v11371_v8  ;;  %v1295_v18 = vsel %vm1294_vm9, %v1290_v57, inf  ;;  %v2010_v31 = vcvt.s32.f32 %v2008_v6 }
 0x280   :  { %5493 = vmatmul.msk.f32.gmra.mxu1 %vm661_vm1, %v5413_v20  ;;  %2031 = vmin.xlane.f32.xlu2 %v2030_v50  ;;  %v7394_v26 = vcvt.s32.f32 %v1529_v34  ;;  %v2295_v6 = vperm.slane %v7355_v33, 1  ;;  %11415 = vst [vmem:[#allocation89_spill] sm:$0xff] %v7405_v14  ;;  %v7407_v3 = vadd.s32 %v1150_v25, %v1148_v10  ;;  %v2297_v34 = vperm.slane %v7355_v33, 3  ;;  %v7426_v32 = vpop.xlane.xlu2 %1382 }
 0x281   :  { %v7389_v0 = vadd.s32 %v1840_v40, %v1838_v45  ;;  %1296 = vmin.xlane.f32.xlu0 %v1295_v18  ;;  %v2294_v40 = vperm.slane %v7355_v33, 0  ;;  %v1014_v45 = vsel %vm934_vm11, %v6177_v22, 64  ;;  %11416 = vst [vmem:[#allocation90_spill] sm:$0xff] %v7423_v24  ;;  %v1869_v20 = vcvt.f32.s32 %v6806_v29 }
 0x282   :  { %11413 = vst [vmem:[#allocation63_spill] sm:$0xff] %v7394_v26  ;;  %1532 = vmin.xlane.f32.xlu1 %v7394_v26  ;;  %v1867_v57 = vpop.xlane.xlu1 %1866  ;;  %v2015_v10 = vsel %vm2014_vm12, %v2010_v31, inf  ;;  %v7436_v50 = vsel %vm661_vm1, %v1015_v56, 2147483647  ;;  %vm4076_vm4 = vcmp.eq.s32.totalorder %v6177_v22, %v7407_v3  ;;  %v803_v29 = vsel %vm661_vm1, %v7405_v14, inf }
 0x283   :  { %11412 = vst [vmem:[#allocation59_spill] sm:$0xff] %v7389_v0  ;;  %vm11071_vm15 = vcmp.eq.s32.totalorder %v6177_v22, %v7389_v0  ;;  %v7444_v18 = vsel %vm661_vm1, %v1014_v45, 2147483647  ;;  %v5414_v31 = vsel %vm4076_vm4, 1.0, %v11371_v8  ;;  %v1320_v25 = vcvt.s32.f32 %v1318_v13 }
 0x284   :  { %v5460_v43 = vsel %vm11071_vm15, 1.0, %v11371_v8  ;;  %11417 = vst [vmem:[#allocation91_spill] sm:$0xff] %v7436_v50  ;;  %v2301_v51 = vperm.slane %v7355_v33, 7  ;;  %v1868_v30 = vcvt.f32.s32 %v1867_v57  ;;  %vm11072_vm7 = vcmp.eq.s32.totalorder %v6177_v22, %v7423_v24 }
 0x285   :  { %5540 = vmatmul.msk.f32.gmra.mxu3 %vm661_vm1, %v5460_v43  ;;  %11418 = vst [vmem:[#allocation92_spill] sm:$0xff] %v7444_v18  ;;  %v1870_v56 = vshll.u32 %v1869_v20, 16  ;;  %v1544_v13 = vshra.s32 %v7444_v18, 16  ;;  %vm936_vm9 = vcmp.eq.f32.partialorder %v6879_v48, %v7300_v63  ;;  %v5461_v43 = vsel %vm11072_vm7, 1.0, %v11371_v8  ;;  %v11421_v20 = vld [vmem:[#allocation4_spill] sm:$0xff] }
 0x286   :  { %v7402_v49 = vld [vmem:[#allocation1] sm:$0xff]  ;;  %v7419_v55 = vpop.xlane.xlu0 %1367  ;;  %v1016_v48 = vsel %vm936_vm9, %v6177_v22, 64  ;;  %v2302_v63 = vperm.slane %v7407_v3, 0  ;;  %vm2044_vm11 = vcmp.eq.f32.partialorder %v6908_v37, %v7333_v38 }
 0x287   :  { %11414 = vst [vmem:[#allocation61_spill] sm:$0xff] %v7402_v49  ;;  %v7469_v4 = vadd.s32 %v1870_v56, %v1868_v30  ;;  %v7499_v37 = vsel %vm661_vm1, %v1016_v48, 2147483647  ;;  %v2306_v56 = vperm.slane %v7407_v3, 4 }
 0x288   :  { %2945 = vst [vmem:[#allocation1] ss:$9 sm:$0xff] %v2294_v40  ;;  %804 = vmin.xlane.f32.xlu2 %v803_v29  ;;  %5494 = vmatmul.msk.f32.gmra.mxu1 %vm661_vm1, %v5414_v31  ;;  %v1325_v40 = vsel %vm1324_vm3, %v1320_v25, inf  ;;  %v2303_v29 = vperm.slane %v7407_v3, 1  ;;  %v1333_v31 = vand.u32 65535, %v6844_v9  ;;  %v2304_v25 = vperm.slane %v7407_v3, 2 }
 0x289   :  { %2946 = vst [vmem:[#allocation1 + $0x1] ss:$9 sm:$0xff] %v2295_v6  ;;  %2016 = vmin.xlane.f32.xlu0 %v2015_v10  ;;  %v1559_v6 = vshra.s32 %v7436_v50, 16  ;;  %v7481_v10 = vpop.xlane.xlu2 %1176  ;;  %vm11083_vm12 = vcmp.eq.s32.totalorder %v6177_v22, %v7469_v4  ;;  %vm1354_vm3 = vcmp.eq.f32.partialorder %v6913_v1, %v7349_v61  ;;  %v1574_v48 = vshra.s32 %v7499_v37, 16  ;;  %v11449_v50 = vld [vmem:[#allocation80_spill] sm:$0xff] }
 0x28a   :  { %2947 = vst [vmem:[#allocation1 + $0x2] ss:$9 sm:$0xff] %v2296_v46  ;;  %1326 = vmin.xlane.f32.xlu1 %v1325_v40  ;;  %v2038_v46 = vand.u32 65535, %v6892_v19  ;;  %v7475_v19 = vpop.xlane.xlu1 %774  ;;  %v2305_v40 = vperm.slane %v7407_v3, 3  ;;  %v1224_v14 = vcvt.f32.s32 %v11449_v50 }
 0x28b   :  { %2948 = vst [vmem:[#allocation1 + $0x3] ss:$9 sm:$0xff] %v2297_v34  ;;  %v11420_v34 = vld [vmem:[#allocation60_spill] sm:$0xff]  ;;  %v7477_v57 = vcvt.s32.f32 %v1559_v6 }
 0x28c   :  { %2949 = vst [vmem:[#allocation1 + $0x4] ss:$9 sm:$0xff] %v2298_v16  ;;  %vm968_vm10 = vcmp.eq.f32.partialorder %v11421_v20, %v11420_v34  ;;  %v1348_v16 = vand.u32 65535, %v6896_v17  ;;  %v2040_v17 = vcvt.s32.f32 %v2038_v46  ;;  %v2307_v46 = vperm.slane %v7407_v3, 5 }
 0x28d   :  { %2950 = vst [vmem:[#allocation1 + $0x5] ss:$9 sm:$0xff] %v2299_v41  ;;  %5541 = vmatmul.msk.f32.gmra.mxu3 %vm661_vm1, %v5461_v43  ;;  %v7483_v41 = vcvt.s32.f32 %v1544_v13  ;;  %v2308_v34 = vperm.slane %v7407_v3, 6 }
 0x28e   :  { %2951 = vst [vmem:[#allocation1 + $0x6] ss:$9 sm:$0xff] %v2300_v53  ;;  %v7467_v45 = vpop.xlane.xlu0 %771  ;;  %v1048_v53 = vsel %vm968_vm10, %v6177_v22, 64  ;;  %v2045_v6 = vsel %vm2044_vm11, %v2040_v17, inf  ;;  %v1350_v9 = vcvt.s32.f32 %v1348_v16  ;;  %v11426_v16 = vld [vmem:[#allocation73_spill] sm:$0xff] }
 0x28f   :  { %2952 = vst [vmem:[#allocation1 + $0x7] ss:$9 sm:$0xff] %v2301_v51  ;;  %v1164_v51 = vcvt.f32.s32 %v6802_v59  ;;  %v7504_v13 = vsel %vm661_vm1, %v1048_v53, 2147483647  ;;  %v5462_v59 = vsel %vm11083_vm12, 1.0, %v11371_v8  ;;  %vm1339_vm9 = vcmp.eq.f32.partialorder %v11426_v16, %v7264_v47  ;;  %v11428_v16 = vld [vmem:[#allocation68_spill] sm:$0xff] }
 0x290   :  { %11419 = vst [vmem:[#allocation93_spill] sm:$0xff] %v7469_v4  ;;  %1562 = vmin.xlane.f32.xlu2 %v7477_v57  ;;  %v1335_v53 = vcvt.s32.f32 %v1333_v31  ;;  %v1355_v1 = vsel %vm1354_vm3, %v1350_v9, inf  ;;  %v7528_v31 = vcvt.s32.f32 %v1574_v48  ;;  %v11432_v9 = vld [vmem:[#allocation5_spill] sm:$0xff] }
 0x291   :  { %11422 = vst [vmem:[#allocation60_spill] sm:$0xff] %v7477_v57  ;;  %1547 = vmin.xlane.f32.xlu0 %v7483_v41 }
 0x292   :  { %11423 = vst [vmem:[#allocation4_spill] sm:$0xff] %v7483_v41  ;;  %2046 = vmin.xlane.f32.xlu1 %v2045_v6  ;;  %v7519_v17 = vpop.xlane.xlu1 %1397  ;;  %v11427_v6 = vld [vmem:[#allocation70_spill] sm:$0xff] }
 0x293   :  { %11425 = vst [vmem:[#allocation95_spill] sm:$0xff] %v7499_v37  ;;  %v1179_v49 = vcvt.f32.s32 %v11427_v6 }
 0x294   :  { %11430 = vst [vmem:[#allocation73_spill] sm:$0xff] %v7528_v31 }
 0x295   :  { %5542 = vmatmul.msk.f32.gmra.mxu3 %vm661_vm1, %v5462_v59  ;;  %v1340_v59 = vsel %vm1339_vm9, %v1335_v53, inf  ;;  %v1180_v53 = vshll.u32 %v1179_v49, 16 }
 0x296   :  { %v7496_v30 = vld [vmem:[#allocation1] sm:$0xff]  ;;  %v1162_v43 = vpop.xlane.xlu0 %1161 }
 0x297   :  { %11424 = vst [vmem:[#allocation94_spill] sm:$0xff] %v7496_v30  ;;  %v1163_v20 = vcvt.f32.s32 %v1162_v43  ;;  %v2054_v43 = vshra.s32 %v7504_v13, 16  ;;  %v1884_v30 = vcvt.f32.s32 %v11428_v16 }
 0x298   :  { %2954 = vst [vmem:[#allocation1] ss:$9 sm:$0xff] %v2302_v63  ;;  %v1165_v63 = vshll.u32 %v1164_v51, 16  ;;  %1356 = vmin.xlane.f32.xlu2 %v1355_v1  ;;  %v11429_v51 = vld [vmem:[#allocation10_spill] sm:$0xff] }
 0x299   :  { %2955 = vst [vmem:[#allocation1 + $0x1] ss:$9 sm:$0xff] %v2303_v29  ;;  %v2309_v29 = vperm.slane %v7407_v3, 7  ;;  %vm938_vm10 = vcmp.eq.f32.partialorder %v11429_v51, %v7467_v45  ;;  %1341 = vmin.xlane.f32.xlu0 %v1340_v59  ;;  %v7538_v1 = vcvt.s32.f32 %v2054_v43  ;;  %v1885_v6 = vshll.u32 %v1884_v30, 16  ;;  %v11434_v43 = vld [vmem:[#allocation85_spill] sm:$0xff] }
 0x29a   :  { %2956 = vst [vmem:[#allocation1 + $0x2] ss:$9 sm:$0xff] %v2304_v25  ;;  %v7522_v25 = vadd.s32 %v1165_v63, %v1163_v20  ;;  %v1178_v63 = vcvt.f32.s32 %v7481_v10  ;;  %1577 = vmin.xlane.f32.xlu1 %v7528_v31  ;;  %v1192_v16 = vpop.xlane.xlu1 %1191  ;;  %vm1369_vm9 = vcmp.eq.f32.partialorder %v11434_v43, %v7419_v55 }
 0x29b   :  { %2957 = vst [vmem:[#allocation1 + $0x3] ss:$9 sm:$0xff] %v2305_v40  ;;  %v1897_v40 = vpop.xlane.xlu2 %1896 }
 0x29c   :  { %2958 = vst [vmem:[#allocation1 + $0x4] ss:$9 sm:$0xff] %v2306_v56  ;;  %v11431_v56 = vld [vmem:[#allocation62_spill] sm:$0xff]  ;;  %vm4077_vm3 = vcmp.eq.s32.totalorder %v6177_v22, %v7522_v25  ;;  %v7545_v59 = vadd.s32 %v1180_v53, %v1178_v63  ;;  %v2310_v49 = vperm.slane %v7522_v25, 0  ;;  %v11437_v63 = vld [vmem:[#allocation71_spill] sm:$0xff]  ;;  %v1898_v43 = vcvt.f32.s32 %v1897_v40 }
 0x29d   :  { %2959 = vst [vmem:[#allocation1 + $0x5] ss:$9 sm:$0xff] %v2307_v46  ;;  %vm969_vm11 = vcmp.eq.f32.partialorder %v11432_v9, %v11431_v56  ;;  %v11433_v46 = vld [vmem:[#allocation82_spill] sm:$0xff]  ;;  %v11435_v56 = vld [vmem:[#allocation75_spill] sm:$0xff]  ;;  %v1194_v53 = vcvt.f32.s32 %v11437_v63  ;;  %v2314_v24 = vperm.slane %v7522_v25, 4  ;;  %v2315_v4 = vperm.slane %v7522_v25, 5 }
 0x29e   :  { %2960 = vst [vmem:[#allocation1 + $0x6] ss:$9 sm:$0xff] %v2308_v34  ;;  %v1363_v20 = vand.u32 65535, %v11433_v46  ;;  %v1018_v34 = vsel %vm938_vm10, %v6177_v22, 64  ;;  %v1882_v45 = vpop.xlane.xlu0 %1881  ;;  %v1049_v48 = vsel %vm969_vm11, %v6177_v22, 64  ;;  %v1899_v9 = vcvt.f32.s32 %v11435_v56 }
 0x29f   :  { %2961 = vst [vmem:[#allocation1 + $0x7] ss:$9 sm:$0xff] %v2309_v29  ;;  %v5415_v29 = vsel %vm4077_vm3, 1.0, %v11371_v8  ;;  %v1883_v10 = vcvt.f32.s32 %v1882_v45  ;;  %v7553_v30 = vsel %vm661_vm1, %v1018_v34, 2147483647  ;;  %v2311_v46 = vperm.slane %v7522_v25, 1 }
 0x2a0   :  { %5495 = vmatmul.msk.f32.gmra.mxu1 %vm661_vm1, %v5415_v29  ;;  %v1365_v51 = vcvt.s32.f32 %v1363_v20  ;;  %v2312_v45 = vperm.slane %v7522_v25, 2  ;;  %2057 = vmin.xlane.f32.xlu2 %v7538_v1  ;;  %v7562_v20 = vsel %vm661_vm1, %v1049_v48, 2147483647  ;;  %v2313_v56 = vperm.slane %v7522_v25, 3 }
 0x2a1   :  { %v7556_v0 = vadd.s32 %v1885_v6, %v1883_v10  ;;  %v1193_v6 = vcvt.f32.s32 %v1192_v16  ;;  %vm4078_vm10 = vcmp.eq.s32.totalorder %v6177_v22, %v7545_v59  ;;  %v1604_v10 = vshra.s32 %v7553_v30, 16 }
 0x2a2   :  { %v1370_v34 = vsel %vm1369_vm9, %v1365_v51, inf  ;;  %v1900_v63 = vshll.u32 %v1899_v9, 16  ;;  %v1195_v40 = vshll.u32 %v1194_v53, 16  ;;  %v11439_v51 = vld [vmem:[#allocation8_spill] sm:$0xff]  ;;  %v5416_v53 = vsel %vm4078_vm10, 1.0, %v11371_v8 }
 0x2a3   :  { %11436 = vst [vmem:[#allocation70_spill] sm:$0xff] %v7556_v0  ;;  %v7572_v48 = vpop.xlane.xlu2 %777  ;;  %vm11085_vm11 = vcmp.eq.s32.totalorder %v6177_v22, %v7556_v0  ;;  %1371 = vmin.xlane.f32.xlu1 %v1370_v34  ;;  %vm939_vm9 = vcmp.eq.f32.partialorder %v11439_v51, %v7475_v19  ;;  %v1912_v0 = vpop.xlane.xlu1 %1911  ;;  %v2323_v37 = vperm.slane %v7545_v59, 5  ;;  %v2325_v57 = vperm.slane %v7545_v59, 7 }
 0x2a4   :  { %v5463_v16 = vsel %vm11085_vm11, 1.0, %v11371_v8  ;;  %v7594_v34 = vadd.s32 %v1195_v40, %v1193_v6  ;;  %v1913_v6 = vcvt.f32.s32 %v1912_v0 }
 0x2a5   :  { %5543 = vmatmul.msk.f32.gmra.mxu3 %vm661_vm1, %v5463_v16  ;;  %v11442_v16 = vld [vmem:[#allocation7_spill] sm:$0xff] }
 0x2a6   :  { %v7564_v29 = vld [vmem:[#allocation1] sm:$0xff]  ;;  %v7583_v9 = vpop.xlane.xlu0 %1412  ;;  %vm4079_vm15 = vcmp.eq.s32.totalorder %v6177_v22, %v7594_v34  ;;  %v2326_v50 = vperm.slane %v7594_v34, 0 }
 0x2a7   :  { %11438 = vst [vmem:[#allocation68_spill] sm:$0xff] %v7564_v29  ;;  %v2317_v29 = vperm.slane %v7522_v25, 7 }
 0x2a8   :  { %2963 = vst [vmem:[#allocation1] ss:$9 sm:$0xff] %v2310_v49  ;;  %v2316_v49 = vperm.slane %v7522_v25, 6  ;;  %5496 = vmatmul.msk.f32.gmra.mxu1 %vm661_vm1, %v5416_v53 }
 0x2a9   :  { %2964 = vst [vmem:[#allocation1 + $0x1] ss:$9 sm:$0xff] %v2311_v46  ;;  %v7585_v46 = vadd.s32 %v1900_v63, %v1898_v43  ;;  %v7597_v43 = vcvt.s32.f32 %v1604_v10  ;;  %v11441_v63 = vld [vmem:[#allocation77_spill] sm:$0xff] }
 0x2aa   :  { %2965 = vst [vmem:[#allocation1 + $0x2] ss:$9 sm:$0xff] %v2312_v45  ;;  %v2069_v45 = vshra.s32 %v7562_v20, 16  ;;  %v1914_v31 = vcvt.f32.s32 %v11441_v63 }
 0x2ab   :  { %11440 = vst [vmem:[#allocation10_spill] sm:$0xff] %v7585_v46  ;;  %1607 = vmin.xlane.f32.xlu2 %v7597_v43  ;;  %vm11086_vm14 = vcmp.eq.s32.totalorder %v6177_v22, %v7585_v46  ;;  %v7624_v51 = vpop.xlane.xlu2 %1427  ;;  %v7635_v63 = vpop.xlane.xlu1 %783  ;;  %v2321_v46 = vperm.slane %v7545_v59, 3 }
 0x2ac   :  { %2966 = vst [vmem:[#allocation1 + $0x3] ss:$9 sm:$0xff] %v2313_v56  ;;  %v1019_v56 = vsel %vm939_vm9, %v6177_v22, 64  ;;  %v7608_v10 = vcvt.s32.f32 %v2069_v45  ;;  %v1915_v19 = vshll.u32 %v1914_v31, 16  ;;  %v5417_v31 = vsel %vm4079_vm15, 1.0, %v11371_v8 }
 0x2ad   :  { %2967 = vst [vmem:[#allocation1 + $0x4] ss:$9 sm:$0xff] %v2314_v24  ;;  %v1393_v24 = vand.u32 65535, %v11442_v16  ;;  %v7611_v40 = vsel %vm661_vm1, %v1019_v56, 2147483647  ;;  %v2318_v56 = vperm.slane %v7545_v59, 0 }
 0x2ae   :  { %2968 = vst [vmem:[#allocation1 + $0x5] ss:$9 sm:$0xff] %v2315_v4  ;;  %2072 = vmin.xlane.f32.xlu1 %v7608_v10  ;;  %v5464_v4 = vsel %vm11086_vm14, 1.0, %v11371_v8  ;;  %v7620_v0 = vpop.xlane.xlu0 %780  ;;  %v1619_v45 = vshra.s32 %v7611_v40, 16 }
 0x2af   :  { %2969 = vst [vmem:[#allocation1 + $0x6] ss:$9 sm:$0xff] %v2316_v49  ;;  %v7626_v49 = vadd.s32 %v1915_v19, %v1913_v6  ;;  %5544 = vmatmul.msk.f32.gmra.mxu3 %vm661_vm1, %v5464_v4  ;;  %v1395_v53 = vcvt.s32.f32 %v1393_v24  ;;  %v2319_v6 = vperm.slane %v7545_v59, 1  ;;  %v11446_v4 = vld [vmem:[#allocation76_spill] sm:$0xff] }
 0x2b0   :  { %2970 = vst [vmem:[#allocation1 + $0x7] ss:$9 sm:$0xff] %v2317_v29  ;;  %v11443_v29 = vld [vmem:[#allocation9_spill] sm:$0xff]  ;;  %5497 = vmatmul.msk.f32.gmra.mxu1 %vm661_vm1, %v5417_v31  ;;  %v7644_v24 = vcvt.s32.f32 %v1619_v45  ;;  %v1209_v31 = vcvt.f32.s32 %v11446_v4  ;;  %v2324_v4 = vperm.slane %v7545_v59, 6 }
 0x2b1   :  { %vm1399_vm9 = vcmp.eq.f32.partialorder %v11443_v29, %v7519_v17  ;;  %11444 = vst [vmem:[#allocation62_spill] sm:$0xff] %v7626_v49  ;;  %v2320_v29 = vperm.slane %v7545_v59, 2  ;;  %vm11087_vm7 = vcmp.eq.s32.totalorder %v6177_v22, %v7626_v49 }
 0x2b2   :  { %v1400_v16 = vsel %vm1399_vm9, %v1395_v53, inf  ;;  %v2322_v53 = vperm.slane %v7545_v59, 4  ;;  %v5465_v45 = vsel %vm11087_vm7, 1.0, %v11371_v8 }
 0x2b3   :  { %1401 = vmin.xlane.f32.xlu2 %v1400_v16  ;;  %v7664_v41 = vpop.xlane.xlu1 %1442 }
 0x2b6   :  { %1622 = vmin.xlane.f32.xlu1 %v7644_v24 }
 0x2b7   :  { %v7639_v19 = vld [vmem:[#allocation1] sm:$0xff]  ;;  %5545 = vmatmul.msk.f32.gmra.mxu3 %vm661_vm1, %v5465_v45 }
 0x2b8   :  { %11445 = vst [vmem:[#allocation5_spill] sm:$0xff] %v7639_v19  ;;  %v11447_v19 = vld [vmem:[#allocation11_spill] sm:$0xff] }
 0x2b9   :  { %2972 = vst [vmem:[#allocation1] ss:$9 sm:$0xff] %v2318_v56  ;;  %v1408_v16 = vand.u32 65535, %v11447_v19  ;;  %v1207_v56 = vpop.xlane.xlu0 %1206  ;;  %v1222_v19 = vpop.xlane.xlu2 %1221 }
 0x2ba   :  { %2973 = vst [vmem:[#allocation1 + $0x1] ss:$9 sm:$0xff] %v2319_v6  ;;  %v1208_v6 = vcvt.f32.s32 %v1207_v56  ;;  %v1223_v18 = vcvt.f32.s32 %v1222_v19 }
 0x2bb   :  { %2974 = vst [vmem:[#allocation1 + $0x2] ss:$9 sm:$0xff] %v2320_v29  ;;  %v1210_v29 = vshll.u32 %v1209_v31, 16  ;;  %v1225_v31 = vshll.u32 %v1224_v14, 16  ;;  %v1929_v14 = vcvt.f32.s32 %v6921_v36  ;;  %v1237_v19 = vpop.xlane.xlu1 %1236 }
 0x2bc   :  { %2975 = vst [vmem:[#allocation1 + $0x3] ss:$9 sm:$0xff] %v2321_v46  ;;  %v11448_v46 = vld [vmem:[#allocation18_spill] sm:$0xff] }
 0x2bd   :  { %2976 = vst [vmem:[#allocation1 + $0x4] ss:$9 sm:$0xff] %v2322_v53  ;;  %vm1414_vm9 = vcmp.eq.f32.partialorder %v11448_v46, %v7583_v9  ;;  %v7662_v49 = vadd.s32 %v1210_v29, %v1208_v6  ;;  %v1410_v53 = vcvt.s32.f32 %v1408_v16  ;;  %v2327_v16 = vperm.slane %v7594_v34, 1 }
 0x2be   :  { %2977 = vst [vmem:[#allocation1 + $0x5] ss:$9 sm:$0xff] %v2323_v37  ;;  %v2328_v6 = vperm.slane %v7594_v34, 2  ;;  %v2329_v29 = vperm.slane %v7594_v34, 3  ;;  %v1239_v46 = vcvt.f32.s32 %v6947_v39  ;;  %v1930_v36 = vshll.u32 %v1929_v14, 16 }
 0x2bf   :  { %2978 = vst [vmem:[#allocation1 + $0x6] ss:$9 sm:$0xff] %v2324_v4  ;;  %v1415_v45 = vsel %vm1414_vm9, %v1410_v53, inf  ;;  %vm4080_vm12 = vcmp.eq.s32.totalorder %v6177_v22, %v7662_v49 }
 0x2c0   :  { %2979 = vst [vmem:[#allocation1 + $0x7] ss:$9 sm:$0xff] %v2325_v57  ;;  %1416 = vmin.xlane.f32.xlu1 %v1415_v45  ;;  %v5418_v37 = vsel %vm4080_vm12, 1.0, %v11371_v8  ;;  %v7673_v57 = vadd.s32 %v1225_v31, %v1223_v18  ;;  %v2330_v18 = vperm.slane %v7594_v34, 4  ;;  %v2331_v45 = vperm.slane %v7594_v34, 5 }
 0x2c1   :  { %5498 = vmatmul.msk.f32.gmra.mxu1 %vm661_vm1, %v5418_v37  ;;  %v1927_v4 = vpop.xlane.xlu0 %1926  ;;  %v2332_v31 = vperm.slane %v7594_v34, 6  ;;  %v1238_v37 = vcvt.f32.s32 %v1237_v19  ;;  %v7699_v19 = vpop.f32.mrf.mxu1 }
 0x2c2   :  { %v1928_v53 = vcvt.f32.s32 %v1927_v4  ;;  %vm4081_vm9 = vcmp.eq.s32.totalorder %v6177_v22, %v7673_v57  ;;  %v1240_v4 = vshll.u32 %v1239_v46, 16  ;;  %11453 = vst [vmem:[#allocation75_spill] sm:$0xff] %v7699_v19  ;;  %v2334_v46 = vperm.slane %v7662_v49, 0 }
 0x2c3   :  { %v5419_v39 = vsel %vm4081_vm9, 1.0, %v11371_v8  ;;  %4808 = vst.msk [vmem:[%s10939_s4] sm:$0xff] %vm11215_vm0, %v7699_v19 }
 0x2c4   :  { %v7694_v26 = vadd.s32 %v1930_v36, %v1928_v53  ;;  %v2336_v36 = vperm.slane %v7662_v49, 2 }
 0x2c6   :  { %11452 = vst [vmem:[#allocation85_spill] sm:$0xff] %v7694_v26  ;;  %vm11089_vm11 = vcmp.eq.s32.totalorder %v6177_v22, %v7694_v26 }
 0x2c7   :  { %v7676_v56 = vld [vmem:[#allocation1] sm:$0xff]  ;;  %v5466_v53 = vsel %vm11089_vm11, 1.0, %v11371_v8 }
 0x2c8   :  { %11450 = vst [vmem:[#allocation82_spill] sm:$0xff] %v7676_v56  ;;  %5546 = vmatmul.msk.f32.gmra.mxu3 %vm661_vm1, %v5466_v53 }
 0x2c9   :  { %2981 = vst [vmem:[#allocation1] ss:$9 sm:$0xff] %v2326_v50  ;;  %v2333_v50 = vperm.slane %v7594_v34, 7  ;;  %5499 = vmatmul.msk.f32.gmra.mxu1 %vm661_vm1, %v5419_v39  ;;  %v2337_v39 = vperm.slane %v7662_v49, 3 }
 0x2ca   :  { %2982 = vst [vmem:[#allocation1 + $0x1] ss:$9 sm:$0xff] %v2327_v16  ;;  %v1942_v16 = vpop.xlane.xlu2 %1941 }
 0x2cb   :  { %2983 = vst [vmem:[#allocation1 + $0x2] ss:$9 sm:$0xff] %v2328_v6  ;;  %v11451_v6 = vld [vmem:[#allocation86_spill] sm:$0xff]  ;;  %v1943_v14 = vcvt.f32.s32 %v1942_v16 }
 0x2cc   :  { %2984 = vst [vmem:[#allocation1 + $0x3] ss:$9 sm:$0xff] %v2329_v29  ;;  %v1944_v56 = vcvt.f32.s32 %v11451_v6  ;;  %v7697_v29 = vadd.s32 %v1240_v4, %v1238_v37  ;;  %v2338_v4 = vperm.slane %v7662_v49, 4 }
 0x2cd   :  { %2985 = vst [vmem:[#allocation1 + $0x4] ss:$9 sm:$0xff] %v2330_v18 }
 0x2ce   :  { %2986 = vst [vmem:[#allocation1 + $0x5] ss:$9 sm:$0xff] %v2331_v45  ;;  %v1945_v18 = vshll.u32 %v1944_v56, 16  ;;  %v2335_v56 = vperm.slane %v7662_v49, 1  ;;  %vm4082_vm14 = vcmp.eq.s32.totalorder %v6177_v22, %v7697_v29 }
 0x2cf   :  { %2987 = vst [vmem:[#allocation1 + $0x6] ss:$9 sm:$0xff] %v2332_v31  ;;  %v7720_v31 = vpop.xlane.xlu0 %1457  ;;  %v5420_v37 = vsel %vm4082_vm14, 1.0, %v11371_v8 }
 0x2d0   :  { %2988 = vst [vmem:[#allocation1 + $0x7] ss:$9 sm:$0xff] %v2333_v50  ;;  %v7713_v45 = vadd.s32 %v1945_v18, %v1943_v14  ;;  %v1959_v50 = vcvt.f32.s32 %v7001_v12  ;;  %v1957_v14 = vpop.xlane.xlu1 %1956  ;;  %v2339_v18 = vperm.slane %v7662_v49, 5  ;;  %v2340_v12 = vperm.slane %v7662_v49, 6 }
 0x2d1   :  { %5500 = vmatmul.msk.f32.gmra.mxu1 %vm661_vm1, %v5420_v37  ;;  %v1958_v53 = vcvt.f32.s32 %v1957_v14 }
 0x2d2   :  { %11454 = vst [vmem:[#allocation71_spill] sm:$0xff] %v7713_v45  ;;  %v7732_v6 = vpop.xlane.xlu2 %786  ;;  %vm11098_vm7 = vcmp.eq.s32.totalorder %v6177_v22, %v7713_v45  ;;  %v1960_v19 = vshll.u32 %v1959_v50, 16  ;;  %v2347_v45 = vperm.slane %v7673_v57, 5 }
 0x2d4   :  { %v7743_v37 = vadd.s32 %v1960_v19, %v1958_v53  ;;  %v1254_v53 = vcvt.f32.s32 %v6999_v5 }
 0x2d6   :  { %11456 = vst [vmem:[#allocation77_spill] sm:$0xff] %v7743_v37  ;;  %vm11099_vm11 = vcmp.eq.s32.totalorder %v6177_v22, %v7743_v37  ;;  %v2348_v37 = vperm.slane %v7673_v57, 6 }
 0x2d7   :  { %v7727_v16 = vld [vmem:[#allocation1] sm:$0xff]  ;;  %v7748_v14 = vpop.xlane.xlu0 %789  ;;  %v5468_v50 = vsel %vm11099_vm11, 1.0, %v11371_v8 }
 0x2d8   :  { %11455 = vst [vmem:[#allocation8_spill] sm:$0xff] %v7727_v16  ;;  %v2341_v16 = vperm.slane %v7662_v49, 7  ;;  %v7759_v19 = vpop.xlane.xlu1 %792 }
 0x2d9   :  { %2990 = vst [vmem:[#allocation1] ss:$9 sm:$0xff] %v2334_v46  ;;  %v5467_v46 = vsel %vm11098_vm7, 1.0, %v11371_v8 }
 0x2da   :  { %2991 = vst [vmem:[#allocation1 + $0x1] ss:$9 sm:$0xff] %v2335_v56  ;;  %v7745_v56 = vpop.f32.mrf.mxu1  ;;  %5547 = vmatmul.msk.f32.gmra.mxu3 %vm661_vm1, %v5467_v46  ;;  %v2345_v46 = vperm.slane %v7673_v57, 3 }
 0x2db   :  { %2992 = vst [vmem:[#allocation1 + $0x2] ss:$9 sm:$0xff] %v2336_v36  ;;  %v7757_v36 = vpop.xlane.xlu2 %1472 }
 0x2dc   :  { %2993 = vst [vmem:[#allocation1 + $0x3] ss:$9 sm:$0xff] %v2337_v39  ;;  %v2343_v39 = vperm.slane %v7673_v57, 1 }
 0x2dd   :  { %2994 = vst [vmem:[#allocation1 + $0x4] ss:$9 sm:$0xff] %v2338_v4 }
 0x2de   :  { %2995 = vst [vmem:[#allocation1 + $0x5] ss:$9 sm:$0xff] %v2339_v18 }
 0x2df   :  { %11457 = vst [vmem:[#allocation7_spill] sm:$0xff] %v7745_v56  ;;  %v1252_v18 = vpop.xlane.xlu0 %1251 }
 0x2e0   :  { %2996 = vst [vmem:[#allocation1 + $0x6] ss:$9 sm:$0xff] %v2340_v12  ;;  %v2344_v12 = vperm.slane %v7673_v57, 2  ;;  %v1253_v26 = vcvt.f32.s32 %v1252_v18 }
 0x2e1   :  { %2997 = vst [vmem:[#allocation1 + $0x7] ss:$9 sm:$0xff] %v2341_v16  ;;  %v2342_v16 = vperm.slane %v7673_v57, 0 }
 0x2e2   :  { %4809 = vst.msk [vmem:[%s10939_s4 + $0x8] sm:$0xff] %vm11215_vm0, %v7745_v56  ;;  %5548 = vmatmul.msk.f32.gmra.mxu3 %vm661_vm1, %v5468_v50  ;;  %v2346_v56 = vperm.slane %v7673_v57, 4  ;;  %v1255_v50 = vshll.u32 %v1254_v53, 16  ;;  %v7784_v53 = vpop.f32.mrf.mxu1 }
 0x2e3   :  { %v1267_v5 = vpop.xlane.xlu2 %1266  ;;  %11459 = vst [vmem:[#allocation76_spill] sm:$0xff] %v7784_v53 }
 0x2e4   :  { %v7778_v2 = vadd.s32 %v1255_v50, %v1253_v26  ;;  %v1268_v18 = vcvt.f32.s32 %v1267_v5  ;;  %4810 = vst.msk [vmem:[%s10939_s4 + $0x10] sm:$0xff] %vm11215_vm0, %v7784_v53  ;;  %v2352_v50 = vperm.slane %v7697_v29, 2  ;;  %v2353_v5 = vperm.slane %v7697_v29, 3 }
 0x2e5   :  { %v2355_v53 = vperm.slane %v7697_v29, 5 }
 0x2e6   :  { %vm4083_vm7 = vcmp.eq.s32.totalorder %v6177_v22, %v7778_v2  ;;  %v2358_v23 = vperm.slane %v7778_v2, 0 }
 0x2e8   :  { %v7768_v4 = vld [vmem:[#allocation1] sm:$0xff] }
 0x2e9   :  { %11458 = vst [vmem:[#allocation9_spill] sm:$0xff] %v7768_v4  ;;  %v2349_v4 = vperm.slane %v7673_v57, 7 }
 0x2ea   :  { %2999 = vst [vmem:[#allocation1] ss:$9 sm:$0xff] %v2342_v16  ;;  %v1269_v16 = vcvt.f32.s32 %v7038_v27  ;;  %v2350_v27 = vperm.slane %v7697_v29, 0 }
 0x2eb   :  { %3000 = vst [vmem:[#allocation1 + $0x1] ss:$9 sm:$0xff] %v2343_v39  ;;  %v7780_v39 = vpop.xlane.xlu1 %1487 }
 0x2ec   :  { %3001 = vst [vmem:[#allocation1 + $0x2] ss:$9 sm:$0xff] %v2344_v12  ;;  %v1270_v12 = vshll.u32 %v1269_v16, 16 }
 0x2ed   :  { %3002 = vst [vmem:[#allocation1 + $0x3] ss:$9 sm:$0xff] %v2345_v46  ;;  %v1974_v46 = vcvt.f32.s32 %v7023_v60 }
 0x2ee   :  { %3003 = vst [vmem:[#allocation1 + $0x4] ss:$9 sm:$0xff] %v2346_v56  ;;  %v7790_v56 = vadd.s32 %v1270_v12, %v1268_v18  ;;  %v1284_v18 = vcvt.f32.s32 %v7058_v54  ;;  %v2354_v12 = vperm.slane %v7697_v29, 4  ;;  %v2357_v54 = vperm.slane %v7697_v29, 7 }
 0x2ef   :  { %3004 = vst [vmem:[#allocation1 + $0x5] ss:$9 sm:$0xff] %v2347_v45  ;;  %v5421_v45 = vsel %vm4083_vm7, 1.0, %v11371_v8  ;;  %v1975_v60 = vshll.u32 %v1974_v46, 16 }
 0x2f0   :  { %3005 = vst [vmem:[#allocation1 + $0x6] ss:$9 sm:$0xff] %v2348_v37  ;;  %5501 = vmatmul.msk.f32.gmra.mxu1 %vm661_vm1, %v5421_v45  ;;  %v2351_v37 = vperm.slane %v7697_v29, 1  ;;  %vm4084_vm11 = vcmp.eq.s32.totalorder %v6177_v22, %v7790_v56 }
 0x2f1   :  { %3006 = vst [vmem:[#allocation1 + $0x7] ss:$9 sm:$0xff] %v2349_v4  ;;  %v1972_v4 = vpop.xlane.xlu0 %1971 }
 0x2f2   :  { %v1973_v45 = vcvt.f32.s32 %v1972_v4  ;;  %v1285_v4 = vshll.u32 %v1284_v18, 16 }
 0x2f3   :  { %v1282_v16 = vpop.xlane.xlu1 %1281 }
 0x2f4   :  { %v1283_v11 = vcvt.f32.s32 %v1282_v16  ;;  %v7818_v46 = vadd.s32 %v1975_v60, %v1973_v45  ;;  %v2004_v60 = vcvt.f32.s32 %v7139_v58  ;;  %v2364_v58 = vperm.slane %v7778_v2, 6 }
 0x2f6   :  { %11461 = vst [vmem:[#allocation18_spill] sm:$0xff] %v7818_v46  ;;  %vm11105_vm13 = vcmp.eq.s32.totalorder %v6177_v22, %v7818_v46 }
 0x2f8   :  { %v7799_v26 = vld [vmem:[#allocation1] sm:$0xff] }
 0x2f9   :  { %11460 = vst [vmem:[#allocation11_spill] sm:$0xff] %v7799_v26  ;;  %v2356_v26 = vperm.slane %v7697_v29, 6 }
 0x2fa   :  { %3008 = vst [vmem:[#allocation1] ss:$9 sm:$0xff] %v2350_v27  ;;  %v1987_v27 = vpop.xlane.xlu2 %1986 }
 0x2fb   :  { %3009 = vst [vmem:[#allocation1 + $0x1] ss:$9 sm:$0xff] %v2351_v37  ;;  %v5422_v37 = vsel %vm4084_vm11, 1.0, %v11371_v8 }
 0x2fc   :  { %3010 = vst [vmem:[#allocation1 + $0x2] ss:$9 sm:$0xff] %v2352_v50  ;;  %5502 = vmatmul.msk.f32.gmra.mxu1 %vm661_vm1, %v5422_v37  ;;  %v1989_v50 = vcvt.f32.s32 %v7087_v21  ;;  %v2359_v21 = vperm.slane %v7778_v2, 1  ;;  %v2361_v37 = vperm.slane %v7778_v2, 3 }
 0x2fd   :  { %3011 = vst [vmem:[#allocation1 + $0x3] ss:$9 sm:$0xff] %v2353_v5  ;;  %v1988_v5 = vcvt.f32.s32 %v1987_v27 }
 0x2fe   :  { %3012 = vst [vmem:[#allocation1 + $0x4] ss:$9 sm:$0xff] %v2354_v12  ;;  %v7820_v12 = vadd.s32 %v1285_v4, %v1283_v11  ;;  %v1990_v16 = vshll.u32 %v1989_v50, 16  ;;  %v2360_v11 = vperm.slane %v7778_v2, 2  ;;  %v2362_v4 = vperm.slane %v7778_v2, 4  ;;  %v2002_v50 = vpop.xlane.xlu1 %2001 }
 0x2ff   :  { %3013 = vst [vmem:[#allocation1 + $0x5] ss:$9 sm:$0xff] %v2355_v53  ;;  %v5469_v53 = vsel %vm11105_vm13, 1.0, %v11371_v8 }
 0x300   :  { %3014 = vst [vmem:[#allocation1 + $0x6] ss:$9 sm:$0xff] %v2356_v26  ;;  %v7829_v18 = vadd.s32 %v1990_v16, %v1988_v5  ;;  %5549 = vmatmul.msk.f32.gmra.mxu3 %vm661_vm1, %v5469_v53  ;;  %vm4085_vm2 = vcmp.eq.s32.totalorder %v6177_v22, %v7820_v12  ;;  %v7836_v26 = vpop.xlane.xlu0 %1502  ;;  %v2363_v5 = vperm.slane %v7778_v2, 5  ;;  %v2003_v16 = vcvt.f32.s32 %v2002_v50 }
 0x301   :  { %3015 = vst [vmem:[#allocation1 + $0x7] ss:$9 sm:$0xff] %v2357_v54  ;;  %v5423_v45 = vsel %vm4085_vm2, 1.0, %v11371_v8  ;;  %v2005_v53 = vshll.u32 %v2004_v60, 16  ;;  %v7868_v60 = vpop.f32.mrf.mxu1  ;;  %v2366_v50 = vperm.slane %v7790_v56, 0 }
 0x302   :  { %11462 = vst [vmem:[#allocation80_spill] sm:$0xff] %v7829_v18  ;;  %v7846_v54 = vpop.xlane.xlu2 %795  ;;  %vm11115_vm13 = vcmp.eq.s32.totalorder %v6177_v22, %v7829_v18  ;;  %v2371_v18 = vperm.slane %v7790_v56, 5 }
 0x303   :  { %11465 = vst [vmem:[#allocation97_spill] sm:$0xff] %v7868_v60 }
 0x304   :  { %5503 = vmatmul.msk.f32.gmra.mxu1 %vm661_vm1, %v5423_v45  ;;  %v7859_v45 = vadd.s32 %v2005_v53, %v2003_v16  ;;  %4811 = vst.msk [vmem:[%s10939_s4 + $0x18] sm:$0xff] %vm11215_vm0, %v7868_v60  ;;  %v1299_v53 = vcvt.f32.s32 %v7099_v7  ;;  %v2370_v60 = vperm.slane %v7790_v56, 4 }
 0x306   :  { %11464 = vst [vmem:[#allocation96_spill] sm:$0xff] %v7859_v45  ;;  %vm11162_vm8 = vcmp.eq.s32.totalorder %v6177_v22, %v7859_v45  ;;  %v2372_v45 = vperm.slane %v7790_v56, 6 }
 0x308   :  { %v7843_v27 = vld [vmem:[#allocation1] sm:$0xff] }
 0x309   :  { %11463 = vst [vmem:[#allocation86_spill] sm:$0xff] %v7843_v27  ;;  %v2365_v27 = vperm.slane %v7778_v2, 7  ;;  %v2381_v2 = vperm.slane %v7820_v12, 7 }
 0x30a   :  { %3017 = vst [vmem:[#allocation1] ss:$9 sm:$0xff] %v2358_v23  ;;  %v5470_v23 = vsel %vm11115_vm13, 1.0, %v11371_v8 }
 0x30b   :  { %3018 = vst [vmem:[#allocation1 + $0x1] ss:$9 sm:$0xff] %v2359_v21  ;;  %5550 = vmatmul.msk.f32.gmra.mxu3 %vm661_vm1, %v5470_v23  ;;  %v7862_v21 = vpop.xlane.xlu0 %798  ;;  %v2368_v23 = vperm.slane %v7790_v56, 2 }
 0x30c   :  { %3019 = vst [vmem:[#allocation1 + $0x2] ss:$9 sm:$0xff] %v2360_v11  ;;  %v7864_v11 = vpop.xlane.xlu2 %1517 }
 0x30d   :  { %3020 = vst [vmem:[#allocation1 + $0x3] ss:$9 sm:$0xff] %v2361_v37  ;;  %v7870_v37 = vpop.f32.mrf.mxu3 }
 0x30e   :  { %3021 = vst [vmem:[#allocation1 + $0x4] ss:$9 sm:$0xff] %v2362_v4  ;;  %v7877_v4 = vpop.xlane.xlu1 %801 }
 0x30f   :  { %3022 = vst [vmem:[#allocation1 + $0x5] ss:$9 sm:$0xff] %v2363_v5  ;;  %v2367_v5 = vperm.slane %v7790_v56, 1 }
 0x310   :  { %3023 = vst [vmem:[#allocation1 + $0x6] ss:$9 sm:$0xff] %v2364_v58 }
 0x311   :  { %3024 = vst [vmem:[#allocation1 + $0x7] ss:$9 sm:$0xff] %v2365_v27  ;;  %v5471_v27 = vsel %vm11162_vm8, 1.0, %v11371_v8 }
 0x312   :  { %11466 = vst [vmem:[#allocation98_spill] sm:$0xff] %v7870_v37 }
 0x313   :  { %11467 = vst [vmem:[#allocation99_spill] sm:$0xff] %v7877_v4  ;;  %5551 = vmatmul.msk.f32.gmra.mxu3 %vm661_vm1, %v5471_v27  ;;  %v1297_v58 = vpop.xlane.xlu0 %1296  ;;  %v1300_v27 = vshll.u32 %v1299_v53, 16 }
 0x314   :  { %4858 = vst.msk [vmem:[%s10939_s4 + $0x190] sm:$0xff] %vm11215_vm0, %v7870_v37  ;;  %v2369_v37 = vperm.slane %v7790_v56, 3  ;;  %v1298_v46 = vcvt.f32.s32 %v1297_v58  ;;  %v1312_v7 = vpop.xlane.xlu2 %1311 }
 0x315   :  { %v1313_v58 = vcvt.f32.s32 %v1312_v7  ;;  %v2376_v7 = vperm.slane %v7820_v12, 2 }
 0x316   :  { %v7901_v4 = vadd.s32 %v1300_v27, %v1298_v46  ;;  %v2019_v27 = vcvt.f32.s32 %v7167_v28 }
 0x318   :  { %v7891_v16 = vld [vmem:[#allocation1] sm:$0xff]  ;;  %vm4086_vm13 = vcmp.eq.s32.totalorder %v6177_v22, %v7901_v4  ;;  %v2384_v34 = vperm.slane %v7901_v4, 2  ;;  %v2386_v59 = vperm.slane %v7901_v4, 4  ;;  %v2389_v25 = vperm.slane %v7901_v4, 7 }
 0x319   :  { %11468 = vst [vmem:[#allocation100_spill] sm:$0xff] %v7891_v16  ;;  %v2373_v16 = vperm.slane %v7790_v56, 7  ;;  %v5424_v46 = vsel %vm4086_vm13, 1.0, %v11371_v8  ;;  %v2379_v56 = vperm.slane %v7820_v12, 5 }
 0x31a   :  { %3026 = vst [vmem:[#allocation1] ss:$9 sm:$0xff] %v2366_v50  ;;  %v1314_v50 = vcvt.f32.s32 %v7152_v62  ;;  %v11117_v62 = vmov 1.0   ;;  %5504 = vmatmul.msk.f32.gmra.mxu1 %vm661_vm1, %v5424_v46  ;;  %v2378_v46 = vperm.slane %v7820_v12, 4 }
 0x31b   :  { %3027 = vst [vmem:[#allocation1 + $0x1] ss:$9 sm:$0xff] %v2367_v5  ;;  %v7903_v5 = vpop.xlane.xlu1 %1532  ;;  %5570 = vmatpush.msk.msrb.mxu2 %vm4086_vm13, %v11117_v62  ;;  %v2017_v53 = vpop.xlane.xlu0 %2016 }
 0x31c   :  { %3028 = vst [vmem:[#allocation1 + $0x2] ss:$9 sm:$0xff] %v2368_v23  ;;  %v7905_v23 = vpop.f32.mrf.mxu1  ;;  %v2018_v28 = vcvt.f32.s32 %v2017_v53  ;;  %v2032_v53 = vpop.xlane.xlu2 %2031 }
 0x31d   :  { %3029 = vst [vmem:[#allocation1 + $0x3] ss:$9 sm:$0xff] %v2369_v37  ;;  %v1315_v37 = vshll.u32 %v1314_v50, 16  ;;  %5571 = vmatpush.msk.msrb.mxu2 %vm4085_vm2, %v11117_v62  ;;  %v2377_v50 = vperm.slane %v7820_v12, 3  ;;  %v2033_v29 = vcvt.f32.s32 %v2032_v53  ;;  %v8030_v53 = vpop.f32.mrf.mxu3 }
 0x31e   :  { %3030 = vst [vmem:[#allocation1 + $0x4] ss:$9 sm:$0xff] %v2370_v60 }
 0x31f   :  { %3031 = vst [vmem:[#allocation1 + $0x5] ss:$9 sm:$0xff] %v2371_v18  ;;  %v7916_v18 = vadd.s32 %v1315_v37, %v1313_v58  ;;  %5572 = vmatpush.msk.msrb.mxu2 %vm4084_vm11, %v11117_v62  ;;  %v1329_v37 = vcvt.f32.s32 %v7228_v44 }
 0x320   :  { %3032 = vst [vmem:[#allocation1 + $0x6] ss:$9 sm:$0xff] %v2372_v45  ;;  %v2374_v45 = vperm.slane %v7820_v12, 0 }
 0x321   :  { %3033 = vst [vmem:[#allocation1 + $0x7] ss:$9 sm:$0xff] %v2373_v16  ;;  %v2375_v16 = vperm.slane %v7820_v12, 1  ;;  %vm11177_vm13 = vcmp.eq.s32.totalorder %v6177_v22, %v7916_v18  ;;  %5573 = vmatpush.msk.msrb.mxu2 %vm4083_vm7, %v11117_v62 }
 0x322   :  { %11469 = vst [vmem:[#allocation101_spill] sm:$0xff] %v7905_v23  ;;  %v5425_v44 = vsel %vm11177_vm13, 1.0, %v11371_v8 }
 0x323   :  { %4812 = vst.msk [vmem:[%s10939_s4 + $0x20] sm:$0xff] %vm11215_vm0, %v7905_v23  ;;  %v1327_v58 = vpop.xlane.xlu1 %1326  ;;  %5574 = vmatpush.msk.msrb.mxu2 %vm4082_vm14, %v11117_v62  ;;  %5505 = vmatmul.msk.f32.gmra.mxu1 %vm661_vm1, %v5425_v44  ;;  %v2388_v44 = vperm.slane %v7901_v4, 6 }
 0x324   :  { %v1328_v23 = vcvt.f32.s32 %v1327_v58  ;;  %v7974_v57 = vpop.f32.mrf.mxu1  ;;  %11475 = vst [vmem:[#allocation107_spill] sm:$0xff] %v8030_v53 }
 0x325   :  { %5575 = vmatpush.msk.msrb.mxu2 %vm4081_vm9, %v11117_v62  ;;  %11472 = vst [vmem:[#allocation104_spill] sm:$0xff] %v7974_v57 }
 0x326   :  { %4813 = vst.msk [vmem:[%s10939_s4 + $0x28] sm:$0xff] %vm11215_vm0, %v7974_v57 }
 0x327   :  { %5576 = vmatpush.msk.msrb.mxu2 %vm4080_vm12, %v11117_v62  ;;  %4859 = vst.msk [vmem:[%s10939_s4 + $0x198] sm:$0xff] %vm11215_vm0, %v8030_v53  ;;  %v11490_v53 = vld [vmem:[#allocation66_spill] sm:$0xff] }
 0x328   :  { %v7924_v60 = vld [vmem:[#allocation1] sm:$0xff] }
 0x329   :  { %11470 = vst [vmem:[#allocation102_spill] sm:$0xff] %v7924_v60  ;;  %5577 = vmatpush.msk.msrb.mxu2 %vm4079_vm15, %v11117_v62 }
 0x32a   :  { %3035 = vst [vmem:[#allocation1] ss:$9 sm:$0xff] %v2374_v45  ;;  %v2020_v45 = vshll.u32 %v2019_v27, 16  ;;  %v1330_v27 = vshll.u32 %v1329_v37, 16  ;;  %v2383_v37 = vperm.slane %v7901_v4, 1 }
 0x32b   :  { %3036 = vst [vmem:[#allocation1 + $0x1] ss:$9 sm:$0xff] %v2375_v16  ;;  %v2380_v16 = vperm.slane %v7820_v12, 6  ;;  %5578 = vmatpush.msk.msrb.mxu2 %vm4078_vm10, %v11117_v62  ;;  %v2047_v33 = vpop.xlane.xlu1 %2046 }
 0x32c   :  { %3037 = vst [vmem:[#allocation1 + $0x2] ss:$9 sm:$0xff] %v2376_v7  ;;  %v2034_v7 = vcvt.f32.s32 %v7237_v42  ;;  %v7961_v58 = vadd.s32 %v1330_v27, %v1328_v23  ;;  %v2382_v42 = vperm.slane %v7901_v4, 0 }
 0x32d   :  { %3038 = vst [vmem:[#allocation1 + $0x3] ss:$9 sm:$0xff] %v2377_v50  ;;  %v7955_v50 = vadd.s32 %v2020_v45, %v2018_v28  ;;  %5579 = vmatpush.msk.msrb.mxu2 %vm4077_vm3, %v11117_v62  ;;  %v8009_v45 = vpop.xlane.xlu2 %804 }
 0x32e   :  { %3039 = vst [vmem:[#allocation1 + $0x4] ss:$9 sm:$0xff] %v2378_v46  ;;  %v2035_v12 = vshll.u32 %v2034_v7, 16  ;;  %vm11180_vm14 = vcmp.eq.s32.totalorder %v6177_v22, %v7961_v58  ;;  %v2048_v7 = vcvt.f32.s32 %v2047_v33 }
 0x32f   :  { %3040 = vst [vmem:[#allocation1 + $0x5] ss:$9 sm:$0xff] %v2379_v56  ;;  %vm11176_vm2 = vcmp.eq.s32.totalorder %v6177_v22, %v7955_v50  ;;  %v5426_v46 = vsel %vm11180_vm14, 1.0, %v11371_v8  ;;  %v2385_v56 = vperm.slane %v7901_v4, 3  ;;  %5580 = vmatpush.msk.msrb.mxu2 %vm4076_vm4, %v11117_v62 }
 0x330   :  { %3041 = vst [vmem:[#allocation1 + $0x6] ss:$9 sm:$0xff] %v2380_v16  ;;  %v5472_v23 = vsel %vm11176_vm2, 1.0, %v11371_v8  ;;  %v7980_v49 = vadd.s32 %v2035_v12, %v2033_v29  ;;  %5506 = vmatmul.msk.f32.gmra.mxu1 %vm661_vm1, %v5426_v46  ;;  %v2387_v16 = vperm.slane %v7901_v4, 5  ;;  %v2049_v4 = vcvt.f32.s32 %v7333_v38 }
 0x331   :  { %11471 = vst [vmem:[#allocation103_spill] sm:$0xff] %v7955_v50  ;;  %5552 = vmatmul.msk.f32.gmra.mxu3 %vm661_vm1, %v5472_v23  ;;  %5581 = vmatpush.msk.msrb.mxu2 %vm4075_vm6, %v11117_v62  ;;  %vm11476_vm6 = vcmp.eq.s32.totalorder %v6177_v22, %v7226_v52  ;;  %v11479_v52 = vld [vmem:[#allocation33_spill] sm:$0xff]  ;;  %v2390_v12 = vperm.slane %v7916_v18, 0  ;;  %v2391_v38 = vperm.slane %v7916_v18, 1 }
 0x332   :  { %3042 = vst [vmem:[#allocation1 + $0x7] ss:$9 sm:$0xff] %v2381_v2  ;;  %vm11158_vm15 = vcmp.eq.s32.totalorder %v6177_v22, %v7980_v49  ;;  %v8024_v2 = vpop.xlane.xlu0 %1547  ;;  %vm11480_vm4 = vcmp.eq.s32.totalorder %v6177_v22, %v11479_v52  ;;  %v2050_v29 = vshll.u32 %v2049_v4, 16  ;;  %v8081_v52 = vpop.f32.mrf.mxu3 }
 0x333   :  { %11473 = vst [vmem:[#allocation105_spill] sm:$0xff] %v7980_v49  ;;  %v5473_v3 = vsel %vm11158_vm15, 1.0, %v11371_v8  ;;  %5582 = vmatpush.msk.msrb.mxu2 %vm4074_vm5, %v11117_v62  ;;  %vm11478_vm5 = vcmp.eq.s32.totalorder %v6177_v22, %v11477_v15  ;;  %v1359_v15 = vcvt.f32.s32 %v7349_v61 }
 0x334   :  { %v8064_v46 = vadd.s32 %v2050_v29, %v2048_v7  ;;  %11482 = vst [vmem:[#allocation33_spill] sm:$0xff] %v8081_v52  ;;  %v8083_v29 = vpop.xlane.xlu1 %1577 }
 0x335   :  { %5583 = vmatpush.msk.msrb.mxu2 %vm11476_vm6, %v11117_v62  ;;  %v8051_v27 = vpop.xlane.xlu2 %1562  ;;  %4860 = vst.msk [vmem:[%s10939_s4 + $0x1a0] sm:$0xff] %vm11215_vm0, %v8081_v52  ;;  %v11492_v52 = vld [vmem:[#allocation81_spill] sm:$0xff] }
 0x336   :  { %11481 = vst [vmem:[#allocation41_spill] sm:$0xff] %v8064_v46  ;;  %vm11159_vm7 = vcmp.eq.s32.totalorder %v6177_v22, %v8064_v46 }
 0x337   :  { %5584 = vmatpush.msk.msrb.mxu2 %vm11478_vm5, %v11117_v62  ;;  %v5474_v4 = vsel %vm11159_vm7, 1.0, %v11371_v8 }
 0x339   :  { %v8000_v28 = vld [vmem:[#allocation1] sm:$0xff]  ;;  %5553 = vmatmul.msk.f32.gmra.mxu3 %vm661_vm1, %v5473_v3  ;;  %5585 = vmatpush.msk.msrb.mxu2 %vm11480_vm4, %v11117_v62  ;;  %v2396_v3 = vperm.slane %v7916_v18, 6 }
 0x33a   :  { %11474 = vst [vmem:[#allocation106_spill] sm:$0xff] %v8000_v28  ;;  %4932 = vmatmul.f32.vlgmr.msrb.gmra.mxu2 %v11117_v62  ;;  %v1342_v23 = vpop.xlane.xlu0 %1341 }
 0x33b   :  { %3044 = vst [vmem:[#allocation1] ss:$9 sm:$0xff] %v2382_v42 }
 0x33c   :  { %3045 = vst [vmem:[#allocation1 + $0x1] ss:$9 sm:$0xff] %v2383_v37  ;;  %v1344_v37 = vcvt.f32.s32 %v7264_v47  ;;  %v2397_v47 = vperm.slane %v7916_v18, 7 }
 0x33d   :  { %3046 = vst [vmem:[#allocation1 + $0x2] ss:$9 sm:$0xff] %v2384_v34  ;;  %v2392_v34 = vperm.slane %v7916_v18, 2  ;;  %v1357_v33 = vpop.xlane.xlu2 %1356 }
 0x33e   :  { %3047 = vst [vmem:[#allocation1 + $0x3] ss:$9 sm:$0xff] %v2385_v56  ;;  %v2393_v56 = vperm.slane %v7916_v18, 3 }
 0x33f   :  { %3048 = vst [vmem:[#allocation1 + $0x4] ss:$9 sm:$0xff] %v2386_v59  ;;  %v2394_v59 = vperm.slane %v7916_v18, 4 }
 0x340   :  { %3049 = vst [vmem:[#allocation1 + $0x5] ss:$9 sm:$0xff] %v2387_v16  ;;  %v1343_v16 = vcvt.f32.s32 %v1342_v23 }
 0x341   :  { %3050 = vst [vmem:[#allocation1 + $0x6] ss:$9 sm:$0xff] %v2388_v44  ;;  %v2395_v44 = vperm.slane %v7916_v18, 5  ;;  %5554 = vmatmul.msk.f32.gmra.mxu3 %vm661_vm1, %v5474_v4  ;;  %v2403_v4 = vperm.slane %v7961_v58, 5 }
 0x342   :  { %3051 = vst [vmem:[#allocation1 + $0x7] ss:$9 sm:$0xff] %v2389_v25  ;;  %v1345_v25 = vshll.u32 %v1344_v37, 16  ;;  %v2398_v37 = vperm.slane %v7961_v58, 0 }
 0x344   :  { %v8078_v7 = vadd.s32 %v1345_v25, %v1343_v16  ;;  %v2401_v16 = vperm.slane %v7961_v58, 3  ;;  %v11484_v25 = vld [vmem:[#allocation78_spill] sm:$0xff] }
 0x345   :  { %vm937_vm10 = vcmp.eq.f32.partialorder %v11484_v25, %v7374_v35  ;;  %v8137_v25 = vpop.f32.mrf.mxu1 }
 0x346   :  { %vm11181_vm12 = vcmp.eq.s32.totalorder %v6177_v22, %v8078_v7  ;;  %11486 = vst [vmem:[#allocation109_spill] sm:$0xff] %v8137_v25  ;;  %v2411_v62 = vperm.slane %v8078_v7, 5 }
 0x347   :  { %v5427_v61 = vsel %vm11181_vm12, 1.0, %v11371_v8  ;;  %4814 = vst.msk [vmem:[%s10939_s4 + $0x30] sm:$0xff] %vm11215_vm0, %v8137_v25 }
 0x348   :  { %5507 = vmatmul.msk.f32.gmra.mxu1 %vm661_vm1, %v5427_v61  ;;  %v2405_v61 = vperm.slane %v7961_v58, 7 }
 0x349   :  { %v8060_v42 = vld [vmem:[#allocation1] sm:$0xff] }
 0x34a   :  { %3053 = vst [vmem:[#allocation1] ss:$9 sm:$0xff] %v2390_v12  ;;  %v1358_v12 = vcvt.f32.s32 %v1357_v33  ;;  %v2053_v33 = vand.u32 65535, %v7504_v13  ;;  %v8122_v13 = vpop.f32.mrf.mxu3 }
 0x34b   :  { %3054 = vst [vmem:[#allocation1 + $0x1] ss:$9 sm:$0xff] %v2391_v38  ;;  %v1360_v38 = vshll.u32 %v1359_v15, 16  ;;  %v8113_v15 = vpop.xlane.xlu2 %2057 }
 0x34c   :  { %3055 = vst [vmem:[#allocation1 + $0x2] ss:$9 sm:$0xff] %v2392_v34  ;;  %vm2059_vm11 = vcmp.eq.f32.partialorder %v7538_v1, %v8113_v15  ;;  %v11487_v1 = vld [vmem:[#allocation26_spill] sm:$0xff] }
 0x34d   :  { %3056 = vst [vmem:[#allocation1 + $0x3] ss:$9 sm:$0xff] %v2393_v56  ;;  %v8096_v23 = vadd.s32 %v1360_v38, %v1358_v12  ;;  %v2399_v56 = vperm.slane %v7961_v58, 1  ;;  %v2404_v12 = vperm.slane %v7961_v58, 6  ;;  %vm941_vm9 = vcmp.eq.f32.partialorder %v11487_v1, %v7620_v0 }
 0x34e   :  { %3057 = vst [vmem:[#allocation1 + $0x4] ss:$9 sm:$0xff] %v2394_v59  ;;  %v2400_v59 = vperm.slane %v7961_v58, 2 }
 0x34f   :  { %3058 = vst [vmem:[#allocation1 + $0x5] ss:$9 sm:$0xff] %v2395_v44  ;;  %v1372_v44 = vpop.xlane.xlu1 %1371  ;;  %vm11191_vm3 = vcmp.eq.s32.totalorder %v6177_v22, %v8096_v23  ;;  %v2418_v57 = vperm.slane %v8096_v23, 4 }
 0x350   :  { %3059 = vst [vmem:[#allocation1 + $0x6] ss:$9 sm:$0xff] %v2396_v3  ;;  %v1374_v3 = vcvt.f32.s32 %v7419_v55  ;;  %v1373_v38 = vcvt.f32.s32 %v1372_v44  ;;  %v5428_v35 = vsel %vm11191_vm3, 1.0, %v11371_v8  ;;  %v1017_v55 = vsel %vm937_vm10, %v6177_v22, 64 }
 0x351   :  { %3060 = vst [vmem:[#allocation1 + $0x7] ss:$9 sm:$0xff] %v2397_v47  ;;  %v2402_v47 = vperm.slane %v7961_v58, 4  ;;  %5508 = vmatmul.msk.f32.gmra.mxu1 %vm661_vm1, %v5428_v35  ;;  %v1603_v35 = vand.u32 65535, %v7553_v30 }
 0x352   :  { %11485 = vst [vmem:[#allocation78_spill] sm:$0xff] %v8122_v13 }
 0x353   :  { %4861 = vst.msk [vmem:[%s10939_s4 + $0x1a8] sm:$0xff] %vm11215_vm0, %v8122_v13  ;;  %v2413_v13 = vperm.slane %v8078_v7, 7 }
 0x358   :  { %v8100_v34 = vld [vmem:[#allocation1] sm:$0xff] }
 0x359   :  { %11483 = vst [vmem:[#allocation108_spill] sm:$0xff] %v8100_v34 }
 0x35a   :  { %3062 = vst [vmem:[#allocation1] ss:$9 sm:$0xff] %v2398_v37  ;;  %v1375_v37 = vshll.u32 %v1374_v3, 16  ;;  %v2406_v3 = vperm.slane %v8078_v7, 0 }
 0x35b   :  { %3063 = vst [vmem:[#allocation1 + $0x1] ss:$9 sm:$0xff] %v2399_v56  ;;  %v2055_v56 = vcvt.s32.f32 %v2053_v33  ;;  %v2068_v33 = vand.u32 65535, %v7562_v20  ;;  %v2409_v20 = vperm.slane %v8078_v7, 3 }
 0x35c   :  { %3064 = vst [vmem:[#allocation1 + $0x2] ss:$9 sm:$0xff] %v2400_v59  ;;  %v8128_v59 = vsel %vm661_vm1, %v1017_v55, 2147483647  ;;  %v1021_v55 = vsel %vm941_vm9, %v6177_v22, 64 }
 0x35d   :  { %3065 = vst [vmem:[#allocation1 + $0x3] ss:$9 sm:$0xff] %v2401_v16  ;;  %v8135_v16 = vadd.s32 %v1375_v37, %v1373_v38  ;;  %v2060_v44 = vsel %vm2059_vm11, %v2055_v56, inf  ;;  %v8153_v38 = vpop.xlane.xlu2 %1607  ;;  %v2410_v37 = vperm.slane %v8078_v7, 4  ;;  %v8166_v56 = vpop.xlane.xlu1 %2072  ;;  %v2070_v1 = vcvt.s32.f32 %v2068_v33 }
 0x35e   :  { %3066 = vst [vmem:[#allocation1 + $0x4] ss:$9 sm:$0xff] %v2402_v47  ;;  %2061 = vmin.xlane.f32.xlu0 %v2060_v44  ;;  %v1589_v47 = vshra.s32 %v8128_v59, 16  ;;  %vm1609_vm5 = vcmp.eq.f32.partialorder %v7597_v43, %v8153_v38  ;;  %vm2074_vm4 = vcmp.eq.f32.partialorder %v7608_v10, %v8166_v56  ;;  %v8176_v30 = vsel %vm661_vm1, %v1021_v55, 2147483647 }
 0x35f   :  { %3067 = vst [vmem:[#allocation1 + $0x5] ss:$9 sm:$0xff] %v2403_v4  ;;  %v2407_v4 = vperm.slane %v8078_v7, 1  ;;  %vm4091_vm6 = vcmp.eq.s32.totalorder %v6177_v22, %v8135_v16  ;;  %v1605_v33 = vcvt.s32.f32 %v1603_v35  ;;  %v1378_v43 = vand.u32 65535, %v11492_v52  ;;  %v11493_v35 = vld [vmem:[#allocation84_spill] sm:$0xff]  ;;  %v8197_v52 = vpop.f32.mrf.mxu3 }
 0x360   :  { %3068 = vst [vmem:[#allocation1 + $0x6] ss:$9 sm:$0xff] %v2404_v12  ;;  %v2408_v12 = vperm.slane %v8078_v7, 2  ;;  %v5429_v0 = vsel %vm4091_vm6, 1.0, %v11371_v8  ;;  %v8168_v44 = vcvt.s32.f32 %v1589_v47  ;;  %v2075_v47 = vsel %vm2074_vm4, %v2070_v1, inf }
 0x361   :  { %3069 = vst [vmem:[#allocation1 + $0x7] ss:$9 sm:$0xff] %v2405_v61  ;;  %5509 = vmatmul.msk.f32.gmra.mxu1 %vm661_vm1, %v5429_v0  ;;  %v2412_v0 = vperm.slane %v8078_v7, 6  ;;  %2076 = vmin.xlane.f32.xlu2 %v2075_v47  ;;  %v8186_v10 = vsel %vm1609_vm5, %v1605_v33, inf  ;;  %vm1384_vm11 = vcmp.eq.f32.partialorder %v11493_v35, %v7426_v32  ;;  %v1618_v1 = vand.u32 65535, %v7611_v40  ;;  %v11496_v47 = vld [vmem:[#allocation23_spill] sm:$0xff] }
 0x362   :  { %11494 = vst [vmem:[#allocation66_spill] sm:$0xff] %v8197_v52  ;;  %vm940_vm9 = vcmp.eq.f32.partialorder %v11496_v47, %v7572_v48  ;;  %v11497_v33 = vld [vmem:[#allocation69_spill] sm:$0xff]  ;;  %v2414_v48 = vperm.slane %v8096_v23, 0 }
 0x363   :  { %4862 = vst.msk [vmem:[%s10939_s4 + $0x1b0] sm:$0xff] %vm11215_vm0, %v8197_v52  ;;  %v1020_v35 = vsel %vm940_vm9, %v6177_v22, 64 }
 0x364   :  { %v8245_v46 = vsel %vm661_vm1, %v1020_v35, 2147483647  ;;  %v2421_v35 = vperm.slane %v8096_v23, 7 }
 0x366   :  { %1592 = vmin.xlane.f32.xlu0 %v8168_v44 }
 0x368   :  { %v8161_v61 = vld [vmem:[#allocation1] sm:$0xff] }
 0x369   :  { %11488 = vst [vmem:[#allocation26_spill] sm:$0xff] %v8161_v61 }
 0x36a   :  { %3071 = vst [vmem:[#allocation1] ss:$9 sm:$0xff] %v2406_v3  ;;  %v8180_v3 = vpop.f32.mrf.mxu1 }
 0x36b   :  { %3072 = vst [vmem:[#allocation1 + $0x1] ss:$9 sm:$0xff] %v2407_v4  ;;  %v11491_v4 = vld [vmem:[#allocation6_spill] sm:$0xff] }
 0x36c   :  { %3073 = vst [vmem:[#allocation1 + $0x2] ss:$9 sm:$0xff] %v2408_v12  ;;  %vm970_vm10 = vcmp.eq.f32.partialorder %v11491_v4, %v11490_v53  ;;  %v1649_v12 = vshra.s32 %v8176_v30, 16  ;;  %v1380_v53 = vcvt.s32.f32 %v1378_v43  ;;  %v11498_v4 = vld [vmem:[#allocation13_spill] sm:$0xff]  ;;  %v11499_v43 = vld [vmem:[#allocation24_spill] sm:$0xff] }
 0x36d   :  { %11489 = vst [vmem:[#allocation110_spill] sm:$0xff] %v8180_v3  ;;  %v1050_v55 = vsel %vm970_vm10, %v6177_v22, 64  ;;  %vm971_vm5 = vcmp.eq.f32.partialorder %v11498_v4, %v11497_v33  ;;  %v2416_v33 = vperm.slane %v8096_v23, 2  ;;  %v11500_v4 = vld [vmem:[#allocation37_spill] sm:$0xff] }
 0x36e   :  { %3074 = vst [vmem:[#allocation1 + $0x3] ss:$9 sm:$0xff] %v2409_v20  ;;  %v8207_v20 = vpop.xlane.xlu1 %1622  ;;  %v1051_v47 = vsel %vm971_vm5, %v6177_v22, 64  ;;  %vm1444_vm10 = vcmp.eq.f32.partialorder %v11500_v4, %v7664_v41 }
 0x36f   :  { %3075 = vst [vmem:[#allocation1 + $0x4] ss:$9 sm:$0xff] %v2410_v37  ;;  %v8209_v37 = vcvt.s32.f32 %v1649_v12  ;;  %v1438_v12 = vand.u32 65535, %v11499_v43  ;;  %vm1624_vm4 = vcmp.eq.f32.partialorder %v7644_v24, %v8207_v20  ;;  %v2417_v43 = vperm.slane %v8096_v23, 3 }
 0x370   :  { %3076 = vst [vmem:[#allocation1 + $0x5] ss:$9 sm:$0xff] %v2411_v62  ;;  %v8200_v62 = vsel %vm661_vm1, %v1050_v55, 2147483647  ;;  %v1620_v55 = vcvt.s32.f32 %v1618_v1  ;;  %v8240_v1 = vpop.f32.mrf.mxu3 }
 0x371   :  { %3077 = vst [vmem:[#allocation1 + $0x6] ss:$9 sm:$0xff] %v2412_v0  ;;  %1652 = vmin.xlane.f32.xlu2 %v8209_v37  ;;  %v2084_v40 = vshra.s32 %v8200_v62, 16  ;;  %v1440_v49 = vcvt.s32.f32 %v1438_v12  ;;  %v11503_v12 = vld [vmem:[#allocation40_spill] sm:$0xff] }
 0x372   :  { %3078 = vst [vmem:[#allocation1 + $0x7] ss:$9 sm:$0xff] %v2413_v13  ;;  %v1385_v13 = vsel %vm1384_vm11, %v1380_v53, inf  ;;  %v8212_v0 = vpop.f32.mrf.mxu1  ;;  %v2415_v53 = vperm.slane %v8096_v23, 1  ;;  %v8237_v24 = vsel %vm1624_vm4, %v1620_v55, inf  ;;  %v2419_v55 = vperm.slane %v8096_v23, 5 }
 0x373   :  { %4815 = vst.msk [vmem:[%s10939_s4 + $0x38] sm:$0xff] %vm11215_vm0, %v8180_v3  ;;  %1386 = vmin.xlane.f32.xlu0 %v1385_v13  ;;  %v8242_v52 = vcvt.s32.f32 %v2084_v40  ;;  %v2420_v40 = vperm.slane %v8096_v23, 6  ;;  %vm944_vm11 = vcmp.eq.f32.partialorder %v11503_v12, %v7748_v14  ;;  %v2426_v3 = vperm.slane %v8135_v16, 4 }
 0x374   :  { %11495 = vst [vmem:[#allocation6_spill] sm:$0xff] %v8212_v0 }
 0x375   :  { %4816 = vst.msk [vmem:[%s10939_s4 + $0x40] sm:$0xff] %vm11215_vm0, %v8212_v0 }
 0x376   :  { %11501 = vst [vmem:[#allocation81_spill] sm:$0xff] %v8240_v1 }
 0x377   :  { %4863 = vst.msk [vmem:[%s10939_s4 + $0x1b8] sm:$0xff] %vm11215_vm0, %v8240_v1  ;;  %v2424_v1 = vperm.slane %v8135_v16, 2 }
 0x379   :  { %v8231_v13 = vld [vmem:[#allocation1] sm:$0xff] }
 0x37a   :  { %3080 = vst [vmem:[#allocation1] ss:$9 sm:$0xff] %v2414_v48  ;;  %v8249_v48 = vsel %vm661_vm1, %v1051_v47, 2147483647  ;;  %v8253_v4 = vpop.f32.mrf.mxu1  ;;  %v1634_v47 = vshra.s32 %v8245_v46, 16 }
 0x37b   :  { %3081 = vst [vmem:[#allocation1 + $0x1] ss:$9 sm:$0xff] %v2415_v53  ;;  %2087 = vmin.xlane.f32.xlu0 %v8242_v52  ;;  %v1445_v53 = vsel %vm1444_vm10, %v1440_v49, inf  ;;  %v1024_v49 = vsel %vm944_vm11, %v6177_v22, 64 }
 0x37c   :  { %3082 = vst [vmem:[#allocation1 + $0x2] ss:$9 sm:$0xff] %v2416_v33  ;;  %1446 = vmin.xlane.f32.xlu2 %v1445_v53  ;;  %v2099_v33 = vshra.s32 %v8249_v48, 16  ;;  %v8269_v14 = vcvt.s32.f32 %v1634_v47 }
 0x37d   :  { %3083 = vst [vmem:[#allocation1 + $0x3] ss:$9 sm:$0xff] %v2417_v43 }
 0x37e   :  { %11502 = vst [vmem:[#allocation84_spill] sm:$0xff] %v8253_v4  ;;  %v8281_v43 = vcvt.s32.f32 %v2099_v33  ;;  %v2423_v33 = vperm.slane %v8135_v16, 1 }
 0x37f   :  { %3084 = vst [vmem:[#allocation1 + $0x4] ss:$9 sm:$0xff] %v2418_v57  ;;  %v8267_v57 = vpop.f32.mrf.mxu3 }
 0x380   :  { %3085 = vst [vmem:[#allocation1 + $0x5] ss:$9 sm:$0xff] %v2419_v55  ;;  %v8284_v55 = vsel %vm661_vm1, %v1024_v49, 2147483647 }
 0x381   :  { %3086 = vst [vmem:[#allocation1 + $0x6] ss:$9 sm:$0xff] %v2420_v40  ;;  %v11506_v40 = vld [vmem:[#allocation16_spill] sm:$0xff]  ;;  %v1694_v49 = vshra.s32 %v8284_v55, 16  ;;  %v1693_v34 = vand.u32 65535, %v8284_v55 }
 0x382   :  { %3087 = vst [vmem:[#allocation1 + $0x7] ss:$9 sm:$0xff] %v2421_v35  ;;  %v8287_v53 = vpop.f32.mrf.mxu1  ;;  %v1423_v12 = vand.u32 65535, %v11506_v40  ;;  %v2422_v35 = vperm.slane %v8135_v16, 0  ;;  %v11508_v40 = vld [vmem:[#allocation14_spill] sm:$0xff] }
 0x383   :  { %11504 = vst [vmem:[#allocation23_spill] sm:$0xff] %v8267_v57  ;;  %1637 = vmin.xlane.f32.xlu0 %v8269_v14  ;;  %vm1429_vm9 = vcmp.eq.f32.partialorder %v11508_v40, %v7624_v51  ;;  %v8309_v61 = vcvt.s32.f32 %v1694_v49 }
 0x384   :  { %4817 = vst.msk [vmem:[%s10939_s4 + $0x48] sm:$0xff] %vm11215_vm0, %v8253_v4  ;;  %2102 = vmin.xlane.f32.xlu2 %v8281_v43  ;;  %v1425_v25 = vcvt.s32.f32 %v1423_v12  ;;  %v2427_v4 = vperm.slane %v8135_v16, 5 }
 0x385   :  { %4864 = vst.msk [vmem:[%s10939_s4 + $0x1c0] sm:$0xff] %vm11215_vm0, %v8267_v57  ;;  %v2425_v57 = vperm.slane %v8135_v16, 3 }
 0x386   :  { %11505 = vst [vmem:[#allocation69_spill] sm:$0xff] %v8287_v53 }
 0x387   :  { %4818 = vst.msk [vmem:[%s10939_s4 + $0x50] sm:$0xff] %vm11215_vm0, %v8287_v53  ;;  %v8306_v0 = vpop.f32.mrf.mxu3  ;;  %v1430_v53 = vsel %vm1429_vm9, %v1425_v25, inf  ;;  %v11512_v25 = vld [vmem:[#allocation39_spill] sm:$0xff] }
 0x388   :  { %11509 = vst [vmem:[#allocation24_spill] sm:$0xff] %v8306_v0  ;;  %vm1489_vm5 = vcmp.eq.f32.partialorder %v11512_v25, %v7780_v39 }
 0x389   :  { %v8297_v47 = vld [vmem:[#allocation1] sm:$0xff]  ;;  %4865 = vst.msk [vmem:[%s10939_s4 + $0x1c8] sm:$0xff] %vm11215_vm0, %v8306_v0 }
 0x38a   :  { %11507 = vst [vmem:[#allocation13_spill] sm:$0xff] %v8297_v47  ;;  %v8312_v40 = vpop.f32.mrf.mxu1 }
 0x38b   :  { %3089 = vst [vmem:[#allocation1] ss:$9 sm:$0xff] %v2422_v35  ;;  %v2428_v35 = vperm.slane %v8135_v16, 6  ;;  %1431 = vmin.xlane.f32.xlu0 %v1430_v53 }
 0x38c   :  { %3090 = vst [vmem:[#allocation1 + $0x1] ss:$9 sm:$0xff] %v2423_v33  ;;  %v2429_v33 = vperm.slane %v8135_v16, 7  ;;  %1697 = vmin.xlane.f32.xlu2 %v8309_v61  ;;  %v11613_v16 = vld [vmem:[#allocation71_spill] sm:$0xff] }
 0x38d   :  { %3091 = vst [vmem:[#allocation1 + $0x2] ss:$9 sm:$0xff] %v2424_v1  ;;  %v11511_v1 = vld [vmem:[#allocation51_spill] sm:$0xff] }
 0x38e   :  { %3092 = vst [vmem:[#allocation1 + $0x3] ss:$9 sm:$0xff] %v2425_v57  ;;  %v1483_v12 = vand.u32 65535, %v11511_v1 }
 0x38f   :  { %3093 = vst [vmem:[#allocation1 + $0x4] ss:$9 sm:$0xff] %v2426_v3 }
 0x390   :  { %11510 = vst [vmem:[#allocation37_spill] sm:$0xff] %v8312_v40  ;;  %v1485_v3 = vcvt.s32.f32 %v1483_v12 }
 0x391   :  { %3094 = vst [vmem:[#allocation1 + $0x5] ss:$9 sm:$0xff] %v2427_v4  ;;  %v8329_v4 = vpop.f32.mrf.mxu3 }
 0x392   :  { %3095 = vst [vmem:[#allocation1 + $0x6] ss:$9 sm:$0xff] %v2428_v35  ;;  %v1490_v57 = vsel %vm1489_vm5, %v1485_v3, inf  ;;  %v8336_v53 = vpop.f32.mrf.mxu1 }
 0x393   :  { %3096 = vst [vmem:[#allocation1 + $0x7] ss:$9 sm:$0xff] %v2429_v33 }
 0x394   :  { %4819 = vst.msk [vmem:[%s10939_s4 + $0x58] sm:$0xff] %vm11215_vm0, %v8312_v40  ;;  %1491 = vmin.xlane.f32.xlu2 %v1490_v57  ;;  %v2079_v40 = vcvt.f32.s32 %v8166_v56 }
 0x395   :  { %11513 = vst [vmem:[#allocation40_spill] sm:$0xff] %v8329_v4 }
 0x396   :  { %4866 = vst.msk [vmem:[%s10939_s4 + $0x1d0] sm:$0xff] %vm11215_vm0, %v8329_v4 }
 0x397   :  { %11514 = vst [vmem:[#allocation16_spill] sm:$0xff] %v8336_v53 }
 0x398   :  { %4820 = vst.msk [vmem:[%s10939_s4 + $0x60] sm:$0xff] %vm11215_vm0, %v8336_v53 }
 0x399   :  { %v8343_v49 = vpop.f32.mrf.mxu3 }
 0x39a   :  { %11515 = vst [vmem:[#allocation14_spill] sm:$0xff] %v8343_v49  ;;  %v8350_v35 = vpop.f32.mrf.mxu1 }
 0x39b   :  { %4867 = vst.msk [vmem:[%s10939_s4 + $0x1d8] sm:$0xff] %vm11215_vm0, %v8343_v49 }
 0x39c   :  { %11516 = vst [vmem:[#allocation51_spill] sm:$0xff] %v8350_v35 }
 0x39d   :  { %4821 = vst.msk [vmem:[%s10939_s4 + $0x68] sm:$0xff] %vm11215_vm0, %v8350_v35 }
 0x3a1   :  { %v8357_v33 = vpop.f32.mrf.mxu3 }
 0x3a2   :  { %11517 = vst [vmem:[#allocation39_spill] sm:$0xff] %v8357_v33  ;;  %v8364_v1 = vpop.f32.mrf.mxu1 }
 0x3a3   :  { %4868 = vst.msk [vmem:[%s10939_s4 + $0x1e0] sm:$0xff] %vm11215_vm0, %v8357_v33  ;;  %v2064_v33 = vcvt.f32.s32 %v8113_v15 }
 0x3a4   :  { %11518 = vst [vmem:[#allocation111_spill] sm:$0xff] %v8364_v1 }
 0x3a5   :  { %4822 = vst.msk [vmem:[%s10939_s4 + $0x70] sm:$0xff] %vm11215_vm0, %v8364_v1 }
 0x3a9   :  { %v8371_v12 = vpop.f32.mrf.mxu3 }
 0x3aa   :  { %11519 = vst [vmem:[#allocation112_spill] sm:$0xff] %v8371_v12  ;;  %v8378_v25 = vpop.f32.mrf.mxu1 }
 0x3ab   :  { %4869 = vst.msk [vmem:[%s10939_s4 + $0x1e8] sm:$0xff] %vm11215_vm0, %v8371_v12 }
 0x3ac   :  { %11520 = vst [vmem:[#allocation113_spill] sm:$0xff] %v8378_v25 }
 0x3ad   :  { %4823 = vst.msk [vmem:[%s10939_s4 + $0x78] sm:$0xff] %vm11215_vm0, %v8378_v25 }
 0x3b1   :  { %v8385_v3 = vpop.f32.mrf.mxu3 }
 0x3b2   :  { %11521 = vst [vmem:[#allocation114_spill] sm:$0xff] %v8385_v3  ;;  %v8392_v57 = vpop.f32.mrf.mxu1 }
 0x3b3   :  { %4870 = vst.msk [vmem:[%s10939_s4 + $0x1f0] sm:$0xff] %vm11215_vm0, %v8385_v3 }
 0x3b4   :  { %11522 = vst [vmem:[#allocation115_spill] sm:$0xff] %v8392_v57 }
 0x3b5   :  { %4824 = vst.msk [vmem:[%s10939_s4 + $0x80] sm:$0xff] %vm11215_vm0, %v8392_v57  ;;  %v1402_v57 = vpop.xlane.xlu2 %1401 }
 0x3b9   :  { %v8401_v4 = vpop.f32.mrf.mxu3 }
 0x3ba   :  { %v8399_v0 = vpop.f32.mrf.mxu1  ;;  %11524 = vst [vmem:[#allocation117_spill] sm:$0xff] %v8401_v4 }
 0x3bb   :  { %11523 = vst [vmem:[#allocation116_spill] sm:$0xff] %v8399_v0 }
 0x3bc   :  { %4825 = vst.msk [vmem:[%s10939_s4 + $0x88] sm:$0xff] %vm11215_vm0, %v8399_v0 }
 0x3bd   :  { %4871 = vst.msk [vmem:[%s10939_s4 + $0x1f8] sm:$0xff] %vm11215_vm0, %v8401_v4 }
 0x3c1   :  { %v8413_v49 = vpop.f32.mrf.mxu3 }
 0x3c2   :  { %11525 = vst [vmem:[#allocation118_spill] sm:$0xff] %v8413_v49 }
 0x3c3   :  { %4872 = vst.msk [vmem:[%s10939_s4 + $0x200] sm:$0xff] %vm11215_vm0, %v8413_v49  ;;  %v2065_v49 = vshll.u32 %v2064_v33, 16  ;;  %v2080_v33 = vshll.u32 %v2079_v40, 16 }
 0x3c5   :  { %v8421_v12 = vpop.f32.mrf.mxu1 }
 0x3c6   :  { %11526 = vst [vmem:[#allocation119_spill] sm:$0xff] %v8421_v12 }
 0x3c7   :  { %4826 = vst.msk [vmem:[%s10939_s4 + $0x90] sm:$0xff] %vm11215_vm0, %v8421_v12 }
 0x3c9   :  { %v8423_v3 = vpop.f32.mrf.mxu3 }
 0x3ca   :  { %11527 = vst [vmem:[#allocation120_spill] sm:$0xff] %v8423_v3 }
 0x3cb   :  { %4873 = vst.msk [vmem:[%s10939_s4 + $0x208] sm:$0xff] %vm11215_vm0, %v8423_v3  ;;  %v1588_v3 = vand.u32 65535, %v8128_v59  ;;  %v1389_v59 = vcvt.f32.s32 %v7426_v32  ;;  %v1404_v32 = vcvt.f32.s32 %v7519_v17  ;;  %v8485_v17 = vld [vmem:[#allocation1] sm:$0xff] }
 0x3cc   :  { %11533 = vst [vmem:[#allocation124_spill] sm:$0xff] %v8485_v17 }
 0x3cd   :  { %v1590_v12 = vcvt.s32.f32 %v1588_v3  ;;  %v1648_v3 = vand.u32 65535, %v8176_v30 }
 0x3ce   :  { %v8438_v53 = vpop.f32.mrf.mxu1 }
 0x3cf   :  { %11529 = vst [vmem:[#allocation122_spill] sm:$0xff] %v8438_v53 }
 0x3d0   :  { %4827 = vst.msk [vmem:[%s10939_s4 + $0x98] sm:$0xff] %vm11215_vm0, %v8438_v53 }
 0x3d1   :  { %v2062_v4 = vpop.xlane.xlu0 %2061 }
 0x3d2   :  { %v2063_v15 = vcvt.f32.s32 %v2062_v4 }
 0x3d4   :  { %v8435_v0 = vadd.s32 %v2065_v49, %v2063_v15  ;;  %v2077_v56 = vpop.xlane.xlu2 %2076 }
 0x3d5   :  { %v2078_v15 = vcvt.f32.s32 %v2077_v56  ;;  %v1403_v56 = vcvt.f32.s32 %v1402_v57 }
 0x3d6   :  { %11528 = vst [vmem:[#allocation121_spill] sm:$0xff] %v8435_v0  ;;  %vm11160_vm4 = vcmp.eq.s32.totalorder %v6177_v22, %v8435_v0  ;;  %v1390_v0 = vshll.u32 %v1389_v59, 16 }
 0x3d7   :  { %v5475_v4 = vsel %vm11160_vm4, 1.0, %v11371_v8  ;;  %v8457_v35 = vadd.s32 %v2080_v33, %v2078_v15 }
 0x3d8   :  { %5555 = vmatmul.msk.f32.gmra.mxu3 %vm661_vm1, %v5475_v4  ;;  %v11531_v4 = vld [vmem:[#allocation29_spill] sm:$0xff] }
 0x3d9   :  { %v8452_v49 = vpop.xlane.xlu0 %1592  ;;  %11530 = vst [vmem:[#allocation123_spill] sm:$0xff] %v8457_v35  ;;  %vm11161_vm11 = vcmp.eq.s32.totalorder %v6177_v22, %v8457_v35  ;;  %vm942_vm9 = vcmp.eq.f32.partialorder %v11531_v4, %v7635_v63  ;;  %v1650_v63 = vcvt.s32.f32 %v1648_v3 }
 0x3da   :  { %vm1594_vm10 = vcmp.eq.f32.partialorder %v8168_v44, %v8452_v49  ;;  %v5476_v40 = vsel %vm11161_vm11, 1.0, %v11371_v8 }
 0x3db   :  { %v8460_v53 = vsel %vm1594_vm10, %v1590_v12, inf }
 0x3de   :  { %v8483_v30 = vpop.f32.mrf.mxu1 }
 0x3df   :  { %11532 = vst [vmem:[#allocation29_spill] sm:$0xff] %v8483_v30 }
 0x3e0   :  { %5556 = vmatmul.msk.f32.gmra.mxu3 %vm661_vm1, %v5476_v40  ;;  %4828 = vst.msk [vmem:[%s10939_s4 + $0xa0] sm:$0xff] %vm11215_vm0, %v8483_v30 }
 0x3e4   :  { %v8468_v44 = vpop.xlane.xlu2 %1652 }
 0x3e5   :  { %vm1654_vm5 = vcmp.eq.f32.partialorder %v8209_v37, %v8468_v44 }
 0x3e6   :  { %v1387_v1 = vpop.xlane.xlu0 %1386 }
 0x3e7   :  { %v1388_v25 = vcvt.f32.s32 %v1387_v1  ;;  %v2083_v1 = vand.u32 65535, %v8200_v62  ;;  %v1405_v62 = vshll.u32 %v1404_v32, 16  ;;  %v8507_v32 = vsel %vm1654_vm5, %v1650_v63, inf }
 0x3e9   :  { %v8473_v12 = vadd.s32 %v1390_v0, %v1388_v25  ;;  %v1022_v25 = vsel %vm942_vm9, %v6177_v22, 64  ;;  %v2085_v3 = vcvt.s32.f32 %v2083_v1  ;;  %v1417_v1 = vpop.xlane.xlu1 %1416 }
 0x3ea   :  { %v8518_v17 = vsel %vm661_vm1, %v1022_v25, 2147483647 }
 0x3eb   :  { %v2430_v33 = vperm.slane %v8473_v12, 0  ;;  %v2431_v15 = vperm.slane %v8473_v12, 1  ;;  %v2432_v59 = vperm.slane %v8473_v12, 2  ;;  %v2433_v0 = vperm.slane %v8473_v12, 3 }
 0x3ec   :  { %v2434_v57 = vperm.slane %v8473_v12, 4  ;;  %vm4092_vm10 = vcmp.eq.s32.totalorder %v6177_v22, %v8473_v12  ;;  %v2435_v40 = vperm.slane %v8473_v12, 5  ;;  %v2436_v30 = vperm.slane %v8473_v12, 6 }
 0x3ed   :  { %3098 = vst [vmem:[#allocation1] ss:$9 sm:$0xff] %v2430_v33  ;;  %v5430_v4 = vsel %vm4092_vm10, 1.0, %v11371_v8  ;;  %v8509_v33 = vadd.s32 %v1405_v62, %v1403_v56  ;;  %v2437_v37 = vperm.slane %v8473_v12, 7  ;;  %v1419_v56 = vcvt.f32.s32 %v7583_v9  ;;  %v11534_v62 = vld [vmem:[#allocation21_spill] sm:$0xff] }
 0x3ee   :  { %3099 = vst [vmem:[#allocation1 + $0x1] ss:$9 sm:$0xff] %v2431_v15  ;;  %v8502_v35 = vpop.xlane.xlu0 %2087  ;;  %5510 = vmatmul.msk.f32.gmra.mxu1 %vm661_vm1, %v5430_v4  ;;  %vm943_vm5 = vcmp.eq.f32.partialorder %v11534_v62, %v7732_v6  ;;  %v1664_v25 = vshra.s32 %v8518_v17, 16  ;;  %v1633_v4 = vand.u32 65535, %v8245_v46  ;;  %v11536_v46 = vld [vmem:[#allocation72_spill] sm:$0xff]  ;;  %v11538_v62 = vld [vmem:[#allocation38_spill] sm:$0xff] }
 0x3ef   :  { %3100 = vst [vmem:[#allocation1 + $0x2] ss:$9 sm:$0xff] %v2432_v59  ;;  %vm2089_vm9 = vcmp.eq.f32.partialorder %v8242_v52, %v8502_v35  ;;  %v8515_v15 = vpop.xlane.xlu2 %1446  ;;  %v2098_v59 = vand.u32 65535, %v8249_v48  ;;  %v1418_v52 = vcvt.f32.s32 %v1417_v1  ;;  %vm4093_vm15 = vcmp.eq.s32.totalorder %v6177_v22, %v8509_v33  ;;  %v11537_v1 = vld [vmem:[#allocation17_spill] sm:$0xff] }
 0x3f0   :  { %3101 = vst [vmem:[#allocation1 + $0x3] ss:$9 sm:$0xff] %v2433_v0  ;;  %v2090_v63 = vsel %vm2089_vm9, %v2085_v3, inf  ;;  %v1420_v0 = vshll.u32 %v1419_v56, 16  ;;  %v1023_v9 = vsel %vm943_vm5, %v6177_v22, 64  ;;  %v5431_v48 = vsel %vm4093_vm15, 1.0, %v11371_v8 }
 0x3f1   :  { %3102 = vst [vmem:[#allocation1 + $0x4] ss:$9 sm:$0xff] %v2434_v57  ;;  %2091 = vmin.xlane.f32.xlu1 %v2090_v63  ;;  %v2100_v3 = vcvt.s32.f32 %v2098_v59  ;;  %vm972_vm7 = vcmp.eq.f32.partialorder %v11537_v1, %v11536_v46  ;;  %v1635_v56 = vcvt.s32.f32 %v1633_v4  ;;  %v2438_v59 = vperm.slane %v8509_v33, 0 }
 0x3f2   :  { %3103 = vst [vmem:[#allocation1 + $0x5] ss:$9 sm:$0xff] %v2435_v40  ;;  %v8536_v6 = vadd.s32 %v1420_v0, %v1418_v52  ;;  %v1453_v52 = vand.u32 65535, %v11538_v62  ;;  %v2440_v4 = vperm.slane %v8509_v33, 2  ;;  %v2442_v46 = vperm.slane %v8509_v33, 4 }
 0x3f3   :  { %3104 = vst [vmem:[#allocation1 + $0x6] ss:$9 sm:$0xff] %v2436_v30  ;;  %v8539_v30 = vcvt.s32.f32 %v1664_v25  ;;  %v2439_v25 = vperm.slane %v8509_v33, 1  ;;  %v2443_v28 = vperm.slane %v8509_v33, 5 }
 0x3f4   :  { %3105 = vst [vmem:[#allocation1 + $0x7] ss:$9 sm:$0xff] %v2437_v37  ;;  %v8550_v37 = vsel %vm661_vm1, %v1023_v9, 2147483647  ;;  %vm4094_vm4 = vcmp.eq.s32.totalorder %v6177_v22, %v8536_v6  ;;  %v1052_v9 = vsel %vm972_vm7, %v6177_v22, 64 }
 0x3f5   :  { %v5432_v1 = vsel %vm4094_vm4, 1.0, %v11371_v8  ;;  %v8575_v62 = vsel %vm661_vm1, %v1052_v9, 2147483647  ;;  %v11541_v9 = vld [vmem:[#allocation74_spill] sm:$0xff] }
 0x3f6   :  { %v8534_v57 = vpop.xlane.xlu0 %1637  ;;  %5511 = vmatmul.msk.f32.gmra.mxu1 %vm661_vm1, %v5431_v48  ;;  %v1679_v48 = vshra.s32 %v8550_v37, 16  ;;  %v2114_v55 = vshra.s32 %v8575_v62, 16 }
 0x3f7   :  { %11535 = vst [vmem:[#allocation21_spill] sm:$0xff] %v8534_v57  ;;  %v8541_v40 = vpop.xlane.xlu2 %2102  ;;  %vm1639_vm9 = vcmp.eq.f32.partialorder %v8269_v14, %v8534_v57  ;;  %v1434_v14 = vcvt.f32.s32 %v7624_v51  ;;  %v11540_v51 = vld [vmem:[#allocation30_spill] sm:$0xff] }
 0x3f8   :  { %vm2104_vm5 = vcmp.eq.f32.partialorder %v8281_v43, %v8541_v40  ;;  %v8561_v0 = vsel %vm1639_vm9, %v1635_v56, inf  ;;  %v1455_v56 = vcvt.s32.f32 %v1453_v52  ;;  %v8580_v47 = vcvt.s32.f32 %v1679_v48  ;;  %v11544_v48 = vld [vmem:[#allocation25_spill] sm:$0xff] }
 0x3f9   :  { %1667 = vmin.xlane.f32.xlu1 %v8539_v30  ;;  %v2105_v63 = vsel %vm2104_vm5, %v2100_v3, inf  ;;  %v2441_v3 = vperm.slane %v8509_v33, 3  ;;  %vm1459_vm5 = vcmp.eq.f32.partialorder %v11540_v51, %v7720_v31  ;;  %v2444_v51 = vperm.slane %v8509_v33, 6 }
 0x3fa   :  { %2106 = vmin.xlane.f32.xlu0 %v2105_v63  ;;  %v2445_v52 = vperm.slane %v8509_v33, 7 }
 0x3fb   :  { %v8557_v43 = vld [vmem:[#allocation1] sm:$0xff] }
 0x3fc   :  { %11539 = vst [vmem:[#allocation72_spill] sm:$0xff] %v8557_v43 }
 0x3fd   :  { %3107 = vst [vmem:[#allocation1] ss:$9 sm:$0xff] %v2438_v59  ;;  %v1435_v59 = vshll.u32 %v1434_v14, 16  ;;  %v11542_v14 = vld [vmem:[#allocation20_spill] sm:$0xff] }
 0x3fe   :  { %3108 = vst [vmem:[#allocation1 + $0x1] ss:$9 sm:$0xff] %v2439_v25  ;;  %v1432_v63 = vpop.xlane.xlu0 %1431  ;;  %5512 = vmatmul.msk.f32.gmra.mxu1 %vm661_vm1, %v5432_v1  ;;  %vm973_vm7 = vcmp.eq.f32.partialorder %v11542_v14, %v11541_v9  ;;  %v11543_v1 = vld [vmem:[#allocation43_spill] sm:$0xff] }
 0x3ff   :  { %3109 = vst [vmem:[#allocation1 + $0x2] ss:$9 sm:$0xff] %v2440_v4  ;;  %v1433_v25 = vcvt.f32.s32 %v1432_v63  ;;  %v1460_v4 = vsel %vm1459_vm5, %v1455_v56, inf  ;;  %vm945_vm9 = vcmp.eq.f32.partialorder %v11543_v1, %v7759_v19  ;;  %v8595_v56 = vpop.xlane.xlu2 %1697 }
 0x400   :  { %3110 = vst [vmem:[#allocation1 + $0x3] ss:$9 sm:$0xff] %v2441_v3  ;;  %v1449_v3 = vcvt.f32.s32 %v7664_v41  ;;  %v1053_v41 = vsel %vm973_vm7, %v6177_v22, 64  ;;  %v1025_v9 = vsel %vm945_vm9, %v6177_v22, 64  ;;  %vm1699_vm5 = vcmp.eq.f32.partialorder %v8309_v61, %v8595_v56 }
 0x401   :  { %3111 = vst [vmem:[#allocation1 + $0x4] ss:$9 sm:$0xff] %v2442_v46  ;;  %1461 = vmin.xlane.f32.xlu1 %v1460_v4  ;;  %v8589_v63 = vadd.s32 %v1435_v59, %v1433_v25  ;;  %v1468_v46 = vand.u32 65535, %v11544_v48  ;;  %v1695_v4 = vcvt.s32.f32 %v1693_v34  ;;  %v11545_v59 = vld [vmem:[#allocation31_spill] sm:$0xff]  ;;  %v8620_v14 = vsel %vm661_vm1, %v1053_v41, 2147483647 }
 0x402   :  { %3112 = vst [vmem:[#allocation1 + $0x5] ss:$9 sm:$0xff] %v2443_v28  ;;  %1682 = vmin.xlane.f32.xlu0 %v8580_v47  ;;  %v1448_v28 = vcvt.f32.s32 %v8515_v15  ;;  %v1450_v19 = vshll.u32 %v1449_v3, 16  ;;  %vm1474_vm8 = vcmp.eq.f32.partialorder %v11545_v59, %v7757_v36  ;;  %v8611_v15 = vcvt.s32.f32 %v2114_v55 }
 0x403   :  { %3113 = vst [vmem:[#allocation1 + $0x6] ss:$9 sm:$0xff] %v2444_v51  ;;  %vm4095_vm11 = vcmp.eq.s32.totalorder %v6177_v22, %v8589_v63  ;;  %v8605_v25 = vsel %vm1699_vm5, %v1695_v4, inf  ;;  %v1470_v51 = vcvt.s32.f32 %v1468_v46  ;;  %v2446_v3 = vperm.slane %v8536_v6, 0  ;;  %v11547_v46 = vld [vmem:[#allocation44_spill] sm:$0xff] }
 0x404   :  { %3114 = vst [vmem:[#allocation1 + $0x7] ss:$9 sm:$0xff] %v2445_v52  ;;  %v5433_v34 = vsel %vm4095_vm11, 1.0, %v11371_v8  ;;  %v8614_v52 = vsel %vm661_vm1, %v1025_v9, 2147483647  ;;  %v8616_v61 = vadd.s32 %v1450_v19, %v1448_v28  ;;  %v2447_v48 = vperm.slane %v8536_v6, 1 }
 0x405   :  { %v1475_v1 = vsel %vm1474_vm8, %v1470_v51, inf  ;;  %vm946_vm7 = vcmp.eq.f32.partialorder %v11547_v46, %v7846_v54  ;;  %v2448_v28 = vperm.slane %v8536_v6, 2  ;;  %v1709_v4 = vshra.s32 %v8614_v52, 16 }
 0x406   :  { %5513 = vmatmul.msk.f32.gmra.mxu1 %vm661_vm1, %v5433_v34  ;;  %v2449_v41 = vperm.slane %v8536_v6, 3  ;;  %vm4096_vm9 = vcmp.eq.s32.totalorder %v6177_v22, %v8616_v61  ;;  %v2129_v9 = vshra.s32 %v8620_v14, 16  ;;  %v2450_v19 = vperm.slane %v8536_v6, 4 }
 0x407   :  { %v1026_v59 = vsel %vm946_vm7, %v6177_v22, 64  ;;  %v2451_v54 = vperm.slane %v8536_v6, 5  ;;  %v2452_v34 = vperm.slane %v8536_v6, 6  ;;  %v5434_v51 = vsel %vm4096_vm9, 1.0, %v11371_v8 }
 0x408   :  { %v8650_v46 = vsel %vm661_vm1, %v1026_v59, 2147483647  ;;  %v2456_v59 = vperm.slane %v8589_v63, 2  ;;  %v2460_v43 = vperm.slane %v8589_v63, 6 }
 0x409   :  { %2117 = vmin.xlane.f32.xlu1 %v8611_v15 }
 0x40a   :  { %1476 = vmin.xlane.f32.xlu0 %v1475_v1  ;;  %v2453_v1 = vperm.slane %v8536_v6, 7 }
 0x40b   :  { %v8625_v55 = vld [vmem:[#allocation1] sm:$0xff] }
 0x40c   :  { %11546 = vst [vmem:[#allocation17_spill] sm:$0xff] %v8625_v55 }
 0x40d   :  { %3116 = vst [vmem:[#allocation1] ss:$9 sm:$0xff] %v2446_v3  ;;  %v8643_v3 = vcvt.s32.f32 %v1709_v4  ;;  %v1724_v4 = vshra.s32 %v8650_v46, 16 }
 0x40e   :  { %3117 = vst [vmem:[#allocation1 + $0x1] ss:$9 sm:$0xff] %v2447_v48  ;;  %5514 = vmatmul.msk.f32.gmra.mxu1 %vm661_vm1, %v5434_v51  ;;  %v8647_v48 = vcvt.s32.f32 %v2129_v9  ;;  %v2455_v51 = vperm.slane %v8589_v63, 1 }
 0x40f   :  { %3118 = vst [vmem:[#allocation1 + $0x2] ss:$9 sm:$0xff] %v2448_v28  ;;  %v11548_v28 = vld [vmem:[#allocation46_spill] sm:$0xff]  ;;  %v8661_v55 = vcvt.s32.f32 %v1724_v4  ;;  %v2461_v4 = vperm.slane %v8589_v63, 7 }
 0x410   :  { %3119 = vst [vmem:[#allocation1 + $0x3] ss:$9 sm:$0xff] %v2449_v41  ;;  %v1498_v41 = vand.u32 65535, %v11548_v28  ;;  %v2458_v28 = vperm.slane %v8589_v63, 4 }
 0x411   :  { %3120 = vst [vmem:[#allocation1 + $0x4] ss:$9 sm:$0xff] %v2450_v19  ;;  %1712 = vmin.xlane.f32.xlu1 %v8643_v3  ;;  %v11549_v19 = vld [vmem:[#allocation49_spill] sm:$0xff] }
 0x412   :  { %3121 = vst [vmem:[#allocation1 + $0x5] ss:$9 sm:$0xff] %v2451_v54  ;;  %2132 = vmin.xlane.f32.xlu0 %v8647_v48  ;;  %vm1504_vm8 = vcmp.eq.f32.partialorder %v11549_v19, %v7836_v26  ;;  %v2454_v54 = vperm.slane %v8589_v63, 0  ;;  %v1500_v9 = vcvt.s32.f32 %v1498_v41  ;;  %v2459_v19 = vperm.slane %v8589_v63, 5  ;;  %v11551_v41 = vld [vmem:[#allocation56_spill] sm:$0xff] }
 0x413   :  { %3122 = vst [vmem:[#allocation1 + $0x6] ss:$9 sm:$0xff] %v2452_v34  ;;  %v1513_v57 = vand.u32 65535, %v11551_v41  ;;  %v2463_v41 = vperm.slane %v8616_v61, 1 }
 0x414   :  { %3123 = vst [vmem:[#allocation1 + $0x7] ss:$9 sm:$0xff] %v2453_v1  ;;  %v1505_v34 = vsel %vm1504_vm8, %v1500_v9, inf  ;;  %v2457_v1 = vperm.slane %v8589_v63, 3  ;;  %v11552_v9 = vld [vmem:[#allocation50_spill] sm:$0xff] }
 0x415   :  { %vm1519_vm5 = vcmp.eq.f32.partialorder %v11552_v9, %v7864_v11 }
 0x419   :  { %1506 = vmin.xlane.f32.xlu1 %v1505_v34  ;;  %v1515_v34 = vcvt.s32.f32 %v1513_v57  ;;  %v2467_v57 = vperm.slane %v8616_v61, 5 }
 0x41a   :  { %1727 = vmin.xlane.f32.xlu0 %v8661_v55 }
 0x41b   :  { %v8664_v60 = vld [vmem:[#allocation1] sm:$0xff] }
 0x41c   :  { %11550 = vst [vmem:[#allocation38_spill] sm:$0xff] %v8664_v60 }
 0x41d   :  { %3125 = vst [vmem:[#allocation1] ss:$9 sm:$0xff] %v2454_v54  ;;  %v1520_v54 = vsel %vm1519_vm5, %v1515_v34, inf }
 0x41e   :  { %3126 = vst [vmem:[#allocation1 + $0x1] ss:$9 sm:$0xff] %v2455_v51  ;;  %v2462_v51 = vperm.slane %v8616_v61, 0 }
 0x41f   :  { %3127 = vst [vmem:[#allocation1 + $0x2] ss:$9 sm:$0xff] %v2456_v59  ;;  %v2464_v59 = vperm.slane %v8616_v61, 2 }
 0x420   :  { %3128 = vst [vmem:[#allocation1 + $0x3] ss:$9 sm:$0xff] %v2457_v1  ;;  %v2465_v1 = vperm.slane %v8616_v61, 3 }
 0x421   :  { %3129 = vst [vmem:[#allocation1 + $0x4] ss:$9 sm:$0xff] %v2458_v28  ;;  %v2466_v28 = vperm.slane %v8616_v61, 4 }
 0x422   :  { %3130 = vst [vmem:[#allocation1 + $0x5] ss:$9 sm:$0xff] %v2459_v19  ;;  %1521 = vmin.xlane.f32.xlu0 %v1520_v54  ;;  %v2469_v19 = vperm.slane %v8616_v61, 7 }
 0x423   :  { %3131 = vst [vmem:[#allocation1 + $0x6] ss:$9 sm:$0xff] %v2460_v43  ;;  %v2468_v43 = vperm.slane %v8616_v61, 6  ;;  %v11596_v61 = vld [vmem:[#allocation60_spill] sm:$0xff] }
 0x424   :  { %3132 = vst [vmem:[#allocation1 + $0x7] ss:$9 sm:$0xff] %v2461_v4  ;;  %v2094_v4 = vcvt.f32.s32 %v8502_v35  ;;  %v1663_v35 = vand.u32 65535, %v8518_v17 }
 0x426   :  { %v2095_v54 = vshll.u32 %v2094_v4, 16  ;;  %v1665_v4 = vcvt.s32.f32 %v1663_v35  ;;  %v1678_v35 = vand.u32 65535, %v8550_v37 }
 0x42b   :  { %v8676_v60 = vld [vmem:[#allocation1] sm:$0xff] }
 0x42c   :  { %3134 = vst [vmem:[#allocation1] ss:$9 sm:$0xff] %v2462_v51 }
 0x42d   :  { %3135 = vst [vmem:[#allocation1 + $0x1] ss:$9 sm:$0xff] %v2463_v41 }
 0x42e   :  { %3136 = vst [vmem:[#allocation1 + $0x2] ss:$9 sm:$0xff] %v2464_v59  ;;  %v2109_v59 = vcvt.f32.s32 %v8541_v40 }
 0x42f   :  { %3137 = vst [vmem:[#allocation1 + $0x3] ss:$9 sm:$0xff] %v2465_v1 }
 0x430   :  { %3138 = vst [vmem:[#allocation1 + $0x4] ss:$9 sm:$0xff] %v2466_v28 }
 0x431   :  { %3139 = vst [vmem:[#allocation1 + $0x5] ss:$9 sm:$0xff] %v2467_v57 }
 0x432   :  { %3140 = vst [vmem:[#allocation1 + $0x6] ss:$9 sm:$0xff] %v2468_v43  ;;  %v2110_v43 = vshll.u32 %v2109_v59, 16 }
 0x433   :  { %3141 = vst [vmem:[#allocation1 + $0x7] ss:$9 sm:$0xff] %v2469_v19 }
 0x45b   :  { %v8685_v9 = vpop.f32.mrf.mxu3 }
 0x45c   :  { %11553 = vst [vmem:[#allocation30_spill] sm:$0xff] %v8685_v9 }
 0x45d   :  { %4874 = vst.msk [vmem:[%s10939_s4 + $0x210] sm:$0xff] %vm11215_vm0, %v8685_v9 }
 0x463   :  { %v8695_v1 = vpop.f32.mrf.mxu3 }
 0x464   :  { %v2092_v34 = vpop.xlane.xlu1 %2091  ;;  %11555 = vst [vmem:[#allocation20_spill] sm:$0xff] %v8695_v1 }
 0x465   :  { %v2093_v51 = vcvt.f32.s32 %v2092_v34  ;;  %4875 = vst.msk [vmem:[%s10939_s4 + $0x218] sm:$0xff] %vm11215_vm0, %v8695_v1 }
 0x467   :  { %v8692_v41 = vadd.s32 %v2095_v54, %v2093_v51  ;;  %v1464_v54 = vcvt.f32.s32 %v7720_v31 }
 0x469   :  { %11554 = vst [vmem:[#allocation74_spill] sm:$0xff] %v8692_v41  ;;  %vm11166_vm7 = vcmp.eq.s32.totalorder %v6177_v22, %v8692_v41 }
 0x46a   :  { %v5477_v40 = vsel %vm11166_vm7, 1.0, %v11371_v8 }
 0x46b   :  { %v8700_v28 = vpop.f32.mrf.mxu1  ;;  %5557 = vmatmul.msk.f32.gmra.mxu3 %vm661_vm1, %v5477_v40  ;;  %v1465_v40 = vshll.u32 %v1464_v54, 16 }
 0x46c   :  { %11556 = vst [vmem:[#allocation43_spill] sm:$0xff] %v8700_v28  ;;  %v8711_v57 = vpop.xlane.xlu1 %1667 }
 0x46d   :  { %11557 = vst [vmem:[#allocation25_spill] sm:$0xff] %v8711_v57  ;;  %v2107_v17 = vpop.xlane.xlu0 %2106  ;;  %vm1669_vm8 = vcmp.eq.f32.partialorder %v8539_v30, %v8711_v57  ;;  %v1492_v57 = vpop.xlane.xlu2 %1491 }
 0x46e   :  { %4829 = vst.msk [vmem:[%s10939_s4 + $0xa8] sm:$0xff] %vm11215_vm0, %v8700_v28  ;;  %v2108_v19 = vcvt.f32.s32 %v2107_v17  ;;  %v8724_v51 = vsel %vm1669_vm8, %v1665_v4, inf  ;;  %v8753_v28 = vld [vmem:[#allocation1] sm:$0xff] }
 0x46f   :  { %11562 = vst [vmem:[#allocation49_spill] sm:$0xff] %v8753_v28 }
 0x470   :  { %v8721_v34 = vadd.s32 %v2110_v43, %v2108_v19  ;;  %v2113_v43 = vand.u32 65535, %v8575_v62  ;;  %v11561_v19 = vld [vmem:[#allocation87_spill] sm:$0xff] }
 0x471   :  { %vm947_vm8 = vcmp.eq.f32.partialorder %v11561_v19, %v7862_v21 }
 0x472   :  { %11558 = vst [vmem:[#allocation31_spill] sm:$0xff] %v8721_v34  ;;  %vm11168_vm5 = vcmp.eq.s32.totalorder %v6177_v22, %v8721_v34  ;;  %v2115_v21 = vcvt.s32.f32 %v2113_v43 }
 0x473   :  { %v8726_v9 = vpop.f32.mrf.mxu1  ;;  %v5478_v31 = vsel %vm11168_vm5, 1.0, %v11371_v8 }
 0x474   :  { %11559 = vst [vmem:[#allocation44_spill] sm:$0xff] %v8726_v9  ;;  %v1462_v1 = vpop.xlane.xlu1 %1461  ;;  %5558 = vmatmul.msk.f32.gmra.mxu3 %vm661_vm1, %v5478_v31  ;;  %v1479_v31 = vcvt.f32.s32 %v7757_v36 }
 0x475   :  { %4830 = vst.msk [vmem:[%s10939_s4 + $0xb0] sm:$0xff] %vm11215_vm0, %v8726_v9  ;;  %v1463_v30 = vcvt.f32.s32 %v1462_v1  ;;  %v8739_v59 = vpop.xlane.xlu0 %1682 }
 0x476   :  { %11560 = vst [vmem:[#allocation46_spill] sm:$0xff] %v8739_v59  ;;  %vm1684_vm7 = vcmp.eq.f32.partialorder %v8580_v47, %v8739_v59  ;;  %v11564_v59 = vld [vmem:[#allocation99_spill] sm:$0xff] }
 0x477   :  { %v8743_v17 = vadd.s32 %v1465_v40, %v1463_v30  ;;  %v1680_v40 = vcvt.s32.f32 %v1678_v35  ;;  %v1027_v30 = vsel %vm947_vm8, %v6177_v22, 64 }
 0x478   :  { %v8777_v43 = vsel %vm661_vm1, %v1027_v30, 2147483647 }
 0x479   :  { %v2470_v1 = vperm.slane %v8743_v17, 0  ;;  %v2471_v4 = vperm.slane %v8743_v17, 1  ;;  %v2472_v54 = vperm.slane %v8743_v17, 2  ;;  %v2473_v37 = vperm.slane %v8743_v17, 3 }
 0x47a   :  { %v2474_v62 = vperm.slane %v8743_v17, 4  ;;  %vm4097_vm5 = vcmp.eq.s32.totalorder %v6177_v22, %v8743_v17  ;;  %v2475_v19 = vperm.slane %v8743_v17, 5  ;;  %v8770_v41 = vsel %vm1684_vm7, %v1680_v40, inf }
 0x47b   :  { %3143 = vst [vmem:[#allocation1] ss:$9 sm:$0xff] %v2470_v1  ;;  %v8762_v47 = vpop.f32.mrf.mxu1  ;;  %v5435_v35 = vsel %vm4097_vm5, 1.0, %v11371_v8  ;;  %v2476_v1 = vperm.slane %v8743_v17, 6  ;;  %v1480_v40 = vshll.u32 %v1479_v31, 16 }
 0x47c   :  { %3144 = vst [vmem:[#allocation1 + $0x1] ss:$9 sm:$0xff] %v2471_v4  ;;  %v8768_v9 = vpop.xlane.xlu1 %2117  ;;  %5515 = vmatmul.msk.f32.gmra.mxu1 %vm661_vm1, %v5435_v35  ;;  %v2477_v4 = vperm.slane %v8743_v17, 7  ;;  %v1739_v35 = vshra.s32 %v8777_v43, 16  ;;  %v11593_v17 = vld [vmem:[#allocation91_spill] sm:$0xff] }
 0x47d   :  { %11563 = vst [vmem:[#allocation56_spill] sm:$0xff] %v8762_v47  ;;  %vm2119_vm8 = vcmp.eq.f32.partialorder %v8611_v15, %v8768_v9  ;;  %v1477_v36 = vpop.xlane.xlu0 %1476  ;;  %v1494_v15 = vcvt.f32.s32 %v7780_v39  ;;  %v1493_v39 = vcvt.f32.s32 %v1492_v57 }
 0x47e   :  { %3145 = vst [vmem:[#allocation1 + $0x2] ss:$9 sm:$0xff] %v2472_v54  ;;  %v2120_v34 = vsel %vm2119_vm8, %v2115_v21, inf  ;;  %v1478_v28 = vcvt.f32.s32 %v1477_v36  ;;  %v11565_v54 = vld [vmem:[#allocation88_spill] sm:$0xff] }
 0x47f   :  { %3146 = vst [vmem:[#allocation1 + $0x3] ss:$9 sm:$0xff] %v2473_v37  ;;  %2121 = vmin.xlane.f32.xlu2 %v2120_v34  ;;  %vm948_vm7 = vcmp.eq.f32.partialorder %v11565_v54, %v11564_v59  ;;  %v2128_v37 = vand.u32 65535, %v8620_v14  ;;  %v1708_v34 = vand.u32 65535, %v8614_v52  ;;  %v11567_v21 = vld [vmem:[#allocation28_spill] sm:$0xff] }
 0x480   :  { %3147 = vst [vmem:[#allocation1 + $0x4] ss:$9 sm:$0xff] %v2474_v62  ;;  %v8784_v30 = vadd.s32 %v1480_v40, %v1478_v28  ;;  %v1028_v59 = vsel %vm948_vm7, %v6177_v22, 64  ;;  %v11566_v62 = vld [vmem:[#allocation79_spill] sm:$0xff]  ;;  %v8798_v28 = vcvt.s32.f32 %v1739_v35 }
 0x481   :  { %3148 = vst [vmem:[#allocation1 + $0x5] ss:$9 sm:$0xff] %v2475_v19  ;;  %vm974_vm8 = vcmp.eq.f32.partialorder %v11567_v21, %v11566_v62  ;;  %v1495_v19 = vshll.u32 %v1494_v15, 16  ;;  %v2130_v52 = vcvt.s32.f32 %v2128_v37  ;;  %v1710_v35 = vcvt.s32.f32 %v1708_v34 }
 0x482   :  { %3149 = vst [vmem:[#allocation1 + $0x6] ss:$9 sm:$0xff] %v2476_v1  ;;  %v2478_v14 = vperm.slane %v8784_v30, 0  ;;  %v11569_v1 = vld [vmem:[#allocation64_spill] sm:$0xff]  ;;  %v2479_v57 = vperm.slane %v8784_v30, 1  ;;  %vm4098_vm7 = vcmp.eq.s32.totalorder %v6177_v22, %v8784_v30  ;;  %v2480_v15 = vperm.slane %v8784_v30, 2 }
 0x483   :  { %3150 = vst [vmem:[#allocation1 + $0x7] ss:$9 sm:$0xff] %v2477_v4  ;;  %v8796_v31 = vpop.f32.mrf.mxu1  ;;  %v1528_v36 = vand.u32 65535, %v11569_v1  ;;  %v8808_v4 = vsel %vm661_vm1, %v1028_v59, 2147483647  ;;  %v5436_v37 = vsel %vm4098_vm7, 1.0, %v11371_v8  ;;  %v8827_v59 = vadd.s32 %v1495_v19, %v1493_v39 }
 0x484   :  { %4831 = vst.msk [vmem:[%s10939_s4 + $0xb8] sm:$0xff] %vm11215_vm0, %v8762_v47  ;;  %v8811_v40 = vpop.xlane.xlu1 %1712  ;;  %v2481_v47 = vperm.slane %v8784_v30, 3  ;;  %5516 = vmatmul.msk.f32.gmra.mxu1 %vm661_vm1, %v5436_v37  ;;  %v1509_v39 = vcvt.f32.s32 %v7836_v26  ;;  %v2483_v19 = vperm.slane %v8784_v30, 5  ;;  %v2485_v37 = vperm.slane %v8784_v30, 7 }
 0x485   :  { %11568 = vst [vmem:[#allocation50_spill] sm:$0xff] %v8796_v31  ;;  %v8816_v54 = vpop.xlane.xlu0 %2132  ;;  %vm1714_vm2 = vcmp.eq.f32.partialorder %v8643_v3, %v8811_v40  ;;  %v2482_v3 = vperm.slane %v8784_v30, 4 }
 0x486   :  { %4832 = vst.msk [vmem:[%s10939_s4 + $0xc0] sm:$0xff] %vm11215_vm0, %v8796_v31  ;;  %vm2134_vm13 = vcmp.eq.f32.partialorder %v8647_v48, %v8816_v54  ;;  %v8833_v31 = vsel %vm1714_vm2, %v1710_v35, inf  ;;  %v1054_v48 = vsel %vm974_vm8, %v6177_v22, 64  ;;  %v1530_v35 = vcvt.s32.f32 %v1528_v36 }
 0x487   :  { %11570 = vst [vmem:[#allocation87_spill] sm:$0xff] %v8811_v40  ;;  %1742 = vmin.xlane.f32.xlu2 %v8798_v28  ;;  %v2135_v34 = vsel %vm2134_vm13, %v2130_v52, inf  ;;  %v2484_v52 = vperm.slane %v8784_v30, 6  ;;  %vm4099_vm13 = vcmp.eq.s32.totalorder %v6177_v22, %v8827_v59  ;;  %v8850_v26 = vsel %vm661_vm1, %v1054_v48, 2147483647 }
 0x488   :  { %2136 = vmin.xlane.f32.xlu1 %v2135_v34  ;;  %v1510_v21 = vshll.u32 %v1509_v39, 16  ;;  %v1723_v34 = vand.u32 65535, %v8650_v46  ;;  %v11577_v46 = vld [vmem:[#allocation92_spill] sm:$0xff]  ;;  %v2491_v40 = vperm.slane %v8827_v59, 5 }
 0x48a   :  { %v8829_v1 = vld [vmem:[#allocation1] sm:$0xff] }
 0x48b   :  { %11571 = vst [vmem:[#allocation99_spill] sm:$0xff] %v8829_v1  ;;  %v11572_v1 = vld [vmem:[#allocation63_spill] sm:$0xff] }
 0x48c   :  { %3152 = vst [vmem:[#allocation1] ss:$9 sm:$0xff] %v2478_v14  ;;  %vm1534_vm14 = vcmp.eq.f32.partialorder %v11572_v1, %v7903_v5  ;;  %v1754_v14 = vshra.s32 %v8808_v4, 16  ;;  %v1507_v1 = vpop.xlane.xlu1 %1506 }
 0x48d   :  { %3153 = vst [vmem:[#allocation1 + $0x1] ss:$9 sm:$0xff] %v2479_v57  ;;  %v1535_v62 = vsel %vm1534_vm14, %v1530_v35, inf  ;;  %v8852_v57 = vpop.f32.mrf.mxu1  ;;  %v1508_v36 = vcvt.f32.s32 %v1507_v1  ;;  %v8870_v39 = vpop.xlane.xlu0 %1727  ;;  %v1543_v35 = vand.u32 65535, %v11577_v46  ;;  %v2488_v46 = vperm.slane %v8827_v59, 2 }
 0x48e   :  { %3154 = vst [vmem:[#allocation1 + $0x2] ss:$9 sm:$0xff] %v2480_v15  ;;  %v8858_v15 = vcvt.s32.f32 %v1754_v14  ;;  %vm1729_vm14 = vcmp.eq.f32.partialorder %v8661_v55, %v8870_v39  ;;  %v1725_v14 = vcvt.s32.f32 %v1723_v34  ;;  %v2487_v34 = vperm.slane %v8827_v59, 1 }
 0x48f   :  { %3155 = vst [vmem:[#allocation1 + $0x3] ss:$9 sm:$0xff] %v2481_v47  ;;  %1536 = vmin.xlane.f32.xlu2 %v1535_v62  ;;  %v5437_v47 = vsel %vm4099_vm13, 1.0, %v11371_v8  ;;  %v8868_v48 = vadd.s32 %v1510_v21, %v1508_v36  ;;  %v11578_v21 = vld [vmem:[#allocation4_spill] sm:$0xff]  ;;  %v1524_v36 = vcvt.f32.s32 %v7864_v11  ;;  %v1545_v55 = vcvt.s32.f32 %v1543_v35 }
 0x490   :  { %3156 = vst [vmem:[#allocation1 + $0x4] ss:$9 sm:$0xff] %v2482_v3  ;;  %5517 = vmatmul.msk.f32.gmra.mxu1 %vm661_vm1, %v5437_v47  ;;  %v2144_v3 = vshra.s32 %v8850_v26, 16  ;;  %1757 = vmin.xlane.f32.xlu1 %v8858_v15  ;;  %vm1549_vm12 = vcmp.eq.f32.partialorder %v11578_v21, %v8024_v2  ;;  %v8885_v1 = vsel %vm1729_vm14, %v1725_v14, inf  ;;  %v2486_v47 = vperm.slane %v8827_v59, 0 }
 0x491   :  { %3157 = vst [vmem:[#allocation1 + $0x5] ss:$9 sm:$0xff] %v2483_v19  ;;  %v11575_v19 = vld [vmem:[#allocation83_spill] sm:$0xff]  ;;  %vm4100_vm8 = vcmp.eq.s32.totalorder %v6177_v22, %v8868_v48  ;;  %v1550_v11 = vsel %vm1549_vm12, %v1545_v55, inf  ;;  %v2489_v35 = vperm.slane %v8827_v59, 3  ;;  %v1525_v21 = vshll.u32 %v1524_v36, 16 }
 0x492   :  { %11573 = vst [vmem:[#allocation88_spill] sm:$0xff] %v8852_v57  ;;  %v2493_v55 = vperm.slane %v8827_v59, 7 }
 0x493   :  { %3158 = vst [vmem:[#allocation1 + $0x6] ss:$9 sm:$0xff] %v2484_v52  ;;  %v11576_v52 = vld [vmem:[#allocation34_spill] sm:$0xff] }
 0x494   :  { %3159 = vst [vmem:[#allocation1 + $0x7] ss:$9 sm:$0xff] %v2485_v37  ;;  %vm975_vm2 = vcmp.eq.f32.partialorder %v11576_v52, %v11575_v19  ;;  %v8878_v37 = vcvt.s32.f32 %v2144_v3  ;;  %v5438_v19 = vsel %vm4100_vm8, 1.0, %v11371_v8 }
 0x495   :  { %4833 = vst.msk [vmem:[%s10939_s4 + $0xc8] sm:$0xff] %vm11215_vm0, %v8852_v57  ;;  %v1055_v62 = vsel %vm975_vm2, %v6177_v22, 64  ;;  %v1522_v14 = vpop.xlane.xlu0 %1521  ;;  %v2490_v57 = vperm.slane %v8827_v59, 4 }
 0x496   :  { %11574 = vst [vmem:[#allocation79_spill] sm:$0xff] %v8870_v39  ;;  %v8898_v52 = vsel %vm661_vm1, %v1055_v62, 2147483647  ;;  %v1523_v39 = vcvt.f32.s32 %v1522_v14  ;;  %v2499_v14 = vperm.slane %v8868_v48, 5 }
 0x497   :  { %2147 = vmin.xlane.f32.xlu2 %v8878_v37  ;;  %v2159_v62 = vshra.s32 %v8898_v52, 16 }
 0x498   :  { %5518 = vmatmul.msk.f32.gmra.mxu1 %vm661_vm1, %v5438_v19  ;;  %1551 = vmin.xlane.f32.xlu1 %v1550_v11  ;;  %v8907_v19 = vadd.s32 %v1525_v21, %v1523_v39  ;;  %v2497_v11 = vperm.slane %v8868_v48, 3  ;;  %v2500_v21 = vperm.slane %v8868_v48, 6 }
 0x499   :  { %v8910_v36 = vcvt.s32.f32 %v2159_v62  ;;  %v2501_v62 = vperm.slane %v8868_v48, 7 }
 0x49a   :  { %vm4101_vm12 = vcmp.eq.s32.totalorder %v6177_v22, %v8907_v19 }
 0x49b   :  { %v8891_v3 = vld [vmem:[#allocation1] sm:$0xff] }
 0x49c   :  { %3161 = vst [vmem:[#allocation1] ss:$9 sm:$0xff] %v2486_v47  ;;  %v2492_v47 = vperm.slane %v8827_v59, 6  ;;  %v11590_v59 = vld [vmem:[#allocation12_spill] sm:$0xff] }
 0x49d   :  { %3162 = vst [vmem:[#allocation1 + $0x1] ss:$9 sm:$0xff] %v2487_v34  ;;  %v5439_v34 = vsel %vm4101_vm12, 1.0, %v11371_v8 }
 0x49e   :  { %3163 = vst [vmem:[#allocation1 + $0x2] ss:$9 sm:$0xff] %v2488_v46  ;;  %v2496_v46 = vperm.slane %v8868_v48, 2 }
 0x49f   :  { %3164 = vst [vmem:[#allocation1 + $0x3] ss:$9 sm:$0xff] %v2489_v35  ;;  %v2498_v35 = vperm.slane %v8868_v48, 4 }
 0x4a0   :  { %3165 = vst [vmem:[#allocation1 + $0x4] ss:$9 sm:$0xff] %v2490_v57  ;;  %2162 = vmin.xlane.f32.xlu1 %v8910_v36  ;;  %5519 = vmatmul.msk.f32.gmra.mxu1 %vm661_vm1, %v5439_v34  ;;  %v2494_v57 = vperm.slane %v8868_v48, 0  ;;  %v2504_v34 = vperm.slane %v8907_v19, 2 }
 0x4a1   :  { %3166 = vst [vmem:[#allocation1 + $0x5] ss:$9 sm:$0xff] %v2491_v40  ;;  %v2495_v40 = vperm.slane %v8868_v48, 1 }
 0x4a2   :  { %3167 = vst [vmem:[#allocation1 + $0x6] ss:$9 sm:$0xff] %v2492_v47  ;;  %v2502_v47 = vperm.slane %v8907_v19, 0 }
 0x4a3   :  { %3168 = vst [vmem:[#allocation1 + $0x7] ss:$9 sm:$0xff] %v2493_v55  ;;  %v2503_v55 = vperm.slane %v8907_v19, 1 }
 0x4aa   :  { %v8921_v39 = vld [vmem:[#allocation1] sm:$0xff] }
 0x4ab   :  { %11579 = vst [vmem:[#allocation28_spill] sm:$0xff] %v8921_v39 }
 0x4ac   :  { %3170 = vst [vmem:[#allocation1] ss:$9 sm:$0xff] %v2494_v57 }
 0x4ad   :  { %3171 = vst [vmem:[#allocation1 + $0x1] ss:$9 sm:$0xff] %v2495_v40  ;;  %v2505_v40 = vperm.slane %v8907_v19, 3 }
 0x4ae   :  { %3172 = vst [vmem:[#allocation1 + $0x2] ss:$9 sm:$0xff] %v2496_v46  ;;  %v2506_v46 = vperm.slane %v8907_v19, 4 }
 0x4af   :  { %3173 = vst [vmem:[#allocation1 + $0x3] ss:$9 sm:$0xff] %v2497_v11  ;;  %v2507_v11 = vperm.slane %v8907_v19, 5 }
 0x4b0   :  { %3174 = vst [vmem:[#allocation1 + $0x4] ss:$9 sm:$0xff] %v2498_v35  ;;  %v2508_v35 = vperm.slane %v8907_v19, 6 }
 0x4b1   :  { %3175 = vst [vmem:[#allocation1 + $0x5] ss:$9 sm:$0xff] %v2499_v14  ;;  %v2509_v14 = vperm.slane %v8907_v19, 7  ;;  %v2158_v19 = vand.u32 65535, %v8898_v52 }
 0x4b2   :  { %3176 = vst [vmem:[#allocation1 + $0x6] ss:$9 sm:$0xff] %v2500_v21  ;;  %v2124_v21 = vcvt.f32.s32 %v8768_v9  ;;  %v1738_v9 = vand.u32 65535, %v8777_v43 }
 0x4b3   :  { %3177 = vst [vmem:[#allocation1 + $0x7] ss:$9 sm:$0xff] %v2501_v62 }
 0x4ba   :  { %v8933_v57 = vld [vmem:[#allocation1] sm:$0xff] }
 0x4bb   :  { %11580 = vst [vmem:[#allocation64_spill] sm:$0xff] %v8933_v57 }
 0x4bc   :  { %3179 = vst [vmem:[#allocation1] ss:$9 sm:$0xff] %v2502_v47 }
 0x4bd   :  { %3180 = vst [vmem:[#allocation1 + $0x1] ss:$9 sm:$0xff] %v2503_v55  ;;  %v2125_v55 = vshll.u32 %v2124_v21, 16 }
 0x4be   :  { %3181 = vst [vmem:[#allocation1 + $0x2] ss:$9 sm:$0xff] %v2504_v34 }
 0x4bf   :  { %3182 = vst [vmem:[#allocation1 + $0x3] ss:$9 sm:$0xff] %v2505_v40 }
 0x4c0   :  { %3183 = vst [vmem:[#allocation1 + $0x4] ss:$9 sm:$0xff] %v2506_v46  ;;  %v2139_v46 = vcvt.f32.s32 %v8816_v54  ;;  %v1740_v54 = vcvt.s32.f32 %v1738_v9 }
 0x4c1   :  { %3184 = vst [vmem:[#allocation1 + $0x5] ss:$9 sm:$0xff] %v2507_v11 }
 0x4c2   :  { %3185 = vst [vmem:[#allocation1 + $0x6] ss:$9 sm:$0xff] %v2508_v35  ;;  %v2140_v21 = vshll.u32 %v2139_v46, 16  ;;  %v2143_v46 = vand.u32 65535, %v8850_v26 }
 0x4c3   :  { %3186 = vst [vmem:[#allocation1 + $0x7] ss:$9 sm:$0xff] %v2509_v14 }
 0x4ee   :  { %v8941_v62 = vpop.f32.mrf.mxu3 }
 0x4ef   :  { %11581 = vst [vmem:[#allocation63_spill] sm:$0xff] %v8941_v62 }
 0x4f0   :  { %4876 = vst.msk [vmem:[%s10939_s4 + $0x220] sm:$0xff] %vm11215_vm0, %v8941_v62 }
 0x4f2   :  { %v2122_v47 = vpop.xlane.xlu2 %2121 }
 0x4f3   :  { %v2123_v34 = vcvt.f32.s32 %v2122_v47 }
 0x4f5   :  { %v8948_v57 = vadd.s32 %v2125_v55, %v2123_v34  ;;  %v1539_v34 = vcvt.f32.s32 %v7903_v5  ;;  %v11586_v5 = vld [vmem:[#allocation89_spill] sm:$0xff] }
 0x4f7   :  { %11582 = vst [vmem:[#allocation83_spill] sm:$0xff] %v8948_v57  ;;  %v8950_v40 = vpop.f32.mrf.mxu3  ;;  %vm11189_vm2 = vcmp.eq.s32.totalorder %v6177_v22, %v8948_v57  ;;  %v1540_v57 = vshll.u32 %v1539_v34, 16  ;;  %v1554_v34 = vcvt.f32.s32 %v8024_v2 }
 0x4f8   :  { %11583 = vst [vmem:[#allocation34_spill] sm:$0xff] %v8950_v40  ;;  %v5479_v35 = vsel %vm11189_vm2, 1.0, %v11371_v8 }
 0x4f9   :  { %v8956_v11 = vpop.f32.mrf.mxu1  ;;  %4877 = vst.msk [vmem:[%s10939_s4 + $0x228] sm:$0xff] %vm11215_vm0, %v8950_v40  ;;  %5559 = vmatmul.msk.f32.gmra.mxu3 %vm661_vm1, %v5479_v35  ;;  %v1753_v35 = vand.u32 65535, %v8808_v4 }
 0x4fa   :  { %11584 = vst [vmem:[#allocation92_spill] sm:$0xff] %v8956_v11  ;;  %v8967_v14 = vpop.xlane.xlu2 %1742 }
 0x4fb   :  { %4834 = vst.msk [vmem:[%s10939_s4 + $0xd0] sm:$0xff] %vm11215_vm0, %v8956_v11  ;;  %vm1744_vm14 = vcmp.eq.f32.partialorder %v8798_v28, %v8967_v14  ;;  %v2137_v43 = vpop.xlane.xlu1 %2136 }
 0x4fc   :  { %v2138_v47 = vcvt.f32.s32 %v2137_v43  ;;  %v8977_v55 = vsel %vm1744_vm14, %v1740_v54, inf  ;;  %vm949_vm14 = vcmp.eq.f32.partialorder %v11586_v5, %v8009_v45 }
 0x4fd   :  { %v1029_v45 = vsel %vm949_vm14, %v6177_v22, 64 }
 0x4fe   :  { %v8980_v62 = vadd.s32 %v2140_v21, %v2138_v47  ;;  %v1755_v21 = vcvt.s32.f32 %v1753_v35  ;;  %v2145_v47 = vcvt.s32.f32 %v2143_v46  ;;  %v9018_v46 = vsel %vm661_vm1, %v1029_v45, 2147483647 }
 0x500   :  { %11585 = vst [vmem:[#allocation4_spill] sm:$0xff] %v8980_v62  ;;  %vm11190_vm2 = vcmp.eq.s32.totalorder %v6177_v22, %v8980_v62 }
 0x501   :  { %v5480_v28 = vsel %vm11190_vm2, 1.0, %v11371_v8  ;;  %v8994_v54 = vpop.f32.mrf.mxu1 }
 0x502   :  { %v1537_v40 = vpop.xlane.xlu2 %1536  ;;  %11587 = vst [vmem:[#allocation89_spill] sm:$0xff] %v8994_v54  ;;  %5560 = vmatmul.msk.f32.gmra.mxu3 %vm661_vm1, %v5480_v28 }
 0x503   :  { %v1538_v39 = vcvt.f32.s32 %v1537_v40  ;;  %v8989_v9 = vpop.xlane.xlu1 %1757  ;;  %4835 = vst.msk [vmem:[%s10939_s4 + $0xd8] sm:$0xff] %vm11215_vm0, %v8994_v54  ;;  %v11588_v54 = vmov 1.0  }
 0x504   :  { %vm1759_vm2 = vcmp.eq.f32.partialorder %v8858_v15, %v8989_v9 }
 0x505   :  { %v1541_v43 = vadd.s32 %v1540_v57, %v1538_v39  ;;  %v9005_v39 = vld [vmem:[#allocation1] sm:$0xff]  ;;  %v9011_v11 = vsel %vm1759_vm2, %v1755_v21, inf  ;;  %v1555_v21 = vshll.u32 %v1554_v34, 16 }
 0x507   :  { %v2510_v4 = vperm.slane %v1541_v43, 0  ;;  %v2511_v40 = vperm.slane %v1541_v43, 1  ;;  %v2512_v26 = vperm.slane %v1541_v43, 2  ;;  %v2513_v57 = vperm.slane %v1541_v43, 3 }
 0x508   :  { %v2514_v28 = vperm.slane %v1541_v43, 4  ;;  %vm4102_vm3 = vcmp.eq.s32.totalorder %v6177_v22, %v1541_v43  ;;  %v2515_v15 = vperm.slane %v1541_v43, 5  ;;  %v2516_v2 = vperm.slane %v1541_v43, 6 }
 0x509   :  { %3188 = vst [vmem:[#allocation1] ss:$9 sm:$0xff] %v2510_v4  ;;  %v5440_v35 = vsel %vm4102_vm3, 1.0, %v11371_v8  ;;  %5586 = vmatpush.msk.msrb.mxu3 %vm4102_vm3, %v11588_v54  ;;  %v2517_v62 = vperm.slane %v1541_v43, 7  ;;  %v1769_v43 = vshra.s32 %v9018_v46, 16 }
 0x50a   :  { %v9009_v5 = vpop.xlane.xlu2 %2147  ;;  %3189 = vst [vmem:[#allocation1 + $0x1] ss:$9 sm:$0xff] %v2511_v40  ;;  %5520 = vmatmul.msk.f32.gmra.mxu1 %vm661_vm1, %v5440_v35 }
 0x50b   :  { %vm2149_vm14 = vcmp.eq.f32.partialorder %v8878_v37, %v9009_v5  ;;  %3190 = vst [vmem:[#allocation1 + $0x2] ss:$9 sm:$0xff] %v2512_v26  ;;  %5587 = vmatpush.msk.msrb.mxu3 %vm4101_vm12, %v11588_v54  ;;  %v1552_v40 = vpop.xlane.xlu1 %1551  ;;  %v9048_v48 = vcvt.s32.f32 %v1769_v43 }
 0x50c   :  { %v2150_v4 = vsel %vm2149_vm14, %v2145_v47, inf  ;;  %3191 = vst [vmem:[#allocation1 + $0x3] ss:$9 sm:$0xff] %v2513_v57  ;;  %v1553_v45 = vcvt.f32.s32 %v1552_v40  ;;  %v2160_v47 = vcvt.s32.f32 %v2158_v19  ;;  %v11597_v19 = vld [vmem:[#allocation95_spill] sm:$0xff] }
 0x50d   :  { %2151 = vmin.xlane.f32.xlu0 %v2150_v4  ;;  %3192 = vst [vmem:[#allocation1 + $0x4] ss:$9 sm:$0xff] %v2514_v28  ;;  %v9025_v37 = vpop.f32.mrf.mxu1  ;;  %5588 = vmatpush.msk.msrb.mxu3 %vm4100_vm8, %v11588_v54  ;;  %vm11604_vm8 = vcmp.eq.s32.totalorder %v6177_v22, %v7955_v50  ;;  %v1768_v50 = vand.u32 65535, %v9018_v46 }
 0x50e   :  { %11589 = vst [vmem:[#allocation125_spill] sm:$0xff] %v9025_v37  ;;  %v9032_v26 = vadd.s32 %v1555_v21, %v1553_v45  ;;  %v11594_v21 = vld [vmem:[#allocation19_spill] sm:$0xff]  ;;  %v11595_v45 = vld [vmem:[#allocation48_spill] sm:$0xff] }
 0x50f   :  { %3193 = vst [vmem:[#allocation1 + $0x5] ss:$9 sm:$0xff] %v2515_v15  ;;  %5589 = vmatpush.msk.msrb.mxu3 %vm4099_vm13, %v11588_v54  ;;  %v1558_v15 = vand.u32 65535, %v11593_v17 }
 0x510   :  { %3194 = vst [vmem:[#allocation1 + $0x6] ss:$9 sm:$0xff] %v2516_v2  ;;  %vm11219_vm3 = vcmp.eq.s32.totalorder %v6177_v22, %v9032_v26  ;;  %v2518_v52 = vperm.slane %v9032_v26, 0  ;;  %v2519_v34 = vperm.slane %v9032_v26, 1  ;;  %v2520_v35 = vperm.slane %v9032_v26, 2 }
 0x511   :  { %3195 = vst [vmem:[#allocation1 + $0x7] ss:$9 sm:$0xff] %v2517_v62  ;;  %5590 = vmatpush.msk.msrb.mxu3 %vm4098_vm7, %v11588_v54  ;;  %v11591_v62 = vld [vmem:[#allocation36_spill] sm:$0xff]  ;;  %v5441_v30 = vsel %vm11219_vm3, 1.0, %v11371_v8  ;;  %v2521_v40 = vperm.slane %v9032_v26, 3  ;;  %v2522_v43 = vperm.slane %v9032_v26, 4 }
 0x512   :  { %4836 = vst.msk [vmem:[%s10939_s4 + $0xe0] sm:$0xff] %vm11215_vm0, %v9025_v37  ;;  %vm976_vm13 = vcmp.eq.f32.partialorder %v11591_v62, %v11590_v59  ;;  %5521 = vmatmul.msk.f32.gmra.mxu1 %vm661_vm1, %v5441_v30  ;;  %v1573_v59 = vand.u32 65535, %v11597_v19  ;;  %v2523_v62 = vperm.slane %v9032_v26, 5  ;;  %v1560_v30 = vcvt.s32.f32 %v1558_v15  ;;  %v11621_v19 = vld [vmem:[#allocation54_spill] sm:$0xff] }
 0x513   :  { %5591 = vmatpush.msk.msrb.mxu3 %vm4097_vm5, %v11588_v54  ;;  %v9063_v57 = vpop.xlane.xlu1 %2162  ;;  %vm977_vm5 = vcmp.eq.f32.partialorder %v11595_v45, %v11594_v21  ;;  %v2524_v17 = vperm.slane %v9032_v26, 6  ;;  %v11615_v45 = vld [vmem:[#allocation85_spill] sm:$0xff] }
 0x514   :  { %vm2164_vm7 = vcmp.eq.f32.partialorder %v8910_v36, %v9063_v57  ;;  %v1056_v36 = vsel %vm976_vm13, %v6177_v22, 64  ;;  %v1057_v63 = vsel %vm977_vm5, %v6177_v22, 64  ;;  %v1575_v15 = vcvt.s32.f32 %v1573_v59 }
 0x515   :  { %1772 = vmin.xlane.f32.xlu0 %v9048_v48  ;;  %v9067_v28 = vpop.f32.mrf.mxu1  ;;  %5592 = vmatpush.msk.msrb.mxu3 %vm4096_vm9, %v11588_v54  ;;  %v2165_v2 = vsel %vm2164_vm7, %v2160_v47, inf  ;;  %vm1564_vm9 = vcmp.eq.f32.partialorder %v11596_v61, %v8051_v27  ;;  %v9102_v47 = vsel %vm661_vm1, %v1056_v36, 2147483647  ;;  %v9118_v6 = vsel %vm661_vm1, %v1057_v63, 2147483647  ;;  %v11619_v61 = vld [vmem:[#allocation10_spill] sm:$0xff] }
 0x516   :  { %11592 = vst [vmem:[#allocation12_spill] sm:$0xff] %v9067_v28  ;;  %2166 = vmin.xlane.f32.xlu2 %v2165_v2  ;;  %v1565_v2 = vsel %vm1564_vm9, %v1560_v30, inf  ;;  %v2174_v36 = vshra.s32 %v9102_v47, 16  ;;  %v2189_v12 = vshra.s32 %v9118_v6, 16  ;;  %vm11614_vm7 = vcmp.eq.s32.totalorder %v6177_v22, %v11613_v16  ;;  %v11624_v30 = vld [vmem:[#allocation42_spill] sm:$0xff]  ;;  %v11625_v63 = vld [vmem:[#allocation45_spill] sm:$0xff] }
 0x517   :  { %4837 = vst.msk [vmem:[%s10939_s4 + $0xe8] sm:$0xff] %vm11215_vm0, %v9067_v28  ;;  %5593 = vmatpush.msk.msrb.mxu3 %vm4095_vm11, %v11588_v54  ;;  %vm11616_vm5 = vcmp.eq.s32.totalorder %v6177_v22, %v11615_v45  ;;  %v1809_v59 = vcvt.f32.s32 %v11621_v19 }
 0x518   :  { %v9087_v4 = vld [vmem:[#allocation1] sm:$0xff]  ;;  %v9141_v33 = vcvt.s32.f32 %v2174_v36  ;;  %v9148_v21 = vcvt.s32.f32 %v2189_v12 }
 0x519   :  { %3197 = vst [vmem:[#allocation1] ss:$9 sm:$0xff] %v2518_v52  ;;  %5594 = vmatpush.msk.msrb.mxu3 %vm4094_vm4, %v11588_v54  ;;  %v2525_v52 = vperm.slane %v9032_v26, 7  ;;  %vm11601_vm4 = vcmp.eq.s32.totalorder %v6177_v22, %v8078_v7  ;;  %v11605_v7 = vld [vmem:[#allocation96_spill] sm:$0xff]  ;;  %v11629_v36 = vld [vmem:[#allocation90_spill] sm:$0xff] }
 0x51a   :  { %3198 = vst [vmem:[#allocation1 + $0x1] ss:$9 sm:$0xff] %v2519_v34  ;;  %v11598_v34 = vld [vmem:[#allocation73_spill] sm:$0xff]  ;;  %vm11606_vm12 = vcmp.eq.s32.totalorder %v6177_v22, %v11605_v7 }
 0x51b   :  { %3199 = vst [vmem:[#allocation1 + $0x2] ss:$9 sm:$0xff] %v2520_v35  ;;  %vm1579_vm11 = vcmp.eq.f32.partialorder %v11598_v34, %v8083_v29  ;;  %5595 = vmatpush.msk.msrb.mxu3 %vm4093_vm15, %v11588_v54  ;;  %vm11600_vm15 = vcmp.eq.s32.totalorder %v6177_v22, %v8096_v23  ;;  %v11609_v23 = vld [vmem:[#allocation18_spill] sm:$0xff]  ;;  %v1810_v34 = vshll.u32 %v1809_v59, 16  ;;  %v11633_v59 = vld [vmem:[#allocation52_spill] sm:$0xff] }
 0x51c   :  { %3200 = vst [vmem:[#allocation1 + $0x3] ss:$9 sm:$0xff] %v2521_v40  ;;  %v1580_v35 = vsel %vm1579_vm11, %v1575_v15, inf  ;;  %vm11610_vm14 = vcmp.eq.s32.totalorder %v6177_v22, %v11609_v23  ;;  %vm11620_vm11 = vcmp.eq.s32.totalorder %v6177_v22, %v11619_v61  ;;  %v11628_v15 = vld [vmem:[#allocation47_spill] sm:$0xff] }
 0x51d   :  { %3201 = vst [vmem:[#allocation1 + $0x4] ss:$9 sm:$0xff] %v2522_v43  ;;  %1566 = vmin.xlane.f32.xlu0 %v1565_v2  ;;  %5596 = vmatpush.msk.msrb.mxu3 %vm4092_vm10, %v11588_v54  ;;  %v9125_v40 = vpop.f32.mrf.mxu1  ;;  %vm11603_vm10 = vcmp.eq.s32.totalorder %v6177_v22, %v7916_v18  ;;  %v11611_v18 = vld [vmem:[#allocation77_spill] sm:$0xff]  ;;  %v11617_v43 = vld [vmem:[#allocation62_spill] sm:$0xff] }
 0x51e   :  { %3202 = vst [vmem:[#allocation1 + $0x5] ss:$9 sm:$0xff] %v2523_v62  ;;  %1581 = vmin.xlane.f32.xlu2 %v1580_v35  ;;  %vm11612_vm13 = vcmp.eq.s32.totalorder %v6177_v22, %v11611_v18  ;;  %vm11618_vm9 = vcmp.eq.s32.totalorder %v6177_v22, %v11617_v43  ;;  %v11622_v62 = vld [vmem:[#allocation70_spill] sm:$0xff]  ;;  %v11626_v2 = vld [vmem:[#allocation93_spill] sm:$0xff]  ;;  %v1793_v35 = vcvt.f32.s32 %v11628_v15 }
 0x51f   :  { %3203 = vst [vmem:[#allocation1 + $0x6] ss:$9 sm:$0xff] %v2524_v17  ;;  %5597 = vmatpush.msk.msrb.mxu3 %vm4091_vm6, %v11588_v54  ;;  %vm11602_vm6 = vcmp.eq.s32.totalorder %v6177_v22, %v7961_v58  ;;  %v11607_v58 = vld [vmem:[#allocation80_spill] sm:$0xff]  ;;  %v1794_v17 = vcvt.f32.s32 %v11624_v30  ;;  %v11631_v30 = vld [vmem:[#allocation59_spill] sm:$0xff] }
 0x520   :  { %3204 = vst [vmem:[#allocation1 + $0x7] ss:$9 sm:$0xff] %v2525_v52  ;;  %vm11608_vm2 = vcmp.eq.s32.totalorder %v6177_v22, %v11607_v58  ;;  %v1808_v52 = vcvt.f32.s32 %v11625_v63 }
 0x521   :  { %11599 = vst [vmem:[#allocation36_spill] sm:$0xff] %v9125_v40  ;;  %5598 = vmatpush.msk.msrb.mxu3 %vm11600_vm15, %v11588_v54  ;;  %vm11623_vm15 = vcmp.eq.s32.totalorder %v6177_v22, %v11622_v62  ;;  %v1795_v12 = vshll.u32 %v1794_v17, 16  ;;  %v2154_v17 = vcvt.f32.s32 %v9009_v5  ;;  %v2169_v5 = vcvt.f32.s32 %v9063_v57 }
 0x522   :  { %4838 = vst.msk [vmem:[%s10939_s4 + $0xf0] sm:$0xff] %vm11215_vm0, %v9125_v40  ;;  %v9211_v19 = vadd.s32 %v1810_v34, %v1808_v52  ;;  %v1770_v57 = vcvt.s32.f32 %v1768_v50 }
 0x523   :  { %5599 = vmatpush.msk.msrb.mxu3 %vm11601_vm4, %v11588_v54  ;;  %vm11627_vm4 = vcmp.eq.s32.totalorder %v6177_v22, %v11626_v2  ;;  %v9217_v63 = vadd.s32 %v1795_v12, %v1793_v35  ;;  %v2155_v15 = vshll.u32 %v2154_v17, 16 }
 0x525   :  { %2177 = vmin.xlane.f32.xlu0 %v9141_v33  ;;  %5600 = vmatpush.msk.msrb.mxu3 %vm11602_vm6, %v11588_v54  ;;  %vm11630_vm6 = vcmp.eq.s32.totalorder %v6177_v22, %v11629_v36 }
 0x526   :  { %2192 = vmin.xlane.f32.xlu2 %v9148_v21 }
 0x527   :  { %5601 = vmatpush.msk.msrb.mxu3 %vm11603_vm10, %v11588_v54  ;;  %vm11632_vm10 = vcmp.eq.s32.totalorder %v6177_v22, %v11631_v30 }
 0x529   :  { %5618 = vmatpush.msk.msra.mxu3 %vm11604_vm8, %v11588_v54  ;;  %vm11634_vm8 = vcmp.eq.s32.totalorder %v6177_v22, %v11633_v59 }
 0x52b   :  { %5619 = vmatpush.msk.msra.mxu3 %vm11606_vm12, %v11588_v54  ;;  %vm11216_vm12 = vcmp.eq.s32.totalorder %v6177_v22, %v9211_v19 }
 0x52d   :  { %5620 = vmatpush.msk.msra.mxu3 %vm11608_vm2, %v11588_v54  ;;  %vm11217_vm2 = vcmp.eq.s32.totalorder %v6177_v22, %v9217_v63 }
 0x52f   :  { %5621 = vmatpush.msk.msra.mxu3 %vm11610_vm14, %v11588_v54 }
 0x531   :  { %5622 = vmatpush.msk.msra.mxu3 %vm11612_vm13, %v11588_v54 }
 0x533   :  { %5623 = vmatpush.msk.msra.mxu3 %vm11614_vm7, %v11588_v54 }
 0x535   :  { %5624 = vmatpush.msk.msra.mxu3 %vm11616_vm5, %v11588_v54 }
 0x537   :  { %5625 = vmatpush.msk.msra.mxu3 %vm11618_vm9, %v11588_v54 }
 0x539   :  { %5626 = vmatpush.msk.msra.mxu3 %vm11620_vm11, %v11588_v54 }
 0x53b   :  { %5627 = vmatpush.msk.msra.mxu3 %vm11623_vm15, %v11588_v54 }
 0x53d   :  { %5628 = vmatpush.msk.msra.mxu3 %vm11627_vm4, %v11588_v54 }
 0x53f   :  { %5629 = vmatpush.msk.msra.mxu3 %vm11630_vm6, %v11588_v54 }
 0x541   :  { %5630 = vmatpush.msk.msra.mxu3 %vm11632_vm10, %v11588_v54 }
 0x543   :  { %5631 = vmatpush.msk.msra.mxu3 %vm11634_vm8, %v11588_v54 }
 0x545   :  { %5632 = vmatpush.msk.msra.mxu3 %vm11216_vm12, %v11588_v54 }
 0x547   :  { %5633 = vmatpush.msk.msra.mxu3 %vm11217_vm2, %v11588_v54 }
 0x57c   :  { %v9236_v52 = vpop.f32.mrf.mxu3 }
 0x57d   :  { %11635 = vst [vmem:[#allocation91_spill] sm:$0xff] %v9236_v52 }
 0x57e   :  { %4878 = vst.msk [vmem:[%s10939_s4 + $0x230] sm:$0xff] %vm11215_vm0, %v9236_v52 }
 0x580   :  { %v2152_v34 = vpop.xlane.xlu0 %2151 }
 0x581   :  { %v2153_v35 = vcvt.f32.s32 %v2152_v34  ;;  %v2170_v34 = vshll.u32 %v2169_v5, 16 }
 0x583   :  { %v9243_v12 = vadd.s32 %v2155_v15, %v2153_v35  ;;  %v1569_v35 = vcvt.f32.s32 %v8051_v27  ;;  %v2173_v27 = vand.u32 65535, %v9102_v47 }
 0x585   :  { %vm11205_vm14 = vcmp.eq.s32.totalorder %v6177_v22, %v9243_v12  ;;  %v9257_v17 = vpop.f32.mrf.mxu3  ;;  %v1570_v16 = vshll.u32 %v1569_v35, 16 }
 0x586   :  { %v5481_v7 = vsel %vm11205_vm14, 1.0, %v11371_v8  ;;  %11637 = vst [vmem:[#allocation48_spill] sm:$0xff] %v9257_v17 }
 0x587   :  { %v9255_v52 = vpop.f32.mrf.mxu1  ;;  %5561 = vmatmul.msk.f32.gmra.mxu3 %vm661_vm1, %v5481_v7  ;;  %4879 = vst.msk [vmem:[%s10939_s4 + $0x238] sm:$0xff] %vm11215_vm0, %v9257_v17 }
 0x588   :  { %v9253_v58 = vpop.xlane.xlu0 %1772  ;;  %11636 = vst [vmem:[#allocation19_spill] sm:$0xff] %v9255_v52 }
 0x589   :  { %4839 = vst.msk [vmem:[%s10939_s4 + $0xf8] sm:$0xff] %vm11215_vm0, %v9255_v52  ;;  %vm1774_vm13 = vcmp.eq.f32.partialorder %v9048_v48, %v9253_v58  ;;  %v2167_v46 = vpop.xlane.xlu2 %2166 }
 0x58a   :  { %v2168_v15 = vcvt.f32.s32 %v2167_v46  ;;  %v9272_v7 = vsel %vm1774_vm13, %v1770_v57, inf  ;;  %v1584_v46 = vcvt.f32.s32 %v8083_v29  ;;  %v9298_v29 = vld [vmem:[#allocation1] sm:$0xff] }
 0x58c   :  { %v9275_v23 = vadd.s32 %v2170_v34, %v2168_v15  ;;  %v1585_v17 = vshll.u32 %v1584_v46, 16 }
 0x58e   :  { %11638 = vst [vmem:[#allocation60_spill] sm:$0xff] %v9275_v23  ;;  %vm11208_vm7 = vcmp.eq.s32.totalorder %v6177_v22, %v9275_v23 }
 0x58f   :  { %v9279_v48 = vpop.f32.mrf.mxu1  ;;  %v5482_v50 = vsel %vm11208_vm7, 1.0, %v11371_v8 }
 0x590   :  { %v1567_v18 = vpop.xlane.xlu0 %1566  ;;  %11639 = vst [vmem:[#allocation95_spill] sm:$0xff] %v9279_v48  ;;  %5562 = vmatmul.msk.f32.gmra.mxu3 %vm661_vm1, %v5482_v50 }
 0x591   :  { %v1568_v37 = vcvt.f32.s32 %v1567_v18  ;;  %v1582_v5 = vpop.xlane.xlu2 %1581  ;;  %4840 = vst.msk [vmem:[%s10939_s4 + $0x100] sm:$0xff] %vm11215_vm0, %v9279_v48 }
 0x592   :  { %v1583_v35 = vcvt.f32.s32 %v1582_v5 }
 0x593   :  { %v9286_v57 = vadd.s32 %v1570_v16, %v1568_v37  ;;  %v2188_v16 = vand.u32 65535, %v9118_v6 }
 0x594   :  { %v9315_v46 = vadd.s32 %v1585_v17, %v1583_v35  ;;  %v11641_v17 = vld [vmem:[#allocation53_spill] sm:$0xff] }
 0x595   :  { %v2526_v18 = vperm.slane %v9286_v57, 0  ;;  %v2527_v34 = vperm.slane %v9286_v57, 1  ;;  %v2528_v15 = vperm.slane %v9286_v57, 2  ;;  %v2529_v37 = vperm.slane %v9286_v57, 3 }
 0x596   :  { %v2530_v48 = vperm.slane %v9286_v57, 4  ;;  %vm4104_vm5 = vcmp.eq.s32.totalorder %v6177_v22, %v9286_v57  ;;  %v2531_v50 = vperm.slane %v9286_v57, 5  ;;  %v2532_v6 = vperm.slane %v9286_v57, 6 }
 0x597   :  { %3206 = vst [vmem:[#allocation1] ss:$9 sm:$0xff] %v2526_v18  ;;  %v5442_v5 = vsel %vm4104_vm5, 1.0, %v11371_v8  ;;  %v2175_v18 = vcvt.s32.f32 %v2173_v27  ;;  %v2533_v28 = vperm.slane %v9286_v57, 7  ;;  %v2190_v40 = vcvt.s32.f32 %v2188_v16 }
 0x598   :  { %v9305_v47 = vpop.xlane.xlu0 %2177  ;;  %3207 = vst [vmem:[#allocation1 + $0x1] ss:$9 sm:$0xff] %v2527_v34  ;;  %5522 = vmatmul.msk.f32.gmra.mxu1 %vm661_vm1, %v5442_v5  ;;  %vm4105_vm4 = vcmp.eq.s32.totalorder %v6177_v22, %v9315_v46  ;;  %v2536_v35 = vperm.slane %v9315_v46, 2  ;;  %v2537_v16 = vperm.slane %v9315_v46, 3  ;;  %v2539_v5 = vperm.slane %v9315_v46, 5 }
 0x599   :  { %vm2179_vm9 = vcmp.eq.f32.partialorder %v9141_v33, %v9305_v47  ;;  %3208 = vst [vmem:[#allocation1 + $0x2] ss:$9 sm:$0xff] %v2528_v15  ;;  %v9319_v34 = vpop.xlane.xlu2 %2192  ;;  %v11640_v15 = vld [vmem:[#allocation15_spill] sm:$0xff]  ;;  %v2654_v57 = vperm.slane %v9211_v19, 0 }
 0x59a   :  { %3209 = vst [vmem:[#allocation1 + $0x3] ss:$9 sm:$0xff] %v2529_v37  ;;  %v2180_v52 = vsel %vm2179_vm9, %v2175_v18, inf  ;;  %vm2194_vm11 = vcmp.eq.f32.partialorder %v9148_v21, %v9319_v34  ;;  %vm978_vm15 = vcmp.eq.f32.partialorder %v11641_v17, %v11640_v15  ;;  %v2534_v21 = vperm.slane %v9315_v46, 0  ;;  %v11642_v18 = vld [vmem:[#allocation22_spill] sm:$0xff] }
 0x59b   :  { %3210 = vst [vmem:[#allocation1 + $0x4] ss:$9 sm:$0xff] %v2530_v48  ;;  %2181 = vmin.xlane.f32.xlu1 %v2180_v52  ;;  %v2195_v33 = vsel %vm2194_vm11, %v2190_v40, inf  ;;  %v1058_v27 = vsel %vm978_vm15, %v6177_v22, 64  ;;  %v5443_v48 = vsel %vm4105_vm4, 1.0, %v11371_v8 }
 0x59c   :  { %3211 = vst [vmem:[#allocation1 + $0x5] ss:$9 sm:$0xff] %v2531_v50  ;;  %2196 = vmin.xlane.f32.xlu0 %v2195_v33  ;;  %v9334_v40 = vsel %vm661_vm1, %v1058_v27, 2147483647  ;;  %v2538_v50 = vperm.slane %v9315_v46, 4  ;;  %v11643_v33 = vld [vmem:[#allocation58_spill] sm:$0xff] }
 0x59d   :  { %3212 = vst [vmem:[#allocation1 + $0x6] ss:$9 sm:$0xff] %v2532_v6  ;;  %v2204_v37 = vshra.s32 %v9334_v40, 16  ;;  %vm979_vm6 = vcmp.eq.f32.partialorder %v11643_v33, %v11642_v18 }
 0x59e   :  { %3213 = vst [vmem:[#allocation1 + $0x7] ss:$9 sm:$0xff] %v2533_v28  ;;  %v2535_v28 = vperm.slane %v9315_v46, 1  ;;  %v1059_v15 = vsel %vm979_vm6, %v6177_v22, 64 }
 0x59f   :  { %v9348_v6 = vcvt.s32.f32 %v2204_v37  ;;  %v9359_v17 = vsel %vm661_vm1, %v1059_v15, 2147483647  ;;  %v1614_v15 = vcvt.f32.s32 %v8153_v38 }
 0x5a0   :  { %5523 = vmatmul.msk.f32.gmra.mxu1 %vm661_vm1, %v5443_v48  ;;  %v2219_v27 = vshra.s32 %v9359_v17, 16 }
 0x5a2   :  { %v9364_v48 = vcvt.s32.f32 %v2219_v27  ;;  %v1659_v27 = vcvt.f32.s32 %v8468_v44  ;;  %v1615_v44 = vshll.u32 %v1614_v15, 16 }
 0x5a3   :  { %1596 = vmin.xlane.f32.xlu1 %v8460_v53  ;;  %v2540_v53 = vperm.slane %v9315_v46, 6 }
 0x5a4   :  { %1611 = vmin.xlane.f32.xlu0 %v8186_v10  ;;  %v2541_v10 = vperm.slane %v9315_v46, 7  ;;  %v11670_v46 = vld [vmem:[#allocation82_spill] sm:$0xff] }
 0x5a5   :  { %v9338_v52 = vld [vmem:[#allocation1] sm:$0xff] }
 0x5a6   :  { %3215 = vst [vmem:[#allocation1] ss:$9 sm:$0xff] %v2534_v21 }
 0x5a7   :  { %3216 = vst [vmem:[#allocation1 + $0x1] ss:$9 sm:$0xff] %v2535_v28  ;;  %v2199_v28 = vcvt.f32.s32 %v9319_v34 }
 0x5a8   :  { %3217 = vst [vmem:[#allocation1 + $0x2] ss:$9 sm:$0xff] %v2536_v35 }
 0x5a9   :  { %3218 = vst [vmem:[#allocation1 + $0x3] ss:$9 sm:$0xff] %v2537_v16 }
 0x5aa   :  { %3219 = vst [vmem:[#allocation1 + $0x4] ss:$9 sm:$0xff] %v2538_v50 }
 0x5ab   :  { %3220 = vst [vmem:[#allocation1 + $0x5] ss:$9 sm:$0xff] %v2539_v5  ;;  %2207 = vmin.xlane.f32.xlu1 %v9348_v6  ;;  %v2200_v5 = vshll.u32 %v2199_v28, 16 }
 0x5ac   :  { %3221 = vst [vmem:[#allocation1 + $0x6] ss:$9 sm:$0xff] %v2540_v53  ;;  %1656 = vmin.xlane.f32.xlu0 %v8507_v32 }
 0x5ad   :  { %3222 = vst [vmem:[#allocation1 + $0x7] ss:$9 sm:$0xff] %v2541_v10 }
 0x5b3   :  { %1641 = vmin.xlane.f32.xlu1 %v8561_v0  ;;  %v2184_v0 = vcvt.f32.s32 %v9305_v47 }
 0x5b4   :  { %1701 = vmin.xlane.f32.xlu0 %v8605_v25 }
 0x5b5   :  { %v2185_v21 = vshll.u32 %v2184_v0, 16  ;;  %v2203_v0 = vand.u32 65535, %v9334_v40 }
 0x5bb   :  { %1686 = vmin.xlane.f32.xlu1 %v8770_v41 }
 0x5bc   :  { %1746 = vmin.xlane.f32.xlu0 %v8977_v55 }
 0x5c3   :  { %1731 = vmin.xlane.f32.xlu1 %v8885_v1  ;;  %v1599_v1 = vcvt.f32.s32 %v8452_v49 }
 0x5c4   :  { %2222 = vmin.xlane.f32.xlu0 %v9364_v48 }
 0x5c5   :  { %v1600_v53 = vshll.u32 %v1599_v1, 16 }
 0x60a   :  { %v9368_v32 = vpop.f32.mrf.mxu3 }
 0x60b   :  { %11644 = vst [vmem:[#allocation73_spill] sm:$0xff] %v9368_v32 }
 0x60c   :  { %4880 = vst.msk [vmem:[%s10939_s4 + $0x240] sm:$0xff] %vm11215_vm0, %v9368_v32 }
 0x60e   :  { %v2182_v25 = vpop.xlane.xlu1 %2181 }
 0x60f   :  { %v2183_v41 = vcvt.f32.s32 %v2182_v25  ;;  %v2197_v55 = vpop.xlane.xlu0 %2196 }
 0x610   :  { %v2198_v37 = vcvt.f32.s32 %v2197_v55 }
 0x611   :  { %v9378_v35 = vadd.s32 %v2185_v21, %v2183_v41  ;;  %v9411_v21 = vld [vmem:[#allocation1] sm:$0xff] }
 0x612   :  { %v9396_v10 = vadd.s32 %v2200_v5, %v2198_v37  ;;  %v1660_v37 = vshll.u32 %v1659_v27, 16 }
 0x613   :  { %11645 = vst [vmem:[#allocation85_spill] sm:$0xff] %v9378_v35  ;;  %v9382_v50 = vpop.f32.mrf.mxu3  ;;  %vm11211_vm10 = vcmp.eq.s32.totalorder %v6177_v22, %v9378_v35 }
 0x614   :  { %11646 = vst [vmem:[#allocation62_spill] sm:$0xff] %v9382_v50  ;;  %v5483_v18 = vsel %vm11211_vm10, 1.0, %v11371_v8  ;;  %vm11212_vm8 = vcmp.eq.s32.totalorder %v6177_v22, %v9396_v10 }
 0x615   :  { %v9380_v16 = vpop.f32.mrf.mxu1  ;;  %4881 = vst.msk [vmem:[%s10939_s4 + $0x248] sm:$0xff] %vm11215_vm0, %v9382_v50  ;;  %5563 = vmatmul.msk.f32.gmra.mxu3 %vm661_vm1, %v5483_v18 }
 0x616   :  { %4841 = vst.msk [vmem:[%s10939_s4 + $0x108] sm:$0xff] %vm11215_vm0, %v9380_v16  ;;  %v1597_v47 = vpop.xlane.xlu1 %1596 }
 0x617   :  { %v1598_v49 = vcvt.f32.s32 %v1597_v47  ;;  %v1612_v34 = vpop.xlane.xlu0 %1611  ;;  %11647 = vst [vmem:[#allocation10_spill] sm:$0xff] %v9396_v10  ;;  %v2205_v47 = vcvt.s32.f32 %v2203_v0 }
 0x618   :  { %v1613_v38 = vcvt.f32.s32 %v1612_v34 }
 0x619   :  { %v9403_v33 = vadd.s32 %v1600_v53, %v1598_v49  ;;  %v5484_v49 = vsel %vm11212_vm8, 1.0, %v11371_v8 }
 0x61b   :  { %v2542_v25 = vperm.slane %v9403_v33, 0  ;;  %v2543_v41 = vperm.slane %v9403_v33, 1  ;;  %v2544_v55 = vperm.slane %v9403_v33, 2  ;;  %v2545_v28 = vperm.slane %v9403_v33, 3 }
 0x61c   :  { %v2546_v1 = vperm.slane %v9403_v33, 4  ;;  %v2547_v40 = vperm.slane %v9403_v33, 5  ;;  %v2548_v53 = vperm.slane %v9403_v33, 6  ;;  %vm4106_vm13 = vcmp.eq.s32.totalorder %v6177_v22, %v9403_v33 }
 0x61d   :  { %3224 = vst [vmem:[#allocation1] ss:$9 sm:$0xff] %v2542_v25  ;;  %v2549_v18 = vperm.slane %v9403_v33, 7  ;;  %v5444_v15 = vsel %vm4106_vm13, 1.0, %v11371_v8  ;;  %v9434_v25 = vadd.s32 %v1615_v44, %v1613_v38  ;;  %5564 = vmatmul.msk.f32.gmra.mxu3 %vm661_vm1, %v5484_v49  ;;  %v1749_v49 = vcvt.f32.s32 %v8967_v14 }
 0x61e   :  { %3225 = vst [vmem:[#allocation1 + $0x1] ss:$9 sm:$0xff] %v2543_v41  ;;  %v9418_v5 = vpop.xlane.xlu1 %2207  ;;  %5524 = vmatmul.msk.f32.gmra.mxu1 %vm661_vm1, %v5444_v15  ;;  %v2653_v33 = vperm.slane %v9217_v63, 7 }
 0x61f   :  { %3226 = vst [vmem:[#allocation1 + $0x2] ss:$9 sm:$0xff] %v2544_v55  ;;  %vm2209_vm9 = vcmp.eq.f32.partialorder %v9348_v6, %v9418_v5  ;;  %v1657_v34 = vpop.xlane.xlu0 %1656  ;;  %v9438_v6 = vpop.f32.mrf.mxu1  ;;  %v1704_v55 = vcvt.f32.s32 %v8595_v56  ;;  %vm4107_vm11 = vcmp.eq.s32.totalorder %v6177_v22, %v9434_v25  ;;  %v2550_v56 = vperm.slane %v9434_v25, 0 }
 0x620   :  { %3227 = vst [vmem:[#allocation1 + $0x3] ss:$9 sm:$0xff] %v2545_v28  ;;  %v2210_v27 = vsel %vm2209_vm9, %v2205_v47, inf  ;;  %v1658_v0 = vcvt.f32.s32 %v1657_v34  ;;  %v5445_v38 = vsel %vm4107_vm11, 1.0, %v11371_v8  ;;  %v2551_v47 = vperm.slane %v9434_v25, 1 }
 0x621   :  { %3228 = vst [vmem:[#allocation1 + $0x4] ss:$9 sm:$0xff] %v2546_v1  ;;  %2211 = vmin.xlane.f32.xlu2 %v2210_v27  ;;  %v1705_v1 = vshll.u32 %v1704_v55, 16  ;;  %v2552_v34 = vperm.slane %v9434_v25, 2  ;;  %v2555_v15 = vperm.slane %v9434_v25, 5  ;;  %v2556_v55 = vperm.slane %v9434_v25, 6 }
 0x622   :  { %3229 = vst [vmem:[#allocation1 + $0x5] ss:$9 sm:$0xff] %v2547_v40  ;;  %v9440_v41 = vadd.s32 %v1660_v37, %v1658_v0  ;;  %v1750_v0 = vshll.u32 %v1749_v49, 16  ;;  %v2557_v14 = vperm.slane %v9434_v25, 7  ;;  %v11649_v49 = vld [vmem:[#allocation65_spill] sm:$0xff] }
 0x623   :  { %3230 = vst [vmem:[#allocation1 + $0x6] ss:$9 sm:$0xff] %v2548_v53  ;;  %v5759_v53 = vmov 0  }
 0x624   :  { %3231 = vst [vmem:[#allocation1 + $0x7] ss:$9 sm:$0xff] %v2549_v18  ;;  %5672 = vset.pattern.permute.xlu1 %v5759_v53  ;;  %5671 = vset.pattern.permute.xlu0 %v5759_v53  ;;  %v2553_v18 = vperm.slane %v9434_v25, 3  ;;  %vm4110_vm14 = vcmp.eq.s32.totalorder %v6177_v22, %v9440_v41 }
 0x625   :  { %4842 = vst.msk [vmem:[%s10939_s4 + $0x110] sm:$0xff] %vm11215_vm0, %v9438_v6  ;;  %5673 = vset.pattern.permute.xlu2 %v5759_v53  ;;  %v11648_v53 = vld [vmem:[#allocation32_spill] sm:$0xff] }
 0x626   :  { %5525 = vmatmul.msk.f32.gmra.mxu1 %vm661_vm1, %v5445_v38  ;;  %v2218_v38 = vand.u32 65535, %v9359_v17  ;;  %vm980_vm6 = vcmp.eq.f32.partialorder %v11649_v49, %v11648_v53 }
 0x627   :  { %v1702_v28 = vpop.xlane.xlu0 %1701 }
 0x628   :  { %v1703_v44 = vcvt.f32.s32 %v1702_v28 }
 0x629   :  { %1626 = vmin.xlane.f32.xlu2 %v8237_v24  ;;  %v2554_v24 = vperm.slane %v9434_v25, 4  ;;  %v2649_v25 = vperm.slane %v9217_v63, 3 }
 0x62a   :  { %v9457_v37 = vadd.s32 %v1705_v1, %v1703_v44 }
 0x62b   :  { %v9459_v40 = vld [vmem:[#allocation1] sm:$0xff] }
 0x62c   :  { %3233 = vst [vmem:[#allocation1] ss:$9 sm:$0xff] %v2550_v56  ;;  %v2220_v56 = vcvt.s32.f32 %v2218_v38  ;;  %v2214_v38 = vcvt.f32.s32 %v9418_v5 }
 0x62d   :  { %3234 = vst [vmem:[#allocation1 + $0x1] ss:$9 sm:$0xff] %v2551_v47 }
 0x62e   :  { %3235 = vst [vmem:[#allocation1 + $0x2] ss:$9 sm:$0xff] %v2552_v34  ;;  %v11650_v34 = vld [vmem:[#allocation27_spill] sm:$0xff] }
 0x62f   :  { %3236 = vst [vmem:[#allocation1 + $0x3] ss:$9 sm:$0xff] %v2553_v18  ;;  %v1747_v27 = vpop.xlane.xlu0 %1746  ;;  %v1060_v18 = vsel %vm980_vm6, %v6177_v22, 64 }
 0x630   :  { %3237 = vst [vmem:[#allocation1 + $0x4] ss:$9 sm:$0xff] %v2554_v24  ;;  %v1748_v28 = vcvt.f32.s32 %v1747_v27  ;;  %v9485_v24 = vsel %vm661_vm1, %v1060_v18, 2147483647 }
 0x631   :  { %3238 = vst [vmem:[#allocation1 + $0x5] ss:$9 sm:$0xff] %v2555_v15  ;;  %1671 = vmin.xlane.f32.xlu2 %v8724_v51  ;;  %v11651_v51 = vld [vmem:[#allocation67_spill] sm:$0xff] }
 0x632   :  { %3239 = vst [vmem:[#allocation1 + $0x6] ss:$9 sm:$0xff] %v2556_v55  ;;  %v9470_v1 = vadd.s32 %v1750_v0, %v1748_v28  ;;  %vm981_vm9 = vcmp.eq.f32.partialorder %v11651_v51, %v11650_v34  ;;  %v11652_v55 = vld [vmem:[#allocation57_spill] sm:$0xff]  ;;  %v11653_v28 = vld [vmem:[#allocation94_spill] sm:$0xff]  ;;  %v1629_v34 = vcvt.f32.s32 %v8207_v20  ;;  %v11658_v51 = vld [vmem:[#allocation72_spill] sm:$0xff] }
 0x633   :  { %3240 = vst [vmem:[#allocation1 + $0x7] ss:$9 sm:$0xff] %v2557_v14  ;;  %v1061_v17 = vsel %vm981_vm9, %v6177_v22, 64  ;;  %v11654_v14 = vld [vmem:[#allocation5_spill] sm:$0xff] }
 0x634   :  { %v9488_v15 = vsel %vm661_vm1, %v1061_v17, 2147483647  ;;  %v1630_v20 = vshll.u32 %v1629_v34, 16  ;;  %vm4116_vm3 = vcmp.eq.s32.totalorder %v6177_v22, %v9470_v1 }
 0x637   :  { %v9473_v44 = vpop.xlane.xlu0 %2222 }
 0x638   :  { %vm2224_vm15 = vcmp.eq.f32.partialorder %v9364_v48, %v9473_v44  ;;  %v2249_v48 = vshra.s32 %v9488_v15, 16 }
 0x639   :  { %v2225_v47 = vsel %vm2224_vm15, %v2220_v56, inf  ;;  %1716 = vmin.xlane.f32.xlu2 %v8833_v31  ;;  %v2234_v31 = vshra.s32 %v9485_v24, 16 }
 0x63a   :  { %2226 = vmin.xlane.f32.xlu1 %v2225_v47  ;;  %v9496_v0 = vcvt.s32.f32 %v2249_v48  ;;  %v2215_v47 = vshll.u32 %v2214_v38, 16  ;;  %v11660_v48 = vld [vmem:[#allocation21_spill] sm:$0xff] }
 0x63b   :  { %v9494_v27 = vcvt.s32.f32 %v2234_v31  ;;  %v1642_v31 = vpop.xlane.xlu1 %1641 }
 0x641   :  { %1761 = vmin.xlane.f32.xlu2 %v9011_v11  ;;  %v11655_v11 = vld [vmem:[#allocation9_spill] sm:$0xff] }
 0x642   :  { %1776 = vmin.xlane.f32.xlu1 %v9272_v7  ;;  %v11656_v7 = vld [vmem:[#allocation100_spill] sm:$0xff] }
 0x649   :  { %2237 = vmin.xlane.f32.xlu2 %v9494_v27 }
 0x64a   :  { %2252 = vmin.xlane.f32.xlu1 %v9496_v0 }
 0x663   :  { %3633 = vperm.xlu1 %5672, %v11652_v55   ;;  %v1644_v55 = vcvt.f32.s32 %v11660_v48 }
 0x66b   :  { %3642 = vperm.xlu1 %5672, %v11653_v28  }
 0x673   :  { %3648 = vperm.xlu1 %5672, %v11654_v14   ;;  %v1643_v14 = vcvt.f32.s32 %v1642_v31 }
 0x67b   :  { %3657 = vperm.xlu1 %5672, %v11655_v11  }
 0x683   :  { %3666 = vperm.xlu1 %5672, %v11656_v7  }
 0x68b   :  { %3675 = vperm.xlu1 %5672, %v8060_v42  }
 0x693   :  { %3684 = vperm.xlu1 %5672, %v8231_v13  }
 0x694   :  { %v2212_v56 = vpop.xlane.xlu2 %2211 }
 0x695   :  { %v2213_v53 = vcvt.f32.s32 %v2212_v56  ;;  %v3241_v56 = vld [vmem:[#allocation1] sm:$0xff] }
 0x697   :  { %v9508_v49 = vadd.s32 %v2215_v47, %v2213_v53  ;;  %v1645_v53 = vshll.u32 %v1644_v55, 16 }
 0x698   :  { %v9512_v18 = vpop.f32.mrf.mxu3 }
 0x699   :  { %11657 = vst [vmem:[#allocation54_spill] sm:$0xff] %v9508_v49  ;;  %vm11213_vm15 = vcmp.eq.s32.totalorder %v6177_v22, %v9508_v49 }
 0x69a   :  { %11659 = vst [vmem:[#allocation70_spill] sm:$0xff] %v9512_v18  ;;  %v5485_v42 = vsel %vm11213_vm15, 1.0, %v11371_v8  ;;  %vm4113_vm15 = vcmp.eq.s32.totalorder %v6177_v22, %v9457_v37 }
 0x69b   :  { %3693 = vperm.xlu1 %5672, %v11658_v51   ;;  %4882 = vst.msk [vmem:[%s10939_s4 + $0x250] sm:$0xff] %vm11215_vm0, %v9512_v18  ;;  %v9525_v5 = vpop.f32.mrf.mxu1  ;;  %5565 = vmatmul.msk.f32.gmra.mxu3 %vm661_vm1, %v5485_v42 }
 0x69c   :  { %v1627_v13 = vpop.xlane.xlu2 %1626  ;;  %4843 = vst.msk [vmem:[%s10939_s4 + $0x118] sm:$0xff] %vm11215_vm0, %v9525_v5 }
 0x69d   :  { %v1628_v17 = vcvt.f32.s32 %v1627_v13  ;;  %v9549_v13 = vadd.s32 %v1645_v53, %v1643_v14 }
 0x69f   :  { %v9534_v28 = vadd.s32 %v1630_v20, %v1628_v17  ;;  %vm4109_vm9 = vcmp.eq.s32.totalorder %v6177_v22, %v9549_v13  ;;  %v2567_v55 = vperm.slane %v9549_v13, 1  ;;  %v2571_v53 = vperm.slane %v9549_v13, 5 }
 0x6a0   :  { %v9554_v17 = vpop.f32.mrf.mxu3  ;;  %v5447_v48 = vsel %vm4109_vm9, 1.0, %v11371_v8 }
 0x6a1   :  { %v2558_v11 = vperm.slane %v9534_v28, 0  ;;  %v2559_v7 = vperm.slane %v9534_v28, 1  ;;  %v2560_v38 = vperm.slane %v9534_v28, 2  ;;  %v2561_v47 = vperm.slane %v9534_v28, 3  ;;  %11661 = vst [vmem:[#allocation42_spill] sm:$0xff] %v9554_v17 }
 0x6a2   :  { %v2562_v34 = vperm.slane %v9534_v28, 4  ;;  %vm4108_vm6 = vcmp.eq.s32.totalorder %v6177_v22, %v9534_v28  ;;  %v2563_v51 = vperm.slane %v9534_v28, 5  ;;  %v2564_v20 = vperm.slane %v9534_v28, 6  ;;  %4883 = vst.msk [vmem:[%s10939_s4 + $0x258] sm:$0xff] %vm11215_vm0, %v9554_v17 }
 0x6a3   :  { %3702 = vperm.xlu1 %5672, %v8676_v60   ;;  %3242 = vst [vmem:[#allocation1] ss:$9 sm:$0xff] %v2558_v11  ;;  %v5446_v42 = vsel %vm4108_vm6, 1.0, %v11371_v8  ;;  %v2565_v60 = vperm.slane %v9534_v28, 7  ;;  %v9556_v31 = vpop.f32.mrf.mxu1  ;;  %v2568_v11 = vperm.slane %v9549_v13, 2  ;;  %v2648_v28 = vperm.slane %v9217_v63, 2 }
 0x6a4   :  { %3243 = vst [vmem:[#allocation1 + $0x1] ss:$9 sm:$0xff] %v2559_v7  ;;  %5526 = vmatmul.msk.f32.gmra.mxu1 %vm661_vm1, %v5446_v42  ;;  %v2569_v7 = vperm.slane %v9549_v13, 3  ;;  %v2574_v42 = vperm.slane %v9440_v41, 0 }
 0x6a5   :  { %3244 = vst [vmem:[#allocation1 + $0x2] ss:$9 sm:$0xff] %v2560_v38  ;;  %v2570_v38 = vperm.slane %v9549_v13, 4 }
 0x6a6   :  { %3245 = vst [vmem:[#allocation1 + $0x3] ss:$9 sm:$0xff] %v2561_v47  ;;  %v5448_v47 = vsel %vm4110_vm14, 1.0, %v11371_v8 }
 0x6a7   :  { %3246 = vst [vmem:[#allocation1 + $0x4] ss:$9 sm:$0xff] %v2562_v34  ;;  %v2572_v34 = vperm.slane %v9549_v13, 6 }
 0x6a8   :  { %3247 = vst [vmem:[#allocation1 + $0x5] ss:$9 sm:$0xff] %v2563_v51  ;;  %v1687_v51 = vpop.xlane.xlu1 %1686 }
 0x6a9   :  { %3248 = vst [vmem:[#allocation1 + $0x6] ss:$9 sm:$0xff] %v2564_v20  ;;  %v2575_v20 = vperm.slane %v9440_v41, 1 }
 0x6aa   :  { %3249 = vst [vmem:[#allocation1 + $0x7] ss:$9 sm:$0xff] %v2565_v60 }
 0x6ab   :  { %3711 = vperm.xlu1 %5672, %v8891_v3   ;;  %4844 = vst.msk [vmem:[%s10939_s4 + $0x120] sm:$0xff] %vm11215_vm0, %v9556_v31  ;;  %v2566_v3 = vperm.slane %v9549_v13, 0 }
 0x6ac   :  { %5527 = vmatmul.msk.f32.gmra.mxu1 %vm661_vm1, %v5447_v48  ;;  %v2576_v48 = vperm.slane %v9440_v41, 2 }
 0x6b1   :  { %v9578_v14 = vld [vmem:[#allocation1] sm:$0xff] }
 0x6b2   :  { %3251 = vst [vmem:[#allocation1] ss:$9 sm:$0xff] %v2566_v3  ;;  %v2577_v3 = vperm.slane %v9440_v41, 3 }
 0x6b3   :  { %3720 = vperm.xlu1 %5672, %v9005_v39   ;;  %3252 = vst [vmem:[#allocation1 + $0x1] ss:$9 sm:$0xff] %v2567_v55  ;;  %v2573_v39 = vperm.slane %v9549_v13, 7  ;;  %v2578_v55 = vperm.slane %v9440_v41, 4  ;;  %v2647_v13 = vperm.slane %v9217_v63, 1 }
 0x6b4   :  { %3253 = vst [vmem:[#allocation1 + $0x2] ss:$9 sm:$0xff] %v2568_v11  ;;  %5528 = vmatmul.msk.f32.gmra.mxu1 %vm661_vm1, %v5448_v47  ;;  %v1672_v11 = vpop.xlane.xlu2 %1671  ;;  %v2580_v47 = vperm.slane %v9440_v41, 6 }
 0x6b5   :  { %3254 = vst [vmem:[#allocation1 + $0x3] ss:$9 sm:$0xff] %v2569_v7  ;;  %v11662_v7 = vld [vmem:[#allocation25_spill] sm:$0xff] }
 0x6b6   :  { %3255 = vst [vmem:[#allocation1 + $0x4] ss:$9 sm:$0xff] %v2570_v38  ;;  %v2579_v38 = vperm.slane %v9440_v41, 5 }
 0x6b7   :  { %3256 = vst [vmem:[#allocation1 + $0x5] ss:$9 sm:$0xff] %v2571_v53  ;;  %v2581_v53 = vperm.slane %v9440_v41, 7  ;;  %v5454_v41 = vsel %vm4116_vm3, 1.0, %v11371_v8 }
 0x6b8   :  { %3257 = vst [vmem:[#allocation1 + $0x6] ss:$9 sm:$0xff] %v2572_v34  ;;  %v1673_v34 = vcvt.f32.s32 %v1672_v11 }
 0x6b9   :  { %3258 = vst [vmem:[#allocation1 + $0x7] ss:$9 sm:$0xff] %v2573_v39 }
 0x6bb   :  { %3729 = vperm.xlu1 %5672, %v9338_v52   ;;  %v1674_v52 = vcvt.f32.s32 %v11662_v7 }
 0x6bd   :  { %v1675_v39 = vshll.u32 %v1674_v52, 16 }
 0x6c0   :  { %v9597_v60 = vld [vmem:[#allocation1] sm:$0xff] }
 0x6c1   :  { %3260 = vst [vmem:[#allocation1] ss:$9 sm:$0xff] %v2574_v42  ;;  %v9606_v42 = vpop.xlane.xlu1 %1731 }
 0x6c2   :  { %3261 = vst [vmem:[#allocation1 + $0x1] ss:$9 sm:$0xff] %v2575_v20 }
 0x6c3   :  { %3738 = vperm.xlu1 %5672, %v3241_v56   ;;  %3262 = vst [vmem:[#allocation1 + $0x2] ss:$9 sm:$0xff] %v2576_v48  ;;  %v9608_v56 = vadd.s32 %v1675_v39, %v1673_v34 }
 0x6c4   :  { %3263 = vst [vmem:[#allocation1 + $0x3] ss:$9 sm:$0xff] %v2577_v3 }
 0x6c5   :  { %3264 = vst [vmem:[#allocation1 + $0x4] ss:$9 sm:$0xff] %v2578_v55  ;;  %v2582_v20 = vperm.slane %v9608_v56, 0  ;;  %v2583_v7 = vperm.slane %v9608_v56, 1  ;;  %v2584_v3 = vperm.slane %v9608_v56, 2  ;;  %v2585_v11 = vperm.slane %v9608_v56, 3 }
 0x6c6   :  { %3265 = vst [vmem:[#allocation1 + $0x5] ss:$9 sm:$0xff] %v2579_v38  ;;  %v2229_v38 = vcvt.f32.s32 %v9473_v44  ;;  %v2586_v52 = vperm.slane %v9608_v56, 4  ;;  %v2587_v34 = vperm.slane %v9608_v56, 5  ;;  %v2588_v32 = vperm.slane %v9608_v56, 6 }
 0x6c7   :  { %3266 = vst [vmem:[#allocation1 + $0x6] ss:$9 sm:$0xff] %v2580_v47  ;;  %v11663_v47 = vld [vmem:[#allocation46_spill] sm:$0xff]  ;;  %vm4111_vm10 = vcmp.eq.s32.totalorder %v6177_v22, %v9608_v56 }
 0x6c8   :  { %3267 = vst [vmem:[#allocation1 + $0x7] ss:$9 sm:$0xff] %v2581_v53  ;;  %v1689_v53 = vcvt.f32.s32 %v11663_v47  ;;  %v2230_v50 = vshll.u32 %v2229_v38, 16 }
 0x6c9   :  { %v2227_v55 = vpop.xlane.xlu1 %2226 }
 0x6ca   :  { %v2228_v39 = vcvt.f32.s32 %v2227_v55  ;;  %v1690_v44 = vshll.u32 %v1689_v53, 16 }
 0x6cf   :  { %v3268_v48 = vld [vmem:[#allocation1] sm:$0xff] }
 0x6d0   :  { %3269 = vst [vmem:[#allocation1] ss:$9 sm:$0xff] %v2582_v20  ;;  %3747 = vperm.xlu1 %5672, %v3268_v48   ;;  %v1688_v20 = vcvt.f32.s32 %v1687_v51  ;;  %v2589_v48 = vperm.slane %v9608_v56, 7  ;;  %v2646_v56 = vperm.slane %v9217_v63, 0 }
 0x6d1   :  { %3270 = vst [vmem:[#allocation1 + $0x1] ss:$9 sm:$0xff] %v2583_v7  ;;  %v9620_v7 = vadd.s32 %v2230_v50, %v2228_v39  ;;  %v2598_v39 = vperm.slane %v9457_v37, 0 }
 0x6d2   :  { %3271 = vst [vmem:[#allocation1 + $0x2] ss:$9 sm:$0xff] %v2584_v3  ;;  %v9622_v3 = vadd.s32 %v1690_v44, %v1688_v20  ;;  %v2599_v20 = vperm.slane %v9457_v37, 1  ;;  %v2600_v44 = vperm.slane %v9457_v37, 2 }
 0x6d3   :  { %3272 = vst [vmem:[#allocation1 + $0x3] ss:$9 sm:$0xff] %v2585_v11  ;;  %vm11214_vm7 = vcmp.eq.s32.totalorder %v6177_v22, %v9620_v7 }
 0x6d4   :  { %3273 = vst [vmem:[#allocation1 + $0x4] ss:$9 sm:$0xff] %v2586_v52  ;;  %v5486_v55 = vsel %vm11214_vm7, 1.0, %v11371_v8  ;;  %v2590_v51 = vperm.slane %v9622_v3, 0  ;;  %v2592_v50 = vperm.slane %v9622_v3, 2  ;;  %v2593_v11 = vperm.slane %v9622_v3, 3 }
 0x6d5   :  { %3274 = vst [vmem:[#allocation1 + $0x5] ss:$9 sm:$0xff] %v2587_v34  ;;  %5566 = vmatmul.msk.f32.gmra.mxu3 %vm661_vm1, %v5486_v55  ;;  %v2594_v52 = vperm.slane %v9622_v3, 4  ;;  %v2595_v47 = vperm.slane %v9622_v3, 5  ;;  %v2596_v53 = vperm.slane %v9622_v3, 6  ;;  %v2597_v34 = vperm.slane %v9622_v3, 7 }
 0x6d6   :  { %3275 = vst [vmem:[#allocation1 + $0x6] ss:$9 sm:$0xff] %v2588_v32  ;;  %v2591_v32 = vperm.slane %v9622_v3, 1  ;;  %v2601_v55 = vperm.slane %v9457_v37, 3  ;;  %vm4112_vm8 = vcmp.eq.s32.totalorder %v6177_v22, %v9622_v3  ;;  %v11667_v3 = vld [vmem:[#allocation35_spill] sm:$0xff] }
 0x6d7   :  { %3276 = vst [vmem:[#allocation1 + $0x7] ss:$9 sm:$0xff] %v2589_v48 }
 0x6d8   :  { %11664 = vst [vmem:[#allocation45_spill] sm:$0xff] %v9620_v7 }
 0x6de   :  { %v9633_v38 = vld [vmem:[#allocation1] sm:$0xff] }
 0x6df   :  { %3278 = vst [vmem:[#allocation1] ss:$9 sm:$0xff] %v2590_v51  ;;  %v2602_v51 = vperm.slane %v9457_v37, 4 }
 0x6e0   :  { %3279 = vst [vmem:[#allocation1 + $0x1] ss:$9 sm:$0xff] %v2591_v32  ;;  %v1717_v32 = vpop.xlane.xlu2 %1716 }
 0x6e1   :  { %3280 = vst [vmem:[#allocation1 + $0x2] ss:$9 sm:$0xff] %v2592_v50  ;;  %v11665_v50 = vld [vmem:[#allocation87_spill] sm:$0xff] }
 0x6e2   :  { %3281 = vst [vmem:[#allocation1 + $0x3] ss:$9 sm:$0xff] %v2593_v11  ;;  %v1719_v11 = vcvt.f32.s32 %v11665_v50 }
 0x6e3   :  { %3282 = vst [vmem:[#allocation1 + $0x4] ss:$9 sm:$0xff] %v2594_v52  ;;  %v2603_v52 = vperm.slane %v9457_v37, 5 }
 0x6e4   :  { %3283 = vst [vmem:[#allocation1 + $0x5] ss:$9 sm:$0xff] %v2595_v47  ;;  %v2604_v47 = vperm.slane %v9457_v37, 6 }
 0x6e5   :  { %3284 = vst [vmem:[#allocation1 + $0x6] ss:$9 sm:$0xff] %v2596_v53  ;;  %v2605_v53 = vperm.slane %v9457_v37, 7 }
 0x6e6   :  { %3285 = vst [vmem:[#allocation1 + $0x7] ss:$9 sm:$0xff] %v2597_v34  ;;  %v1718_v34 = vcvt.f32.s32 %v1717_v32  ;;  %v11666_v32 = vld [vmem:[#allocation79_spill] sm:$0xff] }
 0x6ed   :  { %v9643_v48 = vld [vmem:[#allocation1] sm:$0xff] }
 0x6ee   :  { %3287 = vst [vmem:[#allocation1] ss:$9 sm:$0xff] %v2598_v39  ;;  %v1720_v39 = vshll.u32 %v1719_v11, 16  ;;  %v1734_v11 = vcvt.f32.s32 %v11666_v32 }
 0x6ef   :  { %3288 = vst [vmem:[#allocation1 + $0x1] ss:$9 sm:$0xff] %v2599_v20 }
 0x6f0   :  { %3289 = vst [vmem:[#allocation1 + $0x2] ss:$9 sm:$0xff] %v2600_v44  ;;  %v9652_v20 = vadd.s32 %v1720_v39, %v1718_v34 }
 0x6f1   :  { %3290 = vst [vmem:[#allocation1 + $0x3] ss:$9 sm:$0xff] %v2601_v55 }
 0x6f2   :  { %3291 = vst [vmem:[#allocation1 + $0x4] ss:$9 sm:$0xff] %v2602_v51  ;;  %v2606_v44 = vperm.slane %v9652_v20, 0  ;;  %v2607_v50 = vperm.slane %v9652_v20, 1  ;;  %v2608_v17 = vperm.slane %v9652_v20, 2  ;;  %v2609_v55 = vperm.slane %v9652_v20, 3 }
 0x6f3   :  { %3292 = vst [vmem:[#allocation1 + $0x5] ss:$9 sm:$0xff] %v2603_v52  ;;  %v2610_v51 = vperm.slane %v9652_v20, 4  ;;  %v2611_v52 = vperm.slane %v9652_v20, 5  ;;  %v2613_v34 = vperm.slane %v9652_v20, 7  ;;  %vm4114_vm2 = vcmp.eq.s32.totalorder %v6177_v22, %v9652_v20 }
 0x6f4   :  { %3293 = vst [vmem:[#allocation1 + $0x6] ss:$9 sm:$0xff] %v2604_v47  ;;  %v2612_v47 = vperm.slane %v9652_v20, 6 }
 0x6f5   :  { %3294 = vst [vmem:[#allocation1 + $0x7] ss:$9 sm:$0xff] %v2605_v53  ;;  %v1733_v53 = vcvt.f32.s32 %v9606_v42 }
 0x6fc   :  { %v3295_v18 = vld [vmem:[#allocation1] sm:$0xff] }
 0x6fd   :  { %3296 = vst [vmem:[#allocation1] ss:$9 sm:$0xff] %v2606_v44  ;;  %3756 = vperm.xlu1 %5672, %v3295_v18   ;;  %v1735_v18 = vshll.u32 %v1734_v11, 16 }
 0x6fe   :  { %3297 = vst [vmem:[#allocation1 + $0x1] ss:$9 sm:$0xff] %v2607_v50 }
 0x6ff   :  { %3298 = vst [vmem:[#allocation1 + $0x2] ss:$9 sm:$0xff] %v2608_v17  ;;  %v9664_v39 = vadd.s32 %v1735_v18, %v1733_v53  ;;  %v2623_v53 = vperm.slane %v9470_v1, 1  ;;  %v2624_v18 = vperm.slane %v9470_v1, 2 }
 0x700   :  { %3299 = vst [vmem:[#allocation1 + $0x3] ss:$9 sm:$0xff] %v2609_v55 }
 0x701   :  { %3300 = vst [vmem:[#allocation1 + $0x4] ss:$9 sm:$0xff] %v2610_v51  ;;  %v2614_v17 = vperm.slane %v9664_v39, 0  ;;  %v2615_v44 = vperm.slane %v9664_v39, 1  ;;  %v2616_v55 = vperm.slane %v9664_v39, 2  ;;  %v2617_v51 = vperm.slane %v9664_v39, 3 }
 0x702   :  { %3301 = vst [vmem:[#allocation1 + $0x5] ss:$9 sm:$0xff] %v2611_v52  ;;  %v2618_v42 = vperm.slane %v9664_v39, 4  ;;  %v2619_v32 = vperm.slane %v9664_v39, 5  ;;  %v2620_v11 = vperm.slane %v9664_v39, 6  ;;  %v2621_v52 = vperm.slane %v9664_v39, 7 }
 0x703   :  { %3302 = vst [vmem:[#allocation1 + $0x6] ss:$9 sm:$0xff] %v2612_v47  ;;  %v2622_v47 = vperm.slane %v9470_v1, 0 }
 0x704   :  { %3303 = vst [vmem:[#allocation1 + $0x7] ss:$9 sm:$0xff] %v2613_v34 }
 0x70b   :  { %v9668_v50 = vld [vmem:[#allocation1] sm:$0xff] }
 0x70c   :  { %3305 = vst [vmem:[#allocation1] ss:$9 sm:$0xff] %v2614_v17  ;;  %v2625_v17 = vperm.slane %v9470_v1, 3 }
 0x70d   :  { %3306 = vst [vmem:[#allocation1 + $0x1] ss:$9 sm:$0xff] %v2615_v44  ;;  %v2626_v44 = vperm.slane %v9470_v1, 4 }
 0x70e   :  { %3307 = vst [vmem:[#allocation1 + $0x2] ss:$9 sm:$0xff] %v2616_v55  ;;  %v1762_v55 = vpop.xlane.xlu2 %1761 }
 0x70f   :  { %3308 = vst [vmem:[#allocation1 + $0x3] ss:$9 sm:$0xff] %v2617_v51  ;;  %v5449_v51 = vsel %vm4111_vm10, 1.0, %v11371_v8 }
 0x710   :  { %3309 = vst [vmem:[#allocation1 + $0x4] ss:$9 sm:$0xff] %v2618_v42  ;;  %v1764_v42 = vcvt.f32.s32 %v8989_v9  ;;  %5529 = vmatmul.msk.f32.gmra.mxu1 %vm661_vm1, %v5449_v51  ;;  %v1777_v9 = vpop.xlane.xlu1 %1776 }
 0x711   :  { %3310 = vst [vmem:[#allocation1 + $0x5] ss:$9 sm:$0xff] %v2619_v32  ;;  %v2627_v32 = vperm.slane %v9470_v1, 5  ;;  %v1778_v51 = vcvt.f32.s32 %v1777_v9 }
 0x712   :  { %3311 = vst [vmem:[#allocation1 + $0x6] ss:$9 sm:$0xff] %v2620_v11  ;;  %v2628_v11 = vperm.slane %v9470_v1, 6 }
 0x713   :  { %3312 = vst [vmem:[#allocation1 + $0x7] ss:$9 sm:$0xff] %v2621_v52  ;;  %v2629_v52 = vperm.slane %v9470_v1, 7  ;;  %v2650_v1 = vperm.slane %v9217_v63, 4 }
 0x71a   :  { %v9678_v34 = vld [vmem:[#allocation1] sm:$0xff] }
 0x71b   :  { %3314 = vst [vmem:[#allocation1] ss:$9 sm:$0xff] %v2622_v47  ;;  %v1763_v47 = vcvt.f32.s32 %v1762_v55 }
 0x71c   :  { %3315 = vst [vmem:[#allocation1 + $0x1] ss:$9 sm:$0xff] %v2623_v53  ;;  %v1765_v53 = vshll.u32 %v1764_v42, 16 }
 0x71d   :  { %3316 = vst [vmem:[#allocation1 + $0x2] ss:$9 sm:$0xff] %v2624_v18 }
 0x71e   :  { %3317 = vst [vmem:[#allocation1 + $0x3] ss:$9 sm:$0xff] %v2625_v17  ;;  %v9696_v18 = vadd.s32 %v1765_v53, %v1763_v47  ;;  %v1779_v17 = vcvt.f32.s32 %v9253_v58  ;;  %v2233_v53 = vand.u32 65535, %v9485_v24 }
 0x71f   :  { %3318 = vst [vmem:[#allocation1 + $0x4] ss:$9 sm:$0xff] %v2626_v44  ;;  %v5450_v44 = vsel %vm4112_vm8, 1.0, %v11371_v8 }
 0x720   :  { %3319 = vst [vmem:[#allocation1 + $0x5] ss:$9 sm:$0xff] %v2627_v32  ;;  %5530 = vmatmul.msk.f32.gmra.mxu1 %vm661_vm1, %v5450_v44  ;;  %v2630_v55 = vperm.slane %v9696_v18, 0  ;;  %v1780_v42 = vshll.u32 %v1779_v17, 16  ;;  %v2633_v58 = vperm.slane %v9696_v18, 3  ;;  %v2634_v9 = vperm.slane %v9696_v18, 4 }
 0x721   :  { %3320 = vst [vmem:[#allocation1 + $0x6] ss:$9 sm:$0xff] %v2628_v11  ;;  %v2631_v11 = vperm.slane %v9696_v18, 1  ;;  %v2635_v17 = vperm.slane %v9696_v18, 5  ;;  %v5451_v44 = vsel %vm4113_vm15, 1.0, %v11371_v8  ;;  %v2637_v24 = vperm.slane %v9696_v18, 7 }
 0x722   :  { %3321 = vst [vmem:[#allocation1 + $0x7] ss:$9 sm:$0xff] %v2629_v52  ;;  %v2632_v52 = vperm.slane %v9696_v18, 2  ;;  %v9710_v47 = vadd.s32 %v1780_v42, %v1778_v51  ;;  %v9723_v51 = vpop.xlane.xlu2 %2237  ;;  %v2235_v42 = vcvt.s32.f32 %v2233_v53  ;;  %vm4117_vm12 = vcmp.eq.s32.totalorder %v6177_v22, %v9696_v18 }
 0x723   :  { %vm2239_vm0 = vcmp.eq.f32.partialorder %v9494_v27, %v9723_v51 }
 0x724   :  { %vm11218_vm7 = vcmp.eq.s32.totalorder %v6177_v22, %v9710_v47  ;;  %v2639_v53 = vperm.slane %v9710_v47, 1 }
 0x725   :  { %5602 = vmatpush.msk.msra.mxu2 %vm11218_vm7, %v11588_v54 }
 0x727   :  { %5603 = vmatpush.msk.msra.mxu2 %vm4117_vm12, %v11588_v54 }
 0x728   :  { %5531 = vmatmul.msk.f32.gmra.mxu1 %vm661_vm1, %v5451_v44  ;;  %v2642_v44 = vperm.slane %v9710_v47, 4 }
 0x729   :  { %v3322_v32 = vld [vmem:[#allocation1] sm:$0xff]  ;;  %5604 = vmatpush.msk.msra.mxu2 %vm4116_vm3, %v11588_v54  ;;  %vm11669_vm3 = vcmp.eq.s32.totalorder %v6177_v22, %v9032_v26 }
 0x72a   :  { %3323 = vst [vmem:[#allocation1] ss:$9 sm:$0xff] %v2630_v55  ;;  %3765 = vperm.xlu1 %5672, %v3322_v32   ;;  %v2636_v55 = vperm.slane %v9696_v18, 6  ;;  %v2248_v32 = vand.u32 65535, %v9488_v15  ;;  %v2240_v15 = vsel %vm2239_vm0, %v2235_v42, inf  ;;  %vm4115_vm0 = vcmp.eq.s32.totalorder %v6177_v22, %v9664_v39 }
 0x72b   :  { %3324 = vst [vmem:[#allocation1 + $0x1] ss:$9 sm:$0xff] %v2631_v11  ;;  %v9735_v11 = vpop.xlane.xlu1 %2252  ;;  %2241 = vmin.xlane.f32.xlu0 %v2240_v15  ;;  %5605 = vmatpush.msk.msra.mxu2 %vm4115_vm0, %v11588_v54  ;;  %v5453_v37 = vsel %vm4115_vm0, 1.0, %v11371_v8  ;;  %v2651_v42 = vperm.slane %v9217_v63, 5  ;;  %v2652_v15 = vperm.slane %v9217_v63, 6  ;;  %vm3872_vm0 = vcmask 130112  }
 0x72c   :  { %3325 = vst [vmem:[#allocation1 + $0x2] ss:$9 sm:$0xff] %v2632_v52  ;;  %v2250_v52 = vcvt.s32.f32 %v2248_v32  ;;  %vm2254_vm7 = vcmp.eq.f32.partialorder %v9496_v0, %v9735_v11  ;;  %v2638_v0 = vperm.slane %v9710_v47, 0  ;;  %v2644_v32 = vperm.slane %v9710_v47, 6 }
 0x72d   :  { %3326 = vst [vmem:[#allocation1 + $0x3] ss:$9 sm:$0xff] %v2633_v58  ;;  %v5452_v58 = vsel %vm4114_vm2, 1.0, %v11371_v8  ;;  %5606 = vmatpush.msk.msra.mxu2 %vm4114_vm2, %v11588_v54  ;;  %vm11673_vm2 = vcmp.eq.s32.totalorder %v6177_v22, %v9710_v47 }
 0x72e   :  { %3327 = vst [vmem:[#allocation1 + $0x4] ss:$9 sm:$0xff] %v2634_v9  ;;  %v2255_v27 = vsel %vm2254_vm7, %v2250_v52, inf  ;;  %v2640_v9 = vperm.slane %v9710_v47, 2  ;;  %v11668_v52 = vld [vmem:[#allocation55_spill] sm:$0xff]  ;;  %v5456_v18 = vsel %vm11673_vm2, 1.0, %v11371_v8 }
 0x72f   :  { %3328 = vst [vmem:[#allocation1 + $0x5] ss:$9 sm:$0xff] %v2635_v17  ;;  %2256 = vmin.xlane.f32.xlu2 %v2255_v27  ;;  %v2641_v17 = vperm.slane %v9710_v47, 3  ;;  %5607 = vmatpush.msk.msra.mxu2 %vm4113_vm15, %v11588_v54  ;;  %v5455_v27 = vsel %vm4117_vm12, 1.0, %v11371_v8  ;;  %vm11676_vm12 = vcmp.eq.s32.totalorder %v6177_v22, %v9217_v63  ;;  %vm11689_vm7 = vcmask 261120  }
 0x730   :  { %3329 = vst [vmem:[#allocation1 + $0x6] ss:$9 sm:$0xff] %v2636_v55  ;;  %5532 = vmatmul.msk.f32.gmra.mxu1 %vm661_vm1, %v5452_v58  ;;  %v2643_v55 = vperm.slane %v9710_v47, 5  ;;  %v11671_v58 = vld [vmem:[#allocation61_spill] sm:$0xff]  ;;  %vm3876_vm2 = vcmask 195712  }
 0x731   :  { %3330 = vst [vmem:[#allocation1 + $0x7] ss:$9 sm:$0xff] %v2637_v24  ;;  %5608 = vmatpush.msk.msra.mxu2 %vm4112_vm8, %v11588_v54  ;;  %v2645_v24 = vperm.slane %v9710_v47, 7  ;;  %v2661_v47 = vperm.slane %v9211_v19, 7 }
 0x733   :  { %5609 = vmatpush.msk.msra.mxu2 %vm4111_vm10, %v11588_v54 }
 0x735   :  { %5610 = vmatpush.msk.msra.mxu2 %vm4110_vm14, %v11588_v54  ;;  %vm11679_vm14 = vcmp.eq.s32.totalorder %v6177_v22, %v9211_v19 }
 0x736   :  { %v5458_v63 = vsel %vm11679_vm14, 1.0, %v11371_v8  ;;  %vm11705_vm14 = vcmp.eq.s32.totalorder %v6177_v22, %v9378_v35  ;;  %v5713_v35 = vld [vmem:[%s10937_s0 + $0x178] sm:$0xff] }
 0x737   :  { %5611 = vmatpush.msk.msra.mxu2 %vm4109_vm9, %v11588_v54  ;;  %vm11700_vm9 = vcmp.eq.s32.totalorder %v6177_v22, %v9508_v49 }
 0x738   :  { %v9760_v20 = vld [vmem:[#allocation1] sm:$0xff]  ;;  %5533 = vmatmul.msk.f32.gmra.mxu1 %vm661_vm1, %v5453_v37  ;;  %v11674_v37 = vld [vmem:[#allocation68_spill] sm:$0xff] }
 0x739   :  { %3332 = vst [vmem:[#allocation1] ss:$9 sm:$0xff] %v2638_v0  ;;  %5612 = vmatpush.msk.msra.mxu2 %vm4108_vm6, %v11588_v54  ;;  %v2655_v0 = vperm.slane %v9211_v19, 1  ;;  %vm11699_vm6 = vcmp.eq.s32.totalorder %v6177_v22, %v9620_v7  ;;  %v11738_v7 = vld [vmem:[#allocation105_spill] sm:$0xff] }
 0x73a   :  { %3333 = vst [vmem:[#allocation1 + $0x1] ss:$9 sm:$0xff] %v2639_v53  ;;  %v11672_v53 = vld [vmem:[#allocation11_spill] sm:$0xff] }
 0x73b   :  { %3334 = vst [vmem:[#allocation1 + $0x2] ss:$9 sm:$0xff] %v2640_v9  ;;  %5613 = vmatpush.msk.msra.mxu2 %vm4107_vm11, %v11588_v54  ;;  %v2656_v9 = vperm.slane %v9211_v19, 2 }
 0x73c   :  { %3335 = vst [vmem:[#allocation1 + $0x3] ss:$9 sm:$0xff] %v2641_v17  ;;  %v2657_v17 = vperm.slane %v9211_v19, 3 }
 0x73d   :  { %3336 = vst [vmem:[#allocation1 + $0x4] ss:$9 sm:$0xff] %v2642_v44  ;;  %5614 = vmatpush.msk.msra.mxu2 %vm4106_vm13, %v11588_v54  ;;  %v2658_v44 = vperm.slane %v9211_v19, 4 }
 0x73e   :  { %3337 = vst [vmem:[#allocation1 + $0x5] ss:$9 sm:$0xff] %v2643_v55  ;;  %v2659_v55 = vperm.slane %v9211_v19, 5 }
 0x73f   :  { %3338 = vst [vmem:[#allocation1 + $0x6] ss:$9 sm:$0xff] %v2644_v32  ;;  %3630 = vperm.xlu0 %5671, %v11667_v3   ;;  %5615 = vmatpush.msk.msra.mxu2 %vm4105_vm4, %v11588_v54  ;;  %v2660_v32 = vperm.slane %v9211_v19, 6  ;;  %v2662_v3 = vperm.slane %v11633_v59, 0  ;;  %v11680_v19 = vld [vmem:[#allocation86_spill] sm:$0xff] }
 0x740   :  { %3339 = vst [vmem:[#allocation1 + $0x7] ss:$9 sm:$0xff] %v2645_v24  ;;  %5534 = vmatmul.msk.f32.gmra.mxu1 %vm661_vm1, %v5454_v41  ;;  %v11675_v24 = vld [vmem:[#allocation102_spill] sm:$0xff]  ;;  %v2663_v41 = vperm.slane %v11633_v59, 1 }
 0x741   :  { %5616 = vmatpush.msk.msra.mxu2 %vm4104_vm5, %v11588_v54  ;;  %vm11691_vm5 = vmmov %vm11689_vm7 }
 0x742   :  { %vm11692_vm4 = vmmov %vm11691_vm5 }
 0x743   :  { %5617 = vmatpush.msk.msra.mxu2 %vm11669_vm3, %v11588_v54  ;;  %vm11695_vm10 = vmmov %vm11692_vm4  ;;  %vm11703_vm3 = vcmp.eq.s32.totalorder %v6177_v22, %v9396_v10 }
 0x744   :  { %4972 = vmatmul.f32.vlgmr.msra.gmra.mxu2 %v11588_v54  ;;  %vm11697_vm8 = vmmov %vm11692_vm4 }
 0x745   :  { %vm11698_vm11 = vmmov %vm11692_vm4 }
 0x747   :  { %v9810_v39 = vld [vmem:[#allocation1] sm:$0xff]  ;;  %3636 = vperm.xlu2 %5673, %v11668_v52   ;;  %3651 = vperm.xlu0 %5671, %v11670_v46   ;;  %v2668_v52 = vperm.slane %v11633_v59, 6  ;;  %v2669_v46 = vperm.slane %v11633_v59, 7 }
 0x748   :  { %3341 = vst [vmem:[#allocation1] ss:$9 sm:$0xff] %v2646_v56  ;;  %5535 = vmatmul.msk.f32.gmra.mxu1 %vm661_vm1, %v5455_v27  ;;  %v5457_v56 = vsel %vm11676_vm12, 1.0, %v11371_v8  ;;  %v11681_v27 = vld [vmem:[#allocation13_spill] sm:$0xff]  ;;  %vm3880_vm12 = vcmask 261312  }
 0x749   :  { %3342 = vst [vmem:[#allocation1 + $0x1] ss:$9 sm:$0xff] %v2647_v13 }
 0x74a   :  { %3343 = vst [vmem:[#allocation1 + $0x2] ss:$9 sm:$0xff] %v2648_v28  ;;  %v11677_v28 = vld [vmem:[#allocation8_spill] sm:$0xff] }
 0x74b   :  { %3344 = vst [vmem:[#allocation1 + $0x3] ss:$9 sm:$0xff] %v2649_v25  ;;  %v2664_v25 = vperm.slane %v11633_v59, 2 }
 0x74c   :  { %3345 = vst [vmem:[#allocation1 + $0x4] ss:$9 sm:$0xff] %v2650_v1  ;;  %v11678_v1 = vld [vmem:[#allocation108_spill] sm:$0xff] }
 0x74d   :  { %3346 = vst [vmem:[#allocation1 + $0x5] ss:$9 sm:$0xff] %v2651_v42  ;;  %v2665_v42 = vperm.slane %v11633_v59, 3 }
 0x74e   :  { %3347 = vst [vmem:[#allocation1 + $0x6] ss:$9 sm:$0xff] %v2652_v15  ;;  %v2666_v15 = vperm.slane %v11633_v59, 4 }
 0x74f   :  { %3348 = vst [vmem:[#allocation1 + $0x7] ss:$9 sm:$0xff] %v2653_v33  ;;  %3639 = vperm.xlu2 %5673, %v11671_v58   ;;  %3660 = vperm.xlu0 %5671, %v11672_v53   ;;  %v2667_v33 = vperm.slane %v11633_v59, 5  ;;  %v2671_v58 = vperm.slane %v11631_v30, 1  ;;  %v11682_v53 = vld [vmem:[#allocation106_spill] sm:$0xff]  ;;  %v2673_v59 = vperm.slane %v11631_v30, 3 }
 0x750   :  { %5536 = vmatmul.msk.f32.gmra.mxu1 %vm661_vm1, %v5456_v18  ;;  %v11683_v18 = vld [vmem:[#allocation17_spill] sm:$0xff] }
 0x756   :  { %v3349_v26 = vld [vmem:[#allocation1] sm:$0xff] }
 0x757   :  { %3350 = vst [vmem:[#allocation1] ss:$9 sm:$0xff] %v2654_v57  ;;  %3774 = vperm.xlu1 %5672, %v3349_v26   ;;  %3645 = vperm.xlu2 %5673, %v11674_v37   ;;  %v2670_v57 = vperm.slane %v11631_v30, 0  ;;  %v2672_v26 = vperm.slane %v11631_v30, 2  ;;  %v2678_v37 = vperm.slane %v11629_v36, 0 }
 0x758   :  { %3351 = vst [vmem:[#allocation1 + $0x1] ss:$9 sm:$0xff] %v2655_v0  ;;  %3669 = vperm.xlu0 %5671, %v11675_v24   ;;  %5537 = vmatmul.msk.f32.gmra.mxu1 %vm661_vm1, %v5457_v56  ;;  %v2679_v24 = vperm.slane %v11629_v36, 1 }
 0x759   :  { %3352 = vst [vmem:[#allocation1 + $0x2] ss:$9 sm:$0xff] %v2656_v9  ;;  %v2674_v9 = vperm.slane %v11631_v30, 4 }
 0x75a   :  { %3353 = vst [vmem:[#allocation1 + $0x3] ss:$9 sm:$0xff] %v2657_v17  ;;  %v2675_v17 = vperm.slane %v11631_v30, 5 }
 0x75b   :  { %3354 = vst [vmem:[#allocation1 + $0x4] ss:$9 sm:$0xff] %v2658_v44  ;;  %v2676_v44 = vperm.slane %v11631_v30, 6 }
 0x75c   :  { %3355 = vst [vmem:[#allocation1 + $0x5] ss:$9 sm:$0xff] %v2659_v55  ;;  %v2677_v55 = vperm.slane %v11631_v30, 7  ;;  %v11686_v30 = vld [vmem:[#allocation124_spill] sm:$0xff] }
 0x75d   :  { %3356 = vst [vmem:[#allocation1 + $0x6] ss:$9 sm:$0xff] %v2660_v32  ;;  %v11684_v32 = vld [vmem:[#allocation26_spill] sm:$0xff] }
 0x75e   :  { %3357 = vst [vmem:[#allocation1 + $0x7] ss:$9 sm:$0xff] %v2661_v47  ;;  %v11685_v47 = vld [vmem:[#allocation49_spill] sm:$0xff] }
 0x75f   :  { %3654 = vperm.xlu2 %5673, %v11677_v28   ;;  %v2682_v28 = vperm.slane %v11629_v36, 4 }
 0x760   :  { %3678 = vperm.xlu0 %5671, %v11678_v1   ;;  %5538 = vmatmul.msk.f32.gmra.mxu1 %vm661_vm1, %v5458_v63  ;;  %v2683_v1 = vperm.slane %v11629_v36, 5  ;;  %v2684_v63 = vperm.slane %v11629_v36, 6 }
 0x765   :  { %v9867_v13 = vld [vmem:[#allocation1] sm:$0xff] }
 0x766   :  { %3359 = vst [vmem:[#allocation1] ss:$9 sm:$0xff] %v2662_v3  ;;  %v2680_v3 = vperm.slane %v11629_v36, 2 }
 0x767   :  { %3360 = vst [vmem:[#allocation1 + $0x1] ss:$9 sm:$0xff] %v2663_v41  ;;  %3663 = vperm.xlu2 %5673, %v11680_v19   ;;  %v2681_v41 = vperm.slane %v11629_v36, 3 }
 0x768   :  { %3361 = vst [vmem:[#allocation1 + $0x2] ss:$9 sm:$0xff] %v2664_v25  ;;  %3687 = vperm.xlu0 %5671, %v11681_v27   ;;  %v11687_v25 = vld [vmem:[#allocation28_spill] sm:$0xff]  ;;  %v9922_v27 = vpop.f32.mrf.mxu1 }
 0x769   :  { %3362 = vst [vmem:[#allocation1 + $0x3] ss:$9 sm:$0xff] %v2665_v42  ;;  %v2685_v42 = vperm.slane %v11629_v36, 7  ;;  %v2688_v36 = vperm.slane %v11626_v2, 2 }
 0x76a   :  { %3363 = vst [vmem:[#allocation1 + $0x4] ss:$9 sm:$0xff] %v2666_v15  ;;  %v11688_v15 = vld [vmem:[#allocation38_spill] sm:$0xff] }
 0x76b   :  { %3364 = vst [vmem:[#allocation1 + $0x5] ss:$9 sm:$0xff] %v2667_v33  ;;  %v2686_v33 = vperm.slane %v11626_v2, 0 }
 0x76c   :  { %3365 = vst [vmem:[#allocation1 + $0x6] ss:$9 sm:$0xff] %v2668_v52  ;;  %v9911_v52 = vpop.f32.mrf.mxu3 }
 0x76d   :  { %3366 = vst [vmem:[#allocation1 + $0x7] ss:$9 sm:$0xff] %v2669_v46  ;;  %v2687_v46 = vperm.slane %v11626_v2, 1 }
 0x76e   :  { %4884 = vst.msk [vmem:[%s10939_s4 + $0x260] sm:$0xff] %vm11689_vm7, %v9911_v52 }
 0x76f   :  { %3672 = vperm.xlu2 %5673, %v11682_v53   ;;  %v2692_v53 = vperm.slane %v11626_v2, 6  ;;  %4845 = vst.msk [vmem:[%s10939_s4 + $0x128] sm:$0xff] %vm11691_vm5, %v9922_v27  ;;  %vm11708_vm5 = vcmp.eq.s32.totalorder %v6177_v22, %v9275_v23 }
 0x770   :  { %3696 = vperm.xlu0 %5671, %v11683_v18   ;;  %v9936_v18 = vpop.f32.mrf.mxu1 }
 0x771   :  { %4846 = vst.msk [vmem:[%s10939_s4 + $0x130] sm:$0xff] %vm11692_vm4, %v9936_v18 }
 0x774   :  { %v9886_v0 = vld [vmem:[#allocation1] sm:$0xff] }
 0x775   :  { %3368 = vst [vmem:[#allocation1] ss:$9 sm:$0xff] %v2670_v57  ;;  %v2690_v57 = vperm.slane %v11626_v2, 4 }
 0x776   :  { %3369 = vst [vmem:[#allocation1 + $0x1] ss:$9 sm:$0xff] %v2671_v58  ;;  %v11690_v58 = vld [vmem:[#allocation99_spill] sm:$0xff] }
 0x777   :  { %3370 = vst [vmem:[#allocation1 + $0x2] ss:$9 sm:$0xff] %v2672_v26  ;;  %3681 = vperm.xlu2 %5673, %v11684_v32   ;;  %v2691_v26 = vperm.slane %v11626_v2, 5  ;;  %v2697_v32 = vperm.slane %v11622_v62, 3 }
 0x778   :  { %3371 = vst [vmem:[#allocation1 + $0x3] ss:$9 sm:$0xff] %v2673_v59  ;;  %3705 = vperm.xlu0 %5671, %v11685_v47   ;;  %v2693_v59 = vperm.slane %v11626_v2, 7  ;;  %v9952_v47 = vpop.f32.mrf.mxu1 }
 0x779   :  { %3372 = vst [vmem:[#allocation1 + $0x4] ss:$9 sm:$0xff] %v2674_v9  ;;  %v2695_v9 = vperm.slane %v11622_v62, 1 }
 0x77a   :  { %3373 = vst [vmem:[#allocation1 + $0x5] ss:$9 sm:$0xff] %v2675_v17 }
 0x77b   :  { %3374 = vst [vmem:[#allocation1 + $0x6] ss:$9 sm:$0xff] %v2676_v44  ;;  %v2696_v44 = vperm.slane %v11622_v62, 2 }
 0x77c   :  { %3375 = vst [vmem:[#allocation1 + $0x7] ss:$9 sm:$0xff] %v2677_v55  ;;  %v2244_v55 = vcvt.f32.s32 %v9723_v51  ;;  %v2259_v51 = vcvt.f32.s32 %v9735_v11 }
 0x77d   :  { %4847 = vst.msk [vmem:[%s10939_s4 + $0x138] sm:$0xff] %vm11695_vm10, %v9952_v47 }
 0x77f   :  { %3690 = vperm.xlu2 %5673, %v11686_v30   ;;  %v2701_v30 = vperm.slane %v11622_v62, 7 }
 0x780   :  { %3714 = vperm.xlu0 %5671, %v11687_v25  }
 0x783   :  { %v3376_v56 = vld [vmem:[#allocation1] sm:$0xff] }
 0x784   :  { %3377 = vst [vmem:[#allocation1] ss:$9 sm:$0xff] %v2678_v37  ;;  %3783 = vperm.xlu1 %5672, %v3376_v56   ;;  %v2698_v37 = vperm.slane %v11622_v62, 4  ;;  %v2700_v56 = vperm.slane %v11622_v62, 6 }
 0x785   :  { %3378 = vst [vmem:[#allocation1 + $0x1] ss:$9 sm:$0xff] %v2679_v24 }
 0x786   :  { %3379 = vst [vmem:[#allocation1 + $0x2] ss:$9 sm:$0xff] %v2680_v3  ;;  %v2245_v3 = vshll.u32 %v2244_v55, 16  ;;  %v11701_v55 = vld [vmem:[#allocation113_spill] sm:$0xff] }
 0x787   :  { %3380 = vst [vmem:[#allocation1 + $0x3] ss:$9 sm:$0xff] %v2681_v41  ;;  %3699 = vperm.xlu2 %5673, %v11688_v15   ;;  %v2702_v15 = vperm.slane %v11619_v61, 0 }
 0x788   :  { %3381 = vst [vmem:[#allocation1 + $0x4] ss:$9 sm:$0xff] %v2682_v28  ;;  %3723 = vperm.xlu0 %5671, %v9087_v4   ;;  %v2689_v4 = vperm.slane %v11626_v2, 3  ;;  %v2694_v2 = vperm.slane %v11622_v62, 0 }
 0x789   :  { %3382 = vst [vmem:[#allocation1 + $0x5] ss:$9 sm:$0xff] %v2683_v1 }
 0x78a   :  { %3383 = vst [vmem:[#allocation1 + $0x6] ss:$9 sm:$0xff] %v2684_v63  ;;  %v3634_v63 = vpop.permute.xlu1 %3633 }
 0x78b   :  { %3384 = vst [vmem:[#allocation1 + $0x7] ss:$9 sm:$0xff] %v2685_v42 }
 0x78d   :  { %v9968_v11 = vpop.f32.mrf.mxu1 }
 0x78e   :  { %4848 = vst.msk [vmem:[%s10939_s4 + $0x140] sm:$0xff] %vm11697_vm8, %v9968_v11 }
 0x78f   :  { %3708 = vperm.xlu2 %5673, %v11690_v58   ;;  %v2707_v58 = vperm.slane %v11619_v61, 5 }
 0x790   :  { %3732 = vperm.xlu0 %5671, %v9411_v21   ;;  %v11693_v21 = vld [vmem:[#allocation64_spill] sm:$0xff] }
 0x792   :  { %v9914_v19 = vld [vmem:[#allocation1] sm:$0xff] }
 0x793   :  { %3386 = vst [vmem:[#allocation1] ss:$9 sm:$0xff] %v2686_v33  ;;  %v2703_v33 = vperm.slane %v11619_v61, 1 }
 0x794   :  { %3387 = vst [vmem:[#allocation1 + $0x1] ss:$9 sm:$0xff] %v2687_v46 }
 0x795   :  { %3388 = vst [vmem:[#allocation1 + $0x2] ss:$9 sm:$0xff] %v2688_v36 }
 0x796   :  { %3389 = vst [vmem:[#allocation1 + $0x3] ss:$9 sm:$0xff] %v2689_v4  ;;  %v2704_v4 = vperm.slane %v11619_v61, 2 }
 0x797   :  { %3390 = vst [vmem:[#allocation1 + $0x4] ss:$9 sm:$0xff] %v2690_v57  ;;  %3717 = vperm.xlu2 %5673, %v11693_v21   ;;  %v2709_v21 = vperm.slane %v11619_v61, 7 }
 0x798   :  { %3391 = vst [vmem:[#allocation1 + $0x5] ss:$9 sm:$0xff] %v2691_v26  ;;  %3741 = vperm.xlu0 %5671, %v9578_v14   ;;  %v2699_v14 = vperm.slane %v11622_v62, 5  ;;  %v9977_v62 = vpop.f32.mrf.mxu3  ;;  %v2708_v26 = vperm.slane %v11619_v61, 6 }
 0x799   :  { %3392 = vst [vmem:[#allocation1 + $0x6] ss:$9 sm:$0xff] %v2692_v53  ;;  %v10013_v53 = vadd.s32 4294967288, %v6177_v22 }
 0x79a   :  { %3393 = vst [vmem:[#allocation1 + $0x7] ss:$9 sm:$0xff] %v2693_v59 }
 0x79b   :  { %4885 = vst.msk [vmem:[%s10939_s4 + $0x268] sm:$0xff] %vm11698_vm11, %v9977_v62  ;;  %vm3888_vm11 = vcmask 392512  }
 0x79d   :  { %v10008_v57 = vpop.f32.mrf.mxu1 }
 0x79e   :  { %v2242_v24 = vpop.xlane.xlu0 %2241 }
 0x79f   :  { %3726 = vperm.xlu2 %5673, %v9298_v29   ;;  %v2243_v41 = vcvt.f32.s32 %v2242_v24  ;;  %v2260_v29 = vshll.u32 %v2259_v51, 16 }
 0x7a0   :  { %3750 = vperm.xlu0 %5671, %v9633_v38  }
 0x7a1   :  { %v9947_v17 = vld [vmem:[#allocation1] sm:$0xff]  ;;  %v9961_v28 = vadd.s32 %v2245_v3, %v2243_v41 }
 0x7a2   :  { %3395 = vst [vmem:[#allocation1] ss:$9 sm:$0xff] %v2694_v2  ;;  %v2257_v25 = vpop.xlane.xlu2 %2256  ;;  %v10025_v2 = vpop.permute.xlu1 %3642  ;;  %v11704_v3 = vld [vmem:[#allocation111_spill] sm:$0xff] }
 0x7a3   :  { %3396 = vst [vmem:[#allocation1 + $0x1] ss:$9 sm:$0xff] %v2695_v9  ;;  %v2258_v1 = vcvt.f32.s32 %v2257_v25  ;;  %vm4149_vm13 = vcmp.eq.s32.totalorder %v6177_v22, %v9961_v28  ;;  %v10034_v9 = vadd.s32 4294967272, %v6177_v22 }
 0x7a4   :  { %3397 = vst [vmem:[#allocation1 + $0x2] ss:$9 sm:$0xff] %v2696_v44  ;;  %v5487_v42 = vsel %vm4149_vm13, 1.0, %v11371_v8 }
 0x7a5   :  { %3398 = vst [vmem:[#allocation1 + $0x3] ss:$9 sm:$0xff] %v2697_v32  ;;  %v9970_v38 = vadd.s32 %v2260_v29, %v2258_v1  ;;  %5567 = vmatmul.msk.f32.gmra.mxu3 %vm661_vm1, %v5487_v42  ;;  %v10065_v25 = vpop.f32.mrf.mxu1  ;;  %v5679_v29 = vld [vmem:[%s10937_s0 + $0x68] sm:$0xff] }
 0x7a6   :  { %3399 = vst [vmem:[#allocation1 + $0x4] ss:$9 sm:$0xff] %v2698_v37  ;;  %v3871_v37 = vperm.slane %v3634_v63, %v10013_v53  ;;  %v11707_v63 = vld [vmem:[#allocation51_spill] sm:$0xff] }
 0x7a7   :  { %3400 = vst [vmem:[#allocation1 + $0x5] ss:$9 sm:$0xff] %v2699_v14  ;;  %3735 = vperm.xlu2 %5673, %v9459_v40   ;;  %vm4150_vm15 = vcmp.eq.s32.totalorder %v6177_v22, %v9970_v38  ;;  %v2705_v40 = vperm.slane %v11619_v61, 3  ;;  %v5032_v42 = vsub.f32 %v11707_v63, %v5679_v29  ;;  %v2716_v29 = vperm.slane %v11617_v43, 6 }
 0x7a8   :  { %3401 = vst [vmem:[#allocation1 + $0x6] ss:$9 sm:$0xff] %v2700_v56  ;;  %3759 = vperm.xlu0 %5671, %v9668_v50   ;;  %5634 = vmatpush.msk.msrb.mxu2 %vm4150_vm15, %v11588_v54  ;;  %v2706_v50 = vperm.slane %v11619_v61, 4  ;;  %v5488_v59 = vsel %vm4150_vm15, 1.0, %v11371_v8  ;;  %v5678_v56 = vld [vmem:[%s10937_s0 + $0x70] sm:$0xff]  ;;  %v2717_v63 = vperm.slane %v11617_v43, 7 }
 0x7a9   :  { %11694 = vst [vmem:[#allocation93_spill] sm:$0xff] %v9961_v28  ;;  %v5033_v51 = vsub.f32 %v11704_v3, %v5678_v56  ;;  %v2715_v3 = vperm.slane %v11617_v43, 5 }
 0x7aa   :  { %3402 = vst [vmem:[#allocation1 + $0x7] ss:$9 sm:$0xff] %v2701_v30  ;;  %v3637_v36 = vpop.permute.xlu2 %3636  ;;  %5635 = vmatpush.msk.msrb.mxu2 %vm4149_vm13, %v11588_v54  ;;  %vm3884_vm13 = vcmask 326912  }
 0x7ab   :  { %11696 = vst [vmem:[#allocation47_spill] sm:$0xff] %v9970_v38 }
 0x7ac   :  { %5636 = vmatpush.msk.msrb.mxu2 %vm11699_vm6, %v11588_v54  ;;  %vm3892_vm6 = vcmask 458112  }
 0x7ad   :  { %5568 = vmatmul.msk.f32.gmra.mxu3 %vm661_vm1, %v5488_v59  ;;  %vm11702_vm1 = vmmov %vm11692_vm4  ;;  %vm11710_vm4 = vcmp.eq.s32.totalorder %v6177_v22, %v9243_v12  ;;  %v3649_v59 = vpop.permute.xlu1 %3648 }
 0x7ae   :  { %5637 = vmatpush.msk.msrb.mxu2 %vm11700_vm9, %v11588_v54  ;;  %4849 = vst.msk [vmem:[%s10939_s4 + $0x148] sm:$0xff] %vm11702_vm1, %v10008_v57  ;;  %vm11706_vm7 = vmmov %vm11702_vm1  ;;  %vm3896_vm1 = vcmask 523712  }
 0x7af   :  { %3744 = vperm.xlu2 %5673, %v9597_v60   ;;  %v10037_v60 = vadd.s32 4294967280, %v6177_v22  ;;  %4850 = vst.msk [vmem:[%s10939_s4 + $0x150] sm:$0xff] %vm11706_vm7, %v10065_v25 }
 0x7b0   :  { %3768 = vperm.xlu0 %5671, %v9760_v20   ;;  %v5677_v20 = vld [vmem:[%s10937_s0 + $0x78] sm:$0xff]  ;;  %5638 = vmatpush.msk.msrb.mxu2 %vm11703_vm3, %v11588_v54  ;;  %vm11723_vm3 = vmmov %vm11706_vm7 }
 0x7b1   :  { %v3403_v46 = vld [vmem:[#allocation1] sm:$0xff]  ;;  %v3631_v61 = vpop.permute.xlu0 %3630  ;;  %v5034_v32 = vsub.f32 %v11701_v55, %v5677_v20  ;;  %v3875_v24 = vperm.slane %v3637_v36, %v10037_v60  ;;  %v2711_v36 = vperm.slane %v11617_v43, 1  ;;  %v11712_v55 = vld [vmem:[#allocation4_spill] sm:$0xff] }
 0x7b2   :  { %3404 = vst [vmem:[#allocation1] ss:$9 sm:$0xff] %v2702_v15  ;;  %3792 = vperm.xlu1 %5672, %v3403_v46   ;;  %v3640_v44 = vpop.permute.xlu2 %3639  ;;  %v3869_v14 = vperm.slane %v3631_v61, %v6177_v22  ;;  %5639 = vmatpush.msk.msrb.mxu2 %vm11705_vm14, %v11588_v54  ;;  %v2710_v46 = vperm.slane %v11617_v43, 0  ;;  %v5681_v61 = vld [vmem:[%s10937_s0 + $0x58] sm:$0xff]  ;;  %vm11713_vm10 = vcmp.eq.s32.totalorder %v6177_v22, %v11712_v55 }
 0x7b3   :  { %3405 = vst [vmem:[#allocation1 + $0x1] ss:$9 sm:$0xff] %v2703_v33  ;;  %v3879_v30 = vperm.slane %v3640_v44, %v10034_v9  ;;  %v5114_v15 = vmul.f32 %v5034_v32, %v5034_v32  ;;  %v11711_v44 = vld [vmem:[#allocation37_spill] sm:$0xff]  ;;  %v5112_v32 = vmul.f32 %v5032_v42, %v5032_v42  ;;  %v10128_v42 = vadd.s32 4294967256, %v6177_v22 }
 0x7b4   :  { %3406 = vst [vmem:[#allocation1 + $0x2] ss:$9 sm:$0xff] %v2704_v4  ;;  %v3873_v41 = vsel %vm3872_vm0, %v3871_v37, %v3869_v14  ;;  %5640 = vmatpush.msk.msrb.mxu2 %vm11708_vm5, %v11588_v54  ;;  %v5680_v4 = vld [vmem:[%s10937_s0 + $0x60] sm:$0xff]  ;;  %v5030_v20 = vsub.f32 %v11711_v44, %v5681_v61  ;;  %v2714_v37 = vperm.slane %v11617_v43, 4  ;;  %v5682_v14 = vld [vmem:[%s10937_s0 + $0x50] sm:$0xff]  ;;  %vm3900_vm5 = vcmask 589312  }
 0x7b5   :  { %3407 = vst [vmem:[#allocation1 + $0x3] ss:$9 sm:$0xff] %v2705_v40  ;;  %v3877_v1 = vsel %vm3876_vm2, %v3875_v24, %v3873_v41  ;;  %4952 = vmatmul.f32.vlgmr.msrb.gmra.mxu3 %v11588_v54  ;;  %v11709_v40 = vld [vmem:[#allocation16_spill] sm:$0xff]  ;;  %v11714_v24 = vld [vmem:[#allocation69_spill] sm:$0xff]  ;;  %v10119_v41 = vadd.s32 4294967248, %v6177_v22  ;;  %v11720_v61 = vld [vmem:[#allocation6_spill] sm:$0xff] }
 0x7b6   :  { %3408 = vst [vmem:[#allocation1 + $0x4] ss:$9 sm:$0xff] %v2706_v50  ;;  %v3881_v33 = vsel %vm3880_vm12, %v3879_v30, %v3877_v1  ;;  %v5031_v50 = vsub.f32 %v11709_v40, %v5680_v4  ;;  %5641 = vmatpush.msk.msrb.mxu2 %vm11710_vm4, %v11588_v54  ;;  %5180 = vmatpush.msrb.mxu3 %v5114_v15  ;;  %v11715_v30 = vld [vmem:[#allocation83_spill] sm:$0xff]  ;;  %v11717_v15 = vld [vmem:[#allocation84_spill] sm:$0xff] }
 0x7b7   :  { %3409 = vst [vmem:[#allocation1 + $0x5] ss:$9 sm:$0xff] %v2707_v58  ;;  %3753 = vperm.xlu2 %5673, %v9643_v48   ;;  %v5113_v48 = vmul.f32 %v5033_v51, %v5033_v51  ;;  %v5029_v56 = vsub.f32 %v11714_v24, %v5682_v14  ;;  %vm11716_vm8 = vcmp.eq.s32.totalorder %v6177_v22, %v11715_v30  ;;  %v11724_v14 = vld [vmem:[#allocation110_spill] sm:$0xff] }
 0x7b8   :  { %3410 = vst [vmem:[#allocation1 + $0x6] ss:$9 sm:$0xff] %v2708_v26  ;;  %3777 = vperm.xlu0 %5671, %v9867_v13   ;;  %v10094_v26 = vadd.s32 4294967264, %v6177_v22  ;;  %v2712_v13 = vperm.slane %v11617_v43, 2  ;;  %5642 = vmatpush.msk.msrb.mxu2 %vm11713_vm10, %v11588_v54  ;;  %v5111_v1 = vmul.f32 %v5031_v50, %v5031_v50  ;;  %v5110_v50 = vmul.f32 %v5030_v20, %v5030_v20 }
 0x7b9   :  { %3411 = vst [vmem:[#allocation1 + $0x7] ss:$9 sm:$0xff] %v2709_v21  ;;  %v2713_v21 = vperm.slane %v11617_v43, 3  ;;  %5181 = vmatpush.msrb.mxu3 %v5113_v48  ;;  %v11718_v43 = vld [vmem:[#allocation31_spill] sm:$0xff]  ;;  %v10140_v48 = vadd.s32 4294967240, %v6177_v22  ;;  %v3891_v20 = vperm.slane %v3649_v59, %v10119_v41  ;;  %v5685_v59 = vld [vmem:[%s10937_s0 + $0x38] sm:$0xff] }
 0x7ba   :  { %v3883_v51 = vperm.slane %v10025_v2, %v10094_v26  ;;  %5643 = vmatpush.msk.msrb.mxu2 %vm11716_vm8, %v11588_v54  ;;  %v5683_v2 = vld [vmem:[%s10937_s0 + $0x48] sm:$0xff]  ;;  %v3646_v40 = vpop.permute.xlu2 %3645  ;;  %vm11719_vm15 = vcmp.eq.s32.totalorder %v6177_v22, %v11718_v43  ;;  %v5026_v24 = vsub.f32 %v11724_v14, %v5685_v59  ;;  %v5689_v59 = vld [vmem:[%s10937_s0 + $0xf0] sm:$0xff]  ;;  %vm3904_vm10 = vcmask 654912  }
 0x7bb   :  { %5182 = vmatpush.msrb.mxu3 %v5112_v32  ;;  %v11721_v32 = vld [vmem:[#allocation74_spill] sm:$0xff]  ;;  %v11732_v14 = vld [vmem:[#allocation36_spill] sm:$0xff]  ;;  %vm11739_vm8 = vcmp.eq.s32.totalorder %v6177_v22, %v11738_v7 }
 0x7bc   :  { %v3885_v4 = vsel %vm3884_vm13, %v3883_v51, %v3881_v33  ;;  %5644 = vmatpush.msk.msrb.mxu2 %vm11719_vm15, %v11588_v54  ;;  %v5684_v33 = vld [vmem:[%s10937_s0 + $0x40] sm:$0xff]  ;;  %vm11722_vm9 = vcmp.eq.s32.totalorder %v6177_v22, %v11721_v32  ;;  %vm3908_vm15 = vcmask 720512  }
 0x7bd   :  { %5183 = vmatpush.msrb.mxu3 %v5111_v1  ;;  %v5027_v44 = vsub.f32 %v11720_v61, %v5684_v33  ;;  %v2718_v1 = vperm.slane %v11615_v45, 0  ;;  %v11729_v33 = vld [vmem:[#allocation121_spill] sm:$0xff] }
 0x7be   :  { %5645 = vmatpush.msk.msrb.mxu2 %vm11722_vm9, %v11588_v54  ;;  %4992 = vmatmul.f32.vlgmr.msra.gmra.mxu3 %v11588_v54  ;;  %vm11730_vm7 = vcmp.eq.s32.totalorder %v6177_v22, %v11729_v33  ;;  %vm3912_vm9 = vcmask 786112  }
 0x7bf   :  { %3762 = vperm.xlu2 %5673, %v9678_v34   ;;  %5184 = vmatpush.msrb.mxu3 %v5110_v50  ;;  %v11728_v50 = vld [vmem:[#allocation109_spill] sm:$0xff]  ;;  %v5107_v61 = vmul.f32 %v5027_v44, %v5027_v44  ;;  %v5690_v44 = vld [vmem:[%s10937_s0 + $0x28] sm:$0xff] }
 0x7c0   :  { %v10091_v58 = vld [vmem:[#allocation1] sm:$0xff]  ;;  %3786 = vperm.xlu0 %5671, %v9914_v19  }
 0x7c1   :  { %3413 = vst [vmem:[#allocation1] ss:$9 sm:$0xff] %v2710_v46  ;;  %v5028_v46 = vsub.f32 %v11717_v15, %v5683_v2  ;;  %v3658_v15 = vpop.permute.xlu1 %3657 }
 0x7c2   :  { %3414 = vst [vmem:[#allocation1 + $0x1] ss:$9 sm:$0xff] %v2711_v36  ;;  %v3652_v36 = vpop.permute.xlu0 %3651  ;;  %v3655_v38 = vpop.permute.xlu2 %3654 }
 0x7c3   :  { %3415 = vst [vmem:[#allocation1 + $0x2] ss:$9 sm:$0xff] %v2712_v13  ;;  %v3887_v13 = vperm.slane %v3646_v40, %v10128_v42  ;;  %v3895_v34 = vperm.slane %v3652_v36, %v10140_v48  ;;  %v5108_v51 = vmul.f32 %v5028_v46, %v5028_v46  ;;  %v5687_v40 = vld [vmem:[%s10937_s0 + $0x30] sm:$0xff]  ;;  %v10185_v46 = vadd.s32 4294967224, %v6177_v22 }
 0x7c4   :  { %3416 = vst [vmem:[#allocation1 + $0x3] ss:$9 sm:$0xff] %v2713_v21  ;;  %v10143_v21 = vpop.f32.mrf.mxu1 }
 0x7c5   :  { %3417 = vst [vmem:[#allocation1 + $0x4] ss:$9 sm:$0xff] %v2714_v37  ;;  %v5109_v37 = vmul.f32 %v5029_v56, %v5029_v56  ;;  %v3889_v19 = vsel %vm3888_vm11, %v3887_v13, %v3885_v4  ;;  %v2719_v4 = vperm.slane %v11615_v45, 1  ;;  %v5025_v13 = vsub.f32 %v11728_v50, %v5687_v40  ;;  %v5691_v40 = vld [vmem:[%s10937_s0 + $0xe8] sm:$0xff] }
 0x7c6   :  { %3418 = vst [vmem:[#allocation1 + $0x5] ss:$9 sm:$0xff] %v2715_v3  ;;  %v3893_v56 = vsel %vm3892_vm6, %v3891_v20, %v3889_v19  ;;  %v11725_v3 = vld [vmem:[#allocation123_spill] sm:$0xff]  ;;  %v2720_v20 = vperm.slane %v11615_v45, 2  ;;  %v11734_v50 = vld [vmem:[#allocation12_spill] sm:$0xff] }
 0x7c7   :  { %3419 = vst [vmem:[#allocation1 + $0x6] ss:$9 sm:$0xff] %v2716_v29  ;;  %vm11726_vm14 = vcmp.eq.s32.totalorder %v6177_v22, %v11725_v3  ;;  %5185 = vmatpush.msrb.mxu3 %v5109_v37  ;;  %v5686_v29 = vld [vmem:[%s10937_s0 + $0xf8] sm:$0xff]  ;;  %v3897_v36 = vsel %vm3896_vm1, %v3895_v34, %v3893_v56  ;;  %v5688_v37 = vld [vmem:[%s10937_s0 + $0x20] sm:$0xff]  ;;  %v5049_v56 = vsub.f32 %v11732_v14, %v5689_v59 }
 0x7c8   :  { %3420 = vst [vmem:[#allocation1 + $0x7] ss:$9 sm:$0xff] %v2717_v63  ;;  %5646 = vmatpush.msk.msrb.mxu2 %vm11726_vm14, %v11588_v54  ;;  %v11727_v63 = vld [vmem:[#allocation19_spill] sm:$0xff]  ;;  %v11731_v34 = vld [vmem:[#allocation101_spill] sm:$0xff]  ;;  %v5106_v14 = vmul.f32 %v5026_v24, %v5026_v24  ;;  %3771 = vperm.xlu2 %5673, %v9810_v39   ;;  %v2721_v39 = vperm.slane %v11615_v45, 3  ;;  %vm11747_vm14 = vcmask 261120  }
 0x7c9   :  { %4851 = vst.msk [vmem:[%s10939_s4 + $0x158] sm:$0xff] %vm11723_vm3, %v10143_v21  ;;  %v5050_v2 = vsub.f32 %v11727_v63, %v5686_v29  ;;  %5186 = vmatpush.msrb.mxu3 %v5108_v51  ;;  %v5023_v19 = vsub.f32 %v11731_v34, %v5688_v37  ;;  %v10201_v29 = vadd.s32 4294967232, %v6177_v22  ;;  %v11733_v51 = vld [vmem:[#allocation104_spill] sm:$0xff]  ;;  %v5048_v37 = vsub.f32 %v11734_v50, %v5691_v40  ;;  %v11735_v59 = vld [vmem:[#allocation41_spill] sm:$0xff] }
 0x7ca   :  { %5647 = vmatpush.msk.msrb.mxu2 %vm11730_vm7, %v11588_v54  ;;  %v5024_v63 = vsub.f32 %v11733_v51, %v5690_v44  ;;  %v3661_v34 = vpop.permute.xlu0 %3660  ;;  %vm11736_vm4 = vcmp.eq.s32.totalorder %v6177_v22, %v11735_v59  ;;  %v10218_v44 = vadd.s32 4294967216, %v6177_v22  ;;  %3795 = vperm.xlu0 %5671, %v10091_v58   ;;  %v11737_v24 = vld [vmem:[#allocation125_spill] sm:$0xff]  ;;  %v3903_v50 = vperm.slane %v3658_v15, %v10185_v46  ;;  %vm11749_vm7 = vmmov %vm11747_vm14 }
 0x7cb   :  { %5187 = vmatpush.msrb.mxu3 %v5107_v61  ;;  %v5130_v8 = vmul.f32 %v5050_v2, %v5050_v2  ;;  %v3899_v51 = vperm.slane %v3655_v38, %v10201_v29  ;;  %v5692_v61 = vld [vmem:[%s10937_s0 + $0xe0] sm:$0xff]  ;;  %v5105_v38 = vmul.f32 %v5025_v13, %v5025_v13  ;;  %v5129_v58 = vmul.f32 %v5049_v56, %v5049_v56  ;;  %v5693_v15 = vld [vmem:[%s10937_s0 + $0x18] sm:$0xff] }
 0x7cc   :  { %5648 = vmatpush.msk.msrb.mxu2 %vm11736_vm4, %v11588_v54  ;;  %v10221_v40 = vpop.f32.mrf.mxu1  ;;  %v5047_v2 = vsub.f32 %v11737_v24, %v5692_v61  ;;  %v3907_v49 = vperm.slane %v3661_v34, %v10218_v44  ;;  %v11740_v61 = vld [vmem:[#allocation97_spill] sm:$0xff]  ;;  %v5128_v34 = vmul.f32 %v5048_v37, %v5048_v37  ;;  %v2725_v37 = vperm.slane %v11615_v45, 7 }
 0x7cd   :  { %5188 = vmatpush.msrb.mxu3 %v5106_v14  ;;  %v3901_v10 = vsel %vm3900_vm5, %v3899_v51, %v3897_v36  ;;  %v5022_v24 = vsub.f32 %v11740_v61, %v5693_v15  ;;  %v5104_v14 = vmul.f32 %v5024_v63, %v5024_v63  ;;  %v5694_v36 = vld [vmem:[%s10937_s0 + $0xd8] sm:$0xff]  ;;  %v2724_v15 = vperm.slane %v11615_v45, 6  ;;  %4852 = vst.msk [vmem:[%s10939_s4 + $0x160] sm:$0xff] %vm11747_vm14, %v10221_v40 }
 0x7ce   :  { %5649 = vmatpush.msk.msrb.mxu2 %vm11739_vm8, %v11588_v54  ;;  %v3905_v13 = vsel %vm3904_vm10, %v3903_v50, %v3901_v10  ;;  %v5695_v10 = vld [vmem:[%s10937_s0 + $0x10] sm:$0xff]  ;;  %v10255_v50 = vadd.s32 4294967200, %v6177_v22  ;;  %v5127_v61 = vmul.f32 %v5047_v2, %v5047_v2  ;;  %v5698_v2 = vld [vmem:[%s10937_s0 + $0xc8] sm:$0xff]  ;;  %vm3916_vm3 = vcmask 851712  }
 0x7cf   :  { %v10215_v28 = vld [vmem:[#allocation1] sm:$0xff]  ;;  %5189 = vmatpush.msrb.mxu3 %v5105_v38  ;;  %v3909_v51 = vsel %vm3908_vm15, %v3907_v49, %v3905_v13  ;;  %v5103_v38 = vmul.f32 %v5023_v19, %v5023_v19  ;;  %v5696_v49 = vld [vmem:[%s10937_s0 + $0xd0] sm:$0xff]  ;;  %v3667_v13 = vpop.permute.xlu1 %3666  ;;  %vm11238_vm4 = vcmask 917312   ;;  %vm11237_vm8 = vcmask 982912  }
 0x7d0   :  { %3422 = vst [vmem:[#allocation1] ss:$9 sm:$0xff] %v2718_v1  ;;  %5200 = vmatpush.msra.mxu2 %v5130_v8  ;;  %v2722_v1 = vperm.slane %v11615_v45, 4  ;;  %v11741_v8 = vld [vmem:[#allocation89_spill] sm:$0xff]  ;;  %v11744_v19 = vld [vmem:[#allocation7_spill] sm:$0xff]  ;;  %3780 = vperm.xlu2 %5673, %v9886_v0   ;;  %vm11233_vm14 = vcmask 1048512  }
 0x7d1   :  { %3423 = vst [vmem:[#allocation1 + $0x1] ss:$9 sm:$0xff] %v2719_v4  ;;  %v2723_v4 = vperm.slane %v11615_v45, 5  ;;  %v5046_v56 = vsub.f32 %v11741_v8, %v5694_v36  ;;  %5190 = vmatpush.msrb.mxu3 %v5104_v14  ;;  %v10263_v36 = vadd.s32 4294967208, %v6177_v22  ;;  %v3664_v45 = vpop.permute.xlu2 %3663  ;;  %v5102_v8 = vmul.f32 %v5022_v24, %v5022_v24  ;;  %v5699_v24 = vld [vmem:[%s10937_s0] sm:$0xff] }
 0x7d2   :  { %3424 = vst [vmem:[#allocation1 + $0x2] ss:$9 sm:$0xff] %v2720_v20  ;;  %5201 = vmatpush.msra.mxu2 %v5129_v58  ;;  %v11742_v20 = vld [vmem:[#allocation76_spill] sm:$0xff]  ;;  %v5700_v0 = vld [vmem:[%s10937_s0 + $0xc0] sm:$0xff] }
 0x7d3   :  { %3425 = vst [vmem:[#allocation1 + $0x3] ss:$9 sm:$0xff] %v2721_v39  ;;  %v5021_v63 = vsub.f32 %v11742_v20, %v5695_v10  ;;  %v11743_v39 = vld [vmem:[#allocation92_spill] sm:$0xff]  ;;  %5191 = vmatpush.msrb.mxu3 %v5103_v38  ;;  %v5126_v20 = vmul.f32 %v5046_v56, %v5046_v56 }
 0x7d4   :  { %3426 = vst [vmem:[#allocation1 + $0x4] ss:$9 sm:$0xff] %v2722_v1  ;;  %v5045_v58 = vsub.f32 %v11743_v39, %v5696_v49  ;;  %5202 = vmatpush.msra.mxu2 %v5128_v34  ;;  %v5697_v1 = vld [vmem:[%s10937_s0 + $0x8] sm:$0xff]  ;;  %v3911_v34 = vperm.slane %v3664_v45, %v10263_v36  ;;  %v10274_v49 = vpop.f32.mrf.mxu1  ;;  %v3915_v39 = vperm.slane %v3667_v13, %v10255_v50  ;;  %v5701_v45 = vld [vmem:[%s10937_s0 + $0xb8] sm:$0xff] }
 0x7d5   :  { %3427 = vst [vmem:[#allocation1 + $0x5] ss:$9 sm:$0xff] %v2723_v4  ;;  %v5020_v14 = vsub.f32 %v11744_v19, %v5697_v1  ;;  %v11745_v4 = vld [vmem:[#allocation88_spill] sm:$0xff]  ;;  %5192 = vmatpush.msrb.mxu3 %v5102_v8  ;;  %v5101_v56 = vmul.f32 %v5021_v63, %v5021_v63 }
 0x7d6   :  { %3428 = vst [vmem:[#allocation1 + $0x6] ss:$9 sm:$0xff] %v2724_v15  ;;  %v5044_v10 = vsub.f32 %v11745_v4, %v5698_v2  ;;  %5203 = vmatpush.msra.mxu2 %v5127_v61  ;;  %v11746_v15 = vld [vmem:[#allocation75_spill] sm:$0xff]  ;;  %v5125_v1 = vmul.f32 %v5045_v58, %v5045_v58  ;;  %v3913_v19 = vsel %vm3912_vm9, %v3911_v34, %v3909_v51  ;;  %v11750_v8 = vld [vmem:[#allocation56_spill] sm:$0xff] }
 0x7d7   :  { %3429 = vst [vmem:[#allocation1 + $0x7] ss:$9 sm:$0xff] %v2725_v37  ;;  %v5019_v38 = vsub.f32 %v11746_v15, %v5699_v24  ;;  %v11748_v37 = vld [vmem:[#allocation50_spill] sm:$0xff]  ;;  %v10298_v13 = vsel %vm3916_vm3, %v3915_v39, %v3913_v19  ;;  %5193 = vmatpush.msrb.mxu3 %v5101_v56  ;;  %v5100_v63 = vmul.f32 %v5020_v14, %v5020_v14  ;;  %v11751_v4 = vld [vmem:[#allocation71_spill] sm:$0xff]  ;;  %v11752_v24 = vld [vmem:[#allocation44_spill] sm:$0xff] }
 0x7d8   :  { %v5043_v61 = vsub.f32 %v11748_v37, %v5700_v0  ;;  %4853 = vst.msk [vmem:[%s10939_s4 + $0x168] sm:$0xff] %vm11749_vm7, %v10274_v49  ;;  %5204 = vmatpush.msra.mxu2 %v5126_v20  ;;  %v5042_v58 = vsub.f32 %v11750_v8, %v5701_v45  ;;  %v5124_v51 = vmul.f32 %v5044_v10, %v5044_v10  ;;  %v2726_v34 = vperm.slane %v11751_v4, 0  ;;  %v5702_v20 = vld [vmem:[%s10937_s0 + $0xb0] sm:$0xff]  ;;  %v5703_v10 = vld [vmem:[%s10937_s0 + $0xa8] sm:$0xff] }
 0x7d9   :  { %5194 = vmatpush.msrb.mxu3 %v5100_v63  ;;  %v5099_v2 = vmul.f32 %v5019_v38, %v5019_v38  ;;  %v5041_v15 = vsub.f32 %v11752_v24, %v5702_v20  ;;  %v2727_v39 = vperm.slane %v11751_v4, 1  ;;  %v2728_v0 = vperm.slane %v11751_v4, 2  ;;  %v11753_v38 = vld [vmem:[#allocation43_spill] sm:$0xff]  ;;  %3789 = vperm.xlu2 %5673, %v9947_v17   ;;  %v11754_v45 = vld [vmem:[#allocation29_spill] sm:$0xff] }
 0x7da   :  { %5205 = vmatpush.msra.mxu2 %v5125_v1  ;;  %v5123_v14 = vmul.f32 %v5043_v61, %v5043_v61  ;;  %v5040_v37 = vsub.f32 %v11753_v38, %v5703_v10  ;;  %v5122_v1 = vmul.f32 %v5042_v58, %v5042_v58  ;;  %v2729_v19 = vperm.slane %v11751_v4, 3  ;;  %v5704_v63 = vld [vmem:[%s10937_s0 + $0xa0] sm:$0xff]  ;;  %v5705_v17 = vld [vmem:[%s10937_s0 + $0x98] sm:$0xff]  ;;  %v5707_v10 = vld [vmem:[%s10937_s0 + $0x88] sm:$0xff] }
 0x7db   :  { %5195 = vmatpush.msrb.mxu3 %v5099_v2  ;;  %v2730_v61 = vperm.slane %v11751_v4, 4  ;;  %v5039_v8 = vsub.f32 %v11754_v45, %v5704_v63  ;;  %v2731_v58 = vperm.slane %v11751_v4, 5  ;;  %v2732_v2 = vperm.slane %v11751_v4, 6  ;;  %v11757_v38 = vld [vmem:[#allocation116_spill] sm:$0xff] }
 0x7dc   :  { %5206 = vmatpush.msra.mxu2 %v5124_v51  ;;  %5196 = vmatmul.f32.vlgmr.msrb.gmra.mxu3 %v11588_v54  ;;  %v5121_v51 = vmul.f32 %v5041_v15, %v5041_v15  ;;  %v5120_v24 = vmul.f32 %v5040_v37, %v5040_v37  ;;  %v5706_v15 = vld [vmem:[%s10937_s0 + $0x90] sm:$0xff] }
 0x7de   :  { %v3430_v56 = vld [vmem:[#allocation1] sm:$0xff]  ;;  %5207 = vmatpush.msra.mxu2 %v5123_v14  ;;  %v2733_v14 = vperm.slane %v11751_v4, 7 }
 0x7df   :  { %3801 = vperm.xlu1 %5672, %v3430_v56   ;;  %3431 = vst [vmem:[#allocation1] ss:$9 sm:$0xff] %v2726_v34  ;;  %v11755_v34 = vld [vmem:[#allocation122_spill] sm:$0xff] }
 0x7e0   :  { %3432 = vst [vmem:[#allocation1 + $0x1] ss:$9 sm:$0xff] %v2727_v39  ;;  %5208 = vmatpush.msra.mxu2 %v5122_v1  ;;  %v5038_v20 = vsub.f32 %v11755_v34, %v5705_v17  ;;  %v11756_v39 = vld [vmem:[#allocation119_spill] sm:$0xff]  ;;  %v5036_v1 = vsub.f32 %v11757_v38, %v5707_v10  ;;  %v3670_v17 = vpop.permute.xlu0 %3669  ;;  %v3676_v10 = vpop.permute.xlu1 %3675  ;;  %v10358_v38 = vadd.s32 4294967184, %v6177_v22 }
 0x7e1   :  { %3433 = vst [vmem:[#allocation1 + $0x2] ss:$9 sm:$0xff] %v2728_v0  ;;  %v5037_v56 = vsub.f32 %v11756_v39, %v5706_v15  ;;  %v5119_v0 = vmul.f32 %v5039_v8, %v5039_v8  ;;  %3798 = vperm.xlu2 %5673, %v10215_v28   ;;  %v5708_v4 = vld [vmem:[%s10937_s0 + $0x80] sm:$0xff]  ;;  %v11759_v8 = vld [vmem:[#allocation77_spill] sm:$0xff] }
 0x7e2   :  { %3434 = vst [vmem:[#allocation1 + $0x3] ss:$9 sm:$0xff] %v2729_v19  ;;  %5209 = vmatpush.msra.mxu2 %v5121_v51  ;;  %v5118_v37 = vmul.f32 %v5038_v20, %v5038_v20  ;;  %v11758_v19 = vld [vmem:[#allocation115_spill] sm:$0xff]  ;;  %v5116_v45 = vmul.f32 %v5036_v1, %v5036_v1  ;;  %v2734_v51 = vperm.slane %v11759_v8, 0  ;;  %v2736_v20 = vperm.slane %v11759_v8, 2 }
 0x7e3   :  { %3435 = vst [vmem:[#allocation1 + $0x4] ss:$9 sm:$0xff] %v2730_v61  ;;  %v5035_v61 = vsub.f32 %v11758_v19, %v5708_v4  ;;  %v5117_v63 = vmul.f32 %v5037_v56, %v5037_v56  ;;  %v2739_v39 = vperm.slane %v11759_v8, 5  ;;  %v10354_v56 = vadd.s32 4294967176, %v6177_v22  ;;  %v3673_v4 = vpop.permute.xlu2 %3672 }
 0x7e4   :  { %3436 = vst [vmem:[#allocation1 + $0x5] ss:$9 sm:$0xff] %v2731_v58  ;;  %5210 = vmatpush.msra.mxu2 %v5120_v24  ;;  %v10345_v58 = vadd.s32 4294967192, %v6177_v22  ;;  %v2737_v24 = vperm.slane %v11759_v8, 3  ;;  %v3923_v19 = vperm.slane %v3673_v4, %v10358_v38  ;;  %v5710_v4 = vld [vmem:[%s10937_s0 + $0x1f0] sm:$0xff] }
 0x7e5   :  { %3437 = vst [vmem:[#allocation1 + $0x6] ss:$9 sm:$0xff] %v2732_v2  ;;  %v2735_v2 = vperm.slane %v11759_v8, 1  ;;  %v5115_v28 = vmul.f32 %v5035_v61, %v5035_v61  ;;  %v4706_v61 = vpop.f32.mrf.mxu1 }
 0x7e6   :  { %3438 = vst [vmem:[#allocation1 + $0x7] ss:$9 sm:$0xff] %v2733_v14  ;;  %5211 = vmatpush.msra.mxu2 %v5119_v0  ;;  %v2738_v14 = vperm.slane %v11759_v8, 4  ;;  %v3919_v15 = vperm.slane %v3670_v17, %v10345_v58  ;;  %v2740_v0 = vperm.slane %v11759_v8, 6 }
 0x7e7   :  { %4854 = vst.msk [vmem:[%s10939_s4 + $0x170] sm:$0xff] %vm11749_vm7, %v4706_v61 }
 0x7e8   :  { %5212 = vmatpush.msra.mxu2 %v5118_v37  ;;  %v3921_v1 = vsel %vm11238_vm4, %v3919_v15, %v10298_v13  ;;  %v2741_v37 = vperm.slane %v11759_v8, 7  ;;  %v3679_v8 = vpop.permute.xlu0 %3678  ;;  %v11761_v15 = vld [vmem:[#allocation117_spill] sm:$0xff] }
 0x7ea   :  { %5213 = vmatpush.msra.mxu2 %v5117_v63  ;;  %v3927_v63 = vperm.slane %v3676_v10, %v10354_v56 }
 0x7ec   :  { %5214 = vmatpush.msra.mxu2 %v5116_v45  ;;  %v3925_v45 = vsel %vm11237_vm8, %v3923_v19, %v3921_v1  ;;  %v11762_v19 = vld [vmem:[#allocation114_spill] sm:$0xff] }
 0x7ed   :  { %v3439_v34 = vld [vmem:[#allocation1] sm:$0xff]  ;;  %v10371_v13 = vsel %vm11233_vm14, %v3927_v63, %v3925_v45  ;;  %v5081_v63 = vsub.f32 %v11762_v19, %v5710_v4  ;;  %v5712_v4 = vld [vmem:[%s10937_s0 + $0x170] sm:$0xff]  ;;  %vm11765_vm14 = vcmask 261120  }
 0x7ee   :  { %3440 = vst [vmem:[#allocation1] ss:$9 sm:$0xff] %v2734_v51  ;;  %3804 = vperm.xlu0 %5671, %v3439_v34   ;;  %5215 = vmatpush.msra.mxu2 %v5115_v28  ;;  %v11760_v51 = vld [vmem:[#allocation18_spill] sm:$0xff]  ;;  %v5065_v19 = vsub.f32 %v4706_v61, %v5712_v4 }
 0x7ef   :  { %3441 = vst [vmem:[#allocation1 + $0x1] ss:$9 sm:$0xff] %v2735_v2  ;;  %v2742_v2 = vperm.slane %v11760_v51, 0  ;;  %v2743_v17 = vperm.slane %v11760_v51, 1  ;;  %v2744_v28 = vperm.slane %v11760_v51, 2  ;;  %v2747_v10 = vperm.slane %v11760_v51, 5 }
 0x7f0   :  { %3442 = vst [vmem:[#allocation1 + $0x2] ss:$9 sm:$0xff] %v2736_v20  ;;  %v2745_v20 = vperm.slane %v11760_v51, 3  ;;  %v2748_v1 = vperm.slane %v11760_v51, 6  ;;  %v3688_v45 = vpop.permute.xlu0 %3687  ;;  %v5161_v61 = vmul.f32 %v5081_v63, %v5081_v63  ;;  %v5716_v63 = vld [vmem:[%s10937_s0 + $0x160] sm:$0xff]  ;;  %v5717_v4 = vld [vmem:[%s10937_s0 + $0x1d8] sm:$0xff] }
 0x7f1   :  { %3443 = vst [vmem:[#allocation1 + $0x3] ss:$9 sm:$0xff] %v2737_v24  ;;  %v2746_v24 = vperm.slane %v11760_v51, 4 }
 0x7f2   :  { %3444 = vst [vmem:[#allocation1 + $0x4] ss:$9 sm:$0xff] %v2738_v14  ;;  %v5709_v14 = vld [vmem:[%s10937_s0 + $0x1f8] sm:$0xff] }
 0x7f3   :  { %3445 = vst [vmem:[#allocation1 + $0x5] ss:$9 sm:$0xff] %v2739_v39  ;;  %v5082_v39 = vsub.f32 %v11761_v15, %v5709_v14  ;;  %v4709_v15 = vpop.f32.mrf.mxu1 }
 0x7f4   :  { %3446 = vst [vmem:[#allocation1 + $0x6] ss:$9 sm:$0xff] %v2740_v0  ;;  %v3685_v0 = vpop.permute.xlu1 %3684 }
 0x7f5   :  { %3447 = vst [vmem:[#allocation1 + $0x7] ss:$9 sm:$0xff] %v2741_v37  ;;  %v2749_v37 = vperm.slane %v11760_v51, 7  ;;  %v3930_v51 = vperm.slane %v3679_v8, %v6177_v22  ;;  %v3935_v8 = vperm.slane %v3688_v45, %v10034_v9  ;;  %v5715_v45 = vld [vmem:[%s10937_s0 + $0x1e0] sm:$0xff] }
 0x7f6   :  { %4855 = vst.msk [vmem:[%s10939_s4 + $0x178] sm:$0xff] %vm11765_vm14, %v4709_v15 }
 0x7fc   :  { %v3448_v34 = vld [vmem:[#allocation1] sm:$0xff] }
 0x7fd   :  { %3449 = vst [vmem:[#allocation1] ss:$9 sm:$0xff] %v2742_v2  ;;  %3807 = vperm.xlu2 %5673, %v3448_v34   ;;  %v3682_v2 = vpop.permute.xlu2 %3681  ;;  %v5711_v34 = vld [vmem:[%s10937_s0 + $0x1e8] sm:$0xff] }
 0x7fe   :  { %3450 = vst [vmem:[#allocation1 + $0x1] ss:$9 sm:$0xff] %v2743_v17  ;;  %v10390_v17 = vadd.s32 512, %v6177_v22  ;;  %v3931_v14 = vperm.slane %v3682_v2, %v10013_v53  ;;  %v11766_v2 = vld [vmem:[#allocation39_spill] sm:$0xff] }
 0x7ff   :  { %3451 = vst [vmem:[#allocation1 + $0x2] ss:$9 sm:$0xff] %v2744_v28  ;;  %v11764_v28 = vld [vmem:[#allocation112_spill] sm:$0xff] }
 0x800   :  { %3452 = vst [vmem:[#allocation1 + $0x3] ss:$9 sm:$0xff] %v2745_v20  ;;  %v5080_v20 = vsub.f32 %v11764_v28, %v5711_v34  ;;  %v5066_v34 = vsub.f32 %v4709_v15, %v5713_v35  ;;  %vm4904_vm7 = vcmp.lt.s32.totalorder %v10390_v17, 576  ;;  %v5714_v35 = vld [vmem:[%s10937_s0 + $0x168] sm:$0xff]  ;;  %v5079_v28 = vsub.f32 %v11766_v2, %v5715_v45  ;;  %v5719_v45 = vld [vmem:[%s10937_s0 + $0x1d0] sm:$0xff] }
 0x801   :  { %3453 = vst [vmem:[#allocation1 + $0x4] ss:$9 sm:$0xff] %v2746_v24  ;;  %v5162_v24 = vmul.f32 %v5082_v39, %v5082_v39  ;;  %v3932_v39 = vsel %vm3872_vm0, %v3931_v14, %v3930_v51  ;;  %5650 = vmatmul.msk.f32.vlgmr.msrb.gmra.mxu2 %vm4904_vm7, %v11588_v54  ;;  %v5063_v15 = vsub.f32 %v10221_v40, %v5716_v63  ;;  %v5718_v40 = vld [vmem:[%s10937_s0 + $0x158] sm:$0xff]  ;;  %v11769_v2 = vld [vmem:[#allocation40_spill] sm:$0xff] }
 0x802   :  { %3454 = vst [vmem:[#allocation1 + $0x5] ss:$9 sm:$0xff] %v2747_v10  ;;  %v3933_v10 = vperm.slane %v3685_v0, %v10037_v60  ;;  %v5064_v0 = vsub.f32 %v10274_v49, %v5714_v35  ;;  %v5160_v14 = vmul.f32 %v5080_v20, %v5080_v20  ;;  %v5145_v49 = vmul.f32 %v5065_v19, %v5065_v19  ;;  %v3694_v35 = vpop.permute.xlu1 %3693 }
 0x803   :  { %11763 = vst [vmem:[#allocation90_spill] sm:$0xff] %v10390_v17  ;;  %5240 = vmatpush.msrb.mxu2 %v5162_v24  ;;  %v5062_v19 = vsub.f32 %v10143_v21, %v5718_v40  ;;  %v5077_v63 = vsub.f32 %v11769_v2, %v5719_v45  ;;  %v5159_v17 = vmul.f32 %v5079_v28, %v5079_v28  ;;  %v5720_v21 = vld [vmem:[%s10937_s0 + $0x150] sm:$0xff]  ;;  %v5721_v40 = vld [vmem:[%s10937_s0 + $0x1c8] sm:$0xff] }
 0x804   :  { %3455 = vst [vmem:[#allocation1 + $0x6] ss:$9 sm:$0xff] %v2748_v1  ;;  %v3934_v1 = vsel %vm3876_vm2, %v3933_v10, %v3932_v39  ;;  %v11767_v10 = vld [vmem:[#allocation80_spill] sm:$0xff]  ;;  %v3939_v23 = vperm.slane %v3694_v35, %v10128_v42 }
 0x805   :  { %3456 = vst [vmem:[#allocation1 + $0x7] ss:$9 sm:$0xff] %v2749_v37  ;;  %v5146_v37 = vmul.f32 %v5066_v34, %v5066_v34  ;;  %v3936_v51 = vsel %vm3880_vm12, %v3935_v8, %v3934_v1  ;;  %5241 = vmatpush.msrb.mxu2 %v5161_v61  ;;  %v2750_v24 = vperm.slane %v11767_v10, 0  ;;  %v11768_v34 = vld [vmem:[#allocation14_spill] sm:$0xff]  ;;  %v2751_v20 = vperm.slane %v11767_v10, 1  ;;  %v3691_v1 = vpop.permute.xlu2 %3690 }
 0x806   :  { %v5078_v39 = vsub.f32 %v11768_v34, %v5717_v4  ;;  %v2752_v8 = vperm.slane %v11767_v10, 2  ;;  %v5144_v61 = vmul.f32 %v5064_v0, %v5064_v0  ;;  %v3937_v34 = vperm.slane %v3691_v1, %v10094_v26  ;;  %v11770_v1 = vld [vmem:[#allocation24_spill] sm:$0xff] }
 0x807   :  { %5220 = vmatpush.msra.mxu3 %v5146_v37  ;;  %5242 = vmatpush.msrb.mxu2 %v5160_v14  ;;  %v2753_v37 = vperm.slane %v11767_v10, 3  ;;  %v5061_v0 = vsub.f32 %v10065_v25, %v5720_v21  ;;  %v5143_v14 = vmul.f32 %v5063_v15, %v5063_v15  ;;  %v5076_v28 = vsub.f32 %v11770_v1, %v5721_v40  ;;  %v5722_v25 = vld [vmem:[%s10937_s0 + $0x148] sm:$0xff]  ;;  %v11773_v40 = vld [vmem:[#allocation66_spill] sm:$0xff] }
 0x808   :  { %v3938_v35 = vsel %vm3884_vm13, %v3937_v34, %v3936_v51  ;;  %v5158_v45 = vmul.f32 %v5078_v39, %v5078_v39  ;;  %v5060_v15 = vsub.f32 %v10008_v57, %v5722_v25  ;;  %v11771_v51 = vld [vmem:[#allocation23_spill] sm:$0xff]  ;;  %v5157_v2 = vmul.f32 %v5077_v63, %v5077_v63  ;;  %v5725_v34 = vld [vmem:[%s10937_s0 + $0x1b8] sm:$0xff]  ;;  %v10480_v63 = vpop.f32.mrf.mxu1 }
 0x809   :  { %5221 = vmatpush.msra.mxu3 %v5145_v49  ;;  %v2754_v49 = vperm.slane %v11767_v10, 4  ;;  %5243 = vmatpush.msrb.mxu2 %v5159_v17  ;;  %v5723_v17 = vld [vmem:[%s10937_s0 + $0x1c0] sm:$0xff]  ;;  %v2756_v57 = vperm.slane %v11767_v10, 6  ;;  %4856 = vst.msk [vmem:[%s10939_s4 + $0x180] sm:$0xff] %vm11765_vm14, %v10480_v63 }
 0x80a   :  { %5216 = vmatmul.f32.vlgmr.msra.gmra.mxu2 %v11588_v54  ;;  %v5075_v39 = vsub.f32 %v11771_v51, %v5723_v17 }
 0x80b   :  { %5222 = vmatpush.msra.mxu3 %v5144_v61  ;;  %v10462_v61 = vsel %vm3888_vm11, %v3939_v23, %v3938_v35  ;;  %5244 = vmatpush.msrb.mxu2 %v5158_v45  ;;  %v5724_v23 = vld [vmem:[%s10937_s0 + $0x140] sm:$0xff] }
 0x80c   :  { %v3457_v4 = vld [vmem:[#allocation1] sm:$0xff]  ;;  %v5155_v35 = vmul.f32 %v5075_v39, %v5075_v39 }
 0x80d   :  { %3810 = vperm.xlu1 %5672, %v3457_v4   ;;  %3458 = vst [vmem:[#allocation1] ss:$9 sm:$0xff] %v2750_v24  ;;  %v5142_v24 = vmul.f32 %v5062_v19, %v5062_v19  ;;  %5223 = vmatpush.msra.mxu3 %v5143_v14  ;;  %v5141_v19 = vmul.f32 %v5061_v0, %v5061_v0  ;;  %v2757_v4 = vperm.slane %v11767_v10, 7  ;;  %v5731_v39 = vld [vmem:[%s10937_s0 + $0x1a0] sm:$0xff] }
 0x80e   :  { %3459 = vst [vmem:[#allocation1 + $0x1] ss:$9 sm:$0xff] %v2751_v20  ;;  %v2755_v20 = vperm.slane %v11767_v10, 5  ;;  %5245 = vmatpush.msrb.mxu2 %v5157_v2  ;;  %v5156_v14 = vmul.f32 %v5076_v28, %v5076_v28  ;;  %v5727_v10 = vld [vmem:[%s10937_s0 + $0x1b0] sm:$0xff] }
 0x80f   :  { %3460 = vst [vmem:[#allocation1 + $0x2] ss:$9 sm:$0xff] %v2752_v8  ;;  %v5059_v8 = vsub.f32 %v9968_v11, %v5724_v23  ;;  %5224 = vmatpush.msra.mxu3 %v5142_v24  ;;  %v5726_v11 = vld [vmem:[%s10937_s0 + $0x138] sm:$0xff]  ;;  %v5073_v1 = vsub.f32 %v11773_v40, %v5727_v10  ;;  %v5728_v28 = vld [vmem:[%s10937_s0 + $0x130] sm:$0xff] }
 0x810   :  { %3461 = vst [vmem:[#allocation1 + $0x3] ss:$9 sm:$0xff] %v2753_v37  ;;  %v11772_v37 = vld [vmem:[#allocation81_spill] sm:$0xff]  ;;  %v5058_v0 = vsub.f32 %v9952_v47, %v5726_v11  ;;  %5246 = vmatpush.msrb.mxu2 %v5156_v14  ;;  %v5057_v45 = vsub.f32 %v9936_v18, %v5728_v28  ;;  %v5729_v47 = vld [vmem:[%s10937_s0 + $0x1a8] sm:$0xff] }
 0x811   :  { %3462 = vst [vmem:[#allocation1 + $0x4] ss:$9 sm:$0xff] %v2754_v49  ;;  %v5074_v21 = vsub.f32 %v11772_v37, %v5725_v34  ;;  %v5140_v49 = vmul.f32 %v5060_v15, %v5060_v15  ;;  %5225 = vmatpush.msra.mxu3 %v5141_v19  ;;  %v5139_v25 = vmul.f32 %v5059_v8, %v5059_v8  ;;  %v11774_v15 = vld [vmem:[#allocation78_spill] sm:$0xff]  ;;  %v5730_v18 = vld [vmem:[%s10937_s0 + $0x128] sm:$0xff]  ;;  %v11775_v2 = vld [vmem:[#allocation33_spill] sm:$0xff] }
 0x812   :  { %3463 = vst [vmem:[#allocation1 + $0x5] ss:$9 sm:$0xff] %v2755_v20  ;;  %v5072_v24 = vsub.f32 %v11774_v15, %v5729_v47  ;;  %5247 = vmatpush.msrb.mxu2 %v5155_v35  ;;  %v5056_v17 = vsub.f32 %v9922_v27, %v5730_v18  ;;  %v5138_v51 = vmul.f32 %v5058_v0, %v5058_v0  ;;  %v5732_v8 = vld [vmem:[%s10937_s0 + $0x120] sm:$0xff]  ;;  %v11776_v34 = vld [vmem:[#allocation96_spill] sm:$0xff]  ;;  %v5733_v37 = vld [vmem:[%s10937_s0 + $0x198] sm:$0xff] }
 0x813   :  { %3464 = vst [vmem:[#allocation1 + $0x6] ss:$9 sm:$0xff] %v2756_v57  ;;  %5226 = vmatpush.msra.mxu3 %v5140_v49  ;;  %v5154_v20 = vmul.f32 %v5074_v21, %v5074_v21  ;;  %v5071_v57 = vsub.f32 %v11775_v2, %v5731_v39  ;;  %v5153_v23 = vmul.f32 %v5073_v1, %v5073_v1  ;;  %v2758_v27 = vperm.slane %v11776_v34, 0  ;;  %v11777_v21 = vld [vmem:[#allocation107_spill] sm:$0xff]  ;;  %v5734_v49 = vld [vmem:[%s10937_s0 + $0x118] sm:$0xff]  ;;  %v3697_v1 = vpop.permute.xlu0 %3696  ;;  %v5735_v28 = vld [vmem:[%s10937_s0 + $0x190] sm:$0xff] }
 0x814   :  { %3465 = vst [vmem:[#allocation1 + $0x7] ss:$9 sm:$0xff] %v2757_v4  ;;  %v5055_v19 = vsub.f32 %v9556_v31, %v5732_v8  ;;  %v5137_v4 = vmul.f32 %v5057_v45, %v5057_v45  ;;  %v5070_v14 = vsub.f32 %v11777_v21, %v5733_v37  ;;  %v5152_v11 = vmul.f32 %v5072_v24, %v5072_v24  ;;  %v11778_v45 = vld [vmem:[#allocation98_spill] sm:$0xff]  ;;  %v3703_v8 = vpop.permute.xlu1 %3702  ;;  %v11779_v37 = vld [vmem:[#allocation95_spill] sm:$0xff] }
 0x815   :  { %5227 = vmatpush.msra.mxu3 %v5139_v25  ;;  %5248 = vmatpush.msrb.mxu2 %v5154_v20  ;;  %v2759_v0 = vperm.slane %v11776_v34, 1  ;;  %v5054_v31 = vsub.f32 %v9525_v5, %v5734_v49  ;;  %v5136_v10 = vmul.f32 %v5056_v17, %v5056_v17  ;;  %v2760_v35 = vperm.slane %v11776_v34, 2  ;;  %v5736_v5 = vld [vmem:[%s10937_s0 + $0x110] sm:$0xff]  ;;  %v5737_v17 = vld [vmem:[%s10937_s0 + $0x108] sm:$0xff] }
 0x816   :  { %v5069_v25 = vsub.f32 %v11778_v45, %v5735_v28  ;;  %v5151_v47 = vmul.f32 %v5071_v57, %v5071_v57  ;;  %v2761_v15 = vperm.slane %v11776_v34, 3  ;;  %v5053_v24 = vsub.f32 %v9438_v6, %v5736_v5 }
 0x817   :  { %5228 = vmatpush.msra.mxu3 %v5138_v51  ;;  %5249 = vmatpush.msrb.mxu2 %v5153_v23  ;;  %v5135_v20 = vmul.f32 %v5055_v19, %v5055_v19  ;;  %v2762_v18 = vperm.slane %v11776_v34, 4  ;;  %v5052_v51 = vsub.f32 %v9380_v16, %v5737_v17  ;;  %v3941_v39 = vperm.slane %v3697_v1, %v10119_v41 }
 0x818   :  { %v5150_v2 = vmul.f32 %v5070_v14, %v5070_v14  ;;  %v2763_v57 = vperm.slane %v11776_v34, 5  ;;  %v5134_v23 = vmul.f32 %v5054_v31, %v5054_v31  ;;  %v2764_v6 = vperm.slane %v11776_v34, 6  ;;  %v4715_v31 = vpop.f32.mrf.mxu1 }
 0x819   :  { %5229 = vmatpush.msra.mxu3 %v5137_v4  ;;  %5250 = vmatpush.msrb.mxu2 %v5152_v11  ;;  %v3942_v19 = vsel %vm3892_vm6, %v3941_v39, %v10462_v61  ;;  %v5149_v4 = vmul.f32 %v5069_v25, %v5069_v25  ;;  %v2765_v16 = vperm.slane %v11776_v34, 7  ;;  %v5133_v14 = vmul.f32 %v5053_v24, %v5053_v24  ;;  %v3700_v11 = vpop.permute.xlu2 %3699  ;;  %v5739_v34 = vld [vmem:[%s10937_s0 + $0x180] sm:$0xff] }
 0x81a   :  { %v3943_v49 = vperm.slane %v3700_v11, %v10140_v48  ;;  %v3945_v61 = vperm.slane %v3703_v8, %v10201_v29  ;;  %4857 = vst.msk [vmem:[%s10939_s4 + $0x188] sm:$0xff] %vm11765_vm14, %v4715_v31  ;;  %v2775_v11 = vperm.slane %v11738_v7, 1  ;;  %vm11781_vm14 = vcmask 1048512  }
 0x81b   :  { %v3466_v40 = vld [vmem:[#allocation1] sm:$0xff]  ;;  %5230 = vmatpush.msra.mxu3 %v5136_v10  ;;  %5251 = vmatpush.msrb.mxu2 %v5151_v47  ;;  %v5067_v10 = vsub.f32 %v10480_v63, %v5739_v34 }
 0x81c   :  { %3813 = vperm.xlu0 %5671, %v3466_v40   ;;  %3467 = vst [vmem:[#allocation1] ss:$9 sm:$0xff] %v2758_v27  ;;  %v5738_v27 = vld [vmem:[%s10937_s0 + $0x100] sm:$0xff]  ;;  %v5740_v40 = vld [vmem:[%s10937_s0 + $0x188] sm:$0xff] }
 0x81d   :  { %3468 = vst [vmem:[#allocation1 + $0x1] ss:$9 sm:$0xff] %v2759_v0  ;;  %5231 = vmatpush.msra.mxu3 %v5135_v20  ;;  %5252 = vmatpush.msrb.mxu2 %v5150_v2  ;;  %v5051_v21 = vsub.f32 %v11779_v37, %v5738_v27  ;;  %v5132_v0 = vmul.f32 %v5052_v51, %v5052_v51  ;;  %v11780_v63 = vld [vmem:[#allocation103_spill] sm:$0xff]  ;;  %v3706_v20 = vpop.permute.xlu0 %3705 }
 0x81e   :  { %3469 = vst [vmem:[#allocation1 + $0x2] ss:$9 sm:$0xff] %v2760_v35  ;;  %v5068_v1 = vsub.f32 %v4715_v31, %v5740_v40  ;;  %v3944_v35 = vsel %vm3896_vm1, %v3943_v49, %v3942_v19  ;;  %v5147_v47 = vmul.f32 %v5067_v10, %v5067_v10  ;;  %v2767_v5 = vperm.slane %v11780_v63, 1 }
 0x81f   :  { %3470 = vst [vmem:[#allocation1 + $0x3] ss:$9 sm:$0xff] %v2761_v15  ;;  %5232 = vmatpush.msra.mxu3 %v5134_v23  ;;  %5253 = vmatpush.msrb.mxu2 %v5149_v4  ;;  %v5131_v28 = vmul.f32 %v5051_v21, %v5051_v21  ;;  %v3946_v45 = vsel %vm3900_vm5, %v3945_v61, %v3944_v35  ;;  %v2766_v15 = vperm.slane %v11780_v63, 0  ;;  %v2769_v17 = vperm.slane %v11780_v63, 3  ;;  %v3712_v23 = vpop.permute.xlu1 %3711 }
 0x820   :  { %3471 = vst [vmem:[#allocation1 + $0x4] ss:$9 sm:$0xff] %v2762_v18  ;;  %v5148_v25 = vmul.f32 %v5068_v1, %v5068_v1  ;;  %v2768_v18 = vperm.slane %v11780_v63, 2  ;;  %v2770_v51 = vperm.slane %v11780_v63, 4  ;;  %v3947_v39 = vperm.slane %v3706_v20, %v10185_v46 }
 0x821   :  { %3472 = vst [vmem:[#allocation1 + $0x5] ss:$9 sm:$0xff] %v2763_v57  ;;  %5233 = vmatpush.msra.mxu3 %v5133_v14  ;;  %v2771_v2 = vperm.slane %v11780_v63, 5  ;;  %v2772_v57 = vperm.slane %v11780_v63, 6  ;;  %v2773_v8 = vperm.slane %v11780_v63, 7  ;;  %v3709_v19 = vpop.permute.xlu2 %3708  ;;  %v2774_v14 = vperm.slane %v11738_v7, 0 }
 0x822   :  { %3473 = vst [vmem:[#allocation1 + $0x6] ss:$9 sm:$0xff] %v2764_v6  ;;  %5254 = vmatpush.msrb.mxu2 %v5148_v25  ;;  %v3948_v6 = vsel %vm3904_vm10, %v3947_v39, %v3946_v45  ;;  %v3949_v4 = vperm.slane %v3709_v19, %v10218_v44  ;;  %v2776_v49 = vperm.slane %v11738_v7, 2  ;;  %v2777_v31 = vperm.slane %v11738_v7, 3 }
 0x823   :  { %3474 = vst [vmem:[#allocation1 + $0x7] ss:$9 sm:$0xff] %v2765_v16  ;;  %5234 = vmatpush.msra.mxu3 %v5132_v0  ;;  %v3951_v16 = vperm.slane %v3712_v23, %v10263_v36  ;;  %v2778_v61 = vperm.slane %v11738_v7, 4  ;;  %v2779_v10 = vperm.slane %v11738_v7, 5  ;;  %v2780_v40 = vperm.slane %v11738_v7, 6 }
 0x824   :  { %5255 = vmatpush.msrb.mxu2 %v5147_v47  ;;  %v3950_v27 = vsel %vm3908_vm15, %v3949_v4, %v3948_v6  ;;  %v2781_v35 = vperm.slane %v11738_v7, 7  ;;  %v2782_v7 = vperm.slane %v11735_v59, 0  ;;  %v2785_v39 = vperm.slane %v11735_v59, 3 }
 0x825   :  { %5235 = vmatpush.msra.mxu3 %v5131_v28  ;;  %5256 = vmatmul.f32.vlgmr.msrb.gmra.mxu2 %v11588_v54  ;;  %v3952_v37 = vsel %vm3912_vm9, %v3951_v16, %v3950_v27  ;;  %v3715_v21 = vpop.permute.xlu0 %3714  ;;  %v2788_v6 = vperm.slane %v11735_v59, 6 }
 0x826   :  { %5236 = vmatmul.f32.vlgmr.msra.gmra.mxu3 %v11588_v54  ;;  %v3953_v34 = vperm.slane %v3715_v21, %v10255_v50  ;;  %v2790_v21 = vperm.slane %v11729_v33, 0 }
 0x827   :  { %v3721_v28 = vpop.permute.xlu1 %3720 }
 0x828   :  { %v3954_v1 = vsel %vm3916_vm3, %v3953_v34, %v3952_v37  ;;  %v3957_v63 = vperm.slane %v3721_v28, %v10358_v38 }
 0x829   :  { %v3718_v25 = vpop.permute.xlu2 %3717 }
 0x82a   :  { %v3475_v24 = vld [vmem:[#allocation1] sm:$0xff]  ;;  %v3955_v47 = vperm.slane %v3718_v25, %v10345_v58 }
 0x82b   :  { %3476 = vst [vmem:[#allocation1] ss:$9 sm:$0xff] %v2766_v15  ;;  %3816 = vperm.xlu2 %5673, %v3475_v24  }
 0x82c   :  { %3477 = vst [vmem:[#allocation1 + $0x1] ss:$9 sm:$0xff] %v2767_v5  ;;  %v3956_v5 = vsel %vm11238_vm4, %v3955_v47, %v3954_v1  ;;  %v2797_v1 = vperm.slane %v11729_v33, 7 }
 0x82d   :  { %3478 = vst [vmem:[#allocation1 + $0x2] ss:$9 sm:$0xff] %v2768_v18  ;;  %v3724_v45 = vpop.permute.xlu0 %3723  ;;  %v3958_v24 = vsel %vm11237_vm8, %v3957_v63, %v3956_v5  ;;  %v2783_v18 = vperm.slane %v11735_v59, 1  ;;  %v2798_v63 = vperm.slane %v11725_v3, 0 }
 0x82e   :  { %3479 = vst [vmem:[#allocation1 + $0x3] ss:$9 sm:$0xff] %v2769_v17  ;;  %v3959_v15 = vperm.slane %v3724_v45, %v10354_v56 }
 0x82f   :  { %3480 = vst [vmem:[#allocation1 + $0x4] ss:$9 sm:$0xff] %v2770_v51  ;;  %v2784_v51 = vperm.slane %v11735_v59, 2  ;;  %v3730_v23 = vpop.permute.xlu1 %3729 }
 0x830   :  { %3481 = vst [vmem:[#allocation1 + $0x5] ss:$9 sm:$0xff] %v2771_v2  ;;  %v10597_v20 = vsel %vm11781_vm14, %v3959_v15, %v3958_v24  ;;  %v2786_v2 = vperm.slane %v11735_v59, 4  ;;  %v3962_v4 = vperm.slane %v3730_v23, %v10013_v53  ;;  %v2799_v15 = vperm.slane %v11725_v3, 1 }
 0x831   :  { %3482 = vst [vmem:[#allocation1 + $0x6] ss:$9 sm:$0xff] %v2772_v57  ;;  %v2787_v57 = vperm.slane %v11735_v59, 5  ;;  %v3727_v19 = vpop.permute.xlu2 %3726  ;;  %vm4058_vm14 = vcmask 1040384  }
 0x832   :  { %3483 = vst [vmem:[#allocation1 + $0x7] ss:$9 sm:$0xff] %v2773_v8  ;;  %v2789_v8 = vperm.slane %v11735_v59, 7  ;;  %v3961_v16 = vperm.slane %v3727_v19, %v6177_v22  ;;  %v2792_v59 = vperm.slane %v11729_v33, 2 }
 0x834   :  { %v3963_v27 = vsel %vm3872_vm0, %v3962_v4, %v3961_v16  ;;  %v4054_v4 = vrot.slane %v10597_v20, 7  ;;  %v2809_v20 = vperm.slane %v11721_v32, 3 }
 0x835   :  { %v3733_v37 = vpop.permute.xlu0 %3732 }
 0x839   :  { %v3484_v0 = vld [vmem:[#allocation1] sm:$0xff] }
 0x83a   :  { %3819 = vperm.xlu1 %5672, %v3484_v0   ;;  %3485 = vst [vmem:[#allocation1] ss:$9 sm:$0xff] %v2774_v14  ;;  %v2791_v14 = vperm.slane %v11729_v33, 1  ;;  %v3964_v0 = vperm.slane %v3733_v37, %v10037_v60  ;;  %v10640_v37 = vsel %vm4058_vm14, %v10371_v13, %v4054_v4  ;;  %v2811_v13 = vperm.slane %v11721_v32, 5 }
 0x83b   :  { %3486 = vst [vmem:[#allocation1 + $0x1] ss:$9 sm:$0xff] %v2775_v11  ;;  %v2822_v4 = vperm.slane %v11715_v30, 0  ;;  %vm11782_vm14 = vcmask 261120  }
 0x83c   :  { %3487 = vst [vmem:[#allocation1 + $0x2] ss:$9 sm:$0xff] %v2776_v49  ;;  %v2793_v49 = vperm.slane %v11729_v33, 3  ;;  %v3965_v34 = vsel %vm3876_vm2, %v3964_v0, %v3963_v27  ;;  %v2808_v0 = vperm.slane %v11721_v32, 2 }
 0x83d   :  { %3488 = vst [vmem:[#allocation1 + $0x3] ss:$9 sm:$0xff] %v2777_v31  ;;  %v2794_v31 = vperm.slane %v11729_v33, 4  ;;  %v3742_v24 = vpop.permute.xlu0 %3741 }
 0x83e   :  { %3489 = vst [vmem:[#allocation1 + $0x4] ss:$9 sm:$0xff] %v2778_v61  ;;  %v2795_v61 = vperm.slane %v11729_v33, 5 }
 0x83f   :  { %3490 = vst [vmem:[#allocation1 + $0x5] ss:$9 sm:$0xff] %v2779_v10  ;;  %v2796_v10 = vperm.slane %v11729_v33, 6  ;;  %v2800_v33 = vperm.slane %v11725_v3, 2 }
 0x840   :  { %3491 = vst [vmem:[#allocation1 + $0x6] ss:$9 sm:$0xff] %v2780_v40  ;;  %v3739_v40 = vpop.permute.xlu1 %3738 }
 0x841   :  { %3492 = vst [vmem:[#allocation1 + $0x7] ss:$9 sm:$0xff] %v2781_v35  ;;  %v3736_v35 = vpop.permute.xlu2 %3735  ;;  %v3968_v45 = vperm.slane %v3739_v40, %v10094_v26 }
 0x842   :  { %v3966_v28 = vperm.slane %v3736_v35, %v10034_v9 }
 0x844   :  { %v3967_v25 = vsel %vm3880_vm12, %v3966_v28, %v3965_v34 }
 0x845   :  { %v3969_v47 = vsel %vm3884_vm13, %v3968_v45, %v3967_v25  ;;  %v2814_v25 = vperm.slane %v11718_v43, 0 }
 0x848   :  { %v3493_v17 = vld [vmem:[#allocation1] sm:$0xff]  ;;  %v3748_v23 = vpop.permute.xlu1 %3747 }
 0x849   :  { %3822 = vperm.xlu0 %5671, %v3493_v17   ;;  %3494 = vst [vmem:[#allocation1] ss:$9 sm:$0xff] %v2782_v7  ;;  %v2801_v7 = vperm.slane %v11725_v3, 3  ;;  %v3970_v17 = vperm.slane %v3742_v24, %v10128_v42  ;;  %v3974_v19 = vperm.slane %v3748_v23, %v10140_v48  ;;  %v2818_v24 = vperm.slane %v11718_v43, 4 }
 0x84a   :  { %3495 = vst [vmem:[#allocation1 + $0x1] ss:$9 sm:$0xff] %v2783_v18  ;;  %v2802_v18 = vperm.slane %v11725_v3, 4 }
 0x84b   :  { %3496 = vst [vmem:[#allocation1 + $0x2] ss:$9 sm:$0xff] %v2784_v51  ;;  %v2803_v51 = vperm.slane %v11725_v3, 5 }
 0x84c   :  { %3497 = vst [vmem:[#allocation1 + $0x3] ss:$9 sm:$0xff] %v2785_v39  ;;  %v2804_v39 = vperm.slane %v11725_v3, 6 }
 0x84d   :  { %3498 = vst [vmem:[#allocation1 + $0x4] ss:$9 sm:$0xff] %v2786_v2  ;;  %v3971_v2 = vsel %vm3888_vm11, %v3970_v17, %v3969_v47  ;;  %v2815_v47 = vperm.slane %v11718_v43, 1 }
 0x84e   :  { %3499 = vst [vmem:[#allocation1 + $0x5] ss:$9 sm:$0xff] %v2787_v57  ;;  %v2805_v57 = vperm.slane %v11725_v3, 7  ;;  %v2806_v3 = vperm.slane %v11721_v32, 0 }
 0x84f   :  { %3500 = vst [vmem:[#allocation1 + $0x6] ss:$9 sm:$0xff] %v2788_v6  ;;  %v3745_v6 = vpop.permute.xlu2 %3744 }
 0x850   :  { %3501 = vst [vmem:[#allocation1 + $0x7] ss:$9 sm:$0xff] %v2789_v8  ;;  %v3972_v8 = vperm.slane %v3745_v6, %v10119_v41 }
 0x852   :  { %v3973_v16 = vsel %vm3892_vm6, %v3972_v8, %v3971_v2 }
 0x853   :  { %v3975_v27 = vsel %vm3896_vm1, %v3974_v19, %v3973_v16  ;;  %v2823_v16 = vperm.slane %v11715_v30, 1 }
 0x857   :  { %v3502_v11 = vld [vmem:[#allocation1] sm:$0xff]  ;;  %v3754_v40 = vpop.permute.xlu2 %3753 }
 0x858   :  { %3825 = vperm.xlu2 %5673, %v3502_v11   ;;  %3503 = vst [vmem:[#allocation1] ss:$9 sm:$0xff] %v2790_v21  ;;  %v2807_v21 = vperm.slane %v11721_v32, 1  ;;  %v3751_v11 = vpop.permute.xlu0 %3750 }
 0x859   :  { %3504 = vst [vmem:[#allocation1 + $0x1] ss:$9 sm:$0xff] %v2791_v14 }
 0x85a   :  { %3505 = vst [vmem:[#allocation1 + $0x2] ss:$9 sm:$0xff] %v2792_v59  ;;  %v2810_v59 = vperm.slane %v11721_v32, 4 }
 0x85b   :  { %3506 = vst [vmem:[#allocation1 + $0x3] ss:$9 sm:$0xff] %v2793_v49  ;;  %v3976_v49 = vperm.slane %v3751_v11, %v10201_v29  ;;  %v2827_v11 = vperm.slane %v11715_v30, 5 }
 0x85c   :  { %3507 = vst [vmem:[#allocation1 + $0x4] ss:$9 sm:$0xff] %v2794_v31  ;;  %v2812_v31 = vperm.slane %v11721_v32, 6 }
 0x85d   :  { %3508 = vst [vmem:[#allocation1 + $0x5] ss:$9 sm:$0xff] %v2795_v61  ;;  %v3757_v61 = vpop.permute.xlu1 %3756  ;;  %v3977_v34 = vsel %vm3900_vm5, %v3976_v49, %v3975_v27  ;;  %v2829_v49 = vperm.slane %v11715_v30, 7 }
 0x85e   :  { %3509 = vst [vmem:[#allocation1 + $0x6] ss:$9 sm:$0xff] %v2796_v10  ;;  %v2813_v10 = vperm.slane %v11721_v32, 7  ;;  %v3980_v35 = vperm.slane %v3757_v61, %v10218_v44  ;;  %v2816_v32 = vperm.slane %v11718_v43, 2 }
 0x85f   :  { %3510 = vst [vmem:[#allocation1 + $0x7] ss:$9 sm:$0xff] %v2797_v1  ;;  %v3978_v1 = vperm.slane %v3754_v40, %v10185_v46  ;;  %v3763_v2 = vpop.permute.xlu2 %3762 }
 0x861   :  { %v3979_v28 = vsel %vm3904_vm10, %v3978_v1, %v3977_v34 }
 0x862   :  { %v3981_v45 = vsel %vm3908_vm15, %v3980_v35, %v3979_v28 }
 0x865   :  { %v3766_v17 = vpop.permute.xlu1 %3765 }
 0x866   :  { %v3511_v5 = vld [vmem:[#allocation1] sm:$0xff]  ;;  %v3986_v23 = vperm.slane %v3766_v17, %v10345_v58  ;;  %v5742_v17 = vld [vmem:[%s10937_s0 + $0x278] sm:$0xff] }
 0x867   :  { %3828 = vperm.xlu1 %5672, %v3511_v5   ;;  %3512 = vst [vmem:[#allocation1] ss:$9 sm:$0xff] %v2798_v63  ;;  %v2817_v5 = vperm.slane %v11718_v43, 3  ;;  %v3772_v61 = vpop.permute.xlu2 %3771 }
 0x868   :  { %3513 = vst [vmem:[#allocation1 + $0x1] ss:$9 sm:$0xff] %v2799_v15  ;;  %v3760_v15 = vpop.permute.xlu0 %3759  ;;  %v3990_v40 = vperm.slane %v3772_v61, %v10354_v56  ;;  %v2843_v61 = vperm.slane %v9243_v12, 5 }
 0x869   :  { %3514 = vst [vmem:[#allocation1 + $0x2] ss:$9 sm:$0xff] %v2800_v33  ;;  %v3982_v33 = vperm.slane %v3760_v15, %v10263_v36  ;;  %v2833_v15 = vperm.slane %v11712_v55, 3 }
 0x86a   :  { %3515 = vst [vmem:[#allocation1 + $0x3] ss:$9 sm:$0xff] %v2801_v7  ;;  %v2819_v7 = vperm.slane %v11718_v43, 5 }
 0x86b   :  { %3516 = vst [vmem:[#allocation1 + $0x4] ss:$9 sm:$0xff] %v2802_v18  ;;  %v2820_v18 = vperm.slane %v11718_v43, 6 }
 0x86c   :  { %3517 = vst [vmem:[#allocation1 + $0x5] ss:$9 sm:$0xff] %v2803_v51  ;;  %v3983_v51 = vsel %vm3912_vm9, %v3982_v33, %v3981_v45  ;;  %v2830_v45 = vperm.slane %v11712_v55, 0 }
 0x86d   :  { %3518 = vst [vmem:[#allocation1 + $0x6] ss:$9 sm:$0xff] %v2804_v39  ;;  %v2821_v39 = vperm.slane %v11718_v43, 7  ;;  %v2824_v43 = vperm.slane %v11715_v30, 2 }
 0x86e   :  { %3519 = vst [vmem:[#allocation1 + $0x7] ss:$9 sm:$0xff] %v2805_v57  ;;  %v3984_v57 = vperm.slane %v3763_v2, %v10255_v50 }
 0x870   :  { %v3985_v6 = vsel %vm3916_vm3, %v3984_v57, %v3983_v51  ;;  %v3769_v19 = vpop.permute.xlu0 %3768  ;;  %v5744_v57 = vld [vmem:[%s10937_s0 + $0x260] sm:$0xff] }
 0x871   :  { %v3987_v8 = vsel %vm11238_vm4, %v3986_v23, %v3985_v6  ;;  %vm11783_vm4 = vcmask 1048512   ;;  %v5095_v23 = vsub.f32 %v9911_v52, %v5744_v57  ;;  %v11793_v57 = vld [vmem:[#allocation20_spill] sm:$0xff] }
 0x875   :  { %v3520_v14 = vld [vmem:[#allocation1] sm:$0xff] }
 0x876   :  { %3831 = vperm.xlu0 %5671, %v3520_v14   ;;  %3521 = vst [vmem:[#allocation1] ss:$9 sm:$0xff] %v2806_v3  ;;  %v2825_v3 = vperm.slane %v11715_v30, 3  ;;  %v3988_v14 = vperm.slane %v3769_v19, %v10358_v38  ;;  %v11785_v19 = vld [vmem:[#allocation42_spill] sm:$0xff] }
 0x877   :  { %3522 = vst [vmem:[#allocation1 + $0x1] ss:$9 sm:$0xff] %v2807_v21  ;;  %v2826_v21 = vperm.slane %v11715_v30, 4 }
 0x878   :  { %3523 = vst [vmem:[#allocation1 + $0x2] ss:$9 sm:$0xff] %v2808_v0  ;;  %v2828_v0 = vperm.slane %v11715_v30, 6 }
 0x879   :  { %3524 = vst [vmem:[#allocation1 + $0x3] ss:$9 sm:$0xff] %v2809_v20  ;;  %v3775_v20 = vpop.permute.xlu1 %3774 }
 0x87a   :  { %3525 = vst [vmem:[#allocation1 + $0x4] ss:$9 sm:$0xff] %v2810_v59  ;;  %v3989_v59 = vsel %vm11237_vm8, %v3988_v14, %v3987_v8  ;;  %v3992_v34 = vperm.slane %v3775_v20, %v6177_v22  ;;  %vm4060_vm8 = vcmask 1041408   ;;  %v5745_v8 = vld [vmem:[%s10937_s0 + $0x258] sm:$0xff]  ;;  %v5747_v20 = vld [vmem:[%s10937_s0 + $0x248] sm:$0xff] }
 0x87b   :  { %3526 = vst [vmem:[#allocation1 + $0x5] ss:$9 sm:$0xff] %v2811_v13  ;;  %v4802_v13 = vpop.f32.mrf.mxu3  ;;  %v3991_v30 = vsel %vm11783_vm4, %v3990_v40, %v3989_v59  ;;  %vm11784_vm4 = vmmov %vm11782_vm14  ;;  %v11787_v59 = vld [vmem:[#allocation62_spill] sm:$0xff] }
 0x87c   :  { %3527 = vst [vmem:[#allocation1 + $0x6] ss:$9 sm:$0xff] %v2812_v31  ;;  %v3778_v31 = vpop.permute.xlu0 %3777  ;;  %v4055_v35 = vrot.slane %v3991_v30, 6 }
 0x87d   :  { %3528 = vst [vmem:[#allocation1 + $0x7] ss:$9 sm:$0xff] %v2813_v10  ;;  %v3993_v10 = vperm.slane %v3778_v31, %v10013_v53  ;;  %v2842_v31 = vperm.slane %v9243_v12, 4 }
 0x87e   :  { %4886 = vst.msk [vmem:[%s10939_s4 + $0x270] sm:$0xff] %vm11782_vm14, %v4802_v13  ;;  %v10692_v28 = vsel %vm4060_vm8, %v10640_v37, %v4055_v35  ;;  %v2836_v37 = vperm.slane %v11712_v55, 6  ;;  %v2844_v35 = vperm.slane %v9243_v12, 6  ;;  %vm73_vm8 = vcmask 516096  }
 0x87f   :  { %v10688_v1 = vsel %vm3872_vm0, %v3993_v10, %v3992_v34  ;;  %v5748_v34 = vld [vmem:[%s10937_s0 + $0x240] sm:$0xff]  ;;  %v11788_v10 = vld [vmem:[#allocation73_spill] sm:$0xff] }
 0x880   :  { %v5091_v40 = vsub.f32 %v11788_v10, %v5748_v34 }
 0x883   :  { %v4805_v33 = vpop.f32.mrf.mxu3 }
 0x884   :  { %v3529_v63 = vld [vmem:[#allocation1] sm:$0xff]  ;;  %v5098_v51 = vsub.f32 %v4805_v33, %v5742_v17  ;;  %4887 = vst.msk [vmem:[%s10939_s4 + $0x278] sm:$0xff] %vm11784_vm4, %v4805_v33 }
 0x885   :  { %3834 = vperm.xlu2 %5673, %v3529_v63   ;;  %3530 = vst [vmem:[#allocation1] ss:$9 sm:$0xff] %v2814_v25  ;;  %v2831_v25 = vperm.slane %v11712_v55, 1  ;;  %v2832_v63 = vperm.slane %v11712_v55, 2  ;;  %v11791_v33 = vld [vmem:[#allocation34_spill] sm:$0xff] }
 0x886   :  { %3531 = vst [vmem:[#allocation1 + $0x1] ss:$9 sm:$0xff] %v2815_v47  ;;  %v5178_v2 = vmul.f32 %v5098_v51, %v5098_v51  ;;  %v5752_v17 = vld [vmem:[%s10937_s0 + $0x220] sm:$0xff] }
 0x887   :  { %3532 = vst [vmem:[#allocation1 + $0x2] ss:$9 sm:$0xff] %v2816_v32  ;;  %v2834_v32 = vperm.slane %v11712_v55, 4  ;;  %v11792_v51 = vld [vmem:[#allocation63_spill] sm:$0xff] }
 0x888   :  { %3533 = vst [vmem:[#allocation1 + $0x3] ss:$9 sm:$0xff] %v2817_v5  ;;  %v2835_v5 = vperm.slane %v11712_v55, 5  ;;  %5260 = vmatpush.msrb.mxu3 %v5178_v2  ;;  %v5753_v2 = vld [vmem:[%s10937_s0 + $0x218] sm:$0xff] }
 0x889   :  { %3534 = vst [vmem:[#allocation1 + $0x4] ss:$9 sm:$0xff] %v2818_v24  ;;  %v2837_v24 = vperm.slane %v11712_v55, 7 }
 0x88a   :  { %3535 = vst [vmem:[#allocation1 + $0x5] ss:$9 sm:$0xff] %v2819_v7  ;;  %v5741_v7 = vld [vmem:[%s10937_s0 + $0x270] sm:$0xff] }
 0x88b   :  { %3536 = vst [vmem:[#allocation1 + $0x6] ss:$9 sm:$0xff] %v2820_v18  ;;  %v5097_v18 = vsub.f32 %v4802_v13, %v5741_v7 }
 0x88c   :  { %3537 = vst [vmem:[#allocation1 + $0x7] ss:$9 sm:$0xff] %v2821_v39  ;;  %v5743_v39 = vld [vmem:[%s10937_s0 + $0x268] sm:$0xff] }
 0x88d   :  { %v5096_v55 = vsub.f32 %v9977_v62, %v5743_v39  ;;  %v5177_v6 = vmul.f32 %v5097_v18, %v5097_v18  ;;  %v5094_v62 = vsub.f32 %v11785_v19, %v5745_v8  ;;  %v5087_v39 = vsub.f32 %v11792_v51, %v5752_v17  ;;  %v11794_v8 = vld [vmem:[#allocation60_spill] sm:$0xff] }
 0x88e   :  { %v2846_v19 = vperm.slane %v11794_v8, 0  ;;  %v2852_v10 = vperm.slane %v11794_v8, 6 }
 0x88f   :  { %5261 = vmatpush.msrb.mxu3 %v5177_v6  ;;  %v5174_v13 = vmul.f32 %v5094_v62, %v5094_v62  ;;  %v2847_v62 = vperm.slane %v11794_v8, 1 }
 0x893   :  { %v3538_v27 = vld [vmem:[#allocation1] sm:$0xff] }
 0x894   :  { %3837 = vperm.xlu1 %5672, %v3538_v27   ;;  %3539 = vst [vmem:[#allocation1] ss:$9 sm:$0xff] %v2822_v4  ;;  %v5176_v4 = vmul.f32 %v5096_v55, %v5096_v55  ;;  %v2839_v27 = vperm.slane %v9243_v12, 1 }
 0x895   :  { %3540 = vst [vmem:[#allocation1 + $0x1] ss:$9 sm:$0xff] %v2823_v16  ;;  %v2838_v16 = vperm.slane %v9243_v12, 0 }
 0x896   :  { %3541 = vst [vmem:[#allocation1 + $0x2] ss:$9 sm:$0xff] %v2824_v43  ;;  %v5746_v43 = vld [vmem:[%s10937_s0 + $0x250] sm:$0xff]  ;;  %5262 = vmatpush.msrb.mxu3 %v5176_v4 }
 0x897   :  { %3542 = vst [vmem:[#allocation1 + $0x3] ss:$9 sm:$0xff] %v2825_v3  ;;  %v11786_v3 = vld [vmem:[#allocation70_spill] sm:$0xff] }
 0x898   :  { %3543 = vst [vmem:[#allocation1 + $0x4] ss:$9 sm:$0xff] %v2826_v21  ;;  %v5093_v52 = vsub.f32 %v11786_v3, %v5746_v43  ;;  %v5175_v21 = vmul.f32 %v5095_v23, %v5095_v23  ;;  %v5086_v23 = vsub.f32 %v11793_v57, %v5753_v2  ;;  %v5167_v3 = vmul.f32 %v5087_v39, %v5087_v39 }
 0x899   :  { %3544 = vst [vmem:[#allocation1 + $0x5] ss:$9 sm:$0xff] %v2827_v11  ;;  %v2840_v11 = vperm.slane %v9243_v12, 2 }
 0x89a   :  { %3545 = vst [vmem:[#allocation1 + $0x6] ss:$9 sm:$0xff] %v2828_v0  ;;  %v2841_v0 = vperm.slane %v9243_v12, 3  ;;  %5263 = vmatpush.msrb.mxu3 %v5175_v21  ;;  %v5173_v30 = vmul.f32 %v5093_v52, %v5093_v52  ;;  %v2848_v52 = vperm.slane %v11794_v8, 2  ;;  %v2849_v21 = vperm.slane %v11794_v8, 3 }
 0x89b   :  { %3546 = vst [vmem:[#allocation1 + $0x7] ss:$9 sm:$0xff] %v2829_v49  ;;  %v5092_v49 = vsub.f32 %v11787_v59, %v5747_v20  ;;  %v5166_v20 = vmul.f32 %v5086_v23, %v5086_v23  ;;  %v2850_v59 = vperm.slane %v11794_v8, 4 }
 0x89c   :  { %5264 = vmatpush.msrb.mxu3 %v5174_v13  ;;  %v5756_v13 = vld [vmem:[%s10937_s0 + $0x200] sm:$0xff] }
 0x89e   :  { %5265 = vmatpush.msrb.mxu3 %v5173_v30 }
 0x8a2   :  { %v3547_v47 = vld [vmem:[#allocation1] sm:$0xff] }
 0x8a3   :  { %3840 = vperm.xlu0 %5671, %v3547_v47   ;;  %3548 = vst [vmem:[#allocation1] ss:$9 sm:$0xff] %v2830_v45  ;;  %v2845_v45 = vperm.slane %v9243_v12, 7  ;;  %v11789_v47 = vld [vmem:[#allocation48_spill] sm:$0xff] }
 0x8a4   :  { %3549 = vst [vmem:[#allocation1 + $0x1] ss:$9 sm:$0xff] %v2831_v25  ;;  %v5749_v25 = vld [vmem:[%s10937_s0 + $0x238] sm:$0xff]  ;;  %v5751_v12 = vld [vmem:[%s10937_s0 + $0x228] sm:$0xff] }
 0x8a5   :  { %3550 = vst [vmem:[#allocation1 + $0x2] ss:$9 sm:$0xff] %v2832_v63  ;;  %v5090_v63 = vsub.f32 %v11789_v47, %v5749_v25  ;;  %v5088_v7 = vsub.f32 %v11791_v33, %v5751_v12  ;;  %v11799_v25 = vld [vmem:[#allocation85_spill] sm:$0xff]  ;;  %v11800_v33 = vld [vmem:[#allocation10_spill] sm:$0xff] }
 0x8a6   :  { %3551 = vst [vmem:[#allocation1 + $0x3] ss:$9 sm:$0xff] %v2833_v15  ;;  %v5172_v15 = vmul.f32 %v5092_v49, %v5092_v49  ;;  %v2851_v49 = vperm.slane %v11794_v8, 5  ;;  %v2854_v47 = vperm.slane %v11799_v25, 0  ;;  %v2861_v12 = vperm.slane %v11799_v25, 7 }
 0x8a7   :  { %3552 = vst [vmem:[#allocation1 + $0x4] ss:$9 sm:$0xff] %v2834_v32  ;;  %v5750_v32 = vld [vmem:[%s10937_s0 + $0x230] sm:$0xff]  ;;  %v5170_v18 = vmul.f32 %v5090_v63, %v5090_v63  ;;  %v5168_v6 = vmul.f32 %v5088_v7, %v5088_v7  ;;  %v2855_v63 = vperm.slane %v11799_v25, 1  ;;  %v2862_v7 = vperm.slane %v11800_v33, 0 }
 0x8a8   :  { %3553 = vst [vmem:[#allocation1 + $0x5] ss:$9 sm:$0xff] %v2835_v5  ;;  %v11790_v5 = vld [vmem:[#allocation91_spill] sm:$0xff]  ;;  %5266 = vmatpush.msrb.mxu3 %v5172_v15  ;;  %v2864_v51 = vperm.slane %v11800_v33, 2  ;;  %v2865_v39 = vperm.slane %v11800_v33, 3  ;;  %v2867_v2 = vperm.slane %v11800_v33, 5 }
 0x8a9   :  { %3554 = vst [vmem:[#allocation1 + $0x6] ss:$9 sm:$0xff] %v2836_v37  ;;  %v5089_v37 = vsub.f32 %v11790_v5, %v5750_v32  ;;  %v2856_v32 = vperm.slane %v11799_v25, 2  ;;  %v2857_v5 = vperm.slane %v11799_v25, 3  ;;  %v2868_v57 = vperm.slane %v11800_v33, 6 }
 0x8aa   :  { %3555 = vst [vmem:[#allocation1 + $0x7] ss:$9 sm:$0xff] %v2837_v24  ;;  %v5171_v24 = vmul.f32 %v5091_v40, %v5091_v40  ;;  %v2853_v40 = vperm.slane %v11794_v8, 7  ;;  %v2869_v23 = vperm.slane %v11800_v33, 7 }
 0x8ab   :  { %v5169_v55 = vmul.f32 %v5089_v37, %v5089_v37  ;;  %v2858_v37 = vperm.slane %v11799_v25, 4 }
 0x8ac   :  { %5267 = vmatpush.msrb.mxu3 %v5171_v24  ;;  %v2859_v24 = vperm.slane %v11799_v25, 5 }
 0x8ae   :  { %5268 = vmatpush.msrb.mxu3 %v5170_v18  ;;  %v2863_v18 = vperm.slane %v11800_v33, 1 }
 0x8b0   :  { %5269 = vmatpush.msrb.mxu3 %v5169_v55  ;;  %v2866_v55 = vperm.slane %v11800_v33, 4 }
 0x8b1   :  { %v3556_v14 = vld [vmem:[#allocation1] sm:$0xff] }
 0x8b2   :  { %3843 = vperm.xlu2 %5673, %v3556_v14   ;;  %3557 = vst [vmem:[#allocation1] ss:$9 sm:$0xff] %v2838_v16  ;;  %v5754_v16 = vld [vmem:[%s10937_s0 + $0x210] sm:$0xff]  ;;  %5270 = vmatpush.msrb.mxu3 %v5168_v6  ;;  %v5755_v14 = vld [vmem:[%s10937_s0 + $0x208] sm:$0xff]  ;;  %v11801_v6 = vld [vmem:[#allocation54_spill] sm:$0xff] }
 0x8b3   :  { %3558 = vst [vmem:[#allocation1 + $0x1] ss:$9 sm:$0xff] %v2839_v27  ;;  %v11795_v27 = vld [vmem:[#allocation30_spill] sm:$0xff]  ;;  %v2870_v8 = vperm.slane %v11801_v6, 0 }
 0x8b4   :  { %3559 = vst [vmem:[#allocation1 + $0x2] ss:$9 sm:$0xff] %v2840_v11  ;;  %v5085_v43 = vsub.f32 %v11795_v27, %v5754_v16  ;;  %v11796_v11 = vld [vmem:[#allocation120_spill] sm:$0xff]  ;;  %5271 = vmatpush.msrb.mxu3 %v5167_v3  ;;  %v2873_v16 = vperm.slane %v11801_v6, 3  ;;  %v2874_v27 = vperm.slane %v11801_v6, 4  ;;  %v2876_v3 = vperm.slane %v11801_v6, 6 }
 0x8b5   :  { %3560 = vst [vmem:[#allocation1 + $0x3] ss:$9 sm:$0xff] %v2841_v0  ;;  %v5084_v0 = vsub.f32 %v11796_v11, %v5755_v14 }
 0x8b6   :  { %3561 = vst [vmem:[#allocation1 + $0x4] ss:$9 sm:$0xff] %v2842_v31  ;;  %v11797_v31 = vld [vmem:[#allocation118_spill] sm:$0xff]  ;;  %v5165_v34 = vmul.f32 %v5085_v43, %v5085_v43  ;;  %5272 = vmatpush.msrb.mxu3 %v5166_v20  ;;  %v2875_v43 = vperm.slane %v11801_v6, 5 }
 0x8b7   :  { %3562 = vst [vmem:[#allocation1 + $0x5] ss:$9 sm:$0xff] %v2843_v61  ;;  %v5083_v61 = vsub.f32 %v11797_v31, %v5756_v13  ;;  %v5164_v30 = vmul.f32 %v5084_v0, %v5084_v0 }
 0x8b8   :  { %3563 = vst [vmem:[#allocation1 + $0x6] ss:$9 sm:$0xff] %v2844_v35  ;;  %5273 = vmatpush.msrb.mxu3 %v5165_v34  ;;  %v11803_v34 = vld [vmem:[#allocation93_spill] sm:$0xff] }
 0x8b9   :  { %3564 = vst [vmem:[#allocation1 + $0x7] ss:$9 sm:$0xff] %v2845_v45  ;;  %v5163_v35 = vmul.f32 %v5083_v61, %v5083_v61  ;;  %v4953_v45 = vpop.f32.mrf.mxu3 }
 0x8ba   :  { %5274 = vmatpush.msrb.mxu3 %v5164_v30  ;;  %v2887_v30 = vperm.slane %v11803_v34, 1 }
 0x8bc   :  { %5275 = vmatpush.msrb.mxu3 %v5163_v35 }
 0x8bd   :  { %5651 = vmatmul.msk.f32.vlgmr.msrb.gmra.mxu3 %vm4904_vm7, %v11588_v54  ;;  %v2860_v54 = vperm.slane %v11799_v25, 6  ;;  %v11804_v25 = vmov 0.0   ;;  %vm75_vm7 = vcmask 253952  }
 0x8be   :  { %74 = vst.msk [vmem:[#allocation2] sm:$0x1] %vm73_vm8, %v11804_v25 }
 0x8bf   :  { %76 = vst.msk [vmem:[#allocation3] sm:$0x1] %vm75_vm7, %v11804_v25 }
 0x8c0   :  { %v3565_v4 = vld [vmem:[#allocation1] sm:$0xff] }
 0x8c1   :  { %3846 = vperm.xlu1 %5672, %v3565_v4   ;;  %3566 = vst [vmem:[#allocation1] ss:$9 sm:$0xff] %v2846_v19  ;;  %v2871_v19 = vperm.slane %v11801_v6, 1  ;;  %v2872_v4 = vperm.slane %v11801_v6, 2  ;;  %v4993_v33 = vpop.f32.mrf.mxu3 }
 0x8c2   :  { %3567 = vst [vmem:[#allocation1 + $0x1] ss:$9 sm:$0xff] %v2847_v62 }
 0x8c3   :  { %3568 = vst [vmem:[#allocation1 + $0x2] ss:$9 sm:$0xff] %v2848_v52  ;;  %v2877_v52 = vperm.slane %v11801_v6, 7 }
 0x8c4   :  { %3569 = vst [vmem:[#allocation1 + $0x3] ss:$9 sm:$0xff] %v2849_v21  ;;  %v11802_v21 = vld [vmem:[#allocation45_spill] sm:$0xff] }
 0x8c5   :  { %3570 = vst [vmem:[#allocation1 + $0x4] ss:$9 sm:$0xff] %v2850_v59  ;;  %v2878_v14 = vperm.slane %v11802_v21, 0  ;;  %v2879_v11 = vperm.slane %v11802_v21, 1  ;;  %v2880_v20 = vperm.slane %v11802_v21, 2  ;;  %v2881_v59 = vperm.slane %v11802_v21, 3 }
 0x8c6   :  { %3571 = vst [vmem:[#allocation1 + $0x5] ss:$9 sm:$0xff] %v2851_v49  ;;  %v2882_v49 = vperm.slane %v11802_v21, 4  ;;  %v2883_v13 = vperm.slane %v11802_v21, 5  ;;  %v2884_v31 = vperm.slane %v11802_v21, 6  ;;  %v2885_v61 = vperm.slane %v11802_v21, 7  ;;  %v3784_v21 = vpop.permute.xlu1 %3783 }
 0x8c7   :  { %3572 = vst [vmem:[#allocation1 + $0x6] ss:$9 sm:$0xff] %v2852_v10  ;;  %v2886_v10 = vperm.slane %v11803_v34, 0  ;;  %v4915_v6 = vld [vmem:[#allocation2] sm:$0x1]  ;;  %v3997_v25 = vperm.slane %v3784_v21, %v10034_v9 }
 0x8c8   :  { %3573 = vst [vmem:[#allocation1 + $0x7] ss:$9 sm:$0xff] %v2853_v40  ;;  %v4933_v40 = vpop.f32.mrf.mxu2 }
 0x8cf   :  { %v3574_v15 = vld [vmem:[#allocation1] sm:$0xff] }
 0x8d0   :  { %3849 = vperm.xlu0 %5671, %v3574_v15   ;;  %3575 = vst [vmem:[#allocation1] ss:$9 sm:$0xff] %v2854_v47  ;;  %v2888_v47 = vperm.slane %v11803_v34, 2  ;;  %v2890_v15 = vperm.slane %v11803_v34, 4 }
 0x8d1   :  { %3576 = vst [vmem:[#allocation1 + $0x1] ss:$9 sm:$0xff] %v2855_v63  ;;  %v2889_v63 = vperm.slane %v11803_v34, 3 }
 0x8d2   :  { %3577 = vst [vmem:[#allocation1 + $0x2] ss:$9 sm:$0xff] %v2856_v32  ;;  %v2891_v32 = vperm.slane %v11803_v34, 5 }
 0x8d3   :  { %3578 = vst [vmem:[#allocation1 + $0x3] ss:$9 sm:$0xff] %v2857_v5  ;;  %v4954_v5 = vadd.f32 %v4953_v45, %v4933_v40 }
 0x8d4   :  { %3579 = vst [vmem:[#allocation1 + $0x4] ss:$9 sm:$0xff] %v2858_v37  ;;  %v2892_v37 = vperm.slane %v11803_v34, 6 }
 0x8d5   :  { %3580 = vst [vmem:[#allocation1 + $0x5] ss:$9 sm:$0xff] %v2859_v24  ;;  %v2893_v24 = vperm.slane %v11803_v34, 7 }
 0x8d6   :  { %3581 = vst [vmem:[#allocation1 + $0x6] ss:$9 sm:$0xff] %v2860_v54  ;;  %v4973_v54 = vpop.f32.mrf.mxu2 }
 0x8d7   :  { %3582 = vst [vmem:[#allocation1 + $0x7] ss:$9 sm:$0xff] %v2861_v12  ;;  %v4974_v12 = vadd.f32 %v4973_v54, %v4954_v5 }
 0x8de   :  { %v3583_v17 = vld [vmem:[#allocation1] sm:$0xff] }
 0x8df   :  { %3852 = vperm.xlu2 %5673, %v3583_v17   ;;  %3584 = vst [vmem:[#allocation1] ss:$9 sm:$0xff] %v2862_v7  ;;  %v4994_v7 = vadd.f32 %v4993_v33, %v4974_v12  ;;  %v5179_v12 = vld [vmem:[#allocation3] sm:$0x1] }
 0x8e0   :  { %3585 = vst [vmem:[#allocation1 + $0x1] ss:$9 sm:$0xff] %v2863_v18  ;;  %v11805_v18 = vld [vmem:[#allocation47_spill] sm:$0xff] }
 0x8e1   :  { %3586 = vst [vmem:[#allocation1 + $0x2] ss:$9 sm:$0xff] %v2864_v51  ;;  %v2894_v17 = vperm.slane %v11805_v18, 0  ;;  %v2895_v51 = vperm.slane %v11805_v18, 1 }
 0x8e2   :  { %3587 = vst [vmem:[#allocation1 + $0x3] ss:$9 sm:$0xff] %v2865_v39 }
 0x8e3   :  { %3588 = vst [vmem:[#allocation1 + $0x4] ss:$9 sm:$0xff] %v2866_v55  ;;  %v5013_v55 = vpop.f32.mrf.mxu2 }
 0x8e4   :  { %3589 = vst [vmem:[#allocation1 + $0x5] ss:$9 sm:$0xff] %v2867_v2  ;;  %v2896_v2 = vperm.slane %v11805_v18, 2 }
 0x8e5   :  { %3590 = vst [vmem:[#allocation1 + $0x6] ss:$9 sm:$0xff] %v2868_v57  ;;  %v5014_v57 = vadd.f32 %v5013_v55, %v4994_v7 }
 0x8e6   :  { %3591 = vst [vmem:[#allocation1 + $0x7] ss:$9 sm:$0xff] %v2869_v23  ;;  %v2897_v23 = vperm.slane %v11805_v18, 3 }
 0x8ed   :  { %v3592_v62 = vld [vmem:[#allocation1] sm:$0xff] }
 0x8ee   :  { %3855 = vperm.xlu1 %5672, %v3592_v62   ;;  %3593 = vst [vmem:[#allocation1] ss:$9 sm:$0xff] %v2870_v8  ;;  %v2898_v8 = vperm.slane %v11805_v18, 4  ;;  %v2900_v62 = vperm.slane %v11805_v18, 6 }
 0x8ef   :  { %3594 = vst [vmem:[#allocation1 + $0x1] ss:$9 sm:$0xff] %v2871_v19  ;;  %v2899_v19 = vperm.slane %v11805_v18, 5 }
 0x8f0   :  { %3595 = vst [vmem:[#allocation1 + $0x2] ss:$9 sm:$0xff] %v2872_v4  ;;  %v5016_v4 = vadd.f32 %v5014_v57, %v4915_v6 }
 0x8f1   :  { %3596 = vst [vmem:[#allocation1 + $0x3] ss:$9 sm:$0xff] %v2873_v16  ;;  %v2901_v16 = vperm.slane %v11805_v18, 7 }
 0x8f2   :  { %3597 = vst [vmem:[#allocation1 + $0x4] ss:$9 sm:$0xff] %v2874_v27 }
 0x8f3   :  { %3598 = vst [vmem:[#allocation1 + $0x5] ss:$9 sm:$0xff] %v2875_v43 }
 0x8f4   :  { %3599 = vst [vmem:[#allocation1 + $0x6] ss:$9 sm:$0xff] %v2876_v3  ;;  %v3781_v3 = vpop.permute.xlu2 %3780 }
 0x8f5   :  { %3600 = vst [vmem:[#allocation1 + $0x7] ss:$9 sm:$0xff] %v2877_v52  ;;  %v3787_v52 = vpop.permute.xlu0 %3786  ;;  %v3995_v18 = vperm.slane %v3781_v3, %v10037_v60 }
 0x8f6   :  { %5018 = vst.msk [vmem:[#allocation2] sm:$0x1] %vm73_vm8, %v5016_v4  ;;  %v3999_v6 = vperm.slane %v3787_v52, %v10094_v26 }
 0x8fc   :  { %v3601_v0 = vld [vmem:[#allocation1] sm:$0xff] }
 0x8fd   :  { %3858 = vperm.xlu0 %5671, %v3601_v0   ;;  %3602 = vst [vmem:[#allocation1] ss:$9 sm:$0xff] %v2878_v14  ;;  %v5286_v43 = vld [vmem:[#allocation2] sm:$0x1]  ;;  %v3790_v14 = vpop.permute.xlu2 %3789  ;;  %v3796_v0 = vpop.permute.xlu0 %3795 }
 0x8fe   :  { %3603 = vst [vmem:[#allocation1 + $0x1] ss:$9 sm:$0xff] %v2879_v11  ;;  %v3793_v11 = vpop.permute.xlu1 %3792  ;;  %v4001_v57 = vperm.slane %v3790_v14, %v10128_v42 }
 0x8ff   :  { %3604 = vst [vmem:[#allocation1 + $0x2] ss:$9 sm:$0xff] %v2880_v20 }
 0x900   :  { %3605 = vst [vmem:[#allocation1 + $0x3] ss:$9 sm:$0xff] %v2881_v59 }
 0x901   :  { %3606 = vst [vmem:[#allocation1 + $0x4] ss:$9 sm:$0xff] %v2882_v49  ;;  %v5197_v49 = vpop.f32.mrf.mxu3 }
 0x902   :  { %3607 = vst [vmem:[#allocation1 + $0x5] ss:$9 sm:$0xff] %v2883_v13 }
 0x903   :  { %3608 = vst [vmem:[#allocation1 + $0x6] ss:$9 sm:$0xff] %v2884_v31 }
 0x904   :  { %3609 = vst [vmem:[#allocation1 + $0x7] ss:$9 sm:$0xff] %v2885_v61  ;;  %v5217_v61 = vpop.f32.mrf.mxu2 }
 0x905   :  { %5287 = vst.msk [vmem:[%s10940_s6] sm:$0x1] %vm73_vm8, %v5286_v43  ;;  %v3799_v20 = vpop.permute.xlu2 %3798  ;;  %v10844_v13 = vpop.permute.xlu0 %3804  ;;  %v4003_v43 = vperm.slane %v3793_v11, %v10119_v41 }
 0x906   :  { %v10842_v59 = vpop.permute.xlu1 %3801 }
 0x90b   :  { %v3610_v35 = vld [vmem:[#allocation1] sm:$0xff] }
 0x90c   :  { %3861 = vperm.xlu2 %5673, %v3610_v35   ;;  %3611 = vst [vmem:[#allocation1] ss:$9 sm:$0xff] %v2886_v10  ;;  %v5237_v10 = vpop.f32.mrf.mxu3 }
 0x90d   :  { %3612 = vst [vmem:[#allocation1 + $0x1] ss:$9 sm:$0xff] %v2887_v30  ;;  %v10846_v31 = vpop.permute.xlu2 %3807  ;;  %v10850_v40 = vpop.permute.xlu0 %3813  ;;  %v5218_v30 = vadd.f32 %v5217_v61, %v5197_v49 }
 0x90e   :  { %3613 = vst [vmem:[#allocation1 + $0x2] ss:$9 sm:$0xff] %v2888_v47  ;;  %v10848_v34 = vpop.permute.xlu1 %3810 }
 0x90f   :  { %3614 = vst [vmem:[#allocation1 + $0x3] ss:$9 sm:$0xff] %v2889_v63  ;;  %v5238_v47 = vadd.f32 %v5237_v10, %v5218_v30  ;;  %v5257_v63 = vpop.f32.mrf.mxu2 }
 0x910   :  { %3615 = vst [vmem:[#allocation1 + $0x4] ss:$9 sm:$0xff] %v2890_v15 }
 0x911   :  { %3616 = vst [vmem:[#allocation1 + $0x5] ss:$9 sm:$0xff] %v2891_v32  ;;  %v5258_v5 = vadd.f32 %v5257_v63, %v5238_v47 }
 0x912   :  { %3617 = vst [vmem:[#allocation1 + $0x6] ss:$9 sm:$0xff] %v2892_v37 }
 0x913   :  { %3618 = vst [vmem:[#allocation1 + $0x7] ss:$9 sm:$0xff] %v2893_v24 }
 0x915   :  { %v10852_v35 = vpop.permute.xlu2 %3816  ;;  %v3823_v32 = vpop.permute.xlu0 %3822 }
 0x916   :  { %v10854_v45 = vpop.permute.xlu1 %3819 }
 0x91a   :  { %v3619_v39 = vld [vmem:[#allocation1] sm:$0xff] }
 0x91b   :  { %3864 = vperm.xlu1 %5672, %v3619_v39   ;;  %3620 = vst [vmem:[#allocation1] ss:$9 sm:$0xff] %v2894_v17 }
 0x91c   :  { %3621 = vst [vmem:[#allocation1 + $0x1] ss:$9 sm:$0xff] %v2895_v51  ;;  %v3996_v51 = vsel %vm3876_vm2, %v3995_v18, %v10688_v1 }
 0x91d   :  { %3622 = vst [vmem:[#allocation1 + $0x2] ss:$9 sm:$0xff] %v2896_v2  ;;  %v3826_v54 = vpop.permute.xlu2 %3825  ;;  %v3832_v7 = vpop.permute.xlu0 %3831  ;;  %v3998_v2 = vsel %vm3880_vm12, %v3997_v25, %v3996_v51  ;;  %v4019_v51 = vperm.slane %v10852_v35, %v10358_v38 }
 0x91e   :  { %3623 = vst [vmem:[#allocation1 + $0x3] ss:$9 sm:$0xff] %v2897_v23  ;;  %v3829_v24 = vpop.permute.xlu1 %3828  ;;  %v4000_v1 = vsel %vm3884_vm13, %v3999_v6, %v3998_v2  ;;  %v4024_v4 = vperm.slane %v3826_v54, %v10013_v53 }
 0x91f   :  { %3624 = vst [vmem:[#allocation1 + $0x4] ss:$9 sm:$0xff] %v2898_v8  ;;  %v4023_v8 = vperm.slane %v3823_v32, %v6177_v22  ;;  %v4007_v22 = vperm.slane %v3799_v20, %v10201_v29  ;;  %v4009_v20 = vperm.slane %v10842_v59, %v10185_v46  ;;  %v4011_v59 = vperm.slane %v10844_v13, %v10218_v44 }
 0x920   :  { %3625 = vst [vmem:[#allocation1 + $0x5] ss:$9 sm:$0xff] %v2899_v19  ;;  %v4026_v19 = vperm.slane %v3829_v24, %v10037_v60  ;;  %v4005_v60 = vperm.slane %v3796_v0, %v10140_v48 }
 0x921   :  { %3626 = vst [vmem:[#allocation1 + $0x6] ss:$9 sm:$0xff] %v2900_v62  ;;  %v4002_v62 = vsel %vm3888_vm11, %v4001_v57, %v4000_v1  ;;  %v4025_v21 = vsel %vm3872_vm0, %v4024_v4, %v4023_v8  ;;  %vm11806_vm0 = vcmask 917312  }
 0x922   :  { %3627 = vst [vmem:[#allocation1 + $0x7] ss:$9 sm:$0xff] %v2901_v16  ;;  %v4028_v16 = vperm.slane %v3832_v7, %v10034_v9  ;;  %v4004_v52 = vsel %vm3892_vm6, %v4003_v43, %v4002_v62  ;;  %v4027_v14 = vsel %vm3876_vm2, %v4026_v19, %v4025_v21  ;;  %vm11807_vm2 = vcmask 982912  }
 0x923   :  { %v4006_v10 = vsel %vm3896_vm1, %v4005_v60, %v4004_v52  ;;  %v11812_v62 = vlaneseq }
 0x924   :  { %v4029_v49 = vsel %vm3880_vm12, %v4028_v16, %v4027_v14  ;;  %v4008_v30 = vsel %vm3900_vm5, %v4007_v22, %v4006_v10  ;;  %vm11808_vm12 = vcmask 1048512  }
 0x925   :  { %v3835_v39 = vpop.permute.xlu2 %3834  ;;  %v3841_v23 = vpop.permute.xlu0 %3840 }
 0x926   :  { %v3838_v17 = vpop.permute.xlu1 %3837  ;;  %v4030_v9 = vperm.slane %v3835_v39, %v10094_v26  ;;  %v4034_v11 = vperm.slane %v3841_v23, %v10119_v41  ;;  %v4010_v26 = vsel %vm3904_vm10, %v4009_v20, %v4008_v30  ;;  %v4013_v41 = vperm.slane %v10846_v31, %v10263_v36 }
 0x927   :  { %v4032_v53 = vperm.slane %v3838_v17, %v10128_v42 }
 0x928   :  { %v4031_v47 = vsel %vm3884_vm13, %v4030_v9, %v4029_v49  ;;  %vm11809_vm13 = vmmov %vm11806_vm0 }
 0x929   :  { %v3628_v27 = vld [vmem:[#allocation1] sm:$0xff]  ;;  %v4033_v0 = vsel %vm3888_vm11, %v4032_v53, %v4031_v47  ;;  %vm11810_vm11 = vmmov %vm11807_vm2 }
 0x92a   :  { %3867 = vperm.xlu0 %5671, %v3628_v27  }
 0x92d   :  { %v3844_v3 = vpop.permute.xlu2 %3843 }
 0x933   :  { %v3847_v27 = vpop.permute.xlu1 %3846 }
 0x934   :  { %v4038_v32 = vperm.slane %v3847_v27, %v10201_v29 }
 0x939   :  { %v3853_v42 = vpop.permute.xlu2 %3852 }
 0x940   :  { %v5277_v15 = vpop.f32.mrf.mxu3 }
 0x941   :  { %v5278_v37 = vadd.f32 %v5277_v15, %v5258_v5  ;;  %v4035_v15 = vsel %vm3892_vm6, %v4034_v11, %v4033_v0  ;;  %v4036_v5 = vperm.slane %v3844_v3, %v10140_v48  ;;  %v4015_v48 = vperm.slane %v10848_v34, %v10255_v50 }
 0x942   :  { %v3850_v61 = vpop.permute.xlu0 %3849  ;;  %vm4062_vm6 = vcmask 1043459  }
 0x943   :  { %v5280_v33 = vadd.f32 %v5278_v37, %v5179_v12  ;;  %v4040_v37 = vperm.slane %v3850_v61, %v10185_v46  ;;  %v4037_v24 = vsel %vm3896_vm1, %v4036_v5, %v4035_v15  ;;  %v4012_v12 = vsel %vm3908_vm15, %v4011_v59, %v4010_v26  ;;  %vm11811_vm1 = vmmov %vm11808_vm12 }
 0x944   :  { %v4014_v29 = vsel %vm3912_vm9, %v4013_v41, %v4012_v12  ;;  %v4042_v46 = vperm.slane %v3853_v42, %v10218_v44 }
 0x945   :  { %5282 = vst.msk [vmem:[#allocation3] sm:$0x1] %vm75_vm7, %v5280_v33  ;;  %v4039_v33 = vsel %vm3900_vm5, %v4038_v32, %v4037_v24  ;;  %v4016_v17 = vsel %vm3916_vm3, %v4015_v48, %v4014_v29  ;;  %vm4064_vm5 = vcmask 1042432  }
 0x946   :  { %v4041_v7 = vsel %vm3904_vm10, %v4040_v37, %v4039_v33  ;;  %vm4068_vm10 = vcmp.lt.s32.totalorder %v11812_v62, 640 }
 0x947   :  { %v4043_v25 = vsel %vm3908_vm15, %v4042_v46, %v4041_v7 }
 0x94c   :  { %v5288_v55 = vld [vmem:[#allocation3] sm:$0x1] }
 0x94d   :  { %5289 = vst.msk [vmem:[%s10941_s7] sm:$0x1] %vm75_vm7, %v5288_v55  ;;  %v4017_v55 = vperm.slane %v10850_v40, %v10345_v58 }
 0x94f   :  { %v4018_v2 = vsel %vm11806_vm0, %v4017_v55, %v4016_v17 }
 0x950   :  { %v4020_v35 = vsel %vm11807_vm2, %v4019_v51, %v4018_v2 }
 0x960   :  { %v3856_v63 = vpop.permute.xlu1 %3855 }
 0x961   :  { %v4044_v31 = vperm.slane %v3856_v63, %v10263_v36  ;;  %v4021_v36 = vperm.slane %v10854_v45, %v10354_v56 }
 0x963   :  { %v4045_v34 = vsel %vm3912_vm9, %v4044_v31, %v4043_v25  ;;  %v4022_v6 = vsel %vm11808_vm12, %v4021_v36, %v4020_v35 }
 0x964   :  { %v4056_v19 = vrot.slane %v4022_v6, 5 }
 0x966   :  { %v3862_v39 = vpop.permute.xlu2 %3861 }
 0x967   :  { %v4048_v57 = vperm.slane %v3862_v39, %v10345_v58 }
 0x96f   :  { %v3859_v54 = vpop.permute.xlu0 %3858 }
 0x970   :  { %v4046_v13 = vperm.slane %v3859_v54, %v10255_v50 }
 0x972   :  { %v4047_v44 = vsel %vm3916_vm3, %v4046_v13, %v4045_v34 }
 0x973   :  { %v4049_v40 = vsel %vm11809_vm13, %v4048_v57, %v4047_v44 }
 0x98d   :  { %v3865_v18 = vpop.permute.xlu1 %3864 }
 0x98e   :  { %v4050_v50 = vperm.slane %v3865_v18, %v10358_v38 }
 0x990   :  { %v4051_v45 = vsel %vm11810_vm11, %v4050_v50, %v4049_v40 }
 0x99c   :  { %v3868_v23 = vpop.permute.xlu0 %3867 }
 0x99d   :  { %v4052_v8 = vperm.slane %v3868_v23, %v10354_v56 }
 0x99f   :  { %v4053_v1 = vsel %vm11811_vm1, %v4052_v8, %v4051_v45 }
 0x9a0   :  { %v4057_v38 = vrot.slane %v4053_v1, 4 }
 0x9a2   :  { %v4063_v58 = vsel %vm4062_vm6, %v4056_v19, %v4057_v38 }
 0x9a3   :  { %v4065_v4 = vsel %vm4064_vm5, %v10692_v28, %v4063_v58 }
 0x9a4   :  { %4070 = vst.msk [vmem:[%s10942_s5] sm:$0x1f] %vm4068_vm10, %v4065_v4 }

</bundles_post_ra>
